<compile_context>
chip_gen: v5e
topology: v5e:2x2
jax: 0.10.0
libtpu: 0.0.40
codegen_flags: <defaults>
</compile_context>

<pallas_src>
import jax
import jax.numpy as jnp
from jax.experimental import pallas as pl
from jax.experimental.pallas import tpu as pltpu

EPS = 1e-5


# ----------------------------- Pallas kernels ------------------------------ #

def _conv3x3_bn_relu(act, w_ref, shift_ref, W, M):
    """3x3 conv (stride 1, pad 1) + folded-BN shift + ReLU on a padded-flat activation.

    act:       (P, Cin) f32 value; row j <-> zero-padded spatial position
               (j // (W+2), j % (W+2)); padding rows/cols hold zeros.
    w_ref:     (9, Cin, Cout) bf16 ref, taps ordered (dy, dx); BN scale pre-folded.
    shift_ref: (1, Cout) f32 ref (folded BN shift).
    returns    (M, Cout) f32 "frame": row m <-> output pixel (m // (W+2), m % (W+2));
               rows with (m % (W+2)) >= W are garbage and must be masked by the caller.
    """
    cin = act.shape[1]
    cout = w_ref.shape[-1]
    acc = jnp.zeros((M, cout), jnp.float32)
    for t in range(9):
        dy, dx = divmod(t, 3)
        off = dy * (W + 2) + dx
        a_t = act[off:off + M, :]
        if cin == 1:
            # K=1 "matmul" is just a broadcasted multiply -> keep it on the VPU.
            acc = acc + a_t * w_ref[t].astype(jnp.float32)
        else:
            acc = acc + jnp.dot(a_t.astype(jnp.bfloat16), w_ref[t],
                                preferred_element_type=jnp.float32)
    return jnp.maximum(acc + shift_ref[...], 0.0)


def make_double_conv_kernel(H, W, final_gap):
    """Fused DoubleConv kernel (one batch element per grid step)."""
    P = (H + 2) * (W + 2) + 2   # padded-flat rows (+2 slack so every tap slice is in bounds)
    M = H * (W + 2)             # output frame rows
    j0 = W + 3                  # frame row 0 <-> padded position (1, 1)

    def kernel(a_ref, w1_ref, b1_ref, w2_ref, b2_ref, mask_ref, o_ref, mid_ref):
        mask = mask_ref[...]                                           # (M, 1), 1.0 on real pixels
        # conv1 + BN + ReLU; zero the garbage frame rows so they become conv2's zero padding.
        y1 = _conv3x3_bn_relu(a_ref[0], w1_ref, b1_ref, W, M) * mask   # (M, Cmid) f32
        # Rebuild the padded-flat layout for conv2 in VMEM scratch (never touches HBM).
        mid_ref[...] = jnp.zeros(mid_ref.shape, mid_ref.dtype)
        mid_ref[j0:j0 + M, :] = y1
        # conv2 + BN + ReLU
        y2 = _conv3x3_bn_relu(mid_ref[...], w2_ref, b2_ref, W, M)      # (M, Cout) f32
        if final_gap:
            # Fused AdaptiveAvgPool2d(1): masked mean over the H*W real pixels.
            o_ref[0] = (jnp.sum(y2 * mask, axis=0, keepdims=True) /
                        float(H * W)).astype(o_ref.dtype)
        else:
            o_ref[0] = y2.astype(o_ref.dtype)

    return kernel


# ------------------------------ JAX wrappers -------------------------------- #

def double_conv_stage(x, w1, b1, w2, b2, *, final_gap=False):
    """DoubleConv on NHWC input x: (N, H, W, Cin) f32.

    Returns (N, H, W, Cout) f32, or (N, Cout) f32 when final_gap=True (fused global avg-pool).
    """
    N, H, W, Cin = x.shape
    Cmid = w1.shape[-1]
    Cout = w2.shape[-1]
    P = (H + 2) * (W + 2) + 2
    M = H * (W + 2)

    # Padded-flat activation: zero-pad the spatial border, flatten spatial, add 2 slack rows.
    xp = jnp.pad(x, ((0, 0), (1, 1), (1, 1), (0, 0))).reshape(N, (H + 2) * (W + 2), Cin)
    a = jnp.pad(xp, ((0, 0), (0, 2), (0, 0)))                                  # (N, P, Cin)
    # Frame-row validity mask (constant-folded by XLA): real pixel iff (m % (W+2)) < W.
    mask = ((jnp.arange(M) % (W + 2)) < W).astype(jnp.float32)[:, None]        # (M, 1)

    if final_gap:
        out_shape = jax.ShapeDtypeStruct((N, 1, Cout), jnp.float32)
        out_spec = pl.BlockSpec((1, 1, Cout), lambda n: (n, 0, 0))
        out_bytes = N * Cout * 4
    else:
        out_shape = jax.ShapeDtypeStruct((N, M, Cout), jnp.float32)
        out_spec = pl.BlockSpec((1, M, Cout), lambda n: (n, 0, 0))
        out_bytes = N * M * Cout * 4

    cost = pl.CostEstimate(
        flops=int(2 * N * M * 9 * (Cin * Cmid + Cmid * Cout)),
        transcendentals=0,
        bytes_accessed=int(a.size * 4 + w1.size * 2 + w2.size * 2 +
                           (b1.size + b2.size + mask.size) * 4 + out_bytes),
    )

    out = pl.pallas_call(
        make_double_conv_kernel(H, W, final_gap),
        out_shape=out_shape,
        grid=(N,),
        in_specs=[
            pl.BlockSpec((1, P, Cin), lambda n: (n, 0, 0)),
            pl.BlockSpec((9, Cin, Cmid), lambda n: (0, 0, 0)),   # grid-invariant -> DMA'd once
            pl.BlockSpec((1, Cmid), lambda n: (0, 0)),
            pl.BlockSpec((9, Cmid, Cout), lambda n: (0, 0, 0)),
            pl.BlockSpec((1, Cout), lambda n: (0, 0)),
            pl.BlockSpec((M, 1), lambda n: (0, 0)),
        ],
        out_specs=out_spec,
        scratch_shapes=[pltpu.VMEM((P, Cmid), jnp.float32)],
        compiler_params=pltpu.CompilerParams(dimension_semantics=("parallel",)),
        cost_estimate=cost,
    )(a, w1, b1, w2, b2, mask)

    if final_gap:
        return out.reshape(N, Cout)
    # Frame -> NHWC: frame row m = h*(W+2) + w; keep the w < W columns.
    return out.reshape(N, H, W + 2, Cout)[:, :, :W, :]


def maxpool2x2(x):
    """nn.MaxPool2d(kernel_size=2, stride=2) on NHWC (floors odd sizes like PyTorch)."""
    N, H, W, C = x.shape
    Ho, Wo = H // 2, W // 2
    x = x[:, :Ho * 2, :Wo * 2, :]
    return jnp.max(x.reshape(N, Ho, 2, Wo, 2, C), axis=(2, 4))


def cnn_forward(x_nchw, params):
    """CNN.forward (eval mode). Input NCHW; output (N, 2*features[-1], 1, 1) f32."""
    x = jnp.transpose(x_nchw, (0, 2, 3, 1)).astype(jnp.float32)    # NCHW -> NHWC
    for p in params["convs"]:
        x = double_conv_stage(x, p["w1"], p["b1"], p["w2"], p["b2"])
        x = maxpool2x2(x)
    p = params["bottleneck"]
    pooled = double_conv_stage(x, p["w1"], p["b1"], p["w2"], p["b2"], final_gap=True)
    return pooled[:, :, None, None]                                 # (N, Cout, 1, 1)


# ------------------------- parameters (BN folded) --------------------------- #

def _fold_conv_bn(w_hwio, gamma, beta, mean, var):
    """Fold eval-mode BatchNorm into a bias-free 3x3 conv.

    NOTE: real PyTorch Conv2d weights are (Cout, Cin, kH, kW); permute to (kH, kW, Cin, Cout)
    (HWIO) before calling this so the (dy, dx, cin) tap ordering matches the kernel.
    """
    scale = gamma / jnp.sqrt(var + EPS)                  # (Cout,)
    shift = beta - mean * scale
    kh, kw, cin, cout = w_hwio.shape
    w = (w_hwio * scale).reshape(kh * kw, cin, cout).astype(jnp.bfloat16)
    return w, shift.reshape(1, cout).astype(jnp.float32)


def init_double_conv(key, cin, cout):
    k = jax.random.split(key, 10)

    def bn_params(keys, c):
        gamma = 1.0 + 0.1 * jax.random.normal(keys[0], (c,), jnp.float32)
        beta = 0.1 * jax.random.normal(keys[1], (c,), jnp.float32)
        mean = 0.1 * jax.random.normal(keys[2], (c,), jnp.float32)
        var = 1.0 + 0.1 * jnp.abs(jax.random.normal(keys[3], (c,), jnp.float32))
        return gamma, beta, mean, var

    w1 = jax.random.normal(k[0], (3, 3, cin, cout), jnp.float32) * (2.0 / (9 * cin)) ** 0.5
    w2 = jax.random.normal(k[1], (3, 3, cout, cout), jnp.float32) * (2.0 / (9 * cout)) ** 0.5
    w1f, b1 = _fold_conv_bn(w1, *bn_params(k[2:6], cout))
    w2f, b2 = _fold_conv_bn(w2, *bn_params(k[6:10], cout))
    return {"w1": w1f, "b1": b1, "w2": w2f, "b2": b2}


def init_cnn(key, features, in_channels):
    keys = jax.random.split(key, len(features) + 1)
    params = {"convs": []}
    cin = in_channels
    for i, f in enumerate(features):
        params["convs"].append(init_double_conv(keys[i], cin, f))
        cin = f
    params["bottleneck"] = init_double_conv(keys[-1], features[-1], features[-1] * 2)
    return params


# ------------------------ pure-XLA reference (check) ------------------------ #

def _ref_forward(x_nchw, params):
    """f32 XLA reference using the same folded weights (numerical self-check only)."""
    def conv_bn_relu(x, w9, shift):
        _, cin, cout = w9.shape
        w = w9.astype(jnp.float32).reshape(3, 3, cin, cout)
        y = jax.lax.conv_general_dilated(
            x, w, window_strides=(1, 1), padding="SAME",
            dimension_numbers=("NHWC", "HWIO", "NHWC"),
            precision=jax.lax.Precision.HIGHEST)
        return jnp.maximum(y + shift.reshape(1, 1, 1, cout), 0.0)

    x = jnp.transpose(x_nchw, (0, 2, 3, 1)).astype(jnp.float32)
    for p in params["convs"]:
        x = conv_bn_relu(conv_bn_relu(x, p["w1"], p["b1"]), p["w2"], p["b2"])
        x = maxpool2x2(x)
    p = params["bottleneck"]
    x = conv_bn_relu(conv_bn_relu(x, p["w1"], p["b1"]), p["w2"], p["b2"])
    return jnp.mean(x, axis=(1, 2))[:, :, None, None]


# ---------------------------------- main ------------------------------------ #

if __name__ == "__main__":
    key = jax.random.PRNGKey(0)
    k_params, k_input = jax.random.split(key)

    features = [4, 8]
    in_channels = 1
    N, H, W = 2, 16, 16

    params = init_cnn(k_params, features, in_channels)
    x = jax.random.normal(k_input, (N, in_channels, H, W), jnp.float32)   # NCHW

    fwd = jax.jit(lambda inp: cnn_forward(inp, params))
    out = jax.block_until_ready(fwd(x))

    assert out.shape == (N, features[-1] * 2, 1, 1), out.shape
    assert out.dtype == jnp.float32

    # Loose-tolerance check against a pure-XLA f32 reference (bf16 matmul operands in the kernel).
    ref = _ref_forward(x, params)
    err = float(jnp.max(jnp.abs(out - ref)))
    assert err < 5e-2, f"kernel/reference mismatch: max abs err = {err}"

    print("KERNEL_OK")
</pallas_src>

<mosaic_0001>
module attributes {stable_mosaic.version = 11 : i64} {
  func.func @kernel(%arg0: i32, %arg1: memref<1x326x1xf32, #tpu.memory_space<vmem>>, %arg2: memref<9x1x4xbf16, #tpu.memory_space<vmem>>, %arg3: memref<1x4xf32, #tpu.memory_space<vmem>>, %arg4: memref<9x4x4xbf16, #tpu.memory_space<vmem>>, %arg5: memref<1x4xf32, #tpu.memory_space<vmem>>, %arg6: memref<288x1xf32, #tpu.memory_space<vmem>>, %arg7: memref<1x288x4xf32, #tpu.memory_space<vmem>>, %arg8: memref<326x4xf32, #tpu.memory_space<vmem>>) attributes {dimension_semantics = [#tpu.dimension_semantics<parallel>], iteration_bounds = array<i64: 2>, scalar_prefetch = 0 : i64, scratch_operands = 1 : i64, tpu.core_type = #tpu.core_type<tc>, window_params = [{transform_indices = @transform_0, window_bounds = array<i64: 1, 326, 1>}, {pipeline_mode = #tpu.pipeline_mode<synchronous>, transform_indices = @transform_1, window_bounds = array<i64: 9, 1, 4>}, {pipeline_mode = #tpu.pipeline_mode<synchronous>, transform_indices = @transform_2, window_bounds = array<i64: 1, 4>}, {pipeline_mode = #tpu.pipeline_mode<synchronous>, transform_indices = @transform_3, window_bounds = array<i64: 9, 4, 4>}, {pipeline_mode = #tpu.pipeline_mode<synchronous>, transform_indices = @transform_4, window_bounds = array<i64: 1, 4>}, {pipeline_mode = #tpu.pipeline_mode<synchronous>, transform_indices = @transform_5, window_bounds = array<i64: 288, 1>}, {transform_indices = @transform_6, window_bounds = array<i64: 1, 288, 4>}]} {
    %c0 = arith.constant 0 : index
    %c0_0 = arith.constant 0 : index
    %0 = vector.load %arg6[%c0, %c0_0] : memref<288x1xf32, #tpu.memory_space<vmem>>, vector<288x1xf32>
    %c0_1 = arith.constant 0 : index
    %c0_2 = arith.constant 0 : index
    %c0_3 = arith.constant 0 : index
    %1 = vector.load %arg1[%c0_1, %c0_2, %c0_3] : memref<1x326x1xf32, #tpu.memory_space<vmem>>, vector<1x326x1xf32>
    %2 = vector.shape_cast %1 : vector<1x326x1xf32> to vector<326x1xf32>
    %cst = arith.constant 0.000000e+00 : f32
    %3 = vector.broadcast %cst : f32 to vector<288x4xf32>
    %4 = vector.extract_strided_slice %2 {offsets = [0, 0], sizes = [288, 1], strides = [1, 1]} : vector<326x1xf32> to vector<288x1xf32>
    %c0_4 = arith.constant 0 : index
    %c0_5 = arith.constant 0 : index
    %c0_6 = arith.constant 0 : index
    %5 = vector.load %arg2[%c0_4, %c0_5, %c0_6] : memref<9x1x4xbf16, #tpu.memory_space<vmem>>, vector<1x1x4xbf16>
    %6 = vector.shape_cast %5 : vector<1x1x4xbf16> to vector<1x4xbf16>
    %7 = arith.extf %6 : vector<1x4xbf16> to vector<1x4xf32>
    %8 = vector.broadcast %4 : vector<288x1xf32> to vector<288x4xf32>
    %9 = vector.broadcast %7 : vector<1x4xf32> to vector<288x4xf32>
    %10 = arith.mulf %8, %9 : vector<288x4xf32>
    %11 = arith.addf %3, %10 : vector<288x4xf32>
    %12 = vector.extract_strided_slice %2 {offsets = [1, 0], sizes = [288, 1], strides = [1, 1]} : vector<326x1xf32> to vector<288x1xf32>
    %c1 = arith.constant 1 : index
    %c0_7 = arith.constant 0 : index
    %c0_8 = arith.constant 0 : index
    %13 = vector.load %arg2[%c1, %c0_7, %c0_8] : memref<9x1x4xbf16, #tpu.memory_space<vmem>>, vector<1x1x4xbf16>
    %14 = vector.shape_cast %13 : vector<1x1x4xbf16> to vector<1x4xbf16>
    %15 = arith.extf %14 : vector<1x4xbf16> to vector<1x4xf32>
    %16 = vector.broadcast %12 : vector<288x1xf32> to vector<288x4xf32>
    %17 = vector.broadcast %15 : vector<1x4xf32> to vector<288x4xf32>
    %18 = arith.mulf %16, %17 : vector<288x4xf32>
    %19 = arith.addf %11, %18 : vector<288x4xf32>
    %20 = vector.extract_strided_slice %2 {offsets = [2, 0], sizes = [288, 1], strides = [1, 1]} : vector<326x1xf32> to vector<288x1xf32>
    %c2 = arith.constant 2 : index
    %c0_9 = arith.constant 0 : index
    %c0_10 = arith.constant 0 : index
    %21 = vector.load %arg2[%c2, %c0_9, %c0_10] : memref<9x1x4xbf16, #tpu.memory_space<vmem>>, vector<1x1x4xbf16>
    %22 = vector.shape_cast %21 : vector<1x1x4xbf16> to vector<1x4xbf16>
    %23 = arith.extf %22 : vector<1x4xbf16> to vector<1x4xf32>
    %24 = vector.broadcast %20 : vector<288x1xf32> to vector<288x4xf32>
    %25 = vector.broadcast %23 : vector<1x4xf32> to vector<288x4xf32>
    %26 = arith.mulf %24, %25 : vector<288x4xf32>
    %27 = arith.addf %19, %26 : vector<288x4xf32>
    %28 = vector.extract_strided_slice %2 {offsets = [18, 0], sizes = [288, 1], strides = [1, 1]} : vector<326x1xf32> to vector<288x1xf32>
    %c3 = arith.constant 3 : index
    %c0_11 = arith.constant 0 : index
    %c0_12 = arith.constant 0 : index
    %29 = vector.load %arg2[%c3, %c0_11, %c0_12] : memref<9x1x4xbf16, #tpu.memory_space<vmem>>, vector<1x1x4xbf16>
    %30 = vector.shape_cast %29 : vector<1x1x4xbf16> to vector<1x4xbf16>
    %31 = arith.extf %30 : vector<1x4xbf16> to vector<1x4xf32>
    %32 = vector.broadcast %28 : vector<288x1xf32> to vector<288x4xf32>
    %33 = vector.broadcast %31 : vector<1x4xf32> to vector<288x4xf32>
    %34 = arith.mulf %32, %33 : vector<288x4xf32>
    %35 = arith.addf %27, %34 : vector<288x4xf32>
    %36 = vector.extract_strided_slice %2 {offsets = [19, 0], sizes = [288, 1], strides = [1, 1]} : vector<326x1xf32> to vector<288x1xf32>
    %c4 = arith.constant 4 : index
    %c0_13 = arith.constant 0 : index
    %c0_14 = arith.constant 0 : index
    %37 = vector.load %arg2[%c4, %c0_13, %c0_14] : memref<9x1x4xbf16, #tpu.memory_space<vmem>>, vector<1x1x4xbf16>
    %38 = vector.shape_cast %37 : vector<1x1x4xbf16> to vector<1x4xbf16>
    %39 = arith.extf %38 : vector<1x4xbf16> to vector<1x4xf32>
    %40 = vector.broadcast %36 : vector<288x1xf32> to vector<288x4xf32>
    %41 = vector.broadcast %39 : vector<1x4xf32> to vector<288x4xf32>
    %42 = arith.mulf %40, %41 : vector<288x4xf32>
    %43 = arith.addf %35, %42 : vector<288x4xf32>
    %44 = vector.extract_strided_slice %2 {offsets = [20, 0], sizes = [288, 1], strides = [1, 1]} : vector<326x1xf32> to vector<288x1xf32>
    %c5 = arith.constant 5 : index
    %c0_15 = arith.constant 0 : index
    %c0_16 = arith.constant 0 : index
    %45 = vector.load %arg2[%c5, %c0_15, %c0_16] : memref<9x1x4xbf16, #tpu.memory_space<vmem>>, vector<1x1x4xbf16>
    %46 = vector.shape_cast %45 : vector<1x1x4xbf16> to vector<1x4xbf16>
    %47 = arith.extf %46 : vector<1x4xbf16> to vector<1x4xf32>
    %48 = vector.broadcast %44 : vector<288x1xf32> to vector<288x4xf32>
    %49 = vector.broadcast %47 : vector<1x4xf32> to vector<288x4xf32>
    %50 = arith.mulf %48, %49 : vector<288x4xf32>
    %51 = arith.addf %43, %50 : vector<288x4xf32>
    %52 = vector.extract_strided_slice %2 {offsets = [36, 0], sizes = [288, 1], strides = [1, 1]} : vector<326x1xf32> to vector<288x1xf32>
    %c6 = arith.constant 6 : index
    %c0_17 = arith.constant 0 : index
    %c0_18 = arith.constant 0 : index
    %53 = vector.load %arg2[%c6, %c0_17, %c0_18] : memref<9x1x4xbf16, #tpu.memory_space<vmem>>, vector<1x1x4xbf16>
    %54 = vector.shape_cast %53 : vector<1x1x4xbf16> to vector<1x4xbf16>
    %55 = arith.extf %54 : vector<1x4xbf16> to vector<1x4xf32>
    %56 = vector.broadcast %52 : vector<288x1xf32> to vector<288x4xf32>
    %57 = vector.broadcast %55 : vector<1x4xf32> to vector<288x4xf32>
    %58 = arith.mulf %56, %57 : vector<288x4xf32>
    %59 = arith.addf %51, %58 : vector<288x4xf32>
    %60 = vector.extract_strided_slice %2 {offsets = [37, 0], sizes = [288, 1], strides = [1, 1]} : vector<326x1xf32> to vector<288x1xf32>
    %c7 = arith.constant 7 : index
    %c0_19 = arith.constant 0 : index
    %c0_20 = arith.constant 0 : index
    %61 = vector.load %arg2[%c7, %c0_19, %c0_20] : memref<9x1x4xbf16, #tpu.memory_space<vmem>>, vector<1x1x4xbf16>
    %62 = vector.shape_cast %61 : vector<1x1x4xbf16> to vector<1x4xbf16>
    %63 = arith.extf %62 : vector<1x4xbf16> to vector<1x4xf32>
    %64 = vector.broadcast %60 : vector<288x1xf32> to vector<288x4xf32>
    %65 = vector.broadcast %63 : vector<1x4xf32> to vector<288x4xf32>
    %66 = arith.mulf %64, %65 : vector<288x4xf32>
    %67 = arith.addf %59, %66 : vector<288x4xf32>
    %68 = vector.extract_strided_slice %2 {offsets = [38, 0], sizes = [288, 1], strides = [1, 1]} : vector<326x1xf32> to vector<288x1xf32>
    %c8 = arith.constant 8 : index
    %c0_21 = arith.constant 0 : index
    %c0_22 = arith.constant 0 : index
    %69 = vector.load %arg2[%c8, %c0_21, %c0_22] : memref<9x1x4xbf16, #tpu.memory_space<vmem>>, vector<1x1x4xbf16>
    %70 = vector.shape_cast %69 : vector<1x1x4xbf16> to vector<1x4xbf16>
    %71 = arith.extf %70 : vector<1x4xbf16> to vector<1x4xf32>
    %72 = vector.broadcast %68 : vector<288x1xf32> to vector<288x4xf32>
    %73 = vector.broadcast %71 : vector<1x4xf32> to vector<288x4xf32>
    %74 = arith.mulf %72, %73 : vector<288x4xf32>
    %75 = arith.addf %67, %74 : vector<288x4xf32>
    %c0_23 = arith.constant 0 : index
    %c0_24 = arith.constant 0 : index
    %76 = vector.load %arg3[%c0_23, %c0_24] : memref<1x4xf32, #tpu.memory_space<vmem>>, vector<1x4xf32>
    %77 = vector.broadcast %76 : vector<1x4xf32> to vector<288x4xf32>
    %78 = arith.addf %75, %77 : vector<288x4xf32>
    %cst_25 = arith.constant 0.000000e+00 : f32
    %79 = vector.broadcast %cst_25 : f32 to vector<288x4xf32>
    %80 = arith.maximumf %78, %79 : vector<288x4xf32>
    %81 = vector.broadcast %0 : vector<288x1xf32> to vector<288x4xf32>
    %82 = arith.mulf %80, %81 : vector<288x4xf32>
    %cst_26 = arith.constant 0.000000e+00 : f32
    %83 = vector.broadcast %cst_26 : f32 to vector<326x4xf32>
    %c0_27 = arith.constant 0 : index
    %c0_28 = arith.constant 0 : index
    %84 = vector.load %arg8[%c0_27, %c0_28] : memref<326x4xf32, #tpu.memory_space<vmem>>, vector<326x4xf32>
    tpu.vector_store %arg8[%c0_27, %c0_28], %83 {strides = array<i32>} : memref<326x4xf32, #tpu.memory_space<vmem>>, vector<326x4xf32>,
    %c19 = arith.constant 19 : index
    %c0_29 = arith.constant 0 : index
    %85 = vector.load %arg8[%c19, %c0_29] : memref<326x4xf32, #tpu.memory_space<vmem>>, vector<288x4xf32>
    tpu.vector_store %arg8[%c19, %c0_29], %82 {strides = array<i32>} : memref<326x4xf32, #tpu.memory_space<vmem>>, vector<288x4xf32>,
    %c0_30 = arith.constant 0 : index
    %c0_31 = arith.constant 0 : index
    %86 = vector.load %arg8[%c0_30, %c0_31] : memref<326x4xf32, #tpu.memory_space<vmem>>, vector<326x4xf32>
    %cst_32 = arith.constant 0.000000e+00 : f32
    %87 = vector.broadcast %cst_32 : f32 to vector<288x4xf32>
    %88 = vector.extract_strided_slice %86 {offsets = [0, 0], sizes = [288, 4], strides = [1, 1]} : vector<326x4xf32> to vector<288x4xf32>
    %89 = arith.truncf %88 : vector<288x4xf32> to vector<288x4xbf16>
    %c0_33 = arith.constant 0 : index
    %c0_34 = arith.constant 0 : index
    %c0_35 = arith.constant 0 : index
    %90 = vector.load %arg4[%c0_33, %c0_34, %c0_35] : memref<9x4x4xbf16, #tpu.memory_space<vmem>>, vector<1x4x4xbf16>
    %91 = vector.shape_cast %90 : vector<1x4x4xbf16> to vector<4x4xbf16>
    %cst_36 = arith.constant dense<0.000000e+00> : vector<288x4xf32>
    %92 = tpu.matmul %89, %91, %cst_36 {dimension_numbers = #tpu.dot_dimension_numbers<[1], [0], [0], [1], [0, 0, 1, 1], [], []>} : vector<288x4xbf16>, vector<4x4xbf16>, vector<288x4xf32> -> vector<288x4xf32>
    %93 = arith.addf %87, %92 : vector<288x4xf32>
    %94 = vector.extract_strided_slice %86 {offsets = [1, 0], sizes = [288, 4], strides = [1, 1]} : vector<326x4xf32> to vector<288x4xf32>
    %95 = arith.truncf %94 : vector<288x4xf32> to vector<288x4xbf16>
    %c1_37 = arith.constant 1 : index
    %c0_38 = arith.constant 0 : index
    %c0_39 = arith.constant 0 : index
    %96 = vector.load %arg4[%c1_37, %c0_38, %c0_39] : memref<9x4x4xbf16, #tpu.memory_space<vmem>>, vector<1x4x4xbf16>
    %97 = vector.shape_cast %96 : vector<1x4x4xbf16> to vector<4x4xbf16>
    %cst_40 = arith.constant dense<0.000000e+00> : vector<288x4xf32>
    %98 = tpu.matmul %95, %97, %cst_40 {dimension_numbers = #tpu.dot_dimension_numbers<[1], [0], [0], [1], [0, 0, 1, 1], [], []>} : vector<288x4xbf16>, vector<4x4xbf16>, vector<288x4xf32> -> vector<288x4xf32>
    %99 = arith.addf %93, %98 : vector<288x4xf32>
    %100 = vector.extract_strided_slice %86 {offsets = [2, 0], sizes = [288, 4], strides = [1, 1]} : vector<326x4xf32> to vector<288x4xf32>
    %101 = arith.truncf %100 : vector<288x4xf32> to vector<288x4xbf16>
    %c2_41 = arith.constant 2 : index
    %c0_42 = arith.constant 0 : index
    %c0_43 = arith.constant 0 : index
    %102 = vector.load %arg4[%c2_41, %c0_42, %c0_43] : memref<9x4x4xbf16, #tpu.memory_space<vmem>>, vector<1x4x4xbf16>
    %103 = vector.shape_cast %102 : vector<1x4x4xbf16> to vector<4x4xbf16>
    %cst_44 = arith.constant dense<0.000000e+00> : vector<288x4xf32>
    %104 = tpu.matmul %101, %103, %cst_44 {dimension_numbers = #tpu.dot_dimension_numbers<[1], [0], [0], [1], [0, 0, 1, 1], [], []>} : vector<288x4xbf16>, vector<4x4xbf16>, vector<288x4xf32> -> vector<288x4xf32>
    %105 = arith.addf %99, %104 : vector<288x4xf32>
    %106 = vector.extract_strided_slice %86 {offsets = [18, 0], sizes = [288, 4], strides = [1, 1]} : vector<326x4xf32> to vector<288x4xf32>
    %107 = arith.truncf %106 : vector<288x4xf32> to vector<288x4xbf16>
    %c3_45 = arith.constant 3 : index
    %c0_46 = arith.constant 0 : index
    %c0_47 = arith.constant 0 : index
    %108 = vector.load %arg4[%c3_45, %c0_46, %c0_47] : memref<9x4x4xbf16, #tpu.memory_space<vmem>>, vector<1x4x4xbf16>
    %109 = vector.shape_cast %108 : vector<1x4x4xbf16> to vector<4x4xbf16>
    %cst_48 = arith.constant dense<0.000000e+00> : vector<288x4xf32>
    %110 = tpu.matmul %107, %109, %cst_48 {dimension_numbers = #tpu.dot_dimension_numbers<[1], [0], [0], [1], [0, 0, 1, 1], [], []>} : vector<288x4xbf16>, vector<4x4xbf16>, vector<288x4xf32> -> vector<288x4xf32>
    %111 = arith.addf %105, %110 : vector<288x4xf32>
    %112 = vector.extract_strided_slice %86 {offsets = [19, 0], sizes = [288, 4], strides = [1, 1]} : vector<326x4xf32> to vector<288x4xf32>
    %113 = arith.truncf %112 : vector<288x4xf32> to vector<288x4xbf16>
    %c4_49 = arith.constant 4 : index
    %c0_50 = arith.constant 0 : index
    %c0_51 = arith.constant 0 : index
    %114 = vector.load %arg4[%c4_49, %c0_50, %c0_51] : memref<9x4x4xbf16, #tpu.memory_space<vmem>>, vector<1x4x4xbf16>
    %115 = vector.shape_cast %114 : vector<1x4x4xbf16> to vector<4x4xbf16>
    %cst_52 = arith.constant dense<0.000000e+00> : vector<288x4xf32>
    %116 = tpu.matmul %113, %115, %cst_52 {dimension_numbers = #tpu.dot_dimension_numbers<[1], [0], [0], [1], [0, 0, 1, 1], [], []>} : vector<288x4xbf16>, vector<4x4xbf16>, vector<288x4xf32> -> vector<288x4xf32>
    %117 = arith.addf %111, %116 : vector<288x4xf32>
    %118 = vector.extract_strided_slice %86 {offsets = [20, 0], sizes = [288, 4], strides = [1, 1]} : vector<326x4xf32> to vector<288x4xf32>
    %119 = arith.truncf %118 : vector<288x4xf32> to vector<288x4xbf16>
    %c5_53 = arith.constant 5 : index
    %c0_54 = arith.constant 0 : index
    %c0_55 = arith.constant 0 : index
    %120 = vector.load %arg4[%c5_53, %c0_54, %c0_55] : memref<9x4x4xbf16, #tpu.memory_space<vmem>>, vector<1x4x4xbf16>
    %121 = vector.shape_cast %120 : vector<1x4x4xbf16> to vector<4x4xbf16>
    %cst_56 = arith.constant dense<0.000000e+00> : vector<288x4xf32>
    %122 = tpu.matmul %119, %121, %cst_56 {dimension_numbers = #tpu.dot_dimension_numbers<[1], [0], [0], [1], [0, 0, 1, 1], [], []>} : vector<288x4xbf16>, vector<4x4xbf16>, vector<288x4xf32> -> vector<288x4xf32>
    %123 = arith.addf %117, %122 : vector<288x4xf32>
    %124 = vector.extract_strided_slice %86 {offsets = [36, 0], sizes = [288, 4], strides = [1, 1]} : vector<326x4xf32> to vector<288x4xf32>
    %125 = arith.truncf %124 : vector<288x4xf32> to vector<288x4xbf16>
    %c6_57 = arith.constant 6 : index
    %c0_58 = arith.constant 0 : index
    %c0_59 = arith.constant 0 : index
    %126 = vector.load %arg4[%c6_57, %c0_58, %c0_59] : memref<9x4x4xbf16, #tpu.memory_space<vmem>>, vector<1x4x4xbf16>
    %127 = vector.shape_cast %126 : vector<1x4x4xbf16> to vector<4x4xbf16>
    %cst_60 = arith.constant dense<0.000000e+00> : vector<288x4xf32>
    %128 = tpu.matmul %125, %127, %cst_60 {dimension_numbers = #tpu.dot_dimension_numbers<[1], [0], [0], [1], [0, 0, 1, 1], [], []>} : vector<288x4xbf16>, vector<4x4xbf16>, vector<288x4xf32> -> vector<288x4xf32>
    %129 = arith.addf %123, %128 : vector<288x4xf32>
    %130 = vector.extract_strided_slice %86 {offsets = [37, 0], sizes = [288, 4], strides = [1, 1]} : vector<326x4xf32> to vector<288x4xf32>
    %131 = arith.truncf %130 : vector<288x4xf32> to vector<288x4xbf16>
    %c7_61 = arith.constant 7 : index
    %c0_62 = arith.constant 0 : index
    %c0_63 = arith.constant 0 : index
    %132 = vector.load %arg4[%c7_61, %c0_62, %c0_63] : memref<9x4x4xbf16, #tpu.memory_space<vmem>>, vector<1x4x4xbf16>
    %133 = vector.shape_cast %132 : vector<1x4x4xbf16> to vector<4x4xbf16>
    %cst_64 = arith.constant dense<0.000000e+00> : vector<288x4xf32>
    %134 = tpu.matmul %131, %133, %cst_64 {dimension_numbers = #tpu.dot_dimension_numbers<[1], [0], [0], [1], [0, 0, 1, 1], [], []>} : vector<288x4xbf16>, vector<4x4xbf16>, vector<288x4xf32> -> vector<288x4xf32>
    %135 = arith.addf %129, %134 : vector<288x4xf32>
    %136 = vector.extract_strided_slice %86 {offsets = [38, 0], sizes = [288, 4], strides = [1, 1]} : vector<326x4xf32> to vector<288x4xf32>
    %137 = arith.truncf %136 : vector<288x4xf32> to vector<288x4xbf16>
    %c8_65 = arith.constant 8 : index
    %c0_66 = arith.constant 0 : index
    %c0_67 = arith.constant 0 : index
    %138 = vector.load %arg4[%c8_65, %c0_66, %c0_67] : memref<9x4x4xbf16, #tpu.memory_space<vmem>>, vector<1x4x4xbf16>
    %139 = vector.shape_cast %138 : vector<1x4x4xbf16> to vector<4x4xbf16>
    %cst_68 = arith.constant dense<0.000000e+00> : vector<288x4xf32>
    %140 = tpu.matmul %137, %139, %cst_68 {dimension_numbers = #tpu.dot_dimension_numbers<[1], [0], [0], [1], [0, 0, 1, 1], [], []>} : vector<288x4xbf16>, vector<4x4xbf16>, vector<288x4xf32> -> vector<288x4xf32>
    %141 = arith.addf %135, %140 : vector<288x4xf32>
    %c0_69 = arith.constant 0 : index
    %c0_70 = arith.constant 0 : index
    %142 = vector.load %arg5[%c0_69, %c0_70] : memref<1x4xf32, #tpu.memory_space<vmem>>, vector<1x4xf32>
    %143 = vector.broadcast %142 : vector<1x4xf32> to vector<288x4xf32>
    %144 = arith.addf %141, %143 : vector<288x4xf32>
    %cst_71 = arith.constant 0.000000e+00 : f32
    %145 = vector.broadcast %cst_71 : f32 to vector<288x4xf32>
    %146 = arith.maximumf %144, %145 : vector<288x4xf32>
    %c0_72 = arith.constant 0 : index
    %c0_73 = arith.constant 0 : index
    %c0_74 = arith.constant 0 : index
    %147 = vector.load %arg7[%c0_72, %c0_73, %c0_74] : memref<1x288x4xf32, #tpu.memory_space<vmem>>, vector<1x288x4xf32>
    %148 = vector.shape_cast %147 : vector<1x288x4xf32> to vector<288x4xf32>
    %149 = vector.shape_cast %146 : vector<288x4xf32> to vector<1x288x4xf32>
    tpu.vector_store %arg7[%c0_72, %c0_73, %c0_74], %149 {strides = array<i32>} : memref<1x288x4xf32, #tpu.memory_space<vmem>>, vector<1x288x4xf32>,
    return
  }
  func.func @transform_0(%arg0: i32) -> (i32, i32, i32) {
    %c0_i32 = arith.constant 0 : i32
    %c0_i32_0 = arith.constant 0 : i32
    %c0_i32_1 = arith.constant 0 : i32
    return %arg0, %c0_i32, %c0_i32_0 : i32, i32, i32
  }
  func.func @transform_1(%arg0: i32) -> (i32, i32, i32) {
    %c0_i32 = arith.constant 0 : i32
    %c0_i32_0 = arith.constant 0 : i32
    %c0_i32_1 = arith.constant 0 : i32
    %c0_i32_2 = arith.constant 0 : i32
    return %c0_i32, %c0_i32_0, %c0_i32_1 : i32, i32, i32
  }
  func.func @transform_2(%arg0: i32) -> (i32, i32) {
    %c0_i32 = arith.constant 0 : i32
    %c0_i32_0 = arith.constant 0 : i32
    %c0_i32_1 = arith.constant 0 : i32
    return %c0_i32, %c0_i32_0 : i32, i32
  }
  func.func @transform_3(%arg0: i32) -> (i32, i32, i32) {
    %c0_i32 = arith.constant 0 : i32
    %c0_i32_0 = arith.constant 0 : i32
    %c0_i32_1 = arith.constant 0 : i32
    %c0_i32_2 = arith.constant 0 : i32
    return %c0_i32, %c0_i32_0, %c0_i32_1 : i32, i32, i32
  }
  func.func @transform_4(%arg0: i32) -> (i32, i32) {
    %c0_i32 = arith.constant 0 : i32
    %c0_i32_0 = arith.constant 0 : i32
    %c0_i32_1 = arith.constant 0 : i32
    return %c0_i32, %c0_i32_0 : i32, i32
  }
  func.func @transform_5(%arg0: i32) -> (i32, i32) {
    %c0_i32 = arith.constant 0 : i32
    %c0_i32_0 = arith.constant 0 : i32
    %c0_i32_1 = arith.constant 0 : i32
    return %c0_i32, %c0_i32_0 : i32, i32
  }
  func.func @transform_6(%arg0: i32) -> (i32, i32, i32) {
    %c0_i32 = arith.constant 0 : i32
    %c0_i32_0 = arith.constant 0 : i32
    %c0_i32_1 = arith.constant 0 : i32
    return %arg0, %c0_i32, %c0_i32_0 : i32, i32, i32
  }
}

module attributes {stable_mosaic.version = 11 : i64} {
  func.func @kernel(%arg0: i32, %arg1: memref<1x102x4xf32, #tpu.memory_space<vmem>>, %arg2: memref<9x4x8xbf16, #tpu.memory_space<vmem>>, %arg3: memref<1x8xf32, #tpu.memory_space<vmem>>, %arg4: memref<9x8x8xbf16, #tpu.memory_space<vmem>>, %arg5: memref<1x8xf32, #tpu.memory_space<vmem>>, %arg6: memref<80x1xf32, #tpu.memory_space<vmem>>, %arg7: memref<1x80x8xf32, #tpu.memory_space<vmem>>, %arg8: memref<102x8xf32, #tpu.memory_space<vmem>>) attributes {dimension_semantics = [#tpu.dimension_semantics<parallel>], iteration_bounds = array<i64: 2>, scalar_prefetch = 0 : i64, scratch_operands = 1 : i64, tpu.core_type = #tpu.core_type<tc>, window_params = [{transform_indices = @transform_0, window_bounds = array<i64: 1, 102, 4>}, {pipeline_mode = #tpu.pipeline_mode<synchronous>, transform_indices = @transform_1, window_bounds = array<i64: 9, 4, 8>}, {pipeline_mode = #tpu.pipeline_mode<synchronous>, transform_indices = @transform_2, window_bounds = array<i64: 1, 8>}, {pipeline_mode = #tpu.pipeline_mode<synchronous>, transform_indices = @transform_3, window_bounds = array<i64: 9, 8, 8>}, {pipeline_mode = #tpu.pipeline_mode<synchronous>, transform_indices = @transform_4, window_bounds = array<i64: 1, 8>}, {pipeline_mode = #tpu.pipeline_mode<synchronous>, transform_indices = @transform_5, window_bounds = array<i64: 80, 1>}, {transform_indices = @transform_6, window_bounds = array<i64: 1, 80, 8>}]} {
    %c0 = arith.constant 0 : index
    %c0_0 = arith.constant 0 : index
    %0 = vector.load %arg6[%c0, %c0_0] : memref<80x1xf32, #tpu.memory_space<vmem>>, vector<80x1xf32>
    %c0_1 = arith.constant 0 : index
    %c0_2 = arith.constant 0 : index
    %c0_3 = arith.constant 0 : index
    %1 = vector.load %arg1[%c0_1, %c0_2, %c0_3] : memref<1x102x4xf32, #tpu.memory_space<vmem>>, vector<1x102x4xf32>
    %2 = vector.shape_cast %1 : vector<1x102x4xf32> to vector<102x4xf32>
    %cst = arith.constant 0.000000e+00 : f32
    %3 = vector.broadcast %cst : f32 to vector<80x8xf32>
    %4 = vector.extract_strided_slice %2 {offsets = [0, 0], sizes = [80, 4], strides = [1, 1]} : vector<102x4xf32> to vector<80x4xf32>
    %5 = arith.truncf %4 : vector<80x4xf32> to vector<80x4xbf16>
    %c0_4 = arith.constant 0 : index
    %c0_5 = arith.constant 0 : index
    %c0_6 = arith.constant 0 : index
    %6 = vector.load %arg2[%c0_4, %c0_5, %c0_6] : memref<9x4x8xbf16, #tpu.memory_space<vmem>>, vector<1x4x8xbf16>
    %7 = vector.shape_cast %6 : vector<1x4x8xbf16> to vector<4x8xbf16>
    %cst_7 = arith.constant dense<0.000000e+00> : vector<80x8xf32>
    %8 = tpu.matmul %5, %7, %cst_7 {dimension_numbers = #tpu.dot_dimension_numbers<[1], [0], [0], [1], [0, 0, 1, 1], [], []>} : vector<80x4xbf16>, vector<4x8xbf16>, vector<80x8xf32> -> vector<80x8xf32>
    %9 = arith.addf %3, %8 : vector<80x8xf32>
    %10 = vector.extract_strided_slice %2 {offsets = [1, 0], sizes = [80, 4], strides = [1, 1]} : vector<102x4xf32> to vector<80x4xf32>
    %11 = arith.truncf %10 : vector<80x4xf32> to vector<80x4xbf16>
    %c1 = arith.constant 1 : index
    %c0_8 = arith.constant 0 : index
    %c0_9 = arith.constant 0 : index
    %12 = vector.load %arg2[%c1, %c0_8, %c0_9] : memref<9x4x8xbf16, #tpu.memory_space<vmem>>, vector<1x4x8xbf16>
    %13 = vector.shape_cast %12 : vector<1x4x8xbf16> to vector<4x8xbf16>
    %cst_10 = arith.constant dense<0.000000e+00> : vector<80x8xf32>
    %14 = tpu.matmul %11, %13, %cst_10 {dimension_numbers = #tpu.dot_dimension_numbers<[1], [0], [0], [1], [0, 0, 1, 1], [], []>} : vector<80x4xbf16>, vector<4x8xbf16>, vector<80x8xf32> -> vector<80x8xf32>
    %15 = arith.addf %9, %14 : vector<80x8xf32>
    %16 = vector.extract_strided_slice %2 {offsets = [2, 0], sizes = [80, 4], strides = [1, 1]} : vector<102x4xf32> to vector<80x4xf32>
    %17 = arith.truncf %16 : vector<80x4xf32> to vector<80x4xbf16>
    %c2 = arith.constant 2 : index
    %c0_11 = arith.constant 0 : index
    %c0_12 = arith.constant 0 : index
    %18 = vector.load %arg2[%c2, %c0_11, %c0_12] : memref<9x4x8xbf16, #tpu.memory_space<vmem>>, vector<1x4x8xbf16>
    %19 = vector.shape_cast %18 : vector<1x4x8xbf16> to vector<4x8xbf16>
    %cst_13 = arith.constant dense<0.000000e+00> : vector<80x8xf32>
    %20 = tpu.matmul %17, %19, %cst_13 {dimension_numbers = #tpu.dot_dimension_numbers<[1], [0], [0], [1], [0, 0, 1, 1], [], []>} : vector<80x4xbf16>, vector<4x8xbf16>, vector<80x8xf32> -> vector<80x8xf32>
    %21 = arith.addf %15, %20 : vector<80x8xf32>
    %22 = vector.extract_strided_slice %2 {offsets = [10, 0], sizes = [80, 4], strides = [1, 1]} : vector<102x4xf32> to vector<80x4xf32>
    %23 = arith.truncf %22 : vector<80x4xf32> to vector<80x4xbf16>
    %c3 = arith.constant 3 : index
    %c0_14 = arith.constant 0 : index
    %c0_15 = arith.constant 0 : index
    %24 = vector.load %arg2[%c3, %c0_14, %c0_15] : memref<9x4x8xbf16, #tpu.memory_space<vmem>>, vector<1x4x8xbf16>
    %25 = vector.shape_cast %24 : vector<1x4x8xbf16> to vector<4x8xbf16>
    %cst_16 = arith.constant dense<0.000000e+00> : vector<80x8xf32>
    %26 = tpu.matmul %23, %25, %cst_16 {dimension_numbers = #tpu.dot_dimension_numbers<[1], [0], [0], [1], [0, 0, 1, 1], [], []>} : vector<80x4xbf16>, vector<4x8xbf16>, vector<80x8xf32> -> vector<80x8xf32>
    %27 = arith.addf %21, %26 : vector<80x8xf32>
    %28 = vector.extract_strided_slice %2 {offsets = [11, 0], sizes = [80, 4], strides = [1, 1]} : vector<102x4xf32> to vector<80x4xf32>
    %29 = arith.truncf %28 : vector<80x4xf32> to vector<80x4xbf16>
    %c4 = arith.constant 4 : index
    %c0_17 = arith.constant 0 : index
    %c0_18 = arith.constant 0 : index
    %30 = vector.load %arg2[%c4, %c0_17, %c0_18] : memref<9x4x8xbf16, #tpu.memory_space<vmem>>, vector<1x4x8xbf16>
    %31 = vector.shape_cast %30 : vector<1x4x8xbf16> to vector<4x8xbf16>
    %cst_19 = arith.constant dense<0.000000e+00> : vector<80x8xf32>
    %32 = tpu.matmul %29, %31, %cst_19 {dimension_numbers = #tpu.dot_dimension_numbers<[1], [0], [0], [1], [0, 0, 1, 1], [], []>} : vector<80x4xbf16>, vector<4x8xbf16>, vector<80x8xf32> -> vector<80x8xf32>
    %33 = arith.addf %27, %32 : vector<80x8xf32>
    %34 = vector.extract_strided_slice %2 {offsets = [12, 0], sizes = [80, 4], strides = [1, 1]} : vector<102x4xf32> to vector<80x4xf32>
    %35 = arith.truncf %34 : vector<80x4xf32> to vector<80x4xbf16>
    %c5 = arith.constant 5 : index
    %c0_20 = arith.constant 0 : index
    %c0_21 = arith.constant 0 : index
    %36 = vector.load %arg2[%c5, %c0_20, %c0_21] : memref<9x4x8xbf16, #tpu.memory_space<vmem>>, vector<1x4x8xbf16>
    %37 = vector.shape_cast %36 : vector<1x4x8xbf16> to vector<4x8xbf16>
    %cst_22 = arith.constant dense<0.000000e+00> : vector<80x8xf32>
    %38 = tpu.matmul %35, %37, %cst_22 {dimension_numbers = #tpu.dot_dimension_numbers<[1], [0], [0], [1], [0, 0, 1, 1], [], []>} : vector<80x4xbf16>, vector<4x8xbf16>, vector<80x8xf32> -> vector<80x8xf32>
    %39 = arith.addf %33, %38 : vector<80x8xf32>
    %40 = vector.extract_strided_slice %2 {offsets = [20, 0], sizes = [80, 4], strides = [1, 1]} : vector<102x4xf32> to vector<80x4xf32>
    %41 = arith.truncf %40 : vector<80x4xf32> to vector<80x4xbf16>
    %c6 = arith.constant 6 : index
    %c0_23 = arith.constant 0 : index
    %c0_24 = arith.constant 0 : index
    %42 = vector.load %arg2[%c6, %c0_23, %c0_24] : memref<9x4x8xbf16, #tpu.memory_space<vmem>>, vector<1x4x8xbf16>
    %43 = vector.shape_cast %42 : vector<1x4x8xbf16> to vector<4x8xbf16>
    %cst_25 = arith.constant dense<0.000000e+00> : vector<80x8xf32>
    %44 = tpu.matmul %41, %43, %cst_25 {dimension_numbers = #tpu.dot_dimension_numbers<[1], [0], [0], [1], [0, 0, 1, 1], [], []>} : vector<80x4xbf16>, vector<4x8xbf16>, vector<80x8xf32> -> vector<80x8xf32>
    %45 = arith.addf %39, %44 : vector<80x8xf32>
    %46 = vector.extract_strided_slice %2 {offsets = [21, 0], sizes = [80, 4], strides = [1, 1]} : vector<102x4xf32> to vector<80x4xf32>
    %47 = arith.truncf %46 : vector<80x4xf32> to vector<80x4xbf16>
    %c7 = arith.constant 7 : index
    %c0_26 = arith.constant 0 : index
    %c0_27 = arith.constant 0 : index
    %48 = vector.load %arg2[%c7, %c0_26, %c0_27] : memref<9x4x8xbf16, #tpu.memory_space<vmem>>, vector<1x4x8xbf16>
    %49 = vector.shape_cast %48 : vector<1x4x8xbf16> to vector<4x8xbf16>
    %cst_28 = arith.constant dense<0.000000e+00> : vector<80x8xf32>
    %50 = tpu.matmul %47, %49, %cst_28 {dimension_numbers = #tpu.dot_dimension_numbers<[1], [0], [0], [1], [0, 0, 1, 1], [], []>} : vector<80x4xbf16>, vector<4x8xbf16>, vector<80x8xf32> -> vector<80x8xf32>
    %51 = arith.addf %45, %50 : vector<80x8xf32>
    %52 = vector.extract_strided_slice %2 {offsets = [22, 0], sizes = [80, 4], strides = [1, 1]} : vector<102x4xf32> to vector<80x4xf32>
    %53 = arith.truncf %52 : vector<80x4xf32> to vector<80x4xbf16>
    %c8 = arith.constant 8 : index
    %c0_29 = arith.constant 0 : index
    %c0_30 = arith.constant 0 : index
    %54 = vector.load %arg2[%c8, %c0_29, %c0_30] : memref<9x4x8xbf16, #tpu.memory_space<vmem>>, vector<1x4x8xbf16>
    %55 = vector.shape_cast %54 : vector<1x4x8xbf16> to vector<4x8xbf16>
    %cst_31 = arith.constant dense<0.000000e+00> : vector<80x8xf32>
    %56 = tpu.matmul %53, %55, %cst_31 {dimension_numbers = #tpu.dot_dimension_numbers<[1], [0], [0], [1], [0, 0, 1, 1], [], []>} : vector<80x4xbf16>, vector<4x8xbf16>, vector<80x8xf32> -> vector<80x8xf32>
    %57 = arith.addf %51, %56 : vector<80x8xf32>
    %c0_32 = arith.constant 0 : index
    %c0_33 = arith.constant 0 : index
    %58 = vector.load %arg3[%c0_32, %c0_33] : memref<1x8xf32, #tpu.memory_space<vmem>>, vector<1x8xf32>
    %59 = vector.broadcast %58 : vector<1x8xf32> to vector<80x8xf32>
    %60 = arith.addf %57, %59 : vector<80x8xf32>
    %cst_34 = arith.constant 0.000000e+00 : f32
    %61 = vector.broadcast %cst_34 : f32 to vector<80x8xf32>
    %62 = arith.maximumf %60, %61 : vector<80x8xf32>
    %63 = vector.broadcast %0 : vector<80x1xf32> to vector<80x8xf32>
    %64 = arith.mulf %62, %63 : vector<80x8xf32>
    %cst_35 = arith.constant 0.000000e+00 : f32
    %65 = vector.broadcast %cst_35 : f32 to vector<102x8xf32>
    %c0_36 = arith.constant 0 : index
    %c0_37 = arith.constant 0 : index
    %66 = vector.load %arg8[%c0_36, %c0_37] : memref<102x8xf32, #tpu.memory_space<vmem>>, vector<102x8xf32>
    tpu.vector_store %arg8[%c0_36, %c0_37], %65 {strides = array<i32>} : memref<102x8xf32, #tpu.memory_space<vmem>>, vector<102x8xf32>,
    %c11 = arith.constant 11 : index
    %c0_38 = arith.constant 0 : index
    %67 = vector.load %arg8[%c11, %c0_38] : memref<102x8xf32, #tpu.memory_space<vmem>>, vector<80x8xf32>
    tpu.vector_store %arg8[%c11, %c0_38], %64 {strides = array<i32>} : memref<102x8xf32, #tpu.memory_space<vmem>>, vector<80x8xf32>,
    %c0_39 = arith.constant 0 : index
    %c0_40 = arith.constant 0 : index
    %68 = vector.load %arg8[%c0_39, %c0_40] : memref<102x8xf32, #tpu.memory_space<vmem>>, vector<102x8xf32>
    %cst_41 = arith.constant 0.000000e+00 : f32
    %69 = vector.broadcast %cst_41 : f32 to vector<80x8xf32>
    %70 = vector.extract_strided_slice %68 {offsets = [0, 0], sizes = [80, 8], strides = [1, 1]} : vector<102x8xf32> to vector<80x8xf32>
    %71 = arith.truncf %70 : vector<80x8xf32> to vector<80x8xbf16>
    %c0_42 = arith.constant 0 : index
    %c0_43 = arith.constant 0 : index
    %c0_44 = arith.constant 0 : index
    %72 = vector.load %arg4[%c0_42, %c0_43, %c0_44] : memref<9x8x8xbf16, #tpu.memory_space<vmem>>, vector<1x8x8xbf16>
    %73 = vector.shape_cast %72 : vector<1x8x8xbf16> to vector<8x8xbf16>
    %cst_45 = arith.constant dense<0.000000e+00> : vector<80x8xf32>
    %74 = tpu.matmul %71, %73, %cst_45 {dimension_numbers = #tpu.dot_dimension_numbers<[1], [0], [0], [1], [0, 0, 1, 1], [], []>} : vector<80x8xbf16>, vector<8x8xbf16>, vector<80x8xf32> -> vector<80x8xf32>
    %75 = arith.addf %69, %74 : vector<80x8xf32>
    %76 = vector.extract_strided_slice %68 {offsets = [1, 0], sizes = [80, 8], strides = [1, 1]} : vector<102x8xf32> to vector<80x8xf32>
    %77 = arith.truncf %76 : vector<80x8xf32> to vector<80x8xbf16>
    %c1_46 = arith.constant 1 : index
    %c0_47 = arith.constant 0 : index
    %c0_48 = arith.constant 0 : index
    %78 = vector.load %arg4[%c1_46, %c0_47, %c0_48] : memref<9x8x8xbf16, #tpu.memory_space<vmem>>, vector<1x8x8xbf16>
    %79 = vector.shape_cast %78 : vector<1x8x8xbf16> to vector<8x8xbf16>
    %cst_49 = arith.constant dense<0.000000e+00> : vector<80x8xf32>
    %80 = tpu.matmul %77, %79, %cst_49 {dimension_numbers = #tpu.dot_dimension_numbers<[1], [0], [0], [1], [0, 0, 1, 1], [], []>} : vector<80x8xbf16>, vector<8x8xbf16>, vector<80x8xf32> -> vector<80x8xf32>
    %81 = arith.addf %75, %80 : vector<80x8xf32>
    %82 = vector.extract_strided_slice %68 {offsets = [2, 0], sizes = [80, 8], strides = [1, 1]} : vector<102x8xf32> to vector<80x8xf32>
    %83 = arith.truncf %82 : vector<80x8xf32> to vector<80x8xbf16>
    %c2_50 = arith.constant 2 : index
    %c0_51 = arith.constant 0 : index
    %c0_52 = arith.constant 0 : index
    %84 = vector.load %arg4[%c2_50, %c0_51, %c0_52] : memref<9x8x8xbf16, #tpu.memory_space<vmem>>, vector<1x8x8xbf16>
    %85 = vector.shape_cast %84 : vector<1x8x8xbf16> to vector<8x8xbf16>
    %cst_53 = arith.constant dense<0.000000e+00> : vector<80x8xf32>
    %86 = tpu.matmul %83, %85, %cst_53 {dimension_numbers = #tpu.dot_dimension_numbers<[1], [0], [0], [1], [0, 0, 1, 1], [], []>} : vector<80x8xbf16>, vector<8x8xbf16>, vector<80x8xf32> -> vector<80x8xf32>
    %87 = arith.addf %81, %86 : vector<80x8xf32>
    %88 = vector.extract_strided_slice %68 {offsets = [10, 0], sizes = [80, 8], strides = [1, 1]} : vector<102x8xf32> to vector<80x8xf32>
    %89 = arith.truncf %88 : vector<80x8xf32> to vector<80x8xbf16>
    %c3_54 = arith.constant 3 : index
    %c0_55 = arith.constant 0 : index
    %c0_56 = arith.constant 0 : index
    %90 = vector.load %arg4[%c3_54, %c0_55, %c0_56] : memref<9x8x8xbf16, #tpu.memory_space<vmem>>, vector<1x8x8xbf16>
    %91 = vector.shape_cast %90 : vector<1x8x8xbf16> to vector<8x8xbf16>
    %cst_57 = arith.constant dense<0.000000e+00> : vector<80x8xf32>
    %92 = tpu.matmul %89, %91, %cst_57 {dimension_numbers = #tpu.dot_dimension_numbers<[1], [0], [0], [1], [0, 0, 1, 1], [], []>} : vector<80x8xbf16>, vector<8x8xbf16>, vector<80x8xf32> -> vector<80x8xf32>
    %93 = arith.addf %87, %92 : vector<80x8xf32>
    %94 = vector.extract_strided_slice %68 {offsets = [11, 0], sizes = [80, 8], strides = [1, 1]} : vector<102x8xf32> to vector<80x8xf32>
    %95 = arith.truncf %94 : vector<80x8xf32> to vector<80x8xbf16>
    %c4_58 = arith.constant 4 : index
    %c0_59 = arith.constant 0 : index
    %c0_60 = arith.constant 0 : index
    %96 = vector.load %arg4[%c4_58, %c0_59, %c0_60] : memref<9x8x8xbf16, #tpu.memory_space<vmem>>, vector<1x8x8xbf16>
    %97 = vector.shape_cast %96 : vector<1x8x8xbf16> to vector<8x8xbf16>
    %cst_61 = arith.constant dense<0.000000e+00> : vector<80x8xf32>
    %98 = tpu.matmul %95, %97, %cst_61 {dimension_numbers = #tpu.dot_dimension_numbers<[1], [0], [0], [1], [0, 0, 1, 1], [], []>} : vector<80x8xbf16>, vector<8x8xbf16>, vector<80x8xf32> -> vector<80x8xf32>
    %99 = arith.addf %93, %98 : vector<80x8xf32>
    %100 = vector.extract_strided_slice %68 {offsets = [12, 0], sizes = [80, 8], strides = [1, 1]} : vector<102x8xf32> to vector<80x8xf32>
    %101 = arith.truncf %100 : vector<80x8xf32> to vector<80x8xbf16>
    %c5_62 = arith.constant 5 : index
    %c0_63 = arith.constant 0 : index
    %c0_64 = arith.constant 0 : index
    %102 = vector.load %arg4[%c5_62, %c0_63, %c0_64] : memref<9x8x8xbf16, #tpu.memory_space<vmem>>, vector<1x8x8xbf16>
    %103 = vector.shape_cast %102 : vector<1x8x8xbf16> to vector<8x8xbf16>
    %cst_65 = arith.constant dense<0.000000e+00> : vector<80x8xf32>
    %104 = tpu.matmul %101, %103, %cst_65 {dimension_numbers = #tpu.dot_dimension_numbers<[1], [0], [0], [1], [0, 0, 1, 1], [], []>} : vector<80x8xbf16>, vector<8x8xbf16>, vector<80x8xf32> -> vector<80x8xf32>
    %105 = arith.addf %99, %104 : vector<80x8xf32>
    %106 = vector.extract_strided_slice %68 {offsets = [20, 0], sizes = [80, 8], strides = [1, 1]} : vector<102x8xf32> to vector<80x8xf32>
    %107 = arith.truncf %106 : vector<80x8xf32> to vector<80x8xbf16>
    %c6_66 = arith.constant 6 : index
    %c0_67 = arith.constant 0 : index
    %c0_68 = arith.constant 0 : index
    %108 = vector.load %arg4[%c6_66, %c0_67, %c0_68] : memref<9x8x8xbf16, #tpu.memory_space<vmem>>, vector<1x8x8xbf16>
    %109 = vector.shape_cast %108 : vector<1x8x8xbf16> to vector<8x8xbf16>
    %cst_69 = arith.constant dense<0.000000e+00> : vector<80x8xf32>
    %110 = tpu.matmul %107, %109, %cst_69 {dimension_numbers = #tpu.dot_dimension_numbers<[1], [0], [0], [1], [0, 0, 1, 1], [], []>} : vector<80x8xbf16>, vector<8x8xbf16>, vector<80x8xf32> -> vector<80x8xf32>
    %111 = arith.addf %105, %110 : vector<80x8xf32>
    %112 = vector.extract_strided_slice %68 {offsets = [21, 0], sizes = [80, 8], strides = [1, 1]} : vector<102x8xf32> to vector<80x8xf32>
    %113 = arith.truncf %112 : vector<80x8xf32> to vector<80x8xbf16>
    %c7_70 = arith.constant 7 : index
    %c0_71 = arith.constant 0 : index
    %c0_72 = arith.constant 0 : index
    %114 = vector.load %arg4[%c7_70, %c0_71, %c0_72] : memref<9x8x8xbf16, #tpu.memory_space<vmem>>, vector<1x8x8xbf16>
    %115 = vector.shape_cast %114 : vector<1x8x8xbf16> to vector<8x8xbf16>
    %cst_73 = arith.constant dense<0.000000e+00> : vector<80x8xf32>
    %116 = tpu.matmul %113, %115, %cst_73 {dimension_numbers = #tpu.dot_dimension_numbers<[1], [0], [0], [1], [0, 0, 1, 1], [], []>} : vector<80x8xbf16>, vector<8x8xbf16>, vector<80x8xf32> -> vector<80x8xf32>
    %117 = arith.addf %111, %116 : vector<80x8xf32>
    %118 = vector.extract_strided_slice %68 {offsets = [22, 0], sizes = [80, 8], strides = [1, 1]} : vector<102x8xf32> to vector<80x8xf32>
    %119 = arith.truncf %118 : vector<80x8xf32> to vector<80x8xbf16>
    %c8_74 = arith.constant 8 : index
    %c0_75 = arith.constant 0 : index
    %c0_76 = arith.constant 0 : index
    %120 = vector.load %arg4[%c8_74, %c0_75, %c0_76] : memref<9x8x8xbf16, #tpu.memory_space<vmem>>, vector<1x8x8xbf16>
    %121 = vector.shape_cast %120 : vector<1x8x8xbf16> to vector<8x8xbf16>
    %cst_77 = arith.constant dense<0.000000e+00> : vector<80x8xf32>
    %122 = tpu.matmul %119, %121, %cst_77 {dimension_numbers = #tpu.dot_dimension_numbers<[1], [0], [0], [1], [0, 0, 1, 1], [], []>} : vector<80x8xbf16>, vector<8x8xbf16>, vector<80x8xf32> -> vector<80x8xf32>
    %123 = arith.addf %117, %122 : vector<80x8xf32>
    %c0_78 = arith.constant 0 : index
    %c0_79 = arith.constant 0 : index
    %124 = vector.load %arg5[%c0_78, %c0_79] : memref<1x8xf32, #tpu.memory_space<vmem>>, vector<1x8xf32>
    %125 = vector.broadcast %124 : vector<1x8xf32> to vector<80x8xf32>
    %126 = arith.addf %123, %125 : vector<80x8xf32>
    %cst_80 = arith.constant 0.000000e+00 : f32
    %127 = vector.broadcast %cst_80 : f32 to vector<80x8xf32>
    %128 = arith.maximumf %126, %127 : vector<80x8xf32>
    %c0_81 = arith.constant 0 : index
    %c0_82 = arith.constant 0 : index
    %c0_83 = arith.constant 0 : index
    %129 = vector.load %arg7[%c0_81, %c0_82, %c0_83] : memref<1x80x8xf32, #tpu.memory_space<vmem>>, vector<1x80x8xf32>
    %130 = vector.shape_cast %129 : vector<1x80x8xf32> to vector<80x8xf32>
    %131 = vector.shape_cast %128 : vector<80x8xf32> to vector<1x80x8xf32>
    tpu.vector_store %arg7[%c0_81, %c0_82, %c0_83], %131 {strides = array<i32>} : memref<1x80x8xf32, #tpu.memory_space<vmem>>, vector<1x80x8xf32>,
    return
  }
  func.func @transform_0(%arg0: i32) -> (i32, i32, i32) {
    %c0_i32 = arith.constant 0 : i32
    %c0_i32_0 = arith.constant 0 : i32
    %c0_i32_1 = arith.constant 0 : i32
    return %arg0, %c0_i32, %c0_i32_0 : i32, i32, i32
  }
  func.func @transform_1(%arg0: i32) -> (i32, i32, i32) {
    %c0_i32 = arith.constant 0 : i32
    %c0_i32_0 = arith.constant 0 : i32
    %c0_i32_1 = arith.constant 0 : i32
    %c0_i32_2 = arith.constant 0 : i32
    return %c0_i32, %c0_i32_0, %c0_i32_1 : i32, i32, i32
  }
  func.func @transform_2(%arg0: i32) -> (i32, i32) {
    %c0_i32 = arith.constant 0 : i32
    %c0_i32_0 = arith.constant 0 : i32
    %c0_i32_1 = arith.constant 0 : i32
    return %c0_i32, %c0_i32_0 : i32, i32
  }
  func.func @transform_3(%arg0: i32) -> (i32, i32, i32) {
    %c0_i32 = arith.constant 0 : i32
    %c0_i32_0 = arith.constant 0 : i32
    %c0_i32_1 = arith.constant 0 : i32
    %c0_i32_2 = arith.constant 0 : i32
    return %c0_i32, %c0_i32_0, %c0_i32_1 : i32, i32, i32
  }
  func.func @transform_4(%arg0: i32) -> (i32, i32) {
    %c0_i32 = arith.constant 0 : i32
    %c0_i32_0 = arith.constant 0 : i32
    %c0_i32_1 = arith.constant 0 : i32
    return %c0_i32, %c0_i32_0 : i32, i32
  }
  func.func @transform_5(%arg0: i32) -> (i32, i32) {
    %c0_i32 = arith.constant 0 : i32
    %c0_i32_0 = arith.constant 0 : i32
    %c0_i32_1 = arith.constant 0 : i32
    return %c0_i32, %c0_i32_0 : i32, i32
  }
  func.func @transform_6(%arg0: i32) -> (i32, i32, i32) {
    %c0_i32 = arith.constant 0 : i32
    %c0_i32_0 = arith.constant 0 : i32
    %c0_i32_1 = arith.constant 0 : i32
    return %arg0, %c0_i32, %c0_i32_0 : i32, i32, i32
  }
}

module attributes {stable_mosaic.version = 11 : i64} {
  func.func @kernel(%arg0: i32, %arg1: memref<1x38x8xf32, #tpu.memory_space<vmem>>, %arg2: memref<9x8x16xbf16, #tpu.memory_space<vmem>>, %arg3: memref<1x16xf32, #tpu.memory_space<vmem>>, %arg4: memref<9x16x16xbf16, #tpu.memory_space<vmem>>, %arg5: memref<1x16xf32, #tpu.memory_space<vmem>>, %arg6: memref<24x1xf32, #tpu.memory_space<vmem>>, %arg7: memref<1x1x16xf32, #tpu.memory_space<vmem>>, %arg8: memref<38x16xf32, #tpu.memory_space<vmem>>) attributes {dimension_semantics = [#tpu.dimension_semantics<parallel>], iteration_bounds = array<i64: 2>, scalar_prefetch = 0 : i64, scratch_operands = 1 : i64, tpu.core_type = #tpu.core_type<tc>, window_params = [{transform_indices = @transform_0, window_bounds = array<i64: 1, 38, 8>}, {pipeline_mode = #tpu.pipeline_mode<synchronous>, transform_indices = @transform_1, window_bounds = array<i64: 9, 8, 16>}, {pipeline_mode = #tpu.pipeline_mode<synchronous>, transform_indices = @transform_2, window_bounds = array<i64: 1, 16>}, {pipeline_mode = #tpu.pipeline_mode<synchronous>, transform_indices = @transform_3, window_bounds = array<i64: 9, 16, 16>}, {pipeline_mode = #tpu.pipeline_mode<synchronous>, transform_indices = @transform_4, window_bounds = array<i64: 1, 16>}, {pipeline_mode = #tpu.pipeline_mode<synchronous>, transform_indices = @transform_5, window_bounds = array<i64: 24, 1>}, {transform_indices = @transform_6, window_bounds = array<i64: 1, 1, 16>}]} {
    %c0 = arith.constant 0 : index
    %c0_0 = arith.constant 0 : index
    %0 = vector.load %arg6[%c0, %c0_0] : memref<24x1xf32, #tpu.memory_space<vmem>>, vector<24x1xf32>
    %c0_1 = arith.constant 0 : index
    %c0_2 = arith.constant 0 : index
    %c0_3 = arith.constant 0 : index
    %1 = vector.load %arg1[%c0_1, %c0_2, %c0_3] : memref<1x38x8xf32, #tpu.memory_space<vmem>>, vector<1x38x8xf32>
    %2 = vector.shape_cast %1 : vector<1x38x8xf32> to vector<38x8xf32>
    %cst = arith.constant 0.000000e+00 : f32
    %3 = vector.broadcast %cst : f32 to vector<24x16xf32>
    %4 = vector.extract_strided_slice %2 {offsets = [0, 0], sizes = [24, 8], strides = [1, 1]} : vector<38x8xf32> to vector<24x8xf32>
    %5 = arith.truncf %4 : vector<24x8xf32> to vector<24x8xbf16>
    %c0_4 = arith.constant 0 : index
    %c0_5 = arith.constant 0 : index
    %c0_6 = arith.constant 0 : index
    %6 = vector.load %arg2[%c0_4, %c0_5, %c0_6] : memref<9x8x16xbf16, #tpu.memory_space<vmem>>, vector<1x8x16xbf16>
    %7 = vector.shape_cast %6 : vector<1x8x16xbf16> to vector<8x16xbf16>
    %cst_7 = arith.constant dense<0.000000e+00> : vector<24x16xf32>
    %8 = tpu.matmul %5, %7, %cst_7 {dimension_numbers = #tpu.dot_dimension_numbers<[1], [0], [0], [1], [0, 0, 1, 1], [], []>} : vector<24x8xbf16>, vector<8x16xbf16>, vector<24x16xf32> -> vector<24x16xf32>
    %9 = arith.addf %3, %8 : vector<24x16xf32>
    %10 = vector.extract_strided_slice %2 {offsets = [1, 0], sizes = [24, 8], strides = [1, 1]} : vector<38x8xf32> to vector<24x8xf32>
    %11 = arith.truncf %10 : vector<24x8xf32> to vector<24x8xbf16>
    %c1 = arith.constant 1 : index
    %c0_8 = arith.constant 0 : index
    %c0_9 = arith.constant 0 : index
    %12 = vector.load %arg2[%c1, %c0_8, %c0_9] : memref<9x8x16xbf16, #tpu.memory_space<vmem>>, vector<1x8x16xbf16>
    %13 = vector.shape_cast %12 : vector<1x8x16xbf16> to vector<8x16xbf16>
    %cst_10 = arith.constant dense<0.000000e+00> : vector<24x16xf32>
    %14 = tpu.matmul %11, %13, %cst_10 {dimension_numbers = #tpu.dot_dimension_numbers<[1], [0], [0], [1], [0, 0, 1, 1], [], []>} : vector<24x8xbf16>, vector<8x16xbf16>, vector<24x16xf32> -> vector<24x16xf32>
    %15 = arith.addf %9, %14 : vector<24x16xf32>
    %16 = vector.extract_strided_slice %2 {offsets = [2, 0], sizes = [24, 8], strides = [1, 1]} : vector<38x8xf32> to vector<24x8xf32>
    %17 = arith.truncf %16 : vector<24x8xf32> to vector<24x8xbf16>
    %c2 = arith.constant 2 : index
    %c0_11 = arith.constant 0 : index
    %c0_12 = arith.constant 0 : index
    %18 = vector.load %arg2[%c2, %c0_11, %c0_12] : memref<9x8x16xbf16, #tpu.memory_space<vmem>>, vector<1x8x16xbf16>
    %19 = vector.shape_cast %18 : vector<1x8x16xbf16> to vector<8x16xbf16>
    %cst_13 = arith.constant dense<0.000000e+00> : vector<24x16xf32>
    %20 = tpu.matmul %17, %19, %cst_13 {dimension_numbers = #tpu.dot_dimension_numbers<[1], [0], [0], [1], [0, 0, 1, 1], [], []>} : vector<24x8xbf16>, vector<8x16xbf16>, vector<24x16xf32> -> vector<24x16xf32>
    %21 = arith.addf %15, %20 : vector<24x16xf32>
    %22 = vector.extract_strided_slice %2 {offsets = [6, 0], sizes = [24, 8], strides = [1, 1]} : vector<38x8xf32> to vector<24x8xf32>
    %23 = arith.truncf %22 : vector<24x8xf32> to vector<24x8xbf16>
    %c3 = arith.constant 3 : index
    %c0_14 = arith.constant 0 : index
    %c0_15 = arith.constant 0 : index
    %24 = vector.load %arg2[%c3, %c0_14, %c0_15] : memref<9x8x16xbf16, #tpu.memory_space<vmem>>, vector<1x8x16xbf16>
    %25 = vector.shape_cast %24 : vector<1x8x16xbf16> to vector<8x16xbf16>
    %cst_16 = arith.constant dense<0.000000e+00> : vector<24x16xf32>
    %26 = tpu.matmul %23, %25, %cst_16 {dimension_numbers = #tpu.dot_dimension_numbers<[1], [0], [0], [1], [0, 0, 1, 1], [], []>} : vector<24x8xbf16>, vector<8x16xbf16>, vector<24x16xf32> -> vector<24x16xf32>
    %27 = arith.addf %21, %26 : vector<24x16xf32>
    %28 = vector.extract_strided_slice %2 {offsets = [7, 0], sizes = [24, 8], strides = [1, 1]} : vector<38x8xf32> to vector<24x8xf32>
    %29 = arith.truncf %28 : vector<24x8xf32> to vector<24x8xbf16>
    %c4 = arith.constant 4 : index
    %c0_17 = arith.constant 0 : index
    %c0_18 = arith.constant 0 : index
    %30 = vector.load %arg2[%c4, %c0_17, %c0_18] : memref<9x8x16xbf16, #tpu.memory_space<vmem>>, vector<1x8x16xbf16>
    %31 = vector.shape_cast %30 : vector<1x8x16xbf16> to vector<8x16xbf16>
    %cst_19 = arith.constant dense<0.000000e+00> : vector<24x16xf32>
    %32 = tpu.matmul %29, %31, %cst_19 {dimension_numbers = #tpu.dot_dimension_numbers<[1], [0], [0], [1], [0, 0, 1, 1], [], []>} : vector<24x8xbf16>, vector<8x16xbf16>, vector<24x16xf32> -> vector<24x16xf32>
    %33 = arith.addf %27, %32 : vector<24x16xf32>
    %34 = vector.extract_strided_slice %2 {offsets = [8, 0], sizes = [24, 8], strides = [1, 1]} : vector<38x8xf32> to vector<24x8xf32>
    %35 = arith.truncf %34 : vector<24x8xf32> to vector<24x8xbf16>
    %c5 = arith.constant 5 : index
    %c0_20 = arith.constant 0 : index
    %c0_21 = arith.constant 0 : index
    %36 = vector.load %arg2[%c5, %c0_20, %c0_21] : memref<9x8x16xbf16, #tpu.memory_space<vmem>>, vector<1x8x16xbf16>
    %37 = vector.shape_cast %36 : vector<1x8x16xbf16> to vector<8x16xbf16>
    %cst_22 = arith.constant dense<0.000000e+00> : vector<24x16xf32>
    %38 = tpu.matmul %35, %37, %cst_22 {dimension_numbers = #tpu.dot_dimension_numbers<[1], [0], [0], [1], [0, 0, 1, 1], [], []>} : vector<24x8xbf16>, vector<8x16xbf16>, vector<24x16xf32> -> vector<24x16xf32>
    %39 = arith.addf %33, %38 : vector<24x16xf32>
    %40 = vector.extract_strided_slice %2 {offsets = [12, 0], sizes = [24, 8], strides = [1, 1]} : vector<38x8xf32> to vector<24x8xf32>
    %41 = arith.truncf %40 : vector<24x8xf32> to vector<24x8xbf16>
    %c6 = arith.constant 6 : index
    %c0_23 = arith.constant 0 : index
    %c0_24 = arith.constant 0 : index
    %42 = vector.load %arg2[%c6, %c0_23, %c0_24] : memref<9x8x16xbf16, #tpu.memory_space<vmem>>, vector<1x8x16xbf16>
    %43 = vector.shape_cast %42 : vector<1x8x16xbf16> to vector<8x16xbf16>
    %cst_25 = arith.constant dense<0.000000e+00> : vector<24x16xf32>
    %44 = tpu.matmul %41, %43, %cst_25 {dimension_numbers = #tpu.dot_dimension_numbers<[1], [0], [0], [1], [0, 0, 1, 1], [], []>} : vector<24x8xbf16>, vector<8x16xbf16>, vector<24x16xf32> -> vector<24x16xf32>
    %45 = arith.addf %39, %44 : vector<24x16xf32>
    %46 = vector.extract_strided_slice %2 {offsets = [13, 0], sizes = [24, 8], strides = [1, 1]} : vector<38x8xf32> to vector<24x8xf32>
    %47 = arith.truncf %46 : vector<24x8xf32> to vector<24x8xbf16>
    %c7 = arith.constant 7 : index
    %c0_26 = arith.constant 0 : index
    %c0_27 = arith.constant 0 : index
    %48 = vector.load %arg2[%c7, %c0_26, %c0_27] : memref<9x8x16xbf16, #tpu.memory_space<vmem>>, vector<1x8x16xbf16>
    %49 = vector.shape_cast %48 : vector<1x8x16xbf16> to vector<8x16xbf16>
    %cst_28 = arith.constant dense<0.000000e+00> : vector<24x16xf32>
    %50 = tpu.matmul %47, %49, %cst_28 {dimension_numbers = #tpu.dot_dimension_numbers<[1], [0], [0], [1], [0, 0, 1, 1], [], []>} : vector<24x8xbf16>, vector<8x16xbf16>, vector<24x16xf32> -> vector<24x16xf32>
    %51 = arith.addf %45, %50 : vector<24x16xf32>
    %52 = vector.extract_strided_slice %2 {offsets = [14, 0], sizes = [24, 8], strides = [1, 1]} : vector<38x8xf32> to vector<24x8xf32>
    %53 = arith.truncf %52 : vector<24x8xf32> to vector<24x8xbf16>
    %c8 = arith.constant 8 : index
    %c0_29 = arith.constant 0 : index
    %c0_30 = arith.constant 0 : index
    %54 = vector.load %arg2[%c8, %c0_29, %c0_30] : memref<9x8x16xbf16, #tpu.memory_space<vmem>>, vector<1x8x16xbf16>
    %55 = vector.shape_cast %54 : vector<1x8x16xbf16> to vector<8x16xbf16>
    %cst_31 = arith.constant dense<0.000000e+00> : vector<24x16xf32>
    %56 = tpu.matmul %53, %55, %cst_31 {dimension_numbers = #tpu.dot_dimension_numbers<[1], [0], [0], [1], [0, 0, 1, 1], [], []>} : vector<24x8xbf16>, vector<8x16xbf16>, vector<24x16xf32> -> vector<24x16xf32>
    %57 = arith.addf %51, %56 : vector<24x16xf32>
    %c0_32 = arith.constant 0 : index
    %c0_33 = arith.constant 0 : index
    %58 = vector.load %arg3[%c0_32, %c0_33] : memref<1x16xf32, #tpu.memory_space<vmem>>, vector<1x16xf32>
    %59 = vector.broadcast %58 : vector<1x16xf32> to vector<24x16xf32>
    %60 = arith.addf %57, %59 : vector<24x16xf32>
    %cst_34 = arith.constant 0.000000e+00 : f32
    %61 = vector.broadcast %cst_34 : f32 to vector<24x16xf32>
    %62 = arith.maximumf %60, %61 : vector<24x16xf32>
    %63 = vector.broadcast %0 : vector<24x1xf32> to vector<24x16xf32>
    %64 = arith.mulf %62, %63 : vector<24x16xf32>
    %cst_35 = arith.constant 0.000000e+00 : f32
    %65 = vector.broadcast %cst_35 : f32 to vector<38x16xf32>
    %c0_36 = arith.constant 0 : index
    %c0_37 = arith.constant 0 : index
    %66 = vector.load %arg8[%c0_36, %c0_37] : memref<38x16xf32, #tpu.memory_space<vmem>>, vector<38x16xf32>
    tpu.vector_store %arg8[%c0_36, %c0_37], %65 {strides = array<i32>} : memref<38x16xf32, #tpu.memory_space<vmem>>, vector<38x16xf32>,
    %c7_38 = arith.constant 7 : index
    %c0_39 = arith.constant 0 : index
    %67 = vector.load %arg8[%c7_38, %c0_39] : memref<38x16xf32, #tpu.memory_space<vmem>>, vector<24x16xf32>
    tpu.vector_store %arg8[%c7_38, %c0_39], %64 {strides = array<i32>} : memref<38x16xf32, #tpu.memory_space<vmem>>, vector<24x16xf32>,
    %c0_40 = arith.constant 0 : index
    %c0_41 = arith.constant 0 : index
    %68 = vector.load %arg8[%c0_40, %c0_41] : memref<38x16xf32, #tpu.memory_space<vmem>>, vector<38x16xf32>
    %cst_42 = arith.constant 0.000000e+00 : f32
    %69 = vector.broadcast %cst_42 : f32 to vector<24x16xf32>
    %70 = vector.extract_strided_slice %68 {offsets = [0, 0], sizes = [24, 16], strides = [1, 1]} : vector<38x16xf32> to vector<24x16xf32>
    %71 = arith.truncf %70 : vector<24x16xf32> to vector<24x16xbf16>
    %c0_43 = arith.constant 0 : index
    %c0_44 = arith.constant 0 : index
    %c0_45 = arith.constant 0 : index
    %72 = vector.load %arg4[%c0_43, %c0_44, %c0_45] : memref<9x16x16xbf16, #tpu.memory_space<vmem>>, vector<1x16x16xbf16>
    %73 = vector.shape_cast %72 : vector<1x16x16xbf16> to vector<16x16xbf16>
    %cst_46 = arith.constant dense<0.000000e+00> : vector<24x16xf32>
    %74 = tpu.matmul %71, %73, %cst_46 {dimension_numbers = #tpu.dot_dimension_numbers<[1], [0], [0], [1], [0, 0, 1, 1], [], []>} : vector<24x16xbf16>, vector<16x16xbf16>, vector<24x16xf32> -> vector<24x16xf32>
    %75 = arith.addf %69, %74 : vector<24x16xf32>
    %76 = vector.extract_strided_slice %68 {offsets = [1, 0], sizes = [24, 16], strides = [1, 1]} : vector<38x16xf32> to vector<24x16xf32>
    %77 = arith.truncf %76 : vector<24x16xf32> to vector<24x16xbf16>
    %c1_47 = arith.constant 1 : index
    %c0_48 = arith.constant 0 : index
    %c0_49 = arith.constant 0 : index
    %78 = vector.load %arg4[%c1_47, %c0_48, %c0_49] : memref<9x16x16xbf16, #tpu.memory_space<vmem>>, vector<1x16x16xbf16>
    %79 = vector.shape_cast %78 : vector<1x16x16xbf16> to vector<16x16xbf16>
    %cst_50 = arith.constant dense<0.000000e+00> : vector<24x16xf32>
    %80 = tpu.matmul %77, %79, %cst_50 {dimension_numbers = #tpu.dot_dimension_numbers<[1], [0], [0], [1], [0, 0, 1, 1], [], []>} : vector<24x16xbf16>, vector<16x16xbf16>, vector<24x16xf32> -> vector<24x16xf32>
    %81 = arith.addf %75, %80 : vector<24x16xf32>
    %82 = vector.extract_strided_slice %68 {offsets = [2, 0], sizes = [24, 16], strides = [1, 1]} : vector<38x16xf32> to vector<24x16xf32>
    %83 = arith.truncf %82 : vector<24x16xf32> to vector<24x16xbf16>
    %c2_51 = arith.constant 2 : index
    %c0_52 = arith.constant 0 : index
    %c0_53 = arith.constant 0 : index
    %84 = vector.load %arg4[%c2_51, %c0_52, %c0_53] : memref<9x16x16xbf16, #tpu.memory_space<vmem>>, vector<1x16x16xbf16>
    %85 = vector.shape_cast %84 : vector<1x16x16xbf16> to vector<16x16xbf16>
    %cst_54 = arith.constant dense<0.000000e+00> : vector<24x16xf32>
    %86 = tpu.matmul %83, %85, %cst_54 {dimension_numbers = #tpu.dot_dimension_numbers<[1], [0], [0], [1], [0, 0, 1, 1], [], []>} : vector<24x16xbf16>, vector<16x16xbf16>, vector<24x16xf32> -> vector<24x16xf32>
    %87 = arith.addf %81, %86 : vector<24x16xf32>
    %88 = vector.extract_strided_slice %68 {offsets = [6, 0], sizes = [24, 16], strides = [1, 1]} : vector<38x16xf32> to vector<24x16xf32>
    %89 = arith.truncf %88 : vector<24x16xf32> to vector<24x16xbf16>
    %c3_55 = arith.constant 3 : index
    %c0_56 = arith.constant 0 : index
    %c0_57 = arith.constant 0 : index
    %90 = vector.load %arg4[%c3_55, %c0_56, %c0_57] : memref<9x16x16xbf16, #tpu.memory_space<vmem>>, vector<1x16x16xbf16>
    %91 = vector.shape_cast %90 : vector<1x16x16xbf16> to vector<16x16xbf16>
    %cst_58 = arith.constant dense<0.000000e+00> : vector<24x16xf32>
    %92 = tpu.matmul %89, %91, %cst_58 {dimension_numbers = #tpu.dot_dimension_numbers<[1], [0], [0], [1], [0, 0, 1, 1], [], []>} : vector<24x16xbf16>, vector<16x16xbf16>, vector<24x16xf32> -> vector<24x16xf32>
    %93 = arith.addf %87, %92 : vector<24x16xf32>
    %94 = vector.extract_strided_slice %68 {offsets = [7, 0], sizes = [24, 16], strides = [1, 1]} : vector<38x16xf32> to vector<24x16xf32>
    %95 = arith.truncf %94 : vector<24x16xf32> to vector<24x16xbf16>
    %c4_59 = arith.constant 4 : index
    %c0_60 = arith.constant 0 : index
    %c0_61 = arith.constant 0 : index
    %96 = vector.load %arg4[%c4_59, %c0_60, %c0_61] : memref<9x16x16xbf16, #tpu.memory_space<vmem>>, vector<1x16x16xbf16>
    %97 = vector.shape_cast %96 : vector<1x16x16xbf16> to vector<16x16xbf16>
    %cst_62 = arith.constant dense<0.000000e+00> : vector<24x16xf32>
    %98 = tpu.matmul %95, %97, %cst_62 {dimension_numbers = #tpu.dot_dimension_numbers<[1], [0], [0], [1], [0, 0, 1, 1], [], []>} : vector<24x16xbf16>, vector<16x16xbf16>, vector<24x16xf32> -> vector<24x16xf32>
    %99 = arith.addf %93, %98 : vector<24x16xf32>
    %100 = vector.extract_strided_slice %68 {offsets = [8, 0], sizes = [24, 16], strides = [1, 1]} : vector<38x16xf32> to vector<24x16xf32>
    %101 = arith.truncf %100 : vector<24x16xf32> to vector<24x16xbf16>
    %c5_63 = arith.constant 5 : index
    %c0_64 = arith.constant 0 : index
    %c0_65 = arith.constant 0 : index
    %102 = vector.load %arg4[%c5_63, %c0_64, %c0_65] : memref<9x16x16xbf16, #tpu.memory_space<vmem>>, vector<1x16x16xbf16>
    %103 = vector.shape_cast %102 : vector<1x16x16xbf16> to vector<16x16xbf16>
    %cst_66 = arith.constant dense<0.000000e+00> : vector<24x16xf32>
    %104 = tpu.matmul %101, %103, %cst_66 {dimension_numbers = #tpu.dot_dimension_numbers<[1], [0], [0], [1], [0, 0, 1, 1], [], []>} : vector<24x16xbf16>, vector<16x16xbf16>, vector<24x16xf32> -> vector<24x16xf32>
    %105 = arith.addf %99, %104 : vector<24x16xf32>
    %106 = vector.extract_strided_slice %68 {offsets = [12, 0], sizes = [24, 16], strides = [1, 1]} : vector<38x16xf32> to vector<24x16xf32>
    %107 = arith.truncf %106 : vector<24x16xf32> to vector<24x16xbf16>
    %c6_67 = arith.constant 6 : index
    %c0_68 = arith.constant 0 : index
    %c0_69 = arith.constant 0 : index
    %108 = vector.load %arg4[%c6_67, %c0_68, %c0_69] : memref<9x16x16xbf16, #tpu.memory_space<vmem>>, vector<1x16x16xbf16>
    %109 = vector.shape_cast %108 : vector<1x16x16xbf16> to vector<16x16xbf16>
    %cst_70 = arith.constant dense<0.000000e+00> : vector<24x16xf32>
    %110 = tpu.matmul %107, %109, %cst_70 {dimension_numbers = #tpu.dot_dimension_numbers<[1], [0], [0], [1], [0, 0, 1, 1], [], []>} : vector<24x16xbf16>, vector<16x16xbf16>, vector<24x16xf32> -> vector<24x16xf32>
    %111 = arith.addf %105, %110 : vector<24x16xf32>
    %112 = vector.extract_strided_slice %68 {offsets = [13, 0], sizes = [24, 16], strides = [1, 1]} : vector<38x16xf32> to vector<24x16xf32>
    %113 = arith.truncf %112 : vector<24x16xf32> to vector<24x16xbf16>
    %c7_71 = arith.constant 7 : index
    %c0_72 = arith.constant 0 : index
    %c0_73 = arith.constant 0 : index
    %114 = vector.load %arg4[%c7_71, %c0_72, %c0_73] : memref<9x16x16xbf16, #tpu.memory_space<vmem>>, vector<1x16x16xbf16>
    %115 = vector.shape_cast %114 : vector<1x16x16xbf16> to vector<16x16xbf16>
    %cst_74 = arith.constant dense<0.000000e+00> : vector<24x16xf32>
    %116 = tpu.matmul %113, %115, %cst_74 {dimension_numbers = #tpu.dot_dimension_numbers<[1], [0], [0], [1], [0, 0, 1, 1], [], []>} : vector<24x16xbf16>, vector<16x16xbf16>, vector<24x16xf32> -> vector<24x16xf32>
    %117 = arith.addf %111, %116 : vector<24x16xf32>
    %118 = vector.extract_strided_slice %68 {offsets = [14, 0], sizes = [24, 16], strides = [1, 1]} : vector<38x16xf32> to vector<24x16xf32>
    %119 = arith.truncf %118 : vector<24x16xf32> to vector<24x16xbf16>
    %c8_75 = arith.constant 8 : index
    %c0_76 = arith.constant 0 : index
    %c0_77 = arith.constant 0 : index
    %120 = vector.load %arg4[%c8_75, %c0_76, %c0_77] : memref<9x16x16xbf16, #tpu.memory_space<vmem>>, vector<1x16x16xbf16>
    %121 = vector.shape_cast %120 : vector<1x16x16xbf16> to vector<16x16xbf16>
    %cst_78 = arith.constant dense<0.000000e+00> : vector<24x16xf32>
    %122 = tpu.matmul %119, %121, %cst_78 {dimension_numbers = #tpu.dot_dimension_numbers<[1], [0], [0], [1], [0, 0, 1, 1], [], []>} : vector<24x16xbf16>, vector<16x16xbf16>, vector<24x16xf32> -> vector<24x16xf32>
    %123 = arith.addf %117, %122 : vector<24x16xf32>
    %c0_79 = arith.constant 0 : index
    %c0_80 = arith.constant 0 : index
    %124 = vector.load %arg5[%c0_79, %c0_80] : memref<1x16xf32, #tpu.memory_space<vmem>>, vector<1x16xf32>
    %125 = vector.broadcast %124 : vector<1x16xf32> to vector<24x16xf32>
    %126 = arith.addf %123, %125 : vector<24x16xf32>
    %cst_81 = arith.constant 0.000000e+00 : f32
    %127 = vector.broadcast %cst_81 : f32 to vector<24x16xf32>
    %128 = arith.maximumf %126, %127 : vector<24x16xf32>
    %129 = vector.broadcast %0 : vector<24x1xf32> to vector<24x16xf32>
    %130 = arith.mulf %128, %129 : vector<24x16xf32>
    %cst_82 = arith.constant dense<0.000000e+00> : vector<16xf32>
    %131 = vector.multi_reduction <add>, %130, %cst_82 [0] : vector<24x16xf32> to vector<16xf32>
    %132 = vector.shape_cast %131 : vector<16xf32> to vector<1x16xf32>
    %cst_83 = arith.constant 1.600000e+01 : f32
    %133 = vector.broadcast %cst_83 : f32 to vector<1x16xf32>
    %134 = arith.divf %132, %133 : vector<1x16xf32>
    %c0_84 = arith.constant 0 : index
    %c0_85 = arith.constant 0 : index
    %c0_86 = arith.constant 0 : index
    %135 = vector.load %arg7[%c0_84, %c0_85, %c0_86] : memref<1x1x16xf32, #tpu.memory_space<vmem>>, vector<1x1x16xf32>
    %136 = vector.shape_cast %135 : vector<1x1x16xf32> to vector<1x16xf32>
    %137 = vector.shape_cast %134 : vector<1x16xf32> to vector<1x1x16xf32>
    tpu.vector_store %arg7[%c0_84, %c0_85, %c0_86], %137 {strides = array<i32>} : memref<1x1x16xf32, #tpu.memory_space<vmem>>, vector<1x1x16xf32>,
    return
  }
  func.func @transform_0(%arg0: i32) -> (i32, i32, i32) {
    %c0_i32 = arith.constant 0 : i32
    %c0_i32_0 = arith.constant 0 : i32
    %c0_i32_1 = arith.constant 0 : i32
    return %arg0, %c0_i32, %c0_i32_0 : i32, i32, i32
  }
  func.func @transform_1(%arg0: i32) -> (i32, i32, i32) {
    %c0_i32 = arith.constant 0 : i32
    %c0_i32_0 = arith.constant 0 : i32
    %c0_i32_1 = arith.constant 0 : i32
    %c0_i32_2 = arith.constant 0 : i32
    return %c0_i32, %c0_i32_0, %c0_i32_1 : i32, i32, i32
  }
  func.func @transform_2(%arg0: i32) -> (i32, i32) {
    %c0_i32 = arith.constant 0 : i32
    %c0_i32_0 = arith.constant 0 : i32
    %c0_i32_1 = arith.constant 0 : i32
    return %c0_i32, %c0_i32_0 : i32, i32
  }
  func.func @transform_3(%arg0: i32) -> (i32, i32, i32) {
    %c0_i32 = arith.constant 0 : i32
    %c0_i32_0 = arith.constant 0 : i32
    %c0_i32_1 = arith.constant 0 : i32
    %c0_i32_2 = arith.constant 0 : i32
    return %c0_i32, %c0_i32_0, %c0_i32_1 : i32, i32, i32
  }
  func.func @transform_4(%arg0: i32) -> (i32, i32) {
    %c0_i32 = arith.constant 0 : i32
    %c0_i32_0 = arith.constant 0 : i32
    %c0_i32_1 = arith.constant 0 : i32
    return %c0_i32, %c0_i32_0 : i32, i32
  }
  func.func @transform_5(%arg0: i32) -> (i32, i32) {
    %c0_i32 = arith.constant 0 : i32
    %c0_i32_0 = arith.constant 0 : i32
    %c0_i32_1 = arith.constant 0 : i32
    return %c0_i32, %c0_i32_0 : i32, i32
  }
  func.func @transform_6(%arg0: i32) -> (i32, i32, i32) {
    %c0_i32 = arith.constant 0 : i32
    %c0_i32_0 = arith.constant 0 : i32
    %c0_i32_1 = arith.constant 0 : i32
    return %arg0, %c0_i32, %c0_i32_0 : i32, i32, i32
  }
}

</mosaic_0001>

<bundles_post_ra>
// kernel: _lambda_.4
= control target key start
LH: loop header
LB: loop body
LE: loop exit
PB: predicated region body
PF: predicated region fallthrough
CT: control target
= control target key end

     0   :  { %s2201_s21 = smov 0   ;;  %s3003_s0 = inlined_call_operand.vmem [shape: f32[2,102,4], index: 0, kind: input, shape index: {}]   ;;  %s3004_s1 = inlined_call_operand.vmem [shape: bf16[9,4,8], index: 1, kind: input, shape index: {}]   ;;  %s3005_s2 = inlined_call_operand.vmem [shape: f32[1,8], index: 2, kind: input, shape index: {}]   ;;  %s3006_s3 = inlined_call_operand.vmem [shape: bf16[9,8,8], index: 3, kind: input, shape index: {}]   ;;  %s3007_s4 = inlined_call_operand.vmem [shape: f32[1,8], index: 4, kind: input, shape index: {}]   ;;  %s3008_s5 = inlined_call_operand.vmem [shape: f32[80,1], index: 5, kind: input, shape index: {}]   ;;  %s3009_s6 = inlined_call_operand.vmem [shape: f32[2,80,8], index: 6, kind: output, shape index: {}]  }
   0x1 LB: > { %s2022_s22 = sadd.s32 4294967295, %s2162_s21   ;;  %p2026_p0 = scmp.ge.s32.totalorder %s2162_s21, 1  ;;  %s2162_s21 = sphi %s2201_s21, %s16_s21  }
   0x2   : > { %p212_p1 = scmp.lt.s32.totalorder %s2162_s21, 3 }
   0x4   : > { %p213_p2 = pnand %p2026_p0, %p212_p1 }
   0x5   : > { %p242_p3 = scmp.lt.s32.totalorder (!%p213_p2), %s2022_s22, 1 }
   0x6   : > { %216 = sbr.rel (%p213_p2) target bundleno = 684 (0x2ac), region = 44 }
   0xb   : > { %v2029_v0 = vld [vmem:[%s3004_s1 + $0x2] sm:$0x3]  ;;  %vm346_vm0 = vcmask 1041408   ;;  %v281_v1 = vld [vmem:[%s3004_s1] sm:$0x3]  ;;  %s3011_s22 = smov (!%p242_p3, %s2022_s22), 1 }
   0xc   : > { %v348_v2 = vsel %vm346_vm0, %v2029_v0, 0  ;;  %v395_v3 = vsel %vm346_vm0, %v281_v1, 0  ;;  %v2052_v4 = vld [vmem:[%s3004_s1 + $0x8] sm:$0x3]  ;;  %v2040_v5 = vld [vmem:[%s3004_s1 + $0x4] sm:$0x3] }
   0xd   : > { %357 = vmatpush.bf16.msra.mxu0 %v348_v2  ;;  %2137 = vmatpush.bf16.msra.mxu2 %v348_v2  ;;  %v672_v6 = vsel %vm346_vm0, %v2052_v4, 0  ;;  %v467_v7 = vsel %vm346_vm0, %v2040_v5, 0  ;;  %v2046_v8 = vld [vmem:[%s3004_s1 + $0x6] sm:$0x3]  ;;  %s2139_s9 = smul.u32 104, %s3011_s22  ;;  %vm330_vm1 = vcmask 31744  }
   0xe   : > { %404 = vmatpush.bf16.msra.mxu1 %v395_v3  ;;  %2138 = vmatpush.bf16.msra.mxu3 %v395_v3  ;;  %v554_v9 = vsel %vm346_vm0, %v2046_v8, 0  ;;  %vm285_vm2 = vsmask.f32 7424  ;;  %v2064_v40 = vld [vmem:[%s3004_s1 + $0xc] sm:$0x3]  ;;  %vm439_vm3 = vcmask 1046528  }
   0xf   : > { %s2235_s12 = scalar_lea.vmem %s3003_s0, %s2139_s9  ;;  %v2070_v42 = vld [vmem:[%s3004_s1 + $0xe] sm:$0x3]  ;;  %v2058_v43 = vld [vmem:[%s3004_s1 + $0xa] sm:$0x3]  ;;  %v827_v44 = vsel %vm346_vm0, %v2064_v40, 0  ;;  %vm720_vm4 = vcmask 1045504  }
  0x10   : > { %v263_v10 = vld [vmem:[%s2235_s12] sm:$0xff]  ;;  %v264_v11 = vld [vmem:[%s2235_s12 + $0x8] sm:$0xff]  ;;  %v265_v12 = vld [vmem:[%s2235_s12 + $0x10] sm:$0xff]  ;;  %v925_v45 = vsel %vm346_vm0, %v2070_v42, 0  ;;  %v748_v46 = vsel %vm346_vm0, %v2058_v43, 0  ;;  %vm973_vm7 = vcmask 1044480  }
  0x11   : > { %681 = vmatpush.bf16.msrb.mxu0 %v672_v6  ;;  %476 = vmatpush.bf16.msrb.mxu2 %v467_v7  ;;  %v266_v13 = vld [vmem:[%s2235_s12 + $0x18] sm:$0xff]  ;;  %v2241_v14 = vpack.c.bf16 %v264_v11, %v263_v10  ;;  %v2244_v15 = vld [vmem:[%s2235_s12 + $0x30] sm:$0xff]  ;;  %v2252_v18 = vld [vmem:[%s2235_s12 + $0x40] sm:$0xff]  ;;  %v513_v57 = vpack.c.bf16 %v265_v12, %v264_v11  ;;  %vm602_vm5 = vsmask.f32 6400  ;;  %vm1237_vm8 = vcmask 1043456  }
  0x12   : > { %563 = vmatpush.bf16.msrb.mxu3 %v554_v9  ;;  %v2247_v16 = vld [vmem:[%s2235_s12 + $0x38] sm:$0xff]  ;;  %v2249_v17 = vpack.c.bf16 %v266_v13, %v265_v12  ;;  %v2255_v19 = vld [vmem:[%s2235_s12 + $0x48] sm:$0xff]  ;;  %v267_v34 = vld [vmem:[%s2235_s12 + $0x20] sm:$0xff]  ;;  %757 = vmatpush.bf16.msrb.mxu1 %v748_v46  ;;  %vm875_vm6 = vsmask.f32 5376  ;;  %vm1131_vm9 = vcmask 64512  }
  0x13   : > { %v2259_v20 = vpack.c.bf16 %v2247_v16, %v2244_v15  ;;  %v287_v21 = vshrl.u32 %v2241_v14, 16  ;;  %v289_v22 = vshll.u32 %v2241_v14, 16  ;;  %v2265_v23 = vpack.c.bf16 %v2255_v19, %v2252_v18  ;;  %2035 = vmatmul.msk.bf16.vlgmr.msra.gmra.mxu1 %vm330_vm1, %v2241_v14  ;;  %v268_v35 = vld [vmem:[%s2235_s12 + $0x28] sm:$0xff]  ;;  %v2287_v37 = vld [vmem:[%s2235_s12 + $0x50] sm:$0xff]  ;;  %s2140_s19 = smul.u32 80, %s3011_s22 }
  0x14   : > { %v294_v24 = vshll.u32 %v2249_v17, 16  ;;  %v2292_v39 = vpack.c.bf16 %v268_v35, %v267_v34  ;;  %v2299_v41 = vpack.c.bf16 %v2287_v37, %v2287_v37  ;;  %v298_v47 = vshrl.u32 %v2249_v17, 16  ;;  %v2076_v59 = vld [vmem:[%s3004_s1 + $0x10] sm:$0x3] }
  0x15   : > { %v310_v25 = vshll.u32 %v2259_v20, 16  ;;  %v314_v26 = vshrl.u32 %v2259_v20, 16  ;;  %2038 = vmatmul.msk.bf16.vlgmr.msra.gmra.mxu3 %vm330_vm1, %v2259_v20  ;;  %v291_v27 = vrot.slane %v289_v22, 1  ;;  %v318_v28 = vshll.u32 %v2265_v23, 16  ;;  %s2964_s24 = scalar_lea.vmem %s3009_s6, %s2140_s19 }
  0x16   : > { %v296_v29 = vrot.slane %v294_v24, 1  ;;  %934 = vmatpush.bf16.msra.mxu3 %v925_v45  ;;  %v302_v48 = vshll.u32 %v2292_v39, 16  ;;  %v322_v49 = vshrl.u32 %v2265_v23, 16  ;;  %v326_v50 = vshll.u32 %v2299_v41, 16 }
  0x17   : > { %v312_v30 = vrot.slane %v310_v25, 1  ;;  %v292_v31 = vor.u32 %v291_v27, %v287_v21  ;;  %v320_v32 = vrot.slane %v318_v28, 1  ;;  %v514_v58 = vpack.c.bf16 %v267_v34, %v266_v13 }
  0x18   : > { %v300_v51 = vor.u32 %v298_v47, %v296_v29  ;;  %v304_v52 = vrot.slane %v302_v48, 1  ;;  %v328_v54 = vrot.slane %v326_v50, 1  ;;  %v1001_v60 = vsel %vm346_vm0, %v2076_v59, 0 }
  0x19   : > { %v316_v33 = vor.u32 %v314_v26, %v312_v30  ;;  %v297_v36 = vsel %vm285_vm2, %v292_v31, %v296_v29  ;;  %v324_v53 = vor.u32 %v322_v49, %v320_v32  ;;  %v527_v61 = vrot.slane %v513_v57, 1 }
  0x1a   : > { %2030 = vmatmul.msk.bf16.vlgmr.msra.gmra.mxu0 %vm330_vm1, %v297_v36  ;;  %v305_v55 = vsel %vm285_vm2, %v300_v51, %v304_v52  ;;  %v528_v62 = vrot.slane %v514_v58, 1  ;;  %v306_v63 = vshrl.u32 %v2292_v39, 16  ;;  %v440_v2 = vrot.slane %v2241_v14, 1 }
  0x1b   : > { %v321_v38 = vsel %vm285_vm2, %v316_v33, %v320_v32  ;;  %v329_v56 = vsel %vm285_vm2, %v324_v53, %v328_v54  ;;  %1010 = vmatpush.bf16.msra.mxu0 %v1001_v60  ;;  %v441_v3 = vrot.slane %v2249_v17, 1  ;;  %v515_v6 = vpack.c.bf16 %v2244_v15, %v268_v35 }
  0x1c   : > { %2033 = vmatmul.msk.bf16.vlgmr.msra.gmra.mxu2 %vm330_vm1, %v321_v38  ;;  %v529_v0 = vsel %vm439_vm3, %v527_v61, %v528_v62  ;;  %v308_v1 = vor.u32 %v306_v63, %v304_v52  ;;  %v604_v7 = vshrl.u32 %v513_v57, 16  ;;  %v607_v8 = vshll.u32 %v513_v57, 16 }
  0x1d   : > { %836 = vmatpush.bf16.msra.mxu2 %v827_v44  ;;  %v442_v5 = vsel %vm439_vm3, %v440_v2, %v441_v3  ;;  %v612_v9 = vshrl.u32 %v514_v58, 16  ;;  %v615_v10 = vshll.u32 %v514_v58, 16  ;;  %v721_v11 = vrot.slane %v513_v57, 2 }
  0x1e   : > { %v313_v4 = vsel %vm285_vm2, %v308_v1, %v312_v30  ;;  %v722_v12 = vrot.slane %v514_v58, 2  ;;  %v530_v13 = vrot.slane %v515_v6, 1  ;;  %v606_v14 = vrot.slane %v604_v7, 1 }
  0x1f   : > { %v609_v21 = vrot.slane %v607_v8, 2  ;;  %v614_v22 = vrot.slane %v612_v9, 1  ;;  %v617_v27 = vrot.slane %v615_v10, 2  ;;  %v443_v32 = vrot.slane %v2292_v39, 1 }
  0x20   : > { %v723_v29 = vsel %vm720_vm4, %v721_v11, %v722_v12  ;;  %v531_v15 = vsel %vm439_vm3, %v528_v62, %v530_v13  ;;  %v516_v35 = vpack.c.bf16 %v2252_v18, %v2247_v16  ;;  %v621_v36 = vshrl.u32 %v515_v6, 16 }
  0x21   : > { %v610_v30 = vor.u32 %v609_v21, %v606_v14  ;;  %v618_v31 = vor.u32 %v617_v27, %v614_v22  ;;  %v444_v34 = vsel %vm439_vm3, %v441_v3, %v443_v32  ;;  %v624_v38 = vshll.u32 %v515_v6, 16  ;;  %v2382_v3 = vld [vmem:[%s2235_s12 + $0x58] sm:$0xff] }
  0x22   : > { %v724_v40 = vrot.slane %v515_v6, 2  ;;  %v532_v42 = vrot.slane %v516_v35, 1  ;;  %v623_v43 = vrot.slane %v621_v36, 1  ;;  %v445_v51 = vrot.slane %v2259_v20, 1 }
  0x23   : > { %2036 = vmatmul.msk.bf16.gmra.mxu1 %vm330_vm1, %v2249_v17  ;;  %v619_v33 = vsel %vm602_vm5, %v610_v30, %v618_v31  ;;  %v626_v44 = vrot.slane %v624_v38, 2  ;;  %v517_v52 = vpack.c.bf16 %v2287_v37, %v2255_v19  ;;  %v630_v53 = vshrl.u32 %v516_v35, 16 }
  0x24   : > { %v725_v45 = vsel %vm720_vm4, %v722_v12, %v724_v40  ;;  %v533_v46 = vsel %vm439_vm3, %v530_v13, %v532_v42  ;;  %v446_v18 = vsel %vm439_vm3, %v443_v32, %v445_v51  ;;  %v633_v54 = vshll.u32 %v516_v35, 16 }
  0x25   : > { %2039 = vmatmul.msk.bf16.gmra.mxu3 %vm330_vm1, %v2265_v23  ;;  %v627_v50 = vor.u32 %v626_v44, %v623_v43  ;;  %v632_v57 = vrot.slane %v630_v53, 1  ;;  %v877_v61 = vrot.slane %v294_v24, 3  ;;  %v876_v19 = vrot.slane %v298_v47, 2 }
  0x26   : > { %v635_v58 = vrot.slane %v633_v54, 2  ;;  %v879_v1 = vrot.slane %v306_v63, 2  ;;  %v447_v2 = vrot.slane %v2265_v23, 1  ;;  %v518_v47 = vpack.c.bf16 %v2382_v3, %v2382_v3 }
  0x27   : > { %v628_v16 = vsel %vm602_vm5, %v618_v31, %v627_v50  ;;  %v639_v63 = vshrl.u32 %v517_v52, 16  ;;  %v642_v7 = vshll.u32 %v517_v52, 16  ;;  %v728_v8 = vrot.slane %v517_v52, 2 }
  0x28   : > { %v636_v62 = vor.u32 %v635_v58, %v632_v57  ;;  %v536_v9 = vrot.slane %v518_v47, 1  ;;  %v449_v21 = vrot.slane %v2299_v41, 1  ;;  %v651_v30 = vshll.u32 %v518_v47, 16  ;;  %v253_v41 = vld [vmem:[%s3008_s5] sm:$0xff] }
  0x29   : > { %v641_v10 = vrot.slane %v639_v63, 1  ;;  %v644_v11 = vrot.slane %v642_v7, 2  ;;  %v730_v31 = vrot.slane %v518_v47, 2  ;;  %v800_v38 = vrot.slane %v2249_v17, 2  ;;  %v275_v7 = vld [vmem:[%s2235_s12 + $0x60] sm:$0x3f] }
  0x2a   : > { %2031 = vmatmul.msk.bf16.gmra.mxu0 %vm330_vm1, %v305_v55  ;;  %v726_v55 = vrot.slane %v516_v35, 2  ;;  %v637_v24 = vsel %vm602_vm5, %v627_v50, %v636_v62  ;;  %v450_v27 = vsel %vm439_vm3, %v447_v2, %v449_v21  ;;  %v254_v35 = vld [vmem:[%s3008_s5 + $0x8] sm:$0xff]  ;;  %v883_v44 = vrot.slane %v314_v26, 2  ;;  %v259_v50 = vld [vmem:[%s3008_s5 + $0x30] sm:$0xff] }
  0x2b   : > { %v645_v14 = vor.u32 %v644_v11, %v641_v10  ;;  %v803_v53 = vrot.slane %v2259_v20, 2  ;;  %v887_v58 = vrot.slane %v322_v49, 2  ;;  %v979_v21 = vrot.slane %v2265_v23, 3 }
  0x2c   : > { %2034 = vmatmul.msk.bf16.gmra.mxu2 %vm330_vm1, %v329_v56  ;;  %v534_v56 = vrot.slane %v517_v52, 1  ;;  %v727_v59 = vsel %vm720_vm4, %v724_v40, %v726_v55  ;;  %v729_v12 = vsel %vm720_vm4, %v726_v55, %v728_v8  ;;  %v801_v40 = vrot.slane %v2292_v39, 2 }
  0x2d   : > { %v646_v22 = vsel %vm602_vm5, %v636_v62, %v645_v14  ;;  %v975_v52 = vrot.slane %v2292_v39, 3  ;;  %vm1144_vm10 = vcmask 62464  }
  0x2e   : > { %v535_v60 = vsel %vm439_vm3, %v532_v42, %v534_v56  ;;  %v537_v13 = vsel %vm439_vm3, %v534_v56, %v536_v9  ;;  %v802_v43 = vsel %vm720_vm4, %v800_v38, %v801_v40  ;;  %v804_v57 = vsel %vm720_vm4, %v801_v40, %v803_v53 }
  0x33   : > { %2037 = vmatmul.msk.bf16.gmra.mxu1 %vm330_vm1, %v2292_v39  ;;  %v260_v39 = vld [vmem:[%s3008_s5 + $0x38] sm:$0xff] }
  0x35   : > { %2047 = vmatmul.msk.bf16.vlgmr.msrb.gmra.mxu3 %vm330_vm1, %v529_v0  ;;  %v880_v0 = vrot.slane %v302_v48, 3 }
  0x37   : > { %v881_v6 = vor.u32 %v880_v0, %v879_v1  ;;  %v977_v0 = vrot.slane %v2259_v20, 3  ;;  %v805_v1 = vrot.slane %v2265_v23, 2  ;;  %v258_v23 = vld [vmem:[%s3008_s5 + $0x28] sm:$0xff] }
  0x3a   : > { %2032 = vmatmul.msk.bf16.gmra.mxu0 %vm330_vm1, %v313_v4  ;;  %v448_v4 = vsel %vm439_vm3, %v445_v51, %v447_v2 }
  0x3c   : > { %2041 = vmatmul.msk.bf16.vlgmr.msrb.gmra.mxu2 %vm330_vm1, %v442_v5  ;;  %v878_v5 = vor.u32 %v877_v61, %v876_v19 }
  0x3e   : > { %v882_v48 = vsel %vm875_vm6, %v878_v5, %v881_v6 }
  0x43   : > { %2059 = vmatmul.msk.bf16.vlgmr.msrb.gmra.mxu1 %vm330_vm1, %v723_v29  ;;  %v2164_v29 = vmov 0  }
  0x44   : > { %2151 = vset.pattern.permute.xlu0 %v2164_v29  ;;  %2152 = vset.pattern.permute.xlu1 %v2164_v29 }
  0x45   : > { %2048 = vmatmul.msk.bf16.gmra.mxu3 %vm330_vm1, %v531_v15  ;;  %2153 = vset.pattern.permute.xlu2 %v2164_v29  ;;  %v648_v15 = vshrl.u32 %v518_v47, 16 }
  0x46   : > { %1073 = vperm.xlu0 %2151, %v253_v41   ;;  %v980_v41 = vsel %vm973_vm7, %v977_v0, %v979_v21 }
  0x47   : > { %v650_v32 = vrot.slane %v648_v15, 1 }
  0x4a   : > { %2053 = vmatmul.msk.bf16.vlgmr.msrb.gmra.mxu0 %vm330_vm1, %v619_v33  ;;  %v653_v33 = vrot.slane %v651_v30, 2 }
  0x4c   : > { %2042 = vmatmul.msk.bf16.gmra.mxu2 %vm330_vm1, %v444_v34  ;;  %v731_v34 = vsel %vm720_vm4, %v728_v8, %v730_v31  ;;  %v654_v36 = vor.u32 %v653_v33, %v650_v32 }
  0x4e   : > { %1078 = vperm.xlu0 %2151, %v254_v35   ;;  %v655_v42 = vsel %vm602_vm5, %v645_v14, %v654_v36  ;;  %v257_v14 = vld [vmem:[%s3008_s5 + $0x20] sm:$0xff] }
  0x4f   : > { %1093 = vperm.xlu2 %2153, %v257_v14  }
  0x53   : > { %2060 = vmatmul.msk.bf16.gmra.mxu1 %vm330_vm1, %v725_v45  ;;  %v884_v45 = vrot.slane %v310_v25, 3  ;;  %v256_v25 = vld [vmem:[%s3008_s5 + $0x18] sm:$0xff] }
  0x55   : > { %2049 = vmatmul.msk.bf16.gmra.mxu3 %vm330_vm1, %v533_v46  ;;  %v255_v46 = vld [vmem:[%s3008_s5 + $0x10] sm:$0xff]  ;;  %v885_v51 = vor.u32 %v884_v45, %v883_v44 }
  0x56   : > { %1083 = vperm.xlu1 %2152, %v255_v46   ;;  %1103 = vperm.xlu0 %2151, %v259_v50   ;;  %v261_v50 = vld [vmem:[%s3008_s5 + $0x40] sm:$0xff] }
  0x57   : > { %v886_v26 = vsel %vm875_vm6, %v881_v6, %v885_v51  ;;  %v978_v6 = vsel %vm973_vm7, %v975_v52, %v977_v0  ;;  %1098 = vperm.xlu2 %2153, %v258_v23  }
  0x5a   : > { %2054 = vmatmul.msk.bf16.gmra.mxu0 %vm330_vm1, %v628_v16  ;;  %v262_v16 = vld [vmem:[%s3008_s5 + $0x48] sm:$0xff] }
  0x5c   : > { %2043 = vmatmul.msk.bf16.gmra.mxu2 %vm330_vm1, %v446_v18  ;;  %v974_v18 = vrot.slane %v2249_v17, 3  ;;  %v888_v17 = vrot.slane %v318_v28, 3  ;;  %v2455_v28 = vpack.c.bf16 %v2382_v3, %v2287_v37  ;;  %v806_v3 = vsel %vm720_vm4, %v803_v53, %v805_v1 }
  0x5e   : > { %1088 = vperm.xlu1 %2152, %v256_v25   ;;  %1118 = vperm.xlu0 %2151, %v262_v16   ;;  %v976_v55 = vsel %vm973_vm7, %v974_v18, %v975_v52  ;;  %v892_v2 = vshrl.u32 %v2455_v28, 16 }
  0x5f   : > { %1113 = vperm.xlu2 %2153, %v261_v50   ;;  %v1174_v50 = vld [vmem:[%s3006_s3] sm:$0xf] }
  0x60   : > { %v894_v47 = vrot.slane %v892_v2, 2 }
  0x63   : > { %2061 = vmatmul.msk.bf16.gmra.mxu1 %vm330_vm1, %v727_v59  ;;  %v889_v59 = vor.u32 %v888_v17, %v887_v58 }
  0x65   : > { %2050 = vmatmul.msk.bf16.gmra.mxu3 %vm330_vm1, %v535_v60  ;;  %v890_v49 = vsel %vm875_vm6, %v885_v51, %v889_v59  ;;  %v981_v51 = vrot.slane %v2455_v28, 3 }
  0x66   : > { %1108 = vperm.xlu1 %2152, %v260_v39  }
  0x67   : > { %v982_v52 = vsel %vm973_vm7, %v979_v21, %v981_v51 }
  0x6a   : > { %2055 = vmatmul.msk.bf16.gmra.mxu0 %vm330_vm1, %v637_v24  ;;  %v895_v24 = vshll.u32 %v2455_v28, 16 }
  0x6c   : > { %2044 = vmatmul.msk.bf16.gmra.mxu2 %vm330_vm1, %v448_v4 }
  0x73   : > { %2062 = vmatmul.msk.bf16.gmra.mxu1 %vm330_vm1, %v729_v12  ;;  %v795_v12 = vpack.c.bf16 %v275_v7, %v275_v7 }
  0x75   : > { %2051 = vmatmul.msk.bf16.gmra.mxu3 %vm330_vm1, %v537_v13  ;;  %v904_v29 = vshll.u32 %v795_v12, 16  ;;  %v983_v0 = vrot.slane %v795_v12, 3 }
  0x7a   : > { %2056 = vmatmul.msk.bf16.gmra.mxu0 %vm330_vm1, %v646_v22  ;;  %v807_v22 = vrot.slane %v2455_v28, 2  ;;  %v2082_v28 = vld [vmem:[%s3006_s3 + $0x4] sm:$0xf] }
  0x7c   : > { %2045 = vmatmul.msk.bf16.gmra.mxu2 %vm330_vm1, %v450_v27  ;;  %v901_v27 = vshrl.u32 %v795_v12, 16  ;;  %v808_v32 = vsel %vm720_vm4, %v805_v1, %v807_v22 }
  0x7e   : > { %v903_v33 = vrot.slane %v901_v27, 2 }
  0x83   : > { %2063 = vmatmul.msk.bf16.gmra.mxu1 %vm330_vm1, %v731_v34  ;;  %v906_v34 = vrot.slane %v904_v29, 3 }
  0x85   : > { %2071 = vmatmul.msk.bf16.vlgmr.msra.gmra.mxu3 %vm330_vm1, %v882_v48  ;;  %v897_v48 = vrot.slane %v895_v24, 3  ;;  %v907_v38 = vor.u32 %v906_v34, %v903_v33  ;;  %v984_v24 = vsel %vm973_vm7, %v981_v51, %v983_v0 }
  0x87   : > { %v898_v20 = vor.u32 %v897_v48, %v894_v47 }
  0x89   : > { %v899_v11 = vsel %vm875_vm6, %v889_v59, %v898_v20  ;;  %v908_v46 = vsel %vm875_vm6, %v898_v20, %v907_v38 }
  0x8a   : > { %2057 = vmatmul.msk.bf16.gmra.mxu0 %vm330_vm1, %v655_v42 }
  0x8c   : > { %2065 = vmatmul.msk.bf16.vlgmr.msra.gmra.mxu2 %vm330_vm1, %v802_v43 }
  0x90   : > { %v406_v13 = vpop.f32.mrf.mxu1 }
  0x95   : > { %2072 = vmatmul.msk.bf16.gmra.mxu3 %vm330_vm1, %v886_v26  ;;  %v809_v26 = vrot.slane %v795_v12, 2 }
  0x97   : > { %v359_v54 = vpop.f32.mrf.mxu0 }
  0x98   : > { %v421_v56 = vpop.f32.mrf.mxu3  ;;  %v2492_v35 = vpop.f32.mrf.mxu1  ;;  %v407_v36 = vadd.f32 %v406_v13, %v359_v54 }
  0x9a   : > { %2077 = vmatmul.msk.bf16.vlgmr.msra.gmra.mxu0 %vm330_vm1, %v976_v55  ;;  %v810_v55 = vsel %vm720_vm4, %v807_v22, %v809_v26 }
  0x9c   : > { %2066 = vmatmul.msk.bf16.gmra.mxu2 %vm330_vm1, %v804_v57 }
  0x9f   : > { %v374_v60 = vpop.f32.mrf.mxu2  ;;  %v2449_v62 = vpop.f32.mrf.mxu0 }
  0xa0   : > { %v2447_v61 = vadd.f32 %v421_v56, %v374_v60  ;;  %v2451_v19 = vpop.f32.mrf.mxu3  ;;  %v411_v25 = vpop.f32.mrf.mxu1 }
  0xa5   : > { %2073 = vmatmul.msk.bf16.gmra.mxu3 %vm330_vm1, %v890_v49  ;;  %v1239_v49 = vsel %vm1237_vm8, %v2082_v28, 0 }
  0xa6   : > { %1248 = vmatpush.bf16.msra.mxu1 %v1239_v49 }
  0xa7   : > { %v2463_v4 = vpop.f32.mrf.mxu2  ;;  %v364_v5 = vpop.f32.mrf.mxu0 }
  0xa8   : > { %v426_v37 = vpop.f32.mrf.mxu3  ;;  %v412_v56 = vadd.f32 %v411_v25, %v364_v5  ;;  %v2516_v59 = vpop.f32.mrf.mxu1  ;;  %v1286_v25 = vsel %vm1237_vm8, %v1174_v50, 0 }
  0xa9   : > { %1295 = vmatpush.bf16.msrb.mxu2 %v1286_v25 }
  0xaa   : > { %2078 = vmatmul.msk.bf16.gmra.mxu0 %vm330_vm1, %v978_v6 }
  0xac   : > { %2067 = vmatmul.msk.bf16.gmra.mxu2 %vm330_vm1, %v806_v3 }
  0xaf   : > { %v379_v63 = vpop.f32.mrf.mxu2  ;;  %v2472_v9 = vpop.f32.mrf.mxu0 }
  0xb0   : > { %v2470_v8 = vadd.f32 %v426_v37, %v379_v63  ;;  %v2474_v10 = vpop.f32.mrf.mxu3  ;;  %v416_v37 = vpop.f32.mrf.mxu1 }
  0xb5   : > { %2074 = vmatmul.msk.bf16.gmra.mxu3 %vm330_vm1, %v899_v11 }
  0xb7   : > { %v2483_v15 = vpop.f32.mrf.mxu2  ;;  %v369_v30 = vpop.f32.mrf.mxu0 }
  0xb8   : > { %v565_v31 = vpop.f32.mrf.mxu3  ;;  %v417_v3 = vadd.f32 %v416_v37, %v369_v30 }
  0xba   : > { %2079 = vmatmul.msk.bf16.gmra.mxu0 %vm330_vm1, %v980_v41  ;;  %v2541_v41 = vpop.f32.mrf.mxu1 }
  0xbc   : > { %2068 = vmatmul.msk.bf16.gmra.mxu2 %vm330_vm1, %v808_v32 }
  0xbf   : > { %v478_v40 = vpop.f32.mrf.mxu2  ;;  %v2494_v43 = vpop.f32.mrf.mxu0 }
  0xc0   : > { %v503_v42 = vadd.f32 %v478_v40, %v407_v36  ;;  %v2496_v44 = vpop.f32.mrf.mxu3 }
  0xc2   : > { %v590_v45 = vadd.f32 %v565_v31, %v503_v42  ;;  %v759_v23 = vpop.f32.mrf.mxu1  ;;  %v2165_v42 = vmov 0.0  }
  0xc3   : > { %1133 = vst.msk [vmem:[#allocation2 + $0x8] sm:$0xff] %vm1131_vm9, %v2165_v42 }
  0xc4   : > { %1134 = vst.msk [vmem:[#allocation2 + $0x10] sm:$0xff] %vm1131_vm9, %v2165_v42 }
  0xc5   : > { %2075 = vmatmul.msk.bf16.gmra.mxu3 %vm330_vm1, %v908_v46  ;;  %1132 = vst.msk [vmem:[#allocation2] sm:$0xff] %vm1131_vm9, %v2165_v42 }
  0xc6   : > { %1135 = vst.msk [vmem:[#allocation2 + $0x18] sm:$0xff] %vm1131_vm9, %v2165_v42 }
  0xc7   : > { %v2504_v16 = vpop.f32.mrf.mxu2  ;;  %v683_v18 = vpop.f32.mrf.mxu0  ;;  %1136 = vst.msk [vmem:[#allocation2 + $0x20] sm:$0xff] %vm1131_vm9, %v2165_v42 }
  0xc8   : > { %v570_v53 = vpop.f32.mrf.mxu3  ;;  %v2507_v54 = vadd.f32 %v683_v18, %v590_v45  ;;  %1137 = vst.msk [vmem:[#allocation2 + $0x28] sm:$0xff] %vm1131_vm9, %v2165_v42 }
  0xc9   : > { %1138 = vst.msk [vmem:[#allocation2 + $0x30] sm:$0xff] %vm1131_vm9, %v2165_v42 }
  0xca   : > { %2080 = vmatmul.msk.bf16.gmra.mxu0 %vm330_vm1, %v982_v52  ;;  %1139 = vst.msk [vmem:[#allocation2 + $0x38] sm:$0xff] %vm1131_vm9, %v2165_v42  ;;  %v409_v52 = vadd.f32 %v2492_v35, %v2449_v62  ;;  %v2595_v62 = vld [vmem:[%s3005_s2] ss:$0 sm:$0xff] }
  0xcb   : > { %1140 = vst.msk [vmem:[#allocation2 + $0x40] sm:$0xff] %vm1131_vm9, %v2165_v42 }
  0xcc   : > { %2069 = vmatmul.msk.bf16.gmra.mxu2 %vm330_vm1, %v810_v55  ;;  %1141 = vst.msk [vmem:[#allocation2 + $0x48] sm:$0xff] %vm1131_vm9, %v2165_v42 }
  0xcd   : > { %1142 = vst.msk [vmem:[#allocation2 + $0x50] sm:$0xff] %vm1131_vm9, %v2165_v42 }
  0xce   : > { %1143 = vst.msk [vmem:[#allocation2 + $0x58] sm:$0xff] %vm1131_vm9, %v2165_v42 }
  0xcf   : > { %v483_v57 = vpop.f32.mrf.mxu2  ;;  %v2512_v17 = vpop.f32.mrf.mxu0  ;;  %1145 = vst.msk [vmem:[#allocation2 + $0x60] sm:$0x3f] %vm1144_vm10, %v2165_v42 }
  0xd0   : > { %v505_v58 = vadd.f32 %v483_v57, %v412_v56  ;;  %v2514_v39 = vpop.f32.mrf.mxu3 }
  0xd2   : > { %v592_v60 = vadd.f32 %v570_v53, %v505_v58  ;;  %v504_v53 = vadd.f32 %v2504_v16, %v409_v52 }
  0xd4   : > { %v591_v28 = vadd.f32 %v2496_v44, %v504_v53 }
  0xd6   : > { %v709_v0 = vadd.f32 %v2512_v17, %v591_v28  ;;  %v2105_v28 = vld [vmem:[%s3006_s3 + $0x10] sm:$0xf] }
  0xd7   : > { %v2522_v1 = vpop.f32.mrf.mxu2  ;;  %v688_v2 = vpop.f32.mrf.mxu0 }
  0xd8   : > { %v575_v5 = vpop.f32.mrf.mxu3  ;;  %v2525_v6 = vadd.f32 %v688_v2, %v592_v60  ;;  %v784_v60 = vadd.f32 %v759_v23, %v2507_v54  ;;  %v2093_v54 = vld [vmem:[%s3006_s3 + $0x8] sm:$0xf] }
  0xd9   : > { %v1357_v17 = vsel %vm1237_vm8, %v2093_v54, 0 }
  0xda   : > { %2081 = vmatmul.msk.bf16.gmra.mxu0 %vm330_vm1, %v984_v24  ;;  %1366 = vmatpush.bf16.msrb.mxu3 %v1357_v17 }
  0xdf   : > { %v488_v47 = vpop.f32.mrf.mxu2  ;;  %v2528_v20 = vpop.f32.mrf.mxu0 }
  0xe0   : > { %v507_v48 = vadd.f32 %v488_v47, %v417_v3  ;;  %v2530_v63 = vpop.f32.mrf.mxu3 }
  0xe2   : > { %v594_v7 = vadd.f32 %v575_v5, %v507_v48  ;;  %v1074_v48 = vpop.permute.xlu0 %1073 }
  0xe7   : > { %v2532_v11 = vpop.f32.mrf.mxu2  ;;  %v693_v12 = vpop.f32.mrf.mxu0 }
  0xe8   : > { %v580_v13 = vpop.f32.mrf.mxu3  ;;  %v2534_v14 = vadd.f32 %v693_v12, %v594_v7  ;;  %v414_v7 = vadd.f32 %v2516_v59, %v2472_v9 }
  0xef   : > { %v493_v21 = vpop.f32.mrf.mxu2  ;;  %v2537_v27 = vpop.f32.mrf.mxu0 }
  0xf0   : > { %v509_v22 = vadd.f32 %v493_v21, %v2447_v61  ;;  %v2539_v29 = vpop.f32.mrf.mxu3 }
  0xf2   : > { %v596_v30 = vadd.f32 %v580_v13, %v509_v22  ;;  %v506_v13 = vadd.f32 %v2522_v1, %v414_v7 }
  0xf7   : > { %v2543_v31 = vpop.f32.mrf.mxu2  ;;  %v698_v32 = vpop.f32.mrf.mxu0 }
  0xf8   : > { %v585_v33 = vpop.f32.mrf.mxu3  ;;  %v2545_v34 = vadd.f32 %v698_v32, %v596_v30 }
  0xff   : > { %v498_v36 = vpop.f32.mrf.mxu2  ;;  %v2548_v40 = vpop.f32.mrf.mxu0 }
 0x100   : > { %v511_v38 = vadd.f32 %v498_v36, %v2470_v8  ;;  %v2550_v61 = vpop.f32.mrf.mxu3  ;;  %v761_v8 = vpop.f32.mrf.mxu1 }
 0x101   : > { %v785_v5 = vadd.f32 %v761_v8, %v709_v0 }
 0x102   : > { %v598_v45 = vadd.f32 %v585_v33, %v511_v38  ;;  %v2099_v38 = vld [vmem:[%s3006_s3 + $0xc] sm:$0xf] }
 0x103   : > { %v1444_v8 = vsel %vm1237_vm8, %v2099_v38, 0 }
 0x104   : > { %1453 = vmatpush.bf16.msrb.mxu0 %v1444_v8 }
 0x107   : > { %v2566_v46 = vpop.f32.mrf.mxu2  ;;  %v703_v51 = vpop.f32.mrf.mxu0 }
 0x108   : > { %v936_v26 = vpop.f32.mrf.mxu3  ;;  %v2576_v18 = vadd.f32 %v703_v51, %v598_v45  ;;  %v764_v55 = vpop.f32.mrf.mxu1  ;;  %v593_v45 = vadd.f32 %v2514_v39, %v506_v13 }
 0x109   : > { %v786_v33 = vadd.f32 %v764_v55, %v2525_v6  ;;  %v1079_v51 = vpop.permute.xlu0 %1078 }
 0x10a   : > { %v711_v50 = vadd.f32 %v2528_v20, %v593_v45 }
 0x10f   : > { %v838_v56 = vpop.f32.mrf.mxu2  ;;  %v2587_v57 = vpop.f32.mrf.mxu0 }
 0x110   : > { %v938_v58 = vpop.f32.mrf.mxu3  ;;  %v863_v49 = vadd.f32 %v838_v56, %v784_v60  ;;  %v766_v37 = vpop.f32.mrf.mxu1 }
 0x112   : > { %v961_v2 = vadd.f32 %v936_v26, %v863_v49  ;;  %v1156_v26 = vld [vmem:[#allocation2] sm:$0xff]  ;;  %v1561_v49 = vsel %vm1237_vm8, %v2105_v28, 0 }
 0x113   : > { %1570 = vmatpush.bf16.msrb.mxu1 %v1561_v49 }
 0x117   : > { %v840_v24 = vpop.f32.mrf.mxu2  ;;  %v1012_v35 = vpop.f32.mrf.mxu0 }
 0x118   : > { %v941_v16 = vpop.f32.mrf.mxu3  ;;  %v1037_v3 = vadd.f32 %v1012_v35, %v961_v2  ;;  %v864_v44 = vadd.f32 %v840_v24, %v785_v5  ;;  %v769_v9 = vpop.f32.mrf.mxu1  ;;  %v419_v2 = vadd.f32 %v2541_v41, %v2494_v43 }
 0x119   : > { %v1084_v24 = vpop.permute.xlu1 %1083  ;;  %v788_v17 = vadd.f32 %v769_v9, %v2534_v14 }
 0x11a   : > { %v1051_v47 = vadd.f32 %v2595_v62, %v1037_v3  ;;  %v962_v21 = vadd.f32 %v938_v58, %v864_v44  ;;  %v787_v58 = vadd.f32 %v766_v37, %v711_v50  ;;  %v508_v37 = vadd.f32 %v2532_v11, %v419_v2 }
 0x11c   : > { %v1061_v12 = vmax.f32 %v1051_v47, 0.0  ;;  %v595_v7 = vadd.f32 %v2530_v63, %v508_v37 }
 0x11e   : > { %v1121_v22 = vmul.f32 %v1074_v48, %v1061_v12  ;;  %v713_v41 = vadd.f32 %v2537_v27, %v595_v7 }
 0x11f   : > { %v843_v30 = vpop.f32.mrf.mxu2  ;;  %v1014_v32 = vpop.f32.mrf.mxu0 }
 0x120   : > { %1146 = vst.msk [vmem:[#allocation2 + $0xb] sm:$0xff] %vm1131_vm9, %v1121_v22  ;;  %v1038_v23 = vadd.f32 %v1014_v32, %v962_v21  ;;  %v943_v36 = vpop.f32.mrf.mxu3  ;;  %v865_v59 = vadd.f32 %v843_v30, %v786_v33 }
 0x121   : > { %v1089_v22 = vpop.permute.xlu1 %1088 }
 0x122   : > { %v1052_v1 = vadd.f32 %v2595_v62, %v1038_v23  ;;  %v963_v25 = vadd.f32 %v941_v16, %v865_v59  ;;  %v771_v16 = vpop.f32.mrf.mxu1 }
 0x124   : > { %v1062_v6 = vmax.f32 %v1052_v1, 0.0 }
 0x126   : > { %v1122_v52 = vmul.f32 %v1079_v51, %v1062_v6 }
 0x127   : > { %v845_v53 = vpop.f32.mrf.mxu2  ;;  %v1017_v55 = vpop.f32.mrf.mxu0  ;;  %v1157_v56 = vld [vmem:[#allocation2 + $0x8] sm:$0xff] }
 0x128   : > { %1147 = vst.msk [vmem:[#allocation2 + $0x13] sm:$0xff] %vm1131_vm9, %v1122_v52  ;;  %v1039_v39 = vadd.f32 %v1017_v55, %v963_v25  ;;  %v1169_v60 = vpack.c.bf16 %v1157_v56, %v1156_v26  ;;  %v866_v20 = vadd.f32 %v845_v53, %v787_v58  ;;  %v946_v35 = vpop.f32.mrf.mxu3  ;;  %v424_v25 = vadd.f32 %v2451_v19, %v2463_v4  ;;  %v1094_v52 = vpop.permute.xlu2 %1093 }
 0x12a   : > { %v1053_v0 = vadd.f32 %v2595_v62, %v1039_v39  ;;  %2088 = vmatmul.msk.bf16.vlgmr.msrb.gmra.mxu2 %vm1131_vm9, %v1169_v60  ;;  %v964_v3 = vadd.f32 %v943_v36, %v866_v20  ;;  %v1181_v13 = vshll.u32 %v1169_v60, 16  ;;  %v774_v30 = vpop.f32.mrf.mxu1  ;;  %v789_v36 = vadd.f32 %v771_v16, %v713_v41 }
 0x12b   : > { %v1330_v27 = vrot.slane %v1169_v60, 1  ;;  %v1179_v8 = vshrl.u32 %v1169_v60, 16  ;;  %v510_v49 = vadd.f32 %v2543_v31, %v424_v25  ;;  %v790_v37 = vadd.f32 %v774_v30, %v2545_v34 }
 0x12c   : > { %v1063_v5 = vmax.f32 %v1053_v0, 0.0  ;;  %v1183_v9 = vrot.slane %v1181_v13, 1 }
 0x12e   : > { %v1123_v54 = vmul.f32 %v1084_v24, %v1063_v5  ;;  %v1184_v55 = vor.u32 %v1183_v9, %v1179_v8 }
 0x12f   : > { %v848_v44 = vpop.f32.mrf.mxu2  ;;  %v1019_v47 = vpop.f32.mrf.mxu0  ;;  %v1158_v38 = vld [vmem:[#allocation2 + $0x10] sm:$0xff] }
 0x130   : > { %1148 = vst.msk [vmem:[#allocation2 + $0x1b] sm:$0xff] %vm1131_vm9, %v1123_v54  ;;  %v1040_v48 = vadd.f32 %v1019_v47, %v964_v3  ;;  %v867_v12 = vadd.f32 %v848_v44, %v788_v17  ;;  %v948_v11 = vpop.f32.mrf.mxu3  ;;  %v2640_v53 = vpack.c.bf16 %v1158_v38, %v1157_v56  ;;  %v597_v47 = vadd.f32 %v2539_v29, %v510_v49  ;;  %v1099_v30 = vpop.permute.xlu2 %1098 }
 0x132   : > { %v1054_v43 = vadd.f32 %v2595_v62, %v1040_v48  ;;  %v965_v32 = vadd.f32 %v946_v35, %v867_v12  ;;  %v1493_v5 = vshrl.u32 %v2640_v53, 16  ;;  %v1496_v31 = vshll.u32 %v2640_v53, 16  ;;  %v776_v3 = vpop.f32.mrf.mxu1 }
 0x133   : > { %v1417_v17 = vrot.slane %v2640_v53, 1  ;;  %v715_v41 = vadd.f32 %v2548_v40, %v597_v47 }
 0x134   : > { %v1064_v21 = vmax.f32 %v1054_v43, 0.0  ;;  %v1495_v34 = vrot.slane %v1493_v5, 1  ;;  %v1498_v13 = vrot.slane %v1496_v31, 2  ;;  %v1104_v5 = vpop.permute.xlu0 %1103 }
 0x136   : > { %v1124_v33 = vmul.f32 %v1089_v22, %v1064_v21 }
 0x137   : > { %v850_v23 = vpop.f32.mrf.mxu2  ;;  %v1022_v14 = vpop.f32.mrf.mxu0  ;;  %v1159_v45 = vld [vmem:[#allocation2 + $0x18] sm:$0xff] }
 0x138   : > { %1149 = vst.msk [vmem:[#allocation2 + $0x23] sm:$0xff] %vm1131_vm9, %v1124_v33  ;;  %v1041_v63 = vadd.f32 %v1022_v14, %v965_v32  ;;  %v2630_v59 = vpack.c.bf16 %v1159_v45, %v1158_v38  ;;  %v868_v1 = vadd.f32 %v850_v23, %v789_v36  ;;  %v951_v24 = vpop.f32.mrf.mxu3  ;;  %v791_v14 = vadd.f32 %v776_v3, %v715_v41 }
 0x13a   : > { %v1055_v50 = vadd.f32 %v2595_v62, %v1041_v63  ;;  %2089 = vmatmul.msk.bf16.gmra.mxu2 %vm1131_vm9, %v2630_v59  ;;  %v1331_v6 = vrot.slane %v2630_v59, 1  ;;  %v1186_v51 = vshll.u32 %v2630_v59, 16  ;;  %v1190_v26 = vshrl.u32 %v2630_v59, 16 }
 0x13b   : > { %v966_v19 = vadd.f32 %v948_v11, %v868_v1  ;;  %v429_v63 = vadd.f32 %v2474_v10, %v2483_v15 }
 0x13c   : > { %v1065_v58 = vmax.f32 %v1055_v50, 0.0  ;;  %v1332_v39 = vsel %vm439_vm3, %v1330_v27, %v1331_v6  ;;  %v1188_v60 = vrot.slane %v1186_v51, 1  ;;  %v2647_v28 = vrot.slane %v1190_v26, 2 }
 0x13d   : > { %2094 = vmatmul.msk.bf16.vlgmr.msrb.gmra.mxu3 %vm1131_vm9, %v1332_v39  ;;  %v2651_v20 = vrot.slane %v1186_v51, 3  ;;  %v1688_v51 = vrot.slane %v2630_v59, 2 }
 0x13e   : > { %v1125_v4 = vmul.f32 %v1094_v52, %v1065_v58  ;;  %v1189_v0 = vsel %vm285_vm2, %v1184_v55, %v1188_v60  ;;  %v1860_v52 = vrot.slane %v2630_v59, 3  ;;  %v779_v55 = vpop.f32.mrf.mxu1  ;;  %v1192_v49 = vor.u32 %v1190_v26, %v1188_v60 }
 0x13f   : > { %v853_v56 = vpop.f32.mrf.mxu2  ;;  %v1160_v2 = vld [vmem:[#allocation2 + $0x20] sm:$0xff]  ;;  %v1024_v35 = vpop.f32.mrf.mxu0  ;;  %2083 = vmatmul.msk.bf16.vlgmr.msra.gmra.mxu1 %vm1131_vm9, %v1189_v0  ;;  %v1765_v16 = vor.u32 %v2651_v20, %v2647_v28  ;;  %v792_v47 = vadd.f32 %v779_v55, %v2576_v18 }
 0x140   : > { %1150 = vst.msk [vmem:[#allocation2 + $0x2b] sm:$0xff] %vm1131_vm9, %v1125_v4  ;;  %v2661_v54 = vpack.c.bf16 %v1160_v2, %v1159_v45  ;;  %v1042_v44 = vadd.f32 %v1024_v35, %v966_v19  ;;  %v869_v48 = vadd.f32 %v853_v56, %v790_v37  ;;  %v1499_v45 = vor.u32 %v1498_v13, %v1495_v34  ;;  %v953_v50 = vpop.f32.mrf.mxu3 }
 0x141   : > { %v512_v35 = vadd.f32 %v2566_v46, %v429_v63 }
 0x142   : > { %v1056_v7 = vadd.f32 %v2595_v62, %v1042_v44  ;;  %v1418_v12 = vrot.slane %v2661_v54, 1  ;;  %v1501_v43 = vshrl.u32 %v2661_v54, 16  ;;  %v1504_v21 = vshll.u32 %v2661_v54, 16 }
 0x143   : > { %v967_v33 = vadd.f32 %v951_v24, %v869_v48 }
 0x144   : > { %v1066_v22 = vmax.f32 %v1056_v7, 0.0  ;;  %v1419_v29 = vsel %vm439_vm3, %v1417_v17, %v1418_v12  ;;  %v1503_v11 = vrot.slane %v1501_v43, 1  ;;  %v1506_v32 = vrot.slane %v1504_v21, 2 }
 0x145   : > { %2100 = vmatmul.msk.bf16.vlgmr.msrb.gmra.mxu0 %vm1131_vm9, %v1419_v29  ;;  %v599_v7 = vadd.f32 %v2550_v61, %v512_v35  ;;  %v1114_v35 = vpop.permute.xlu2 %1113 }
 0x146   : > { %v1126_v23 = vmul.f32 %v1099_v30, %v1066_v22  ;;  %v2674_v9 = vor.u32 %v1506_v32, %v1503_v11  ;;  %v781_v61 = vpop.f32.mrf.mxu1  ;;  %v2111_v30 = vld [vmem:[%s3006_s3 + $0x14] sm:$0xf] }
 0x147   : > { %v855_v36 = vpop.f32.mrf.mxu2  ;;  %v1027_v38 = vpop.f32.mrf.mxu0  ;;  %v1161_v40 = vld [vmem:[#allocation2 + $0x28] sm:$0xff]  ;;  %v717_v21 = vadd.f32 %v2587_v57, %v599_v7 }
 0x148   : > { %1151 = vst.msk [vmem:[#allocation2 + $0x33] sm:$0xff] %vm1131_vm9, %v1126_v23  ;;  %v1043_v1 = vadd.f32 %v1027_v38, %v967_v33  ;;  %v2679_v27 = vpack.c.bf16 %v1161_v40, %v1160_v2  ;;  %v870_v8 = vadd.f32 %v855_v36, %v791_v14  ;;  %v2684_v25 = vsel %vm602_vm5, %v1499_v45, %v2674_v9  ;;  %v956_v22 = vpop.f32.mrf.mxu3 }
 0x149   : > { %v1636_v36 = vsel %vm1237_vm8, %v2111_v30, 0  ;;  %v793_v14 = vadd.f32 %v781_v61, %v717_v21  ;;  %v1119_v21 = vpop.permute.xlu0 %1118 }
 0x14a   : > { %v1057_v58 = vadd.f32 %v2595_v62, %v1043_v1  ;;  %2090 = vmatmul.msk.bf16.gmra.mxu2 %vm1131_vm9, %v2679_v27  ;;  %v1333_v10 = vrot.slane %v2679_v27, 1  ;;  %v1194_v15 = vshll.u32 %v2679_v27, 16  ;;  %v1198_v39 = vshrl.u32 %v2679_v27, 16 }
 0x14b   : > { %v1689_v19 = vrot.slane %v2679_v27, 2  ;;  %v1861_v4 = vrot.slane %v2679_v27, 3  ;;  %1645 = vmatpush.bf16.msra.mxu2 %v1636_v36 }
 0x14c   : > { %v1067_v56 = vmax.f32 %v1057_v58, 0.0  ;;  %v1334_v0 = vsel %vm439_vm3, %v1331_v6, %v1333_v10  ;;  %v1196_v2 = vrot.slane %v1194_v15, 1  ;;  %v1767_v24 = vrot.slane %v1194_v15, 3 }
 0x14d   : > { %2095 = vmatmul.msk.bf16.gmra.mxu3 %vm1131_vm9, %v1334_v0  ;;  %v1766_v26 = vrot.slane %v1198_v39, 2  ;;  %v2710_v60 = vsel %vm720_vm4, %v1688_v51, %v1689_v19  ;;  %v2715_v59 = vsel %vm973_vm7, %v1860_v52, %v1861_v4  ;;  %v968_v6 = vadd.f32 %v953_v50, %v870_v8 }
 0x14e   : > { %v1127_v42 = vmul.f32 %v1104_v5, %v1067_v56  ;;  %v1197_v46 = vsel %vm285_vm2, %v1192_v49, %v1196_v2  ;;  %v1200_v58 = vor.u32 %v1198_v39, %v1196_v2 }
 0x14f   : > { %v858_v31 = vpop.f32.mrf.mxu2  ;;  %v1029_v37 = vpop.f32.mrf.mxu0  ;;  %2084 = vmatmul.msk.bf16.gmra.mxu1 %vm1131_vm9, %v1197_v46  ;;  %v1162_v3 = vld [vmem:[#allocation2 + $0x30] sm:$0xff]  ;;  %v2719_v44 = vor.u32 %v1767_v24, %v1766_v26 }
 0x150   : > { %1152 = vst.msk [vmem:[#allocation2 + $0x3b] sm:$0xff] %vm1131_vm9, %v1127_v42  ;;  %v1044_v17 = vadd.f32 %v1029_v37, %v968_v6  ;;  %v2723_v48 = vpack.c.bf16 %v1162_v3, %v1161_v40  ;;  %v871_v41 = vadd.f32 %v858_v31, %v792_v47  ;;  %v958_v5 = vpop.f32.mrf.mxu3 }
 0x151   : > { %v2731_v43 = vsel %vm875_vm6, %v1765_v16, %v2719_v44  ;;  %v1109_v16 = vpop.permute.xlu1 %1108 }
 0x152   : > { %v1058_v34 = vadd.f32 %v2595_v62, %v1044_v17  ;;  %v1420_v13 = vrot.slane %v2723_v48, 1  ;;  %v1510_v18 = vshrl.u32 %v2723_v48, 16  ;;  %v1513_v29 = vshll.u32 %v2723_v48, 16 }
 0x153   : > { %v969_v33 = vadd.f32 %v956_v22, %v871_v41 }
 0x154   : > { %v1068_v11 = vmax.f32 %v1058_v34, 0.0  ;;  %v1421_v28 = vsel %vm439_vm3, %v1418_v12, %v1420_v13  ;;  %v1512_v20 = vrot.slane %v1510_v18, 1  ;;  %v1515_v32 = vrot.slane %v1513_v29, 2 }
 0x155   : > { %2101 = vmatmul.msk.bf16.gmra.mxu0 %vm1131_vm9, %v1421_v28 }
 0x156   : > { %v1128_v57 = vmul.f32 %v1109_v16, %v1068_v11  ;;  %v1516_v45 = vor.u32 %v1515_v32, %v1512_v20 }
 0x157   : > { %v860_v23 = vpop.f32.mrf.mxu2  ;;  %v1032_v38 = vpop.f32.mrf.mxu0  ;;  %v1163_v40 = vld [vmem:[#allocation2 + $0x38] sm:$0xff] }
 0x158   : > { %1153 = vst.msk [vmem:[#allocation2 + $0x43] sm:$0xff] %vm1131_vm9, %v1128_v57  ;;  %v1045_v12 = vadd.f32 %v1032_v38, %v969_v33  ;;  %v2747_v63 = vpack.c.bf16 %v1163_v40, %v1162_v3  ;;  %v872_v1 = vadd.f32 %v860_v23, %v793_v14  ;;  %v2751_v8 = vsel %vm602_vm5, %v2674_v9, %v1516_v45 }
 0x15a   : > { %v1059_v50 = vadd.f32 %v2595_v62, %v1045_v12  ;;  %2091 = vmatmul.msk.bf16.gmra.mxu2 %vm1131_vm9, %v2747_v63  ;;  %v1335_v51 = vrot.slane %v2747_v63, 1  ;;  %v1202_v52 = vshll.u32 %v2747_v63, 16  ;;  %v1206_v55 = vshrl.u32 %v2747_v63, 16 }
 0x15b   : > { %v1691_v15 = vrot.slane %v2747_v63, 2  ;;  %v1863_v49 = vrot.slane %v2747_v63, 3  ;;  %v970_v6 = vadd.f32 %v958_v5, %v872_v1  ;;  %v1610_v5 = vrot.slane %v2661_v54, 2 }
 0x15c   : > { %v1069_v9 = vmax.f32 %v1059_v50, 0.0  ;;  %v1336_v56 = vsel %vm439_vm3, %v1333_v10, %v1335_v51  ;;  %v1204_v0 = vrot.slane %v1202_v52, 1  ;;  %v1770_v24 = vrot.slane %v1206_v55, 2  ;;  %v1168_v50 = vld [vmem:[#allocation2 + $0x60] sm:$0x3f] }
 0x15d   : > { %2096 = vmatmul.msk.bf16.gmra.mxu3 %vm1131_vm9, %v1336_v56  ;;  %v2770_v26 = vsel %vm720_vm4, %v1689_v19, %v1691_v15  ;;  %v1771_v39 = vrot.slane %v1202_v52, 3  ;;  %v2775_v2 = vsel %vm973_vm7, %v1861_v4, %v1863_v49 }
 0x15e   : > { %v1129_v42 = vmul.f32 %v1114_v35, %v1069_v9  ;;  %v1205_v10 = vsel %vm285_vm2, %v1200_v58, %v1204_v0  ;;  %v1208_v33 = vor.u32 %v1206_v55, %v1204_v0  ;;  %v2129_v55 = vld [vmem:[%s3006_s3 + $0x20] sm:$0xf] }
 0x15f   : > { %v1034_v31 = vpop.f32.mrf.mxu0  ;;  %2085 = vmatmul.msk.bf16.gmra.mxu1 %vm1131_vm9, %v1205_v10  ;;  %v1164_v46 = vld [vmem:[#allocation2 + $0x40] sm:$0xff]  ;;  %v1772_v37 = vor.u32 %v1771_v39, %v1770_v24  ;;  %v2839_v24 = vpack.c.bf16 %v1168_v50, %v1168_v50 }
 0x160   : > { %1154 = vst.msk [vmem:[#allocation2 + $0x4b] sm:$0xff] %vm1131_vm9, %v1129_v42  ;;  %v1046_v3 = vadd.f32 %v1034_v31, %v970_v6  ;;  %v2780_v19 = vpack.c.bf16 %v1164_v46, %v1163_v40  ;;  %v2123_v40 = vld [vmem:[%s3006_s3 + $0x1c] sm:$0xf]  ;;  %v1609_v31 = vrot.slane %v2640_v53, 2 }
 0x161   : > { %v2784_v27 = vsel %vm875_vm6, %v2719_v44, %v1772_v37  ;;  %v2117_v44 = vld [vmem:[%s3006_s3 + $0x18] sm:$0xf]  ;;  %v1812_v1 = vsel %vm1237_vm8, %v2123_v40, 0 }
 0x162   : > { %v1060_v4 = vadd.f32 %v2595_v62, %v1046_v3  ;;  %v1422_v47 = vrot.slane %v2780_v19, 1  ;;  %v1519_v17 = vshrl.u32 %v2780_v19, 16  ;;  %v1522_v7 = vshll.u32 %v2780_v19, 16  ;;  %1821 = vmatpush.bf16.msra.mxu0 %v1812_v1 }
 0x163   : > { %v1715_v62 = vsel %vm1237_vm8, %v2117_v44, 0  ;;  %v1869_v3 = vrot.slane %v2839_v24, 3 }
 0x164   : > { %v1070_v41 = vmax.f32 %v1060_v4, 0.0  ;;  %v1423_v34 = vsel %vm439_vm3, %v1420_v13, %v1422_v47  ;;  %v1521_v18 = vrot.slane %v1519_v17, 1  ;;  %v1524_v22 = vrot.slane %v1522_v7, 2  ;;  %1724 = vmatpush.bf16.msra.mxu3 %v1715_v62 }
 0x165   : > { %2102 = vmatmul.msk.bf16.gmra.mxu0 %vm1131_vm9, %v1423_v34 }
 0x166   : > { %v1130_v29 = vmul.f32 %v1119_v21, %v1070_v41  ;;  %v2796_v11 = vor.u32 %v1524_v22, %v1521_v18 }
 0x167   : > { %v1165_v61 = vld [vmem:[#allocation2 + $0x48] sm:$0xff] }
 0x168   : > { %1155 = vst.msk [vmem:[#allocation2 + $0x53] sm:$0xff] %vm1131_vm9, %v1130_v29  ;;  %v2799_v28 = vpack.c.bf16 %v1165_v61, %v1164_v46  ;;  %v2803_v13 = vsel %vm602_vm5, %v1516_v45, %v2796_v11 }
 0x16a   : > { %2092 = vmatmul.msk.bf16.gmra.mxu2 %vm1131_vm9, %v2799_v28  ;;  %v1337_v20 = vrot.slane %v2799_v28, 1  ;;  %v1210_v16 = vshll.u32 %v2799_v28, 16  ;;  %v1214_v30 = vshrl.u32 %v2799_v28, 16  ;;  %v1693_v32 = vrot.slane %v2799_v28, 2 }
 0x16b   : > { %v1865_v57 = vrot.slane %v2799_v28, 3 }
 0x16c   : > { %v1338_v23 = vsel %vm439_vm3, %v1335_v51, %v1337_v20  ;;  %v1212_v36 = vrot.slane %v1210_v16, 1  ;;  %v2816_v14 = vsel %vm720_vm4, %v1691_v15, %v1693_v32  ;;  %v1774_v38 = vrot.slane %v1214_v30, 2 }
 0x16d   : > { %2097 = vmatmul.msk.bf16.gmra.mxu3 %vm1131_vm9, %v1338_v23  ;;  %v1775_v45 = vrot.slane %v1210_v16, 3  ;;  %v2823_v12 = vsel %vm973_vm7, %v1863_v49, %v1865_v57  ;;  %v1887_v49 = vsel %vm1237_vm8, %v2129_v55, 0 }
 0x16e   : > { %v1213_v63 = vsel %vm285_vm2, %v1208_v33, %v1212_v36  ;;  %1896 = vmatpush.bf16.msra.mxu1 %v1887_v49 }
 0x16f   : > { %2086 = vmatmul.msk.bf16.gmra.mxu1 %vm1131_vm9, %v1213_v63  ;;  %v1166_v51 = vld [vmem:[#allocation2 + $0x50] sm:$0xff]  ;;  %v1167_v52 = vld [vmem:[#allocation2 + $0x58] sm:$0xff]  ;;  %v1776_v58 = vor.u32 %v1775_v45, %v1774_v38  ;;  %v1216_v45 = vor.u32 %v1214_v30, %v1212_v36  ;;  %v1614_v30 = vrot.slane %v2780_v19, 2 }
 0x170   : > { %v2831_v15 = vpack.c.bf16 %v1166_v51, %v1165_v61  ;;  %v1175_v9 = vpack.c.bf16 %v1166_v51, %v1166_v51  ;;  %v2837_v0 = vpack.c.bf16 %v1167_v52, %v1166_v51  ;;  %v2843_v39 = vpack.c.bf16 %v1167_v52, %v1167_v52 }
 0x171   : > { %v2835_v56 = vsel %vm875_vm6, %v1772_v37, %v1776_v58 }
 0x172   : > { %v1424_v35 = vrot.slane %v2831_v15, 1  ;;  %v1695_v6 = vrot.slane %v2837_v0, 2  ;;  %v1528_v42 = vshrl.u32 %v2831_v15, 16  ;;  %v1218_v46 = vshll.u32 %v1175_v9, 16 }
 0x173   : > { %v1531_v4 = vshll.u32 %v2831_v15, 16  ;;  %v1779_v17 = vshrl.u32 %v2837_v0, 16  ;;  %v1782_v7 = vshll.u32 %v2837_v0, 16  ;;  %v1537_v41 = vshrl.u32 %v2843_v39, 16 }
 0x174   : > { %v1425_v10 = vsel %vm439_vm3, %v1422_v47, %v1424_v35  ;;  %v1696_v37 = vsel %vm720_vm4, %v1693_v32, %v1695_v6  ;;  %v1530_v54 = vrot.slane %v1528_v42, 1  ;;  %v1611_v47 = vsel %vm720_vm4, %v1609_v31, %v1610_v5 }
 0x175   : > { %2103 = vmatmul.msk.bf16.gmra.mxu0 %vm1131_vm9, %v1425_v10  ;;  %v1540_v53 = vshll.u32 %v2843_v39, 16  ;;  %v1867_v34 = vrot.slane %v2837_v0, 3  ;;  %v1339_v18 = vrot.slane %v1175_v9, 1  ;;  %v1533_v21 = vrot.slane %v1531_v4, 2 }
 0x176   : > { %v1781_v44 = vrot.slane %v1779_v17, 2  ;;  %v1784_v22 = vrot.slane %v1782_v7, 3  ;;  %v1539_v29 = vrot.slane %v1537_v41, 1  ;;  %v1220_v32 = vrot.slane %v1218_v46, 1 }
 0x177   : > { %v1542_v62 = vrot.slane %v1540_v53, 2  ;;  %v2862_v61 = vsel %vm973_vm7, %v1865_v57, %v1867_v34  ;;  %v2865_v16 = vsel %vm973_vm7, %v1867_v34, %v1869_v3  ;;  %v1534_v33 = vor.u32 %v1533_v21, %v1530_v54 }
 0x178   : > { %v2868_v23 = vor.u32 %v1784_v22, %v1781_v44  ;;  %v1340_v40 = vsel %vm439_vm3, %v1337_v20, %v1339_v18  ;;  %v1221_v50 = vsel %vm285_vm2, %v1216_v45, %v1220_v32  ;;  %v1426_v51 = vrot.slane %v2843_v39, 1 }
 0x179   : > { %v1543_v38 = vor.u32 %v1542_v62, %v1539_v29  ;;  %v1535_v63 = vsel %vm602_vm5, %v2796_v11, %v1534_v33  ;;  %v1612_v20 = vrot.slane %v2723_v48, 2 }
 0x17a   : > { %2112 = vmatmul.msk.bf16.vlgmr.msra.gmra.mxu2 %vm1131_vm9, %v1611_v47  ;;  %v1786_v57 = vsel %vm875_vm6, %v1776_v58, %v2868_v23  ;;  %v1427_v28 = vsel %vm439_vm3, %v1424_v35, %v1426_v51  ;;  %v1697_v35 = vrot.slane %v2839_v24, 2 }
 0x17b   : > { %v1544_v1 = vsel %vm602_vm5, %v1534_v33, %v1543_v38  ;;  %v1613_v11 = vsel %vm720_vm4, %v1610_v5, %v1612_v20  ;;  %v1615_v36 = vsel %vm720_vm4, %v1612_v20, %v1614_v30  ;;  %v1788_v5 = vshrl.u32 %v2839_v24, 16 }
 0x17d   : > { %2098 = vmatmul.msk.bf16.gmra.mxu3 %vm1131_vm9, %v1340_v40  ;;  %v1790_v3 = vrot.slane %v1788_v5, 2 }
 0x17f   : > { %2087 = vmatmul.msk.bf16.gmra.mxu1 %vm1131_vm9, %v1221_v50 }
 0x185   : > { %2104 = vmatmul.msk.bf16.gmra.mxu0 %vm1131_vm9, %v1427_v28 }
 0x18a   : > { %2113 = vmatmul.msk.bf16.gmra.mxu2 %vm1131_vm9, %v1613_v11 }
 0x18d   : > { %2118 = vmatmul.msk.bf16.vlgmr.msra.gmra.mxu3 %vm1131_vm9, %v2710_v60 }
 0x18f   : > { %2106 = vmatmul.msk.bf16.vlgmr.msrb.gmra.mxu1 %vm1131_vm9, %v2684_v25  ;;  %v1616_v25 = vrot.slane %v2831_v15, 2 }
 0x191   : > { %v1617_v60 = vsel %vm720_vm4, %v1614_v30, %v1616_v25 }
 0x195   : > { %2124 = vmatmul.msk.bf16.vlgmr.msra.gmra.mxu0 %vm1131_vm9, %v2731_v43 }
 0x19a   : > { %2114 = vmatmul.msk.bf16.gmra.mxu2 %vm1131_vm9, %v1615_v36 }
 0x19d   : > { %2119 = vmatmul.msk.bf16.gmra.mxu3 %vm1131_vm9, %v2770_v26 }
 0x19f   : > { %2107 = vmatmul.msk.bf16.gmra.mxu1 %vm1131_vm9, %v2751_v8  ;;  %v1618_v8 = vrot.slane %v2843_v39, 2  ;;  %v1791_v39 = vshll.u32 %v2839_v24, 16 }
 0x1a1   : > { %v1619_v26 = vsel %vm720_vm4, %v1616_v25, %v1618_v8  ;;  %v1793_v54 = vrot.slane %v1791_v39, 3 }
 0x1a3   : > { %v1794_v7 = vor.u32 %v1793_v54, %v1790_v3 }
 0x1a5   : > { %2125 = vmatmul.msk.bf16.gmra.mxu0 %vm1131_vm9, %v2784_v27  ;;  %v1795_v18 = vsel %vm875_vm6, %v2868_v23, %v1794_v7 }
 0x1aa   : > { %2115 = vmatmul.msk.bf16.gmra.mxu2 %vm1131_vm9, %v1617_v60 }
 0x1ad   : > { %v1297_v48 = vpop.f32.mrf.mxu2  ;;  %2120 = vmatmul.msk.bf16.gmra.mxu3 %vm1131_vm9, %v2816_v14 }
 0x1af   : > { %2108 = vmatmul.msk.bf16.gmra.mxu1 %vm1131_vm9, %v2803_v13 }
 0x1b5   : > { %v1299_v43 = vpop.f32.mrf.mxu2  ;;  %2126 = vmatmul.msk.bf16.gmra.mxu0 %vm1131_vm9, %v2835_v56 }
 0x1ba   : > { %2116 = vmatmul.msk.bf16.gmra.mxu2 %vm1131_vm9, %v1619_v26 }
 0x1bc   : > { %v1250_v19 = vpop.f32.mrf.mxu1 }
 0x1bd   : > { %v1298_v27 = vadd.f32 %v1297_v48, %v1250_v19  ;;  %2121 = vmatmul.msk.bf16.gmra.mxu3 %vm1131_vm9, %v1696_v37  ;;  %v1302_v52 = vpop.f32.mrf.mxu2  ;;  %v1698_v37 = vsel %vm720_vm4, %v1695_v6, %v1697_v35 }
 0x1bf   : > { %2109 = vmatmul.msk.bf16.gmra.mxu1 %vm1131_vm9, %v1535_v63 }
 0x1c0   : > { %v1368_v14 = vpop.f32.mrf.mxu3 }
 0x1c1   : > { %v1393_v55 = vadd.f32 %v1368_v14, %v1298_v27 }
 0x1c2   : > { %v1455_v13 = vpop.f32.mrf.mxu0 }
 0x1c3   : > { %v2916_v58 = vadd.f32 %v1455_v13, %v1393_v55 }
 0x1c4   : > { %v1252_v15 = vpop.f32.mrf.mxu1 }
 0x1c5   : > { %v1300_v49 = vadd.f32 %v1299_v43, %v1252_v15  ;;  %2127 = vmatmul.msk.bf16.gmra.mxu0 %vm1131_vm9, %v1786_v57  ;;  %v1304_v9 = vpop.f32.mrf.mxu2 }
 0x1c8   : > { %v1370_v56 = vpop.f32.mrf.mxu3 }
 0x1c9   : > { %v1394_v42 = vadd.f32 %v1370_v56, %v1300_v49 }
 0x1ca   : > { %v1457_v10 = vpop.f32.mrf.mxu0 }
 0x1cb   : > { %v2922_v31 = vadd.f32 %v1457_v10, %v1394_v42 }
 0x1cc   : > { %v1255_v46 = vpop.f32.mrf.mxu1 }
 0x1cd   : > { %v1303_v4 = vadd.f32 %v1302_v52, %v1255_v46  ;;  %2122 = vmatmul.msk.bf16.gmra.mxu3 %vm1131_vm9, %v1698_v37  ;;  %v1307_v24 = vpop.f32.mrf.mxu2 }
 0x1cf   : > { %2110 = vmatmul.msk.bf16.gmra.mxu1 %vm1131_vm9, %v1544_v1 }
 0x1d0   : > { %v1373_v17 = vpop.f32.mrf.mxu3 }
 0x1d1   : > { %v1395_v47 = vadd.f32 %v1373_v17, %v1303_v4 }
 0x1d2   : > { %v1460_v41 = vpop.f32.mrf.mxu0 }
 0x1d3   : > { %v1482_v53 = vadd.f32 %v1460_v41, %v1395_v47 }
 0x1d4   : > { %v1257_v34 = vpop.f32.mrf.mxu1 }
 0x1d5   : > { %v1305_v0 = vadd.f32 %v1304_v9, %v1257_v34  ;;  %2128 = vmatmul.msk.bf16.gmra.mxu0 %vm1131_vm9, %v1795_v18  ;;  %v1309_v29 = vpop.f32.mrf.mxu2 }
 0x1d8   : > { %v1375_v6 = vpop.f32.mrf.mxu3 }
 0x1d9   : > { %v1396_v21 = vadd.f32 %v1375_v6, %v1305_v0 }
 0x1da   : > { %v1462_v44 = vpop.f32.mrf.mxu0 }
 0x1db   : > { %v1483_v22 = vadd.f32 %v1462_v44, %v1396_v21 }
 0x1dc   : > { %v1260_v62 = vpop.f32.mrf.mxu1 }
 0x1dd   : > { %v1308_v32 = vadd.f32 %v1307_v24, %v1260_v62  ;;  %v1312_v23 = vpop.f32.mrf.mxu2 }
 0x1df   : > { %2130 = vmatmul.msk.bf16.vlgmr.msra.gmra.mxu1 %vm1131_vm9, %v2715_v59 }
 0x1e0   : > { %v1378_v33 = vpop.f32.mrf.mxu3 }
 0x1e1   : > { %v1397_v38 = vadd.f32 %v1378_v33, %v1308_v32 }
 0x1e2   : > { %v1465_v40 = vpop.f32.mrf.mxu0 }
 0x1e3   : > { %v1484_v45 = vadd.f32 %v1465_v40, %v1397_v38 }
 0x1e4   : > { %v1262_v63 = vpop.f32.mrf.mxu1 }
 0x1e5   : > { %v1310_v57 = vadd.f32 %v1309_v29, %v1262_v63  ;;  %v1314_v30 = vpop.f32.mrf.mxu2 }
 0x1e8   : > { %v1380_v1 = vpop.f32.mrf.mxu3 }
 0x1e9   : > { %v1398_v50 = vadd.f32 %v1380_v1, %v1310_v57  ;;  %v2957_v1 = vld [vmem:[%s3007_s4] ss:$0 sm:$0xff] }
 0x1ea   : > { %v1467_v51 = vpop.f32.mrf.mxu0 }
 0x1eb   : > { %v1485_v28 = vadd.f32 %v1467_v51, %v1398_v50 }
 0x1ec   : > { %v1265_v20 = vpop.f32.mrf.mxu1 }
 0x1ed   : > { %v1313_v11 = vadd.f32 %v1312_v23, %v1265_v20  ;;  %v1317_v19 = vpop.f32.mrf.mxu2 }
 0x1ef   : > { %2131 = vmatmul.msk.bf16.gmra.mxu1 %vm1131_vm9, %v2775_v2 }
 0x1f0   : > { %v1383_v36 = vpop.f32.mrf.mxu3 }
 0x1f1   : > { %v1399_v25 = vadd.f32 %v1383_v36, %v1313_v11 }
 0x1f2   : > { %v1470_v59 = vpop.f32.mrf.mxu0 }
 0x1f3   : > { %v1486_v60 = vadd.f32 %v1470_v59, %v1399_v25 }
 0x1f4   : > { %v1267_v48 = vpop.f32.mrf.mxu1 }
 0x1f5   : > { %v1315_v43 = vadd.f32 %v1314_v30, %v1267_v48  ;;  %v1319_v9 = vpop.f32.mrf.mxu2 }
 0x1f8   : > { %v1385_v8 = vpop.f32.mrf.mxu3 }
 0x1f9   : > { %v1400_v26 = vadd.f32 %v1385_v8, %v1315_v43 }
 0x1fa   : > { %v1472_v27 = vpop.f32.mrf.mxu0 }
 0x1fb   : > { %v1487_v52 = vadd.f32 %v1472_v27, %v1400_v26 }
 0x1fc   : > { %v1270_v14 = vpop.f32.mrf.mxu1 }
 0x1fd   : > { %v1318_v55 = vadd.f32 %v1317_v19, %v1270_v14  ;;  %v1647_v0 = vpop.f32.mrf.mxu2 }
 0x1ff   : > { %2132 = vmatmul.msk.bf16.gmra.mxu1 %vm1131_vm9, %v2823_v12 }
 0x200   : > { %v1388_v13 = vpop.f32.mrf.mxu3 }
 0x201   : > { %v1401_v15 = vadd.f32 %v1388_v13, %v1318_v55 }
 0x202   : > { %v1475_v2 = vpop.f32.mrf.mxu0 }
 0x203   : > { %v1488_v49 = vadd.f32 %v1475_v2, %v1401_v15 }
 0x204   : > { %v1272_v56 = vpop.f32.mrf.mxu1 }
 0x205   : > { %v1320_v35 = vadd.f32 %v1319_v9, %v1272_v56 }
 0x208   : > { %v1390_v5 = vpop.f32.mrf.mxu3 }
 0x209   : > { %v1402_v39 = vadd.f32 %v1390_v5, %v1320_v35 }
 0x20a   : > { %v1477_v42 = vpop.f32.mrf.mxu0 }
 0x20b   : > { %v1489_v10 = vadd.f32 %v1477_v42, %v1402_v39 }
 0x20c   : > { %v1572_v46 = vpop.f32.mrf.mxu1 }
 0x20d   : > { %v1597_v37 = vadd.f32 %v1572_v46, %v2916_v58 }
 0x20f   : > { %2133 = vmatmul.msk.bf16.gmra.mxu1 %vm1131_vm9, %v2862_v61  ;;  %v1672_v62 = vadd.f32 %v1647_v0, %v1597_v37 }
 0x210   : > { %v1726_v61 = vpop.f32.mrf.mxu3 }
 0x214   : > { %v1574_v3 = vpop.f32.mrf.mxu1 }
 0x215   : > { %v1598_v12 = vadd.f32 %v1574_v3, %v2922_v31  ;;  %v1823_v31 = vpop.f32.mrf.mxu0 }
 0x218   : > { %v1728_v44 = vpop.f32.mrf.mxu3 }
 0x21c   : > { %v1577_v54 = vpop.f32.mrf.mxu1 }
 0x21d   : > { %v1599_v4 = vadd.f32 %v1577_v54, %v1482_v53  ;;  %v1649_v53 = vpop.f32.mrf.mxu2 }
 0x21e   : > { %v1673_v23 = vadd.f32 %v1649_v53, %v1598_v12 }
 0x21f   : > { %2134 = vmatmul.msk.bf16.gmra.mxu1 %vm1131_vm9, %v2865_v16 }
 0x220   : > { %v1731_v40 = vpop.f32.mrf.mxu3  ;;  %v1752_v20 = vadd.f32 %v1728_v44, %v1673_v23 }
 0x224   : > { %v1579_v17 = vpop.f32.mrf.mxu1 }
 0x225   : > { %v1600_v7 = vadd.f32 %v1579_v17, %v1483_v22  ;;  %v1825_v22 = vpop.f32.mrf.mxu0  ;;  %v1652_v32 = vpop.f32.mrf.mxu2 }
 0x226   : > { %v1849_v25 = vadd.f32 %v1825_v22, %v1752_v20  ;;  %v1674_v59 = vadd.f32 %v1652_v32, %v1599_v4 }
 0x228   : > { %v1733_v30 = vpop.f32.mrf.mxu3  ;;  %v1753_v8 = vadd.f32 %v1731_v40, %v1674_v59 }
 0x22c   : > { %v1582_v47 = vpop.f32.mrf.mxu1 }
 0x22d   : > { %v1601_v24 = vadd.f32 %v1582_v47, %v1484_v45  ;;  %v1751_v45 = vadd.f32 %v1726_v61, %v1672_v62  ;;  %v1828_v63 = vpop.f32.mrf.mxu0 }
 0x22e   : > { %v1850_v14 = vadd.f32 %v1828_v63, %v1753_v8 }
 0x22f   : > { %v1848_v57 = vadd.f32 %v1823_v31, %v1751_v45 }
 0x234   : > { %v1584_v41 = vpop.f32.mrf.mxu1 }
 0x235   : > { %v2944_v34 = vadd.f32 %v1584_v41, %v1485_v28  ;;  %v1654_v28 = vpop.f32.mrf.mxu2 }
 0x236   : > { %v1675_v55 = vadd.f32 %v1654_v28, %v1600_v7 }
 0x23c   : > { %v1587_v18 = vpop.f32.mrf.mxu1 }
 0x23d   : > { %v2946_v58 = vadd.f32 %v1587_v18, %v1486_v60  ;;  %v1830_v60 = vpop.f32.mrf.mxu0  ;;  %v1657_v19 = vpop.f32.mrf.mxu2 }
 0x23e   : > { %v1676_v39 = vadd.f32 %v1657_v19, %v1601_v24 }
 0x244   : > { %v1589_v6 = vpop.f32.mrf.mxu1 }
 0x245   : > { %v2948_v21 = vadd.f32 %v1589_v6, %v1487_v52  ;;  %v1736_v52 = vpop.f32.mrf.mxu3  ;;  %v1833_v2 = vpop.f32.mrf.mxu0 }
 0x246   : > { %v1659_v35 = vpop.f32.mrf.mxu2  ;;  %v1755_v37 = vadd.f32 %v1736_v52, %v1676_v39 }
 0x247   : > { %v1677_v17 = vadd.f32 %v1659_v35, %v2944_v34 }
 0x248   : > { %v1852_v4 = vadd.f32 %v1833_v2, %v1755_v37 }
 0x24c   : > { %v1592_v16 = vpop.f32.mrf.mxu1 }
 0x24d   : > { %v2950_v29 = vadd.f32 %v1592_v16, %v1488_v49  ;;  %v1754_v49 = vadd.f32 %v1733_v30, %v1675_v55  ;;  %v1738_v42 = vpop.f32.mrf.mxu3  ;;  %v1835_v12 = vpop.f32.mrf.mxu0 }
 0x24e   : > { %v1662_v7 = vpop.f32.mrf.mxu2  ;;  %v1756_v18 = vadd.f32 %v1738_v42, %v1677_v17 }
 0x24f   : > { %v1851_v5 = vadd.f32 %v1830_v60, %v1754_v49  ;;  %v1678_v53 = vadd.f32 %v1662_v7, %v2946_v58 }
 0x250   : > { %v1853_v31 = vadd.f32 %v1835_v12, %v1756_v18 }
 0x254   : > { %v1594_v33 = vpop.f32.mrf.mxu1 }
 0x255   : > { %v2952_v38 = vadd.f32 %v1594_v33, %v1489_v10  ;;  %v1741_v24 = vpop.f32.mrf.mxu3  ;;  %v1838_v6 = vpop.f32.mrf.mxu0 }
 0x256   : > { %v1664_v34 = vpop.f32.mrf.mxu2  ;;  %v1757_v22 = vadd.f32 %v1741_v24, %v1678_v53 }
 0x257   : > { %v1679_v45 = vadd.f32 %v1664_v34, %v2948_v21 }
 0x258   : > { %v1854_v40 = vadd.f32 %v1838_v6, %v1757_v22 }
 0x25c   : > { %v1898_v50 = vpop.f32.mrf.mxu1 }
 0x25d   : > { %v1923_v51 = vadd.f32 %v1898_v50, %v1848_v57  ;;  %v1743_v32 = vpop.f32.mrf.mxu3  ;;  %v1840_v63 = vpop.f32.mrf.mxu0 }
 0x25e   : > { %v1758_v58 = vadd.f32 %v1743_v32, %v1679_v45 }
 0x25f   : > { %v1937_v11 = vadd.f32 %v2957_v1, %v1923_v51  ;;  %v1667_v51 = vpop.f32.mrf.mxu2 }
 0x260   : > { %v1680_v30 = vadd.f32 %v1667_v51, %v2950_v29 }
 0x261   : > { %v1947_v36 = vmax.f32 %v1937_v11, 0.0  ;;  %v1855_v11 = vadd.f32 %v1840_v63, %v1758_v58 }
 0x263   : > { %1957 = vst.msk [vmem:[%s2964_s24] sm:$0xff] %vm1131_vm9, %v1947_v36 }
 0x264   : > { %v1900_v48 = vpop.f32.mrf.mxu1 }
 0x265   : > { %v1924_v43 = vadd.f32 %v1900_v48, %v1849_v25  ;;  %v1746_v20 = vpop.f32.mrf.mxu3  ;;  %v1843_v21 = vpop.f32.mrf.mxu0 }
 0x266   : > { %v1759_v59 = vadd.f32 %v1746_v20, %v1680_v30 }
 0x267   : > { %v1938_v26 = vadd.f32 %v2957_v1, %v1924_v43  ;;  %v1669_v43 = vpop.f32.mrf.mxu2 }
 0x268   : > { %v1856_v8 = vadd.f32 %v1843_v21, %v1759_v59 }
 0x269   : > { %v1948_v27 = vmax.f32 %v1938_v26, 0.0  ;;  %v1681_v26 = vadd.f32 %v1669_v43, %v2952_v38 }
 0x26b   : > { %1958 = vst.msk [vmem:[%s2964_s24 + $0x8] sm:$0xff] %vm1131_vm9, %v1948_v27 }
 0x26c   : > { %v1903_v13 = vpop.f32.mrf.mxu1 }
 0x26d   : > { %v1925_v15 = vadd.f32 %v1903_v13, %v1850_v14  ;;  %v1748_v19 = vpop.f32.mrf.mxu3  ;;  %v1845_v55 = vpop.f32.mrf.mxu0 }
 0x26e   : > { %v1760_v52 = vadd.f32 %v1748_v19, %v1681_v26 }
 0x26f   : > { %v1939_v9 = vadd.f32 %v2957_v1, %v1925_v15 }
 0x270   : > { %v1857_v15 = vadd.f32 %v1845_v55, %v1760_v52 }
 0x271   : > { %v1949_v56 = vmax.f32 %v1939_v9, 0.0 }
 0x273   : > { %1959 = vst.msk [vmem:[%s2964_s24 + $0x10] sm:$0xff] %vm1131_vm9, %v1949_v56 }
 0x274   : > { %v1905_v10 = vpop.f32.mrf.mxu1 }
 0x275   : > { %v1926_v46 = vadd.f32 %v1905_v10, %v1851_v5 }
 0x277   : > { %v1940_v3 = vadd.f32 %v2957_v1, %v1926_v46 }
 0x279   : > { %v1950_v54 = vmax.f32 %v1940_v3, 0.0 }
 0x27b   : > { %1960 = vst.msk [vmem:[%s2964_s24 + $0x18] sm:$0xff] %vm1131_vm9, %v1950_v54 }
 0x27c   : > { %v1908_v47 = vpop.f32.mrf.mxu1 }
 0x27d   : > { %v1927_v41 = vadd.f32 %v1908_v47, %v1852_v4 }
 0x27f   : > { %v1941_v0 = vadd.f32 %v2957_v1, %v1927_v41 }
 0x281   : > { %v1951_v61 = vmax.f32 %v1941_v0, 0.0 }
 0x283   : > { %1961 = vst.msk [vmem:[%s2964_s24 + $0x20] sm:$0xff] %vm1131_vm9, %v1951_v61 }
 0x284   : > { %v1910_v44 = vpop.f32.mrf.mxu1 }
 0x285   : > { %v1928_v16 = vadd.f32 %v1910_v44, %v1853_v31 }
 0x287   : > { %v1942_v62 = vadd.f32 %v2957_v1, %v1928_v16 }
 0x289   : > { %v1952_v33 = vmax.f32 %v1942_v62, 0.0 }
 0x28b   : > { %1962 = vst.msk [vmem:[%s2964_s24 + $0x28] sm:$0xff] %vm1131_vm9, %v1952_v33 }
 0x28c   : > { %v1913_v57 = vpop.f32.mrf.mxu1 }
 0x28d   : > { %v1929_v23 = vadd.f32 %v1913_v57, %v1854_v40 }
 0x28f   : > { %v1943_v50 = vadd.f32 %v2957_v1, %v1929_v23 }
 0x291   : > { %v1953_v28 = vmax.f32 %v1943_v50, 0.0 }
 0x293   : > { %1963 = vst.msk [vmem:[%s2964_s24 + $0x30] sm:$0xff] %vm1131_vm9, %v1953_v28 }
 0x294   : > { %v1915_v36 = vpop.f32.mrf.mxu1 }
 0x295   : > { %v1930_v25 = vadd.f32 %v1915_v36, %v1855_v11 }
 0x297   : > { %v1944_v60 = vadd.f32 %v2957_v1, %v1930_v25 }
 0x299   : > { %v1954_v48 = vmax.f32 %v1944_v60, 0.0 }
 0x29b   : > { %1964 = vst.msk [vmem:[%s2964_s24 + $0x38] sm:$0xff] %vm1131_vm9, %v1954_v48 }
 0x29c   : > { %v1918_v27 = vpop.f32.mrf.mxu1 }
 0x29d   : > { %v1931_v29 = vadd.f32 %v1918_v27, %v1856_v8 }
 0x29f   : > { %v1945_v14 = vadd.f32 %v2957_v1, %v1931_v29 }
 0x2a1   : > { %v1955_v13 = vmax.f32 %v1945_v14, 0.0 }
 0x2a3   : > { %1965 = vst.msk [vmem:[%s2964_s24 + $0x40] sm:$0xff] %vm1131_vm9, %v1955_v13 }
 0x2a4   : > { %v1920_v2 = vpop.f32.mrf.mxu1 }
 0x2a5   : > { %v1932_v49 = vadd.f32 %v1920_v2, %v1857_v15 }
 0x2a7   : > { %v1946_v9 = vadd.f32 %v2957_v1, %v1932_v49 }
 0x2a9   : > { %v1956_v56 = vmax.f32 %v1946_v9, 0.0 }
 0x2ab   : > { %1966 = vst.msk [vmem:[%s2964_s24 + $0x48] sm:$0xff] %vm1131_vm9, %v1956_v56 }
 0x2ac PF: > { %s16_s21 = sadd.s32 1, %s2162_s21  }
 0x2ad   : > { %p13_p4 = scmp.ge.s32.totalorder %s16_s21, 4  }
 0x2af   :  { %15 = sbr.rel (!%p13_p4) target bundleno = 1 (0x1), region = 90 }

// kernel: _lambda_.5
= control target key start
LH: loop header
LB: loop body
LE: loop exit
PB: predicated region body
PF: predicated region fallthrough
CT: control target
= control target key end

     0   :  { %11 = vsyncpa [#allocation4], 0  ;;  %s1634_s0 = inlined_call_operand.vmem [shape: f32[2,38,8], index: 0, kind: input, shape index: {}]   ;;  %s1635_s1 = inlined_call_operand.vmem [shape: bf16[9,8,16], index: 1, kind: input, shape index: {}]   ;;  %s1636_s2 = inlined_call_operand.vmem [shape: f32[1,16], index: 2, kind: input, shape index: {}]   ;;  %s1637_s3 = inlined_call_operand.vmem [shape: bf16[9,16,16], index: 3, kind: input, shape index: {}]   ;;  %s1638_s4 = inlined_call_operand.vmem [shape: f32[1,16], index: 4, kind: input, shape index: {}]   ;;  %s1639_s5 = inlined_call_operand.vmem [shape: f32[24,1], index: 5, kind: input, shape index: {}]   ;;  %s1640_s6 = inlined_call_operand.hbm [shape: f32[2,1,16], index: 6, kind: output, shape index: {}]  }
   0x1   :  { %13 = vsyncpa [#allocation4 + $0x1], 0  ;;  %s1392_s21 = smov 0   ;;  %s1394_s22 = smov 0  }
   0x2   :  { %s1396_s23 = smov 0   ;;  %s1398_s24 = smov 0  }
   0x3 LB: > { %s1413_s25 = sadd.s32 4294967295, %s1352_s24   ;;  %s1127_s26 = sadd.s32 4294967294, %s1352_s24   ;;  %s1352_s24 = sphi %s1398_s24, %s1646_s24   ;;  %s1348_s23 = sphi %s1396_s23, %s1645_s23   ;;  %s1344_s22 = sphi %s1394_s22, %s1644_s22   ;;  %s1340_s21 = sphi %s1392_s21, %s1643_s21  }
   0x4   : > { %s1417_s27 = sadd.s32 1, %s1352_s24   ;;  %s157_s28 = sadd.s32 1, %s1348_s23 }
   0x5   : > { %s154_s29 = ssub.s32 %s1352_s24, %s1417_s27  ;;  %p167_p0 = scmp.ne.s32.totalorder %s1348_s23, %s1344_s22 }
   0x6   : > { %p155_p1 = scmp.eq.s32.totalorder %s154_s29, 0  ;;  %p168_p2 = scmp.eq.s32.totalorder %s1413_s25, 1 }
   0x7   : > { %p173_p3 = scmp.ne.s32.totalorder %s1344_s22, %s1340_s21  ;;  %p174_p4 = scmp.eq.s32.totalorder %s1127_s26, 1 }
   0x8   : > { %s1428_s30 = scalar_select %p155_p1, %s1348_s23, %s157_s28  }
   0x9   : > { %p1430_p5 = por %p168_p2, %p167_p0  ;;  %p1434_p6 = por %p174_p4, %p173_p3 }
   0xa   : > { %p1130_p7 = scmp.ge.s32.totalorder %s1352_s24, 1  ;;  %p215_p8 = scmp.lt.s32.totalorder %s1352_s24, 3 }
   0xc   : > { %p216_p9 = pnand %p1130_p7, %p215_p8 }
   0xd   : > { %p244_p10 = scmp.lt.s32.totalorder (!%p216_p9), %s1413_s25, 1  ;;  %s1068_s18 = scalar_lea.hbm (!%p216_p9), %s1640_s6, %s1413_s25 }
   0xe   : > { %219 = sbr.rel (%p216_p9) target bundleno = 491 (0x1eb), region = 44  ;;  %s1072_s26 = sshll.u32 (!%p216_p9), %s1068_s18, 4  ;;  %s1073_s26 = int_to_ptr.hbm [resolvable:$true] %s1072_s26 }
   0xf   : > { %s1304_s29 = sshra.s32 (!%p216_p9), %s1073_s26, 4  ;;  %s1310_s11 = scalar_lea.hbm (!%p216_p9), %s1640_s6, 2  ;;  %s1305_s29 = int_to_ptr.hbm [resolvable:$true] %s1304_s29 }
  0x10   : > { %s1306_s9 = scalar_lea.hbm (!%p216_p9), %s1305_s29, 1  ;;  %p1311_p0 = scmp.lt.s32.totalorder (!%p216_p9), %s1305_s29, %s1640_s6 }
  0x11   : > { %p1307_p11 = scmp.ne.s32.totalorder (!%p216_p9), %s1305_s29, %s1306_s9  ;;  %p1312_p1 = scmp.lt.s32.totalorder (!%p216_p9), %s1310_s11, %s1306_s9 }
  0x13   : > { %v260_v0 = vld [vmem:[%s1635_s1] sm:$0xf]  ;;  %vm287_vm0 = vcmask 1043456   ;;  %v1132_v2 = vld [vmem:[%s1635_s1 + $0x4] sm:$0xf]  ;;  %s245_s15 = scalar_select %p244_p10, %s1413_s25, 1 }
  0x14   : > { %v315_v1 = vsel %vm287_vm0, %v260_v0, 0  ;;  %v1137_v3 = vld [vmem:[%s1635_s1 + $0x8] sm:$0xf]  ;;  %v289_v4 = vsel %vm287_vm0, %v1132_v2, 0  ;;  %v1140_v6 = vld [vmem:[%s1635_s1 + $0xc] sm:$0xf]  ;;  %p1308_p12 = pnand %p1307_p11, %p1430_p5  ;;  %p1313_p2 = por %p1312_p1, %p1311_p0 }
  0x15   : > { %1240 = vmatpush.bf16.msra.mxu3 %v315_v1  ;;  %324 = vmatpush.bf16.msra.mxu1 %v315_v1  ;;  %v350_v5 = vsel %vm287_vm0, %v1137_v3, 0  ;;  %v1143_v7 = vld [vmem:[%s1635_s1 + $0x10] sm:$0xf]  ;;  %s1241_s20 = smul.u32 40, %s245_s15  ;;  %v386_v8 = vsel %vm287_vm0, %v1140_v6, 0  ;;  %vm280_vm1 = vcmask 64512  }
  0x16   : > { %1239 = vmatpush.bf16.msra.mxu2 %v289_v4  ;;  %298 = vmatpush.bf16.msra.mxu0 %v289_v4  ;;  %v426_v9 = vsel %vm287_vm0, %v1143_v7, 0  ;;  %v1152_v10 = vld [vmem:[%s1635_s1 + $0x1c] sm:$0xf]  ;;  %v1146_v11 = vld [vmem:[%s1635_s1 + $0x14] sm:$0xf]  ;;  %vm375_vm3 = vcmask 1044480   ;;  %p1309_p13 = pneg %p1308_p12 }
  0x17   : > { %s1471_s12 = scalar_lea.vmem %s1634_s0, %s1241_s20  ;;  %v460_v12 = vsel %vm287_vm0, %v1146_v11, 0  ;;  %v548_v19 = vsel %vm287_vm0, %v1152_v10, 0  ;;  %v1149_v26 = vld [vmem:[%s1635_s1 + $0x18] sm:$0xf]  ;;  %v1155_v27 = vld [vmem:[%s1635_s1 + $0x20] sm:$0xf] }
  0x18   : > { %v253_v13 = vld [vmem:[%s1471_s12] sm:$0xff]  ;;  %v254_v14 = vld [vmem:[%s1471_s12 + $0x8] sm:$0xff]  ;;  %v255_v15 = vld [vmem:[%s1471_s12 + $0x10] sm:$0xff]  ;;  %vm264_vm2 = vsmask.f32 7424  ;;  %v499_v31 = vsel %vm287_vm0, %v1149_v26, 0  ;;  %p1314_p3 = pnand %p1313_p2, %p1309_p13 }
  0x19   : > { %395 = vmatpush.bf16.msrb.mxu3 %v386_v8  ;;  %469 = vmatpush.bf16.msrb.mxu1 %v460_v12  ;;  %v256_v16 = vld [vmem:[%s1471_s12 + $0x18] sm:$0xff]  ;;  %v258_v17 = vpack.c.bf16 %v254_v14, %v253_v13  ;;  %v259_v18 = vpack.c.bf16 %v255_v15, %v255_v15  ;;  %v583_v32 = vsel %vm287_vm0, %v1155_v27, 0  ;;  %v449_v36 = vpack.c.bf16 %v255_v15, %v254_v14  ;;  %v257_v48 = vld [vmem:[%s1471_s12 + $0x20] sm:$0x3f]  ;;  %v252_v60 = vld [vmem:[%s1639_s5 + $0x10] sm:$0xff]  ;;  %s242_s15 = sand.u32 1, %s1344_s22  }
  0x1a   : > { %359 = vmatpush.bf16.msrb.mxu2 %v350_v5  ;;  %435 = vmatpush.bf16.msrb.mxu0 %v426_v9  ;;  %v261_v20 = vpack.c.bf16 %v256_v16, %v255_v15  ;;  %vm339_vm4 = vcmask 1046528   ;;  %vm411_vm5 = vsmask.f32 4352  ;;  %v450_v49 = vpack.c.bf16 %v256_v16, %v256_v16  ;;  %v250_v59 = vld [vmem:[%s1639_s5] sm:$0xff]  ;;  %v251_v1 = vld [vmem:[%s1639_s5 + $0x8] sm:$0xff]  ;;  %s243_s19 = scalar_lea.vmem [#allocation3], %s242_s15 }
  0x1b   : > { %1136 = vmatmul.msk.bf16.vlgmr.msra.gmra.mxu3 %vm280_vm1, %v259_v18  ;;  %v266_v21 = vshrl.u32 %v258_v17, 16  ;;  %v268_v22 = vshll.u32 %v258_v17, 16  ;;  %1135 = vmatmul.msk.bf16.vlgmr.msra.gmra.mxu1 %vm280_vm1, %v258_v17  ;;  %v376_v34 = vrot.slane %v258_v17, 3  ;;  %v340_v42 = vrot.slane %v258_v17, 1  ;;  %s1070_s20 = sshll.u32 %s243_s19, 4  ;;  %s1060_s28 = scalar_lea.sflag [#allocation4], %s242_s15  ;;  %s1071_s20 = int_to_ptr.vmem [resolvable:$true] %s1070_s20 }
  0x1c   : > { %v273_v23 = vshll.u32 %v261_v20, 16  ;;  %v277_v24 = vshrl.u32 %v261_v20, 16  ;;  %v377_v35 = vrot.slane %v261_v20, 3  ;;  %v341_v43 = vrot.slane %v261_v20, 1 }
  0x1d   : > { %557 = vmatpush.bf16.msra.mxu3 %v548_v19  ;;  %v270_v25 = vrot.slane %v268_v22, 1  ;;  %v412_v38 = vrot.slane %v266_v21, 3  ;;  %v413_v39 = vrot.slane %v268_v22, 4  ;;  %v483_v50 = vpack.c.bf16 %v257_v48, %v256_v16 }
  0x1e   : > { %v275_v28 = vrot.slane %v273_v23, 1  ;;  %v415_v37 = vrot.slane %v277_v24, 3  ;;  %v416_v40 = vrot.slane %v273_v23, 4  ;;  %v378_v41 = vsel %vm375_vm3, %v376_v34, %v377_v35 }
  0x1f   : > { %v271_v29 = vor.u32 %v270_v25, %v266_v21  ;;  %v414_v44 = vor.u32 %v413_v39, %v412_v38  ;;  %v342_v46 = vsel %vm339_vm4, %v340_v42, %v341_v43  ;;  %v525_v51 = vshrl.u32 %v449_v36, 16 }
  0x20   : > { %v279_v30 = vor.u32 %v277_v24, %v275_v28  ;;  %v417_v45 = vor.u32 %v416_v40, %v415_v37  ;;  %v528_v52 = vshll.u32 %v449_v36, 16  ;;  %v533_v53 = vshrl.u32 %v483_v50, 16  ;;  %v1230_v40 = vld [vmem:[%s1637_s3] sm:$0xff] }
  0x21   : > { %v276_v33 = vsel %vm264_vm2, %v271_v29, %v275_v28  ;;  %v536_v54 = vshll.u32 %v483_v50, 16  ;;  %v527_v55 = vrot.slane %v525_v51, 2  ;;  %v1354_v61 = vmov 0   ;;  %v1231_v29 = vld [vmem:[%s1637_s3 + $0x8] sm:$0xff] }
  0x22   : > { %1134 = vmatmul.msk.bf16.vlgmr.msra.gmra.mxu2 %vm280_vm1, %v279_v30  ;;  %1133 = vmatmul.msk.bf16.vlgmr.msra.gmra.mxu0 %vm280_vm1, %v276_v33  ;;  %v418_v47 = vsel %vm411_vm5, %v414_v44, %v417_v45  ;;  %v530_v56 = vrot.slane %v528_v52, 3  ;;  %v535_v57 = vrot.slane %v533_v53, 2  ;;  %vm524_vm6 = vsmask.f32 5376 }
  0x23   : > { %508 = vmatpush.bf16.msra.mxu2 %v499_v31  ;;  %592 = vmatpush.bf16.msra.mxu0 %v583_v32  ;;  %v538_v58 = vrot.slane %v536_v54, 3  ;;  %v489_v2 = vrot.slane %v449_v36, 2  ;;  %v490_v3 = vrot.slane %v483_v50, 2  ;;  %v573_v4 = vrot.slane %v449_v36, 3 }
  0x24   : > { %1284 = vset.pattern.permute.xlu0 %v1354_v61  ;;  %1285 = vset.pattern.permute.xlu1 %v1354_v61  ;;  %v531_v62 = vor.u32 %v530_v56, %v527_v55  ;;  %v574_v5 = vrot.slane %v483_v50, 3  ;;  %vm488_vm7 = vcmask 1045504   ;;  %vm634_vm8 = vcmask 130048   ;;  %v1286_v55 = vld [vmem:[%s1636_s2] ss:$0 sm:$0xff] }
  0x25   : > { %v539_v63 = vor.u32 %v538_v58, %v535_v57  ;;  %618 = vperm.xlu0 %1284, %v250_v59   ;;  %628 = vperm.xlu1 %1285, %v252_v60   ;;  %v491_v6 = vsel %vm488_vm7, %v489_v2, %v490_v3  ;;  %vm639_vm9 = vcmask 128000   ;;  %v1355_v24 = vmov 0.0  }
  0x26   : > { %v575_v7 = vsel %vm375_vm3, %v573_v4, %v574_v5  ;;  %635 = vst.msk [vmem:[#allocation2] sm:$0xff] %vm634_vm8, %v1355_v24  ;;  %691 = vmatpush.bf16.msra.mxu1 %v1231_v29  ;;  %vm1057_vm11 = vcmask 122880  }
  0x27   : > { %v540_v0 = vsel %vm524_vm6, %v531_v62, %v539_v63  ;;  %636 = vst.msk [vmem:[#allocation2 + $0x8] sm:$0xff] %vm634_vm8, %v1355_v24 }
  0x28   : > { %640 = vst.msk [vmem:[#allocation2 + $0x20] sm:$0x3f] %vm639_vm9, %v1355_v24 }
  0x29   : > { %637 = vst.msk [vmem:[#allocation2 + $0x10] sm:$0xff] %vm634_vm8, %v1355_v24 }
  0x2a   : > { %638 = vst.msk [vmem:[#allocation2 + $0x18] sm:$0xff] %vm634_vm8, %v1355_v24 }
  0x2b   : > { %1141 = vmatmul.msk.bf16.vlgmr.msrb.gmra.mxu3 %vm280_vm1, %v378_v41  ;;  %1147 = vmatmul.msk.bf16.vlgmr.msrb.gmra.mxu1 %vm280_vm1, %v449_v36 }
  0x2d   : > { %623 = vperm.xlu0 %1284, %v251_v1  }
  0x32   : > { %1138 = vmatmul.msk.bf16.vlgmr.msrb.gmra.mxu2 %vm280_vm1, %v342_v46  ;;  %1144 = vmatmul.msk.bf16.vlgmr.msrb.gmra.mxu0 %vm280_vm1, %v418_v47  ;;  %v1233_v46 = vld [vmem:[%s1637_s3 + $0x18] sm:$0xff] }
  0x33   : > { %720 = vmatpush.bf16.msrb.mxu2 %v1230_v40  ;;  %797 = vmatpush.bf16.msrb.mxu0 %v1233_v46 }
  0x3b   : > { %1142 = vmatmul.msk.bf16.gmra.mxu3 %vm280_vm1, %v377_v35  ;;  %1148 = vmatmul.msk.bf16.gmra.mxu1 %vm280_vm1, %v450_v49 }
  0x42   : > { %1139 = vmatmul.msk.bf16.gmra.mxu2 %vm280_vm1, %v341_v43  ;;  %1145 = vmatmul.msk.bf16.gmra.mxu0 %vm280_vm1, %v417_v45  ;;  %v1232_v45 = vld [vmem:[%s1637_s3 + $0x10] sm:$0xff] }
  0x43   : > { %758 = vmatpush.bf16.msrb.mxu3 %v1232_v45  ;;  %v1238_v45 = vld [vmem:[%s1637_s3 + $0x40] sm:$0xff] }
  0x4b   : > { %1153 = vmatmul.msk.bf16.vlgmr.msra.gmra.mxu3 %vm280_vm1, %v540_v0 }
  0x52   : > { %1150 = vmatmul.msk.bf16.vlgmr.msra.gmra.mxu2 %vm280_vm1, %v491_v6  ;;  %1156 = vmatmul.msk.bf16.vlgmr.msra.gmra.mxu0 %vm280_vm1, %v575_v7 }
  0x5b   : > { %1154 = vmatmul.msk.bf16.gmra.mxu3 %vm280_vm1, %v539_v63 }
  0x62   : > { %1151 = vmatmul.msk.bf16.gmra.mxu2 %vm280_vm1, %v490_v3  ;;  %1157 = vmatmul.msk.bf16.gmra.mxu0 %vm280_vm1, %v574_v5  ;;  %v1234_v5 = vld [vmem:[%s1637_s3 + $0x20] sm:$0xff] }
  0x63   : > { %840 = vmatpush.bf16.msrb.mxu1 %v1234_v5 }
  0x97   : > { %v1541_v60 = vpop.permute.xlu0 %618 }
  0x98   : > { %v326_v8 = vpop.f32.mrf.mxu1 }
  0x9e   : > { %v331_v9 = vpop.f32.mrf.mxu3 }
  0x9f   : > { %v300_v10 = vpop.f32.mrf.mxu0 }
  0xa0   : > { %v328_v11 = vpop.f32.mrf.mxu1  ;;  %v327_v31 = vadd.f32 %v326_v8, %v300_v10 }
  0xa5   : > { %v305_v12 = vpop.f32.mrf.mxu2 }
  0xa6   : > { %v333_v13 = vpop.f32.mrf.mxu3  ;;  %v332_v48 = vadd.f32 %v331_v9, %v305_v12 }
  0xa7   : > { %v302_v14 = vpop.f32.mrf.mxu0  ;;  %v1548_v13 = vpop.permute.xlu0 %623 }
  0xa8   : > { %v471_v15 = vpop.f32.mrf.mxu1  ;;  %v329_v37 = vadd.f32 %v328_v11, %v302_v14 }
  0xad   : > { %v307_v16 = vpop.f32.mrf.mxu2 }
  0xae   : > { %v397_v17 = vpop.f32.mrf.mxu3 }
  0xaf   : > { %v437_v18 = vpop.f32.mrf.mxu0 }
  0xb0   : > { %v473_v19 = vpop.f32.mrf.mxu1 }
  0xb5   : > { %v361_v20 = vpop.f32.mrf.mxu2 }
  0xb6   : > { %v399_v21 = vpop.f32.mrf.mxu3  ;;  %v370_v34 = vadd.f32 %v361_v20, %v327_v31  ;;  %v1552_v20 = vpop.permute.xlu1 %628 }
  0xb7   : > { %v439_v22 = vpop.f32.mrf.mxu0 }
  0xb8   : > { %v476_v23 = vpop.f32.mrf.mxu1  ;;  %v406_v35 = vadd.f32 %v397_v17, %v370_v34 }
  0xba   : > { %v446_v41 = vadd.f32 %v437_v18, %v406_v35 }
  0xbc   : > { %v480_v43 = vadd.f32 %v471_v15, %v446_v41 }
  0xbd   : > { %v363_v25 = vpop.f32.mrf.mxu2 }
  0xbe   : > { %v402_v26 = vpop.f32.mrf.mxu3  ;;  %v371_v42 = vadd.f32 %v363_v25, %v329_v37 }
  0xbf   : > { %v442_v27 = vpop.f32.mrf.mxu0 }
  0xc0   : > { %v478_v28 = vpop.f32.mrf.mxu1  ;;  %v407_v44 = vadd.f32 %v399_v21, %v371_v42 }
  0xc1   : > { %v1237_v28 = vld [vmem:[%s1637_s3 + $0x38] sm:$0xff] }
  0xc2   : > { %v447_v52 = vadd.f32 %v439_v22, %v407_v44  ;;  %972 = vmatpush.bf16.msra.mxu0 %v1237_v28 }
  0xc4   : > { %v481_v57 = vadd.f32 %v473_v19, %v447_v52 }
  0xc5   : > { %v366_v30 = vpop.f32.mrf.mxu2 }
  0xc6   : > { %v404_v32 = vpop.f32.mrf.mxu3  ;;  %v372_v53 = vadd.f32 %v366_v30, %v332_v48 }
  0xc7   : > { %v444_v33 = vpop.f32.mrf.mxu0 }
  0xc8   : > { %v408_v58 = vadd.f32 %v402_v26, %v372_v53 }
  0xca   : > { %v448_v2 = vadd.f32 %v442_v27, %v408_v58  ;;  %v1236_v27 = vld [vmem:[%s1637_s3 + $0x30] sm:$0xff] }
  0xcb   : > { %920 = vmatpush.bf16.msra.mxu3 %v1236_v27 }
  0xcc   : > { %v482_v7 = vadd.f32 %v476_v23, %v448_v2  ;;  %v1235_v23 = vld [vmem:[%s1637_s3 + $0x28] sm:$0xff] }
  0xcd   : > { %v368_v36 = vpop.f32.mrf.mxu2  ;;  %878 = vmatpush.bf16.msra.mxu2 %v1235_v23 }
  0xce   : > { %v559_v38 = vpop.f32.mrf.mxu3 }
  0xcf   : > { %v594_v39 = vpop.f32.mrf.mxu0 }
  0xd5   : > { %v510_v47 = vpop.f32.mrf.mxu2 }
  0xd6   : > { %v519_v49 = vadd.f32 %v510_v47, %v480_v43  ;;  %v561_v50 = vpop.f32.mrf.mxu3  ;;  %v648_v47 = vld [vmem:[#allocation2 + $0x20] sm:$0x3f] }
  0xd7   : > { %v596_v51 = vpop.f32.mrf.mxu0 }
  0xd8   : > { %v568_v54 = vadd.f32 %v559_v38, %v519_v49 }
  0xda   : > { %v603_v56 = vadd.f32 %v594_v39, %v568_v54 }
  0xdc   : > { %v610_v59 = vadd.f32 %v1286_v55, %v603_v56 }
  0xdd   : > { %v512_v61 = vpop.f32.mrf.mxu2 }
  0xde   : > { %v613_v62 = vmax.f32 %v610_v59, 0.0  ;;  %v520_v63 = vadd.f32 %v512_v61, %v481_v57  ;;  %v564_v0 = vpop.f32.mrf.mxu3 }
  0xdf   : > { %v599_v1 = vpop.f32.mrf.mxu0 }
  0xe0   : > { %v631_v3 = vmul.f32 %v1541_v60, %v613_v62  ;;  %v569_v4 = vadd.f32 %v561_v50, %v520_v63 }
  0xe2   : > { %641 = vst.msk [vmem:[#allocation2 + $0x7] sm:$0xff] %vm634_vm8, %v631_v3  ;;  %v604_v6 = vadd.f32 %v596_v51, %v569_v4 }
  0xe4   : > { %v611_v8 = vadd.f32 %v1286_v55, %v604_v6 }
  0xe5   : > { %v515_v9 = vpop.f32.mrf.mxu2 }
  0xe6   : > { %v614_v10 = vmax.f32 %v611_v8, 0.0  ;;  %v521_v11 = vadd.f32 %v515_v9, %v482_v7  ;;  %v566_v12 = vpop.f32.mrf.mxu3 }
  0xe7   : > { %v601_v14 = vpop.f32.mrf.mxu0 }
  0xe8   : > { %v632_v15 = vmul.f32 %v1548_v13, %v614_v10  ;;  %v570_v16 = vadd.f32 %v564_v0, %v521_v11 }
  0xe9   : > { %v644_v24 = vld [vmem:[#allocation2] sm:$0xff] }
  0xea   : > { %642 = vst.msk [vmem:[#allocation2 + $0xf] sm:$0xff] %vm634_vm8, %v632_v15  ;;  %v605_v17 = vadd.f32 %v599_v1, %v570_v16 }
  0xec   : > { %v612_v18 = vadd.f32 %v1286_v55, %v605_v17 }
  0xed   : > { %v517_v19 = vpop.f32.mrf.mxu2 }
  0xee   : > { %v615_v21 = vmax.f32 %v612_v18, 0.0 }
  0xf0   : > { %v633_v22 = vmul.f32 %v1552_v20, %v615_v21 }
  0xf1   : > { %v645_v25 = vld [vmem:[#allocation2 + $0x8] sm:$0xff] }
  0xf2   : > { %643 = vst.msk [vmem:[#allocation2 + $0x17] sm:$0xff] %vm634_vm8, %v633_v22  ;;  %v649_v26 = vpack.c.bf16 %v645_v25, %v644_v24 }
  0xf4   : > { %1170 = vmatmul.msk.bf16.vlgmr.msrb.gmra.mxu2 %vm634_vm8, %v649_v26  ;;  %v660_v29 = vshll.u32 %v649_v26, 16  ;;  %v736_v34 = vrot.slane %v649_v26, 1  ;;  %v775_v35 = vrot.slane %v649_v26, 3  ;;  %v658_v38 = vshrl.u32 %v649_v26, 16 }
  0xf6   : > { %v662_v33 = vrot.slane %v660_v29, 1  ;;  %v814_v63 = vrot.slane %v658_v38, 3  ;;  %v815_v0 = vrot.slane %v660_v29, 4 }
  0xf8   : > { %v663_v42 = vor.u32 %v662_v33, %v658_v38  ;;  %v816_v8 = vor.u32 %v815_v0, %v814_v63 }
  0xf9   : > { %v646_v30 = vld [vmem:[#allocation2 + $0x10] sm:$0xff]  ;;  %v647_v31 = vld [vmem:[#allocation2 + $0x18] sm:$0xff] }
  0xfa   : > { %v653_v32 = vpack.c.bf16 %v647_v31, %v646_v30  ;;  %v650_v46 = vpack.c.bf16 %v646_v30, %v646_v30  ;;  %v854_v49 = vpack.c.bf16 %v646_v30, %v645_v25  ;;  %v892_v50 = vpack.c.bf16 %v648_v47, %v647_v31 }
  0xfb   : > { %v855_v10 = vpack.c.bf16 %v647_v31, %v647_v31 }
  0xfc   : > { %v737_v36 = vrot.slane %v653_v32, 1  ;;  %v776_v37 = vrot.slane %v653_v32, 3  ;;  %v665_v39 = vshll.u32 %v653_v32, 16  ;;  %v669_v48 = vshrl.u32 %v653_v32, 16 }
  0xfd   : > { %v937_v52 = vshrl.u32 %v854_v49, 16  ;;  %v940_v53 = vshll.u32 %v854_v49, 16  ;;  %v945_v54 = vshrl.u32 %v892_v50, 16  ;;  %v948_v55 = vshll.u32 %v892_v50, 16 }
  0xfe   : > { %v738_v40 = vsel %vm339_vm4, %v736_v34, %v737_v36  ;;  %v777_v41 = vsel %vm375_vm3, %v775_v35, %v776_v37  ;;  %v667_v43 = vrot.slane %v665_v39, 1  ;;  %v817_v61 = vrot.slane %v669_v48, 3 }
  0xff   : > { %1178 = vmatmul.msk.bf16.vlgmr.msrb.gmra.mxu3 %vm634_vm8, %v738_v40  ;;  %1186 = vmatmul.msk.bf16.vlgmr.msrb.gmra.mxu0 %vm634_vm8, %v777_v41  ;;  %v939_v56 = vrot.slane %v937_v52, 2  ;;  %v942_v57 = vrot.slane %v940_v53, 3  ;;  %v947_v58 = vrot.slane %v945_v54, 2  ;;  %v950_v59 = vrot.slane %v948_v55, 3 }
 0x100   : > { %v668_v44 = vsel %vm264_vm2, %v663_v42, %v667_v43  ;;  %v671_v51 = vor.u32 %v669_v48, %v667_v43  ;;  %v818_v62 = vrot.slane %v665_v39, 4  ;;  %v898_v1 = vrot.slane %v854_v49, 2 }
 0x101   : > { %1164 = vmatmul.msk.bf16.vlgmr.msra.gmra.mxu1 %vm634_vm8, %v668_v44  ;;  %v899_v2 = vrot.slane %v892_v50, 2  ;;  %v943_v3 = vor.u32 %v942_v57, %v939_v56  ;;  %v951_v4 = vor.u32 %v950_v59, %v947_v58  ;;  %v989_v11 = vrot.slane %v854_v49, 3 }
 0x102   : > { %1011 = vmatpush.bf16.msra.mxu1 %v1238_v45  ;;  %v819_v5 = vor.u32 %v818_v62, %v817_v61  ;;  %v990_v12 = vrot.slane %v892_v50, 3 }
 0x103   : > { %v900_v6 = vsel %vm488_vm7, %v898_v1, %v899_v2  ;;  %v952_v7 = vsel %vm524_vm6, %v943_v3, %v951_v4 }
 0x104   : > { %1171 = vmatmul.msk.bf16.gmra.mxu2 %vm634_vm8, %v650_v46  ;;  %v820_v9 = vsel %vm411_vm5, %v816_v8, %v819_v5  ;;  %v991_v14 = vsel %vm375_vm3, %v989_v11, %v990_v12 }
 0x10f   : > { %1179 = vmatmul.msk.bf16.gmra.mxu3 %vm634_vm8, %v737_v36  ;;  %1187 = vmatmul.msk.bf16.gmra.mxu0 %vm634_vm8, %v776_v37 }
 0x111   : > { %1165 = vmatmul.msk.bf16.gmra.mxu1 %vm634_vm8, %v671_v51 }
 0x114   : > { %1202 = vmatmul.msk.bf16.vlgmr.msra.gmra.mxu2 %vm634_vm8, %v854_v49 }
 0x11f   : > { %1210 = vmatmul.msk.bf16.vlgmr.msra.gmra.mxu3 %vm634_vm8, %v900_v6  ;;  %1218 = vmatmul.msk.bf16.vlgmr.msra.gmra.mxu0 %vm634_vm8, %v952_v7 }
 0x121   : > { %1194 = vmatmul.msk.bf16.vlgmr.msrb.gmra.mxu1 %vm634_vm8, %v820_v9 }
 0x124   : > { %1203 = vmatmul.msk.bf16.gmra.mxu2 %vm634_vm8, %v855_v10 }
 0x12f   : > { %1211 = vmatmul.msk.bf16.gmra.mxu3 %vm634_vm8, %v899_v2  ;;  %1219 = vmatmul.msk.bf16.gmra.mxu0 %vm634_vm8, %v951_v4 }
 0x131   : > { %1195 = vmatmul.msk.bf16.gmra.mxu1 %vm634_vm8, %v819_v5  ;;  %v1287_v5 = vld [vmem:[%s1638_s4] ss:$0 sm:$0xff] }
 0x141   : > { %1226 = vmatmul.msk.bf16.vlgmr.msra.gmra.mxu1 %vm634_vm8, %v991_v14 }
 0x151   : > { %1227 = vmatmul.msk.bf16.gmra.mxu1 %vm634_vm8, %v990_v12  ;;  %v1356_v12 = vmov 16.0  }
 0x152   : > { %1288 = vrcp.f32 %v1356_v12 }
 0x177   : > { %v722_v15 = vpop.f32.mrf.mxu2 }
 0x17c   : > { %v799_v16 = vpop.f32.mrf.mxu0 }
 0x17e   : > { %v693_v17 = vpop.f32.mrf.mxu1 }
 0x17f   : > { %v723_v18 = vadd.f32 %v722_v15, %v693_v17  ;;  %v724_v19 = vpop.f32.mrf.mxu2 }
 0x182   : > { %v760_v21 = vpop.f32.mrf.mxu3 }
 0x183   : > { %v769_v22 = vadd.f32 %v760_v21, %v723_v18  ;;  %v1289_v21 = vpop.eup %1288 }
 0x184   : > { %v801_v23 = vpop.f32.mrf.mxu0  ;;  %vm1054_vm10 = vweird.f32 %v1289_v21 }
 0x185   : > { %v808_v24 = vadd.f32 %v799_v16, %v769_v22 }
 0x186   : > { %v695_v25 = vpop.f32.mrf.mxu1 }
 0x187   : > { %v727_v26 = vpop.f32.mrf.mxu2  ;;  %v725_v47 = vadd.f32 %v724_v19, %v695_v25 }
 0x18a   : > { %v762_v27 = vpop.f32.mrf.mxu3 }
 0x18b   : > { %v770_v49 = vadd.f32 %v762_v27, %v725_v47 }
 0x18c   : > { %v804_v28 = vpop.f32.mrf.mxu0 }
 0x18d   : > { %v809_v53 = vadd.f32 %v801_v23, %v770_v49 }
 0x18e   : > { %v698_v29 = vpop.f32.mrf.mxu1 }
 0x18f   : > { %v729_v30 = vpop.f32.mrf.mxu2  ;;  %v728_v54 = vadd.f32 %v727_v26, %v698_v29  ;;  %v1050_v26 = vmul.f32 16.0, %v1289_v21 }
 0x192   : > { %v765_v31 = vpop.f32.mrf.mxu3 }
 0x193   : > { %v771_v57 = vadd.f32 %v765_v31, %v728_v54 }
 0x194   : > { %v806_v32 = vpop.f32.mrf.mxu0 }
 0x195   : > { %v810_v63 = vadd.f32 %v804_v28, %v771_v57 }
 0x196   : > { %v700_v33 = vpop.f32.mrf.mxu1 }
 0x197   : > { %v880_v34 = vpop.f32.mrf.mxu2 }
 0x19a   : > { %v767_v35 = vpop.f32.mrf.mxu3 }
 0x19c   : > { %v974_v36 = vpop.f32.mrf.mxu0 }
 0x19e   : > { %v842_v37 = vpop.f32.mrf.mxu1 }
 0x19f   : > { %v882_v38 = vpop.f32.mrf.mxu2  ;;  %v851_v52 = vadd.f32 %v842_v37, %v808_v24 }
 0x1a1   : > { %v889_v58 = vadd.f32 %v880_v34, %v851_v52 }
 0x1a2   : > { %v922_v39 = vpop.f32.mrf.mxu3 }
 0x1a3   : > { %v931_v62 = vadd.f32 %v922_v39, %v889_v58 }
 0x1a4   : > { %v976_v40 = vpop.f32.mrf.mxu0 }
 0x1a5   : > { %v983_v2 = vadd.f32 %v974_v36, %v931_v62 }
 0x1a6   : > { %v844_v41 = vpop.f32.mrf.mxu1 }
 0x1a7   : > { %v885_v42 = vpop.f32.mrf.mxu2  ;;  %v852_v55 = vadd.f32 %v844_v41, %v809_v53 }
 0x1a9   : > { %v890_v59 = vadd.f32 %v882_v38, %v852_v55 }
 0x1aa   : > { %v924_v43 = vpop.f32.mrf.mxu3 }
 0x1ab   : > { %v932_v0 = vadd.f32 %v924_v43, %v890_v59 }
 0x1ac   : > { %v979_v44 = vpop.f32.mrf.mxu0 }
 0x1ad   : > { %v984_v6 = vadd.f32 %v976_v40, %v932_v0 }
 0x1ae   : > { %v847_v45 = vpop.f32.mrf.mxu1 }
 0x1af   : > { %v887_v46 = vpop.f32.mrf.mxu2  ;;  %v853_v1 = vadd.f32 %v847_v45, %v810_v63 }
 0x1b1   : > { %v891_v3 = vadd.f32 %v885_v42, %v853_v1 }
 0x1b2   : > { %v927_v48 = vpop.f32.mrf.mxu3 }
 0x1b3   : > { %v933_v9 = vadd.f32 %v927_v48, %v891_v3 }
 0x1b4   : > { %v981_v50 = vpop.f32.mrf.mxu0 }
 0x1b5   : > { %v985_v16 = vadd.f32 %v979_v44, %v933_v9 }
 0x1b6   : > { %v849_v51 = vpop.f32.mrf.mxu1 }
 0x1ba   : > { %v929_v56 = vpop.f32.mrf.mxu3 }
 0x1be   : > { %v1013_v61 = vpop.f32.mrf.mxu1 }
 0x1bf   : > { %v1022_v4 = vadd.f32 %v1013_v61, %v983_v2 }
 0x1c1   : > { %v1029_v10 = vadd.f32 %v1287_v5, %v1022_v4 }
 0x1c3   : > { %v1032_v15 = vmax.f32 %v1029_v10, 0.0 }
 0x1c5   : > { %v1035_v22 = vmul.f32 %v1032_v15, %v1541_v60 }
 0x1c6   : > { %v1015_v7 = vpop.f32.mrf.mxu1 }
 0x1c7   : > { %v1023_v8 = vadd.f32 %v1015_v7, %v984_v6  ;;  %v1038_v27 = vsel %vm634_vm8, %v1035_v22, 0.0 }
 0x1c9   : > { %v1030_v11 = vadd.f32 %v1287_v5, %v1023_v8 }
 0x1cb   : > { %v1033_v14 = vmax.f32 %v1030_v11, 0.0 }
 0x1cd   : > { %v1036_v18 = vmul.f32 %v1033_v14, %v1548_v13  ;;  %v1051_v13 = vsub.f32 1.0, %v1050_v26 }
 0x1ce   : > { %v1018_v17 = vpop.f32.mrf.mxu1 }
 0x1cf   : > { %v1024_v19 = vadd.f32 %v1018_v17, %v985_v16  ;;  %v1039_v24 = vsel %vm634_vm8, %v1036_v18, 0.0  ;;  %v1052_v34 = vmul.f32 %v1289_v21, %v1051_v13 }
 0x1d0   : > { %v1040_v29 = vadd.f32 %v1039_v24, %v1038_v27 }
 0x1d1   : > { %v1031_v23 = vadd.f32 %v1287_v5, %v1024_v19  ;;  %v1053_v36 = vadd.f32 %v1289_v21, %v1052_v34 }
 0x1d3   : > { %v1034_v25 = vmax.f32 %v1031_v23, 0.0 }
 0x1d5   : > { %v1037_v28 = vmul.f32 %v1034_v25, %v1552_v20  ;;  %v1055_v20 = vsel %vm1054_vm10, %v1289_v21, %v1053_v36 }
 0x1d6   : > { %v1020_v30 = vpop.f32.mrf.mxu1 }
 0x1d7   : > { %v1041_v31 = vsel %vm634_vm8, %v1037_v28, 0.0 }
 0x1d8   : > { %v1042_v32 = vadd.f32 %v1041_v31, %v1040_v29 }
 0x1da   : > { %v1043_v33 = vrot.slane %v1042_v32, 4 }
 0x1dc   : > { %v1044_v35 = vadd.f32 %v1043_v33, %v1042_v32 }
 0x1de   : > { %v1045_v60 = vrot.slane %v1044_v35, 2 }
 0x1e0   : > { %v1046_v37 = vadd.f32 %v1045_v60, %v1044_v35 }
 0x1e2   : > { %v1047_v38 = vrot.slane %v1046_v37, 1 }
 0x1e4   : > { %v1048_v39 = vadd.f32 %v1047_v38, %v1046_v37 }
 0x1e6   : > { %v1056_v40 = vmul.f32 %v1055_v20, %v1048_v39 }
 0x1e8   : > { %1058 = vst.msk [vmem:[%s243_s19] sm:$0x1] %vm1057_vm11, %v1056_v40 }
 0x1e9   : > { %1317 = shalt.err (!%p1314_p3)
}
 0x1ea   : > { %1242 = dma.vmem_to_hbm [thread:$0]  (%p1430_p5), %s1071_s20, 16, %s1073_s26, %s1060_s28  }
 0x1eb PF: > { %p1248_p4 = scmp.ge.s32.totalorder %s1352_s24, 2  ;;  %s1084_s14 = sand.u32 1, %s1340_s21  }
 0x1ec   : > { %s1085_s15 = scalar_lea.sflag [#allocation4], %s1084_s14 }
 0x1ed   : > { %p1245_p7 = pnand %p1248_p4, %p1434_p6 }
 0x1ef   : > { %p1246_p8 = pneg %p1245_p7 }
 0x1f1   : > { %1335 = dma.done.wait (%p1246_p8), %s1085_s15, 16  }
 0x1f2   : > { %1337 = vsyncadd (%p1246_p8), %s1085_s15, 4294967280  ;;  %p16_p9 = scmp.ge.s32.totalorder %s1417_s27, 4   ;;  %s1643_s21 = smov %s1344_s22 }
 0x1f3   : > { %s1644_s22 = smov %s1348_s23  ;;  %s1645_s23 = smov %s1428_s30 }
 0x1f4   : > { %s1646_s24 = smov %s1417_s27  ;;  %18 = sbr.rel (!%p16_p9) target bundleno = 3 (0x3), region = 95 }
 0x1f9   :  { %1090 = vsyncpa [#allocation4], 1 }
 0x1fa   :  { %1092 = vsyncpa [#allocation4 + $0x1], 1 }

// kernel: _lambda_.3
= control target key start
LH: loop header
LB: loop body
LE: loop exit
PB: predicated region body
PF: predicated region fallthrough
CT: control target
= control target key end

     0   :  { %s5281_s21 = smov 0   ;;  %s9829_s0 = inlined_call_operand.vmem [shape: f32[2,326,1], index: 0, kind: input, shape index: {}]   ;;  %s9830_s1 = inlined_call_operand.vmem [shape: bf16[9,1,4], index: 1, kind: input, shape index: {}]   ;;  %s9831_s2 = inlined_call_operand.vmem [shape: f32[1,4], index: 2, kind: input, shape index: {}]   ;;  %s9832_s3 = inlined_call_operand.vmem [shape: bf16[9,4,4], index: 3, kind: input, shape index: {}]   ;;  %s9833_s4 = inlined_call_operand.vmem [shape: f32[1,4], index: 4, kind: input, shape index: {}]   ;;  %s9834_s5 = inlined_call_operand.vmem [shape: f32[288,1], index: 5, kind: input, shape index: {}]   ;;  %s9835_s6 = inlined_call_operand.vmem [shape: f32[2,288,4], index: 6, kind: output, shape index: {}]  }
   0x1 LB: > { %s5027_s22 = sadd.s32 4294967295, %s5242_s21   ;;  %p5031_p0 = scmp.ge.s32.totalorder %s5242_s21, 1  ;;  %s5242_s21 = sphi %s5281_s21, %s16_s21  }
   0x2   : > { %p212_p1 = scmp.lt.s32.totalorder %s5242_s21, 3 }
   0x4   : > { %p213_p2 = pnand %p5031_p0, %p212_p1 }
   0x6   : > { %216 = sbr.rel (%p213_p2) target bundleno = 1343 (0x53f), region = 44 }
   0xb   : > { %p242_p3 = scmp.lt.s32.totalorder %s5027_s22, 1  ;;  %v5244_v0 = vmov 0   ;;  %v272_v28 = vld [vmem:[%s9834_s5 + $0x98] sm:$0xff]  ;;  %v271_v29 = vld [vmem:[%s9834_s5 + $0x90] sm:$0xff]  ;;  %v270_v30 = vld [vmem:[%s9834_s5 + $0x88] sm:$0xff]  ;;  %vm892_vm0 = vcmask 1045504  }
   0xc   : > { %5231 = vset.pattern.permute.xlu2 %v5244_v0  ;;  %5230 = vset.pattern.permute.xlu1 %v5244_v0  ;;  %v274_v32 = vld [vmem:[%s9834_s5 + $0xa8] sm:$0xff]  ;;  %v273_v33 = vld [vmem:[%s9834_s5 + $0xa0] sm:$0xff]  ;;  %v260_v35 = vld [vmem:[%s9834_s5 + $0x38] sm:$0xff]  ;;  %vm1349_vm1 = vcmask 1044480   ;;  %vm1573_vm2 = vcmask 1043456   ;;  %vm2030_vm3 = vcmask 1042432  }
   0xd   : > { %5229 = vset.pattern.permute.xlu0 %v5244_v0  ;;  %s11268_s22 = smov (!%p242_p3, %s5027_s22), 1  ;;  %v261_v34 = vld [vmem:[%s9834_s5 + $0x40] sm:$0xff]  ;;  %v264_v38 = vld [vmem:[%s9834_s5 + $0x58] sm:$0xff]  ;;  %v263_v39 = vld [vmem:[%s9834_s5 + $0x50] sm:$0xff]  ;;  %vm2254_vm4 = vcmask 1041408   ;;  %vm668_vm5 = vcmask 1046528  }
   0xe   : > { %s5217_s23 = smul.u32 328, %s11268_s22  ;;  %v262_v40 = vld [vmem:[%s9834_s5 + $0x48] sm:$0xff]  ;;  %v5036_v41 = vld [vmem:[%s9830_s1 + $0x3] sm:$0x1]  ;;  %v5037_v43 = vld [vmem:[%s9830_s1 + $0x4] sm:$0x1] }
   0xf   : > { %v5038_v44 = vld [vmem:[%s9830_s1 + $0x5] sm:$0x1]  ;;  %v5034_v45 = vld [vmem:[%s9830_s1 + $0x1] sm:$0x1]  ;;  %v330_v46 = vld [vmem:[%s9830_s1] sm:$0x1]  ;;  %v1040_v47 = vunpack.c.l.bf16 %v5036_v41  ;;  %v1273_v52 = vunpack.c.l.bf16 %v5037_v43 }
  0x10   : > { %s5295_s26 = scalar_lea.vmem %s9829_s0, %s5217_s23  ;;  %v5035_v49 = vld [vmem:[%s9830_s1 + $0x2] sm:$0x1]  ;;  %v5039_v50 = vld [vmem:[%s9830_s1 + $0x6] sm:$0x1]  ;;  %v1497_v53 = vunpack.c.l.bf16 %v5038_v44  ;;  %v5040_v54 = vld [vmem:[%s9830_s1 + $0x7] sm:$0x1]  ;;  %v587_v56 = vunpack.c.l.bf16 %v5034_v45  ;;  %v331_v58 = vunpack.c.l.bf16 %v330_v46 }
  0x11   : > { %v310_v1 = vld [vmem:[%s5295_s26 + $0xa8] sm:$0xff]  ;;  %v308_v2 = vld [vmem:[%s5295_s26 + $0x98] sm:$0xff]  ;;  %v311_v4 = vld [vmem:[%s5295_s26 + $0xb0] sm:$0xff]  ;;  %v816_v59 = vunpack.c.l.bf16 %v5035_v49  ;;  %v5390_v60 = vperm.slane %v1040_v47, 0  ;;  %v1721_v61 = vunpack.c.l.bf16 %v5039_v50  ;;  %v1954_v62 = vunpack.c.l.bf16 %v5040_v54  ;;  %s5218_s12 = smul.u32 288, %s11268_s22 }
  0x12   : > { %v306_v3 = vld [vmem:[%s5295_s26 + $0x88] sm:$0xff]  ;;  %439 = vperm.xlu2 %5231, %v310_v1   ;;  %429 = vperm.xlu1 %5230, %v308_v2   ;;  %v309_v5 = vld [vmem:[%s5295_s26 + $0xa0] sm:$0xff]  ;;  %v307_v6 = vld [vmem:[%s5295_s26 + $0x90] sm:$0xff]  ;;  %v5392_v0 = vperm.slane %v1273_v52, 0  ;;  %v5394_v1 = vperm.slane %v1497_v53, 0  ;;  %vm2692_vm6 = vcmask 31744  }
  0x13   : > { %419 = vperm.xlu0 %5229, %v306_v3   ;;  %v298_v7 = vld [vmem:[%s5295_s26 + $0x48] sm:$0xff]  ;;  %v297_v8 = vld [vmem:[%s5295_s26 + $0x40] sm:$0xff]  ;;  %v296_v9 = vld [vmem:[%s5295_s26 + $0x38] sm:$0xff]  ;;  %v5400_v3 = vperm.slane %v587_v56, 0  ;;  %vm2834_vm7 = vsmask.f32 7424  ;;  %s9525_s22 = scalar_lea.vmem %s9835_s6, %s5218_s12 }
  0x14   : > { %v301_v10 = vld [vmem:[%s5295_s26 + $0x60] sm:$0xff]  ;;  %v300_v11 = vld [vmem:[%s5295_s26 + $0x58] sm:$0xff]  ;;  %v299_v12 = vld [vmem:[%s5295_s26 + $0x50] sm:$0xff]  ;;  %vm3684_vm8 = vsmask.f32 6400  ;;  %vm2733_vm9 = vcmask 29696  }
  0x15   : > { %v302_v13 = vld [vmem:[%s5295_s26 + $0x68] sm:$0xff]  ;;  %v313_v14 = vld [vmem:[%s5295_s26 + $0xc0] sm:$0xff]  ;;  %v312_v15 = vld [vmem:[%s5295_s26 + $0xb8] sm:$0xff]  ;;  %vm4350_vm10 = vsmask.f32 5376 }
  0x16   : > { %v290_v16 = vld [vmem:[%s5295_s26 + $0x8] sm:$0xff]  ;;  %v289_v17 = vld [vmem:[%s5295_s26] sm:$0xff]  ;;  %v303_v18 = vld [vmem:[%s5295_s26 + $0x70] sm:$0xff] }
  0x17   : > { %v315_v19 = vld [vmem:[%s5295_s26 + $0xd0] sm:$0xff]  ;;  %v314_v20 = vld [vmem:[%s5295_s26 + $0xc8] sm:$0xff]  ;;  %v304_v22 = vld [vmem:[%s5295_s26 + $0x78] sm:$0xff] }
  0x18   : > { %v291_v21 = vld [vmem:[%s5295_s26 + $0x10] sm:$0xff]  ;;  %v293_v23 = vld [vmem:[%s5295_s26 + $0x20] sm:$0xff]  ;;  %v292_v24 = vld [vmem:[%s5295_s26 + $0x18] sm:$0xff] }
  0x19   : > { %v295_v25 = vld [vmem:[%s5295_s26 + $0x30] sm:$0xff]  ;;  %v294_v26 = vld [vmem:[%s5295_s26 + $0x28] sm:$0xff]  ;;  %v305_v27 = vld [vmem:[%s5295_s26 + $0x80] sm:$0xff] }
  0x1a   : > { %444 = vperm.xlu2 %5231, %v311_v4   ;;  %434 = vperm.xlu1 %5230, %v309_v5   ;;  %v316_v31 = vld [vmem:[%s5295_s26 + $0xd8] sm:$0xff]  ;;  %v317_v36 = vld [vmem:[%s5295_s26 + $0xe0] sm:$0xff]  ;;  %v319_v51 = vld [vmem:[%s5295_s26 + $0xf0] sm:$0xff]  ;;  %v5404_v5 = vperm.slane %v331_v58, 0 }
  0x1b   : > { %424 = vperm.xlu0 %5229, %v307_v6   ;;  %v320_v48 = vld [vmem:[%s5295_s26 + $0xf8] sm:$0xff]  ;;  %v5041_v55 = vld [vmem:[%s9830_s1 + $0x8] sm:$0x1]  ;;  %v5406_v6 = vperm.slane %v816_v59, 0  ;;  %v275_v50 = vld [vmem:[%s9834_s5 + $0xb0] sm:$0xff] }
  0x1c   : > { %v318_v57 = vld [vmem:[%s5295_s26 + $0xe8] sm:$0xff]  ;;  %v2178_v63 = vunpack.c.l.bf16 %v5041_v55 }
  0x1d   : > { %v322_v55 = vld [vmem:[%s5295_s26 + $0x108] sm:$0xff] }
  0x22   : > { %379 = vperm.xlu2 %5231, %v298_v7   ;;  %374 = vperm.xlu1 %5230, %v297_v8  }
  0x23   : > { %369 = vperm.xlu0 %5229, %v296_v9   ;;  %v5416_v9 = vperm.slane %v1721_v61, 0 }
  0x25   : > { %10268 = vst [vmem:[#allocation6_spill] sm:$0xff] %v5416_v9 }
  0x2a   : > { %394 = vperm.xlu2 %5231, %v301_v10   ;;  %389 = vperm.xlu1 %5230, %v300_v11  }
  0x2b   : > { %384 = vperm.xlu0 %5229, %v299_v12   ;;  %v5426_v12 = vperm.slane %v1954_v62, 0 }
  0x32   : > { %399 = vperm.xlu2 %5231, %v302_v13   ;;  %454 = vperm.xlu1 %5230, %v313_v14   ;;  %v5428_v13 = vperm.slane %v2178_v63, 0 }
  0x33   : > { %449 = vperm.xlu0 %5229, %v312_v15   ;;  %v254_v15 = vld [vmem:[%s9834_s5 + $0x8] sm:$0xff] }
  0x3a   : > { %339 = vperm.xlu2 %5231, %v290_v16   ;;  %334 = vperm.xlu1 %5230, %v289_v17   ;;  %v253_v16 = vld [vmem:[%s9834_s5] sm:$0xff] }
  0x3b   : > { %404 = vperm.xlu0 %5229, %v303_v18  }
  0x42   : > { %464 = vperm.xlu2 %5231, %v315_v19   ;;  %459 = vperm.xlu1 %5230, %v314_v20   ;;  %v321_v19 = vld [vmem:[%s5295_s26 + $0x100] sm:$0xff] }
  0x43   : > { %344 = vperm.xlu0 %5229, %v291_v21  }
  0x4a   : > { %409 = vperm.xlu2 %5231, %v304_v22   ;;  %354 = vperm.xlu1 %5230, %v293_v23  }
  0x4b   : > { %349 = vperm.xlu0 %5229, %v292_v24  }
  0x52   : > { %364 = vperm.xlu2 %5231, %v295_v25   ;;  %359 = vperm.xlu1 %5230, %v294_v26  }
  0x53   : > { %414 = vperm.xlu0 %5229, %v305_v27  }
  0x5a   : > { %2573 = vperm.xlu2 %5231, %v272_v28   ;;  %2568 = vperm.xlu1 %5230, %v271_v29  }
  0x5b   : > { %2563 = vperm.xlu0 %5229, %v270_v30  }
  0x62   : > { %469 = vperm.xlu2 %5231, %v316_v31   ;;  %2583 = vperm.xlu1 %5230, %v274_v32  }
  0x63   : > { %2578 = vperm.xlu0 %5229, %v273_v33  }
  0x6a   : > { %2518 = vperm.xlu2 %5231, %v261_v34   ;;  %2513 = vperm.xlu1 %5230, %v260_v35  }
  0x6b   : > { %474 = vperm.xlu0 %5229, %v317_v36  }
  0x6c   : > { %v5347_v37 = vpop.permute.xlu2 %439 }
  0x6d   : > { %10265 = vst [vmem:[#allocation3_spill] sm:$0xff] %v5347_v37  ;;  %v5398_v2 = vmul.f32 %v5390_v60, %v5347_v37  ;;  %v5410_v7 = vmul.f32 %v5392_v0, %v5347_v37  ;;  %v5414_v8 = vmul.f32 %v5394_v1, %v5347_v37  ;;  %v5432_v14 = vmul.f32 %v5400_v3, %v5347_v37 }
  0x6e   : > { %v5448_v20 = vmul.f32 %v5416_v9, %v5347_v37  ;;  %v5456_v22 = vmul.f32 %v5426_v12, %v5347_v37  ;;  %v5466_v26 = vmul.f32 %v5428_v13, %v5347_v37 }
  0x6f   : > { %v9847_v17 = vrot.slane %v5398_v2, 2  ;;  %v9846_v24 = vrot.slane %v5410_v7, 3  ;;  %v9845_v25 = vrot.slane %v5414_v8, 4 }
  0x70   : > { %10272 = vst [vmem:[#allocation10_spill] sm:$0xff] %v5448_v20  ;;  %v9837_v34 = vrot.slane %v5448_v20, 4  ;;  %v9836_v36 = vrot.slane %v5456_v22, 5  ;;  %v9840_v43 = vrot.slane %v5466_v26, 6 }
  0x71   : > { %10273 = vst [vmem:[#allocation11_spill] sm:$0xff] %v5456_v22 }
  0x72   : > { %2533 = vperm.xlu2 %5231, %v264_v38   ;;  %2528 = vperm.xlu1 %5230, %v263_v39   ;;  %10275 = vst [vmem:[#allocation13_spill] sm:$0xff] %v5466_v26 }
  0x73   : > { %2523 = vperm.xlu0 %5229, %v262_v40  }
  0x74   : > { %v5361_v42 = vpop.permute.xlu2 %444 }
  0x75   : > { %10266 = vst [vmem:[#allocation4_spill] sm:$0xff] %v5361_v42  ;;  %v5420_v10 = vmul.f32 %v5390_v60, %v5361_v42  ;;  %v5424_v11 = vmul.f32 %v5392_v0, %v5361_v42  ;;  %v5443_v18 = vmul.f32 %v5394_v1, %v5361_v42  ;;  %v5452_v21 = vmul.f32 %v5416_v9, %v5361_v42 }
  0x76   : > { %v5460_v23 = vmul.f32 %v5426_v12, %v5361_v42  ;;  %v5470_v27 = vmul.f32 %v5428_v13, %v5361_v42  ;;  %v5476_v30 = vmul.f32 %v5400_v3, %v5361_v42 }
  0x77   : > { %10269 = vst [vmem:[#allocation7_spill] sm:$0xff] %v5420_v10  ;;  %v9841_v28 = vrot.slane %v5420_v10, 2  ;;  %v9839_v29 = vrot.slane %v5424_v11, 3  ;;  %v9838_v31 = vrot.slane %v5443_v18, 4  ;;  %v9844_v35 = vrot.slane %v5452_v21, 4 }
  0x78   : > { %10270 = vst [vmem:[#allocation8_spill] sm:$0xff] %v5424_v11  ;;  %v9843_v38 = vrot.slane %v5460_v23, 5  ;;  %v9842_v44 = vrot.slane %v5470_v27, 6 }
  0x79   : > { %10271 = vst [vmem:[#allocation9_spill] sm:$0xff] %v5443_v18  ;;  %v5512_v47 = vsel %vm892_vm0, %v9847_v17, %v9841_v28  ;;  %v5547_v56 = vsel %vm1573_vm2, %v9845_v25, %v9838_v31  ;;  %v5558_v58 = vsel %vm1573_vm2, %v9837_v34, %v9844_v35  ;;  %v325_v31 = vld [vmem:[%s5295_s26 + $0x120] sm:$0xff] }
  0x7a   : > { %489 = vperm.xlu2 %5231, %v320_v48   ;;  %484 = vperm.xlu1 %5230, %v319_v51   ;;  %10274 = vst [vmem:[#allocation12_spill] sm:$0xff] %v5460_v23  ;;  %v5519_v48 = vsel %vm1349_vm1, %v9846_v24, %v9839_v29  ;;  %v323_v51 = vld [vmem:[%s5295_s26 + $0x110] sm:$0xff]  ;;  %v5565_v59 = vsel %vm2030_vm3, %v9836_v36, %v9843_v38  ;;  %v324_v36 = vld [vmem:[%s5295_s26 + $0x118] sm:$0xff] }
  0x7b   : > { %479 = vperm.xlu0 %5229, %v318_v57   ;;  %10276 = vst [vmem:[#allocation14_spill] sm:$0xff] %v5470_v27 }
  0x7c   : > { %v5402_v4 = vpop.permute.xlu2 %379 }
  0x7d   : > { %10267 = vst [vmem:[#allocation5_spill] sm:$0xff] %v5402_v4  ;;  %v5489_v39 = vmul.f32 %v5400_v3, %v5402_v4  ;;  %v5495_v41 = vmul.f32 %v5406_v6, %v5402_v4 }
  0x7f   : > { %10279 = vst [vmem:[#allocation17_spill] sm:$0xff] %v5489_v39 }
  0x80   : > { %10281 = vst [vmem:[#allocation19_spill] sm:$0xff] %v5495_v41 }
  0x82   : > { %2483 = vperm.xlu2 %5231, %v254_v15   ;;  %2478 = vperm.xlu1 %5230, %v253_v16   ;;  %v5578_v15 = vsel %vm2254_vm4, %v9840_v43, %v9842_v44 }
  0x83   : > { %494 = vperm.xlu0 %5229, %v321_v19  }
  0x84   : > { %v5479_v32 = vpop.permute.xlu1 %429  ;;  %v5481_v33 = vpop.permute.xlu2 %394 }
  0x85   : > { %10277 = vst [vmem:[#allocation15_spill] sm:$0xff] %v5479_v32  ;;  %v5491_v40 = vpop.permute.xlu0 %419  ;;  %v5501_v45 = vmul.f32 %v5400_v3, %v5479_v32  ;;  %v5505_v46 = vmul.f32 %v5406_v6, %v5479_v32  ;;  %v5531_v52 = vmul.f32 %v5416_v9, %v5481_v33  ;;  %v5535_v53 = vmul.f32 %v5426_v12, %v5481_v33 }
  0x86   : > { %10278 = vst [vmem:[#allocation16_spill] sm:$0xff] %v5481_v33  ;;  %v5523_v49 = vmul.f32 %v5400_v3, %v5491_v40  ;;  %v5539_v54 = vmul.f32 %v5428_v13, %v5481_v33  ;;  %v5551_v57 = vmul.f32 %v5406_v6, %v5491_v40  ;;  %v5569_v61 = vmul.f32 %v5400_v3, %v5481_v33 }
  0x87   : > { %10280 = vst [vmem:[#allocation18_spill] sm:$0xff] %v5491_v40  ;;  %v532_v16 = vmul.f32 %v5404_v5, %v5479_v32  ;;  %v530_v34 = vmul.f32 %v5404_v5, %v5491_v40  ;;  %v5597_v38 = vmul.f32 %v5390_v60, %v5479_v32  ;;  %v5605_v35 = vmul.f32 %v5394_v1, %v5479_v32 }
  0x88   : > { %10282 = vst [vmem:[#allocation20_spill] sm:$0xff] %v5523_v49  ;;  %v5623_v62 = vmul.f32 %v5406_v6, %v5481_v33  ;;  %v10301_v22 = vrot.slane %v5501_v45, 1  ;;  %v10306_v18 = vrot.slane %v5531_v52, 4  ;;  %v10351_v27 = vrot.slane %v5569_v61, 1 }
  0x89   : > { %10283 = vst [vmem:[#allocation21_spill] sm:$0xff] %v5531_v52  ;;  %v9885_v52 = vmov 0.0  }
  0x8a   : > { %10284 = vst [vmem:[#allocation22_spill] sm:$0xff] %v5535_v53  ;;  %2588 = vperm.xlu2 %5231, %v275_v50   ;;  %504 = vperm.xlu1 %5230, %v323_v51  }
  0x8b   : > { %10285 = vst [vmem:[#allocation23_spill] sm:$0xff] %v5539_v54  ;;  %499 = vperm.xlu0 %5229, %v322_v55   ;;  %v5601_v55 = vmul.f32 %v5392_v0, %v5479_v32  ;;  %v276_v32 = vld [vmem:[%s9834_s5 + $0xb8] sm:$0xff] }
  0x8c   : > { %10286 = vst [vmem:[#allocation24_spill] sm:$0xff] %v5551_v57  ;;  %v5590_v51 = vpop.permute.xlu1 %434  ;;  %v5592_v28 = vpop.permute.xlu2 %399 }
  0x8d   : > { %10287 = vst [vmem:[#allocation25_spill] sm:$0xff] %v5569_v61  ;;  %v5609_v25 = vmul.f32 %v5400_v3, %v5590_v51  ;;  %v5611_v24 = vpop.permute.xlu0 %424  ;;  %v5615_v17 = vmul.f32 %v5406_v6, %v5590_v51  ;;  %v5619_v63 = vmul.f32 %v5416_v9, %v5592_v28  ;;  %v5631_v43 = vmul.f32 %v5426_v12, %v5592_v28 }
  0x8e   : > { %10288 = vst [vmem:[#allocation26_spill] sm:$0xff] %v5590_v51  ;;  %v5627_v44 = vmul.f32 %v5400_v3, %v5611_v24  ;;  %v5635_v29 = vmul.f32 %v5428_v13, %v5592_v28  ;;  %v5639_v50 = vmul.f32 %v5406_v6, %v5611_v24  ;;  %v5648_v20 = vmul.f32 %v5390_v60, %v5590_v51 }
  0x8f   : > { %10289 = vst [vmem:[#allocation27_spill] sm:$0xff] %v5592_v28  ;;  %v10300_v26 = vrot.slane %v5609_v25, 1  ;;  %v5667_v40 = vmul.f32 %v5400_v3, %v5592_v28  ;;  %v10305_v10 = vrot.slane %v5619_v63, 4 }
  0x90   : > { %10290 = vst [vmem:[#allocation28_spill] sm:$0xff] %v5597_v38 }
  0x91   : > { %10291 = vst [vmem:[#allocation29_spill] sm:$0xff] %v5601_v55  ;;  %v709_v42 = vsel %vm668_vm5, %v10301_v22, %v10300_v26  ;;  %v10303_v22 = vrot.slane %v5615_v17, 2  ;;  %v10304_v26 = vrot.slane %v5505_v46, 2 }
  0x92   : > { %10292 = vst [vmem:[#allocation30_spill] sm:$0xff] %v5605_v35  ;;  %590 = vperm.xlu2 %5231, %v325_v31   ;;  %509 = vperm.xlu1 %5230, %v324_v36   ;;  %v797_v33 = vadd.f32 %v709_v42, %v532_v16  ;;  %v10307_v42 = vrot.slane %v5627_v44, 1  ;;  %v10308_v31 = vrot.slane %v5523_v49, 1 }
  0x93   : > { %10293 = vst [vmem:[#allocation31_spill] sm:$0xff] %v5609_v25  ;;  %2593 = vperm.xlu0 %5229, %v276_v32   ;;  %v933_v11 = vsel %vm892_vm0, %v10304_v26, %v10303_v22  ;;  %v10310_v22 = vrot.slane %v5631_v43, 5  ;;  %v10311_v26 = vrot.slane %v5535_v53, 5  ;;  %v10317_v32 = vrot.slane %v5551_v57, 2 }
  0x94   : > { %10294 = vst [vmem:[#allocation32_spill] sm:$0xff] %v5611_v24  ;;  %v705_v36 = vsel %vm668_vm5, %v10308_v31, %v10307_v42  ;;  %v5689_v16 = vpop.permute.xlu1 %374  ;;  %v340_v4 = vpop.permute.xlu2 %339  ;;  %v1021_v19 = vadd.f32 %v933_v11, %v797_v33  ;;  %v10316_v33 = vrot.slane %v5639_v50, 2 }
  0x95   : > { %10295 = vst [vmem:[#allocation33_spill] sm:$0xff] %v5615_v17  ;;  %v795_v42 = vadd.f32 %v705_v36, %v530_v34  ;;  %v5707_v31 = vmul.f32 %v5400_v3, %v5689_v16  ;;  %v5709_v11 = vpop.permute.xlu0 %369  ;;  %v5725_v34 = vmul.f32 %v5400_v3, %v340_v4  ;;  %v5728_v36 = vmul.f32 %v5406_v6, %v340_v4 }
  0x96   : > { %10296 = vst [vmem:[#allocation34_spill] sm:$0xff] %v5619_v63  ;;  %v5696_v63 = vsel %vm2030_vm3, %v10311_v26, %v10310_v22  ;;  %v929_v22 = vsel %vm892_vm0, %v10317_v32, %v10316_v33  ;;  %v5718_v26 = vmul.f32 %v5392_v0, %v5590_v51  ;;  %v5733_v57 = vmul.f32 %v5406_v6, %v5689_v16  ;;  %v255_v32 = vld [vmem:[%s9834_s5 + $0x10] sm:$0xff]  ;;  %v266_v33 = vld [vmem:[%s9834_s5 + $0x68] sm:$0xff] }
  0x97   : > { %10297 = vst [vmem:[#allocation35_spill] sm:$0xff] %v5623_v62  ;;  %v1019_v37 = vadd.f32 %v929_v22, %v795_v42  ;;  %v10323_v42 = vrot.slane %v5489_v39, 1  ;;  %v10324_v22 = vrot.slane %v5707_v31, 1  ;;  %v5788_v17 = vmul.f32 %v5392_v0, %v5592_v28 }
  0x98   : > { %10298 = vst [vmem:[#allocation36_spill] sm:$0xff] %v5631_v43  ;;  %v10320_v43 = vrot.slane %v5597_v38, 2 }
  0x99   : > { %10299 = vst [vmem:[#allocation37_spill] sm:$0xff] %v5635_v29 }
  0x9a   : > { %10302 = vst [vmem:[#allocation38_spill] sm:$0xff] %v5667_v40  ;;  %v5681_v40 = vsel %vm1573_vm2, %v10306_v18, %v10305_v10  ;;  %v10312_v10 = vrot.slane %v5635_v29, 6  ;;  %v10313_v18 = vrot.slane %v5539_v54, 6  ;;  %v10319_v29 = vrot.slane %v5648_v20, 2  ;;  %2488 = vperm.xlu2 %5231, %v255_v32   ;;  %2543 = vperm.xlu1 %5230, %v266_v33  }
  0x9b   : > { %10309 = vst [vmem:[#allocation39_spill] sm:$0xff] %v5689_v16 }
  0x9c   : > { %v5703_v49 = vsel %vm2254_vm4, %v10313_v18, %v10312_v10  ;;  %10314 = vst [vmem:[#allocation40_spill] sm:$0xff] %v5707_v31  ;;  %v5722_v10 = vmul.f32 %v5394_v1, %v5590_v51  ;;  %v1254_v18 = vadd.f32 %v5512_v47, %v1021_v19  ;;  %v1162_v54 = vsel %vm892_vm0, %v10320_v43, %v10319_v29  ;;  %v265_v19 = vld [vmem:[%s9834_s5 + $0x60] sm:$0xff]  ;;  %v5790_v51 = vpop.permute.xlu1 %389  ;;  %v5792_v38 = vpop.permute.xlu2 %464 }
  0x9d   : > { %10315 = vst [vmem:[#allocation41_spill] sm:$0xff] %v5709_v11  ;;  %v5748_v47 = vmul.f32 %v5390_v60, %v5592_v28  ;;  %v5760_v29 = vmul.f32 %v5400_v3, %v5709_v11  ;;  %v5763_v43 = vmul.f32 %v5404_v5, %v340_v4  ;;  %v521_v4 = vmul.f32 %v5404_v5, %v5689_v16 }
  0x9e   : > { %10318 = vst [vmem:[#allocation42_spill] sm:$0xff] %v5733_v57  ;;  %v1478_v53 = vadd.f32 %v5519_v48, %v1254_v18  ;;  %v687_v48 = vsel %vm668_vm5, %v10324_v22, %v10323_v42  ;;  %2538 = vperm.xlu0 %5229, %v265_v19   ;;  %v1252_v32 = vadd.f32 %v1162_v54, %v1019_v37  ;;  %v10329_v54 = vrot.slane %v5718_v26, 3 }
  0x9f   : > { %10321 = vst [vmem:[#allocation43_spill] sm:$0xff] %v5748_v47  ;;  %v786_v19 = vadd.f32 %v687_v48, %v521_v4  ;;  %v10330_v42 = vrot.slane %v5601_v55, 3  ;;  %v10331_v33 = vrot.slane %v5722_v10, 4  ;;  %v10332_v16 = vrot.slane %v5605_v35, 4  ;;  %v5815_v4 = vpop.permute.xlu0 %384 }
  0xa0   : > { %2714 = vst.msk [vmem:[#allocation2 + $0xa8] sm:$0xff] %vm2692_vm6, %v9885_v52  ;;  %v5781_v18 = vadd.f32 %v5547_v56, %v1478_v53  ;;  %v10327_v53 = vrot.slane %v5495_v41, 2  ;;  %v10328_v56 = vrot.slane %v5733_v57, 2  ;;  %v5813_v48 = vmul.f32 %v5400_v3, %v5790_v51 }
  0xa1   : > { %10322 = vst [vmem:[#allocation44_spill] sm:$0xff] %v5760_v29  ;;  %v1386_v22 = vsel %vm1349_vm1, %v10330_v42, %v10329_v54  ;;  %v1610_v39 = vsel %vm1573_vm2, %v10332_v16, %v10331_v33  ;;  %v531_v16 = vmul.f32 %v5404_v5, %v5611_v24  ;;  %v5833_v33 = vmul.f32 %v5390_v60, %v5815_v4 }
  0xa2   : > { %2715 = vst.msk [vmem:[#allocation2 + $0xb0] sm:$0xff] %vm2692_vm6, %v9885_v52  ;;  %v911_v37 = vsel %vm892_vm0, %v10328_v56, %v10327_v53  ;;  %v5821_v53 = vmul.f32 %v5390_v60, %v5790_v51  ;;  %v5825_v56 = vmul.f32 %v5394_v1, %v5592_v28  ;;  %v5837_v54 = vmul.f32 %v5392_v0, %v5815_v4  ;;  %v277_v28 = vld [vmem:[%s9834_s5 + $0xc0] sm:$0xff] }
  0xa3   : > { %2693 = vst.msk [vmem:[#allocation2] sm:$0xff] %vm2692_vm6, %v9885_v52  ;;  %v5841_v42 = vmul.f32 %v5392_v0, %v5790_v51  ;;  %v10339_v35 = vrot.slane %v5501_v45, 1  ;;  %v10340_v55 = vrot.slane %v5627_v44, 1  ;;  %v10341_v41 = vmov 0.0   ;;  %2598 = vperm.xlu1 %5230, %v277_v28  }
  0xa4   : > { %2694 = vst.msk [vmem:[#allocation2 + $0x8] sm:$0xff] %vm2692_vm6, %v9885_v52  ;;  %v5859_v45 = vmul.f32 %v5394_v1, %v5815_v4  ;;  %v1476_v44 = vadd.f32 %v1386_v22, %v1252_v32  ;;  %v1010_v31 = vadd.f32 %v911_v37, %v786_v19  ;;  %v9898_v11 = vrot.slane %v5833_v33, 2  ;;  %v5902_v25 = vpop.permute.xlu1 %454 }
  0xa5   : > { %10325 = vst [vmem:[#allocation45_spill] sm:$0xff] %v5788_v17  ;;  %v707_v24 = vsel %vm668_vm5, %v10340_v55, %v10339_v35  ;;  %v5863_v35 = vmul.f32 %v5394_v1, %v5790_v51  ;;  %v256_v55 = vld [vmem:[%s9834_s5 + $0x18] sm:$0xff]  ;;  %v9906_v57 = vrot.slane %v5837_v54, 3  ;;  %v9904_v29 = vrot.slane %v5841_v42, 3 }
  0xa6   : > { %10326 = vst [vmem:[#allocation46_spill] sm:$0xff] %v5792_v38  ;;  %v1700_v22 = vadd.f32 %v1610_v39, %v1476_v44  ;;  %v5880_v23 = vmul.f32 %v5400_v3, %v5792_v38  ;;  %v10345_v19 = vrot.slane %v5821_v53, 2  ;;  %v5891_v39 = vmul.f32 %v5406_v6, %v5790_v51  ;;  %2493 = vperm.xlu0 %5229, %v256_v55  }
  0xa7   : > { %2695 = vst.msk [vmem:[#allocation2 + $0x10] sm:$0xff] %vm2692_vm6, %v9885_v52  ;;  %v9905_v32 = vrot.slane %v5863_v35, 4  ;;  %v5895_v44 = vmul.f32 %v5400_v3, %v5815_v4  ;;  %v1368_v55 = vsel %vm1349_vm1, %v9906_v57, %v9904_v29  ;;  %v5932_v29 = vmul.f32 %v5426_v12, %v5902_v25  ;;  %v282_v57 = vld [vmem:[%s9834_s5 + $0xe8] sm:$0xff] }
  0xa8   : > { %10333 = vst [vmem:[#allocation47_spill] sm:$0xff] %v5813_v48  ;;  %v1144_v37 = vsel %vm892_vm0, %v9898_v11, %v10345_v19  ;;  %v5904_v19 = vpop.permute.xlu2 %409  ;;  %v1933_v11 = vadd.f32 %v5558_v58, %v1700_v22  ;;  %v5937_v22 = vadd.f32 %v707_v24, %v531_v16  ;;  %v10355_v24 = vrot.slane %v5639_v50, 2  ;;  %v281_v58 = vld [vmem:[%s9834_s5 + $0xe0] sm:$0xff] }
  0xa9   : > { %10334 = vst [vmem:[#allocation48_spill] sm:$0xff] %v5815_v4  ;;  %v1243_v28 = vadd.f32 %v1144_v37, %v1010_v31  ;;  %v10350_v31 = vrot.slane %v5859_v45, 4  ;;  %v5924_v4 = vpop.permute.xlu0 %449 }
  0xaa   : > { %2696 = vst.msk [vmem:[#allocation2 + $0x18] sm:$0xff] %vm2692_vm6, %v9885_v52 }
  0xab   : > { %10335 = vst [vmem:[#allocation49_spill] sm:$0xff] %v5821_v53  ;;  %v1592_v37 = vsel %vm1573_vm2, %v10350_v31, %v9905_v32  ;;  %v5949_v31 = vmul.f32 %v5428_v13, %v5924_v4  ;;  %v10354_v32 = vrot.slane %v5505_v46, 2  ;;  %v5970_v46 = vmul.f32 %v5428_v13, %v5902_v25  ;;  %2618 = vperm.xlu1 %5230, %v281_v58  }
  0xac   : > { %2697 = vst.msk [vmem:[#allocation2 + $0x20] sm:$0xff] %vm2692_vm6, %v9885_v52  ;;  %v278_v52 = vld [vmem:[%s9834_s5 + $0xc8] sm:$0xff]  ;;  %v1467_v50 = vadd.f32 %v1368_v55, %v1243_v28  ;;  %v5991_v55 = vld [vmem:[%s9831_s2] ss:$0 sm:$0xff] }
  0xad   : > { %10336 = vst [vmem:[#allocation50_spill] sm:$0xff] %v5833_v33  ;;  %2603 = vperm.xlu2 %5231, %v278_v52   ;;  %v524_v52 = vmul.f32 %v5404_v5, %v5790_v51  ;;  %v5958_v16 = vsel %vm892_vm0, %v10355_v24, %v10354_v32  ;;  %v280_v32 = vld [vmem:[%s9834_s5 + $0xd8] sm:$0xff]  ;;  %v5997_v24 = vmul.f32 %v5400_v3, %v5904_v19 }
  0xae   : > { %10337 = vst [vmem:[#allocation51_spill] sm:$0xff] %v5837_v54  ;;  %v1691_v61 = vadd.f32 %v1592_v37, %v1467_v50  ;;  %2613 = vperm.xlu0 %5229, %v280_v32   ;;  %v335_v50 = vpop.permute.xlu1 %334  ;;  %v10364_v32 = vrot.slane %v5970_v46, 6  ;;  %v6054_v37 = vmul.f32 %v5426_v12, %v5904_v19 }
  0xaf   : > { %10338 = vst [vmem:[#allocation52_spill] sm:$0xff] %v5841_v42  ;;  %v5928_v42 = vmul.f32 %v5416_v9, %v5902_v25 }
  0xb0   : > { %2698 = vst.msk [vmem:[#allocation2 + $0x28] sm:$0xff] %vm2692_vm6, %v10341_v41  ;;  %v6016_v58 = vpop.permute.xlu2 %364 }
  0xb1   : > { %10342 = vst [vmem:[#allocation53_spill] sm:$0xff] %v5859_v45  ;;  %v326_v45 = vld [vmem:[%s5295_s26 + $0x128] sm:$0xff] }
  0xb2   : > { %10343 = vst [vmem:[#allocation54_spill] sm:$0xff] %v5863_v35 }
  0xb3   : > { %2699 = vst.msk [vmem:[#allocation2 + $0x30] sm:$0xff] %vm2692_vm6, %v10341_v41 }
  0xb4   : > { %2700 = vst.msk [vmem:[#allocation2 + $0x38] sm:$0xff] %vm2692_vm6, %v10341_v41 }
  0xb5   : > { %10344 = vst [vmem:[#allocation55_spill] sm:$0xff] %v5880_v23  ;;  %v10352_v23 = vrot.slane %v5813_v48, 1  ;;  %v2157_v48 = vadd.f32 %v5565_v59, %v1933_v11  ;;  %2623 = vperm.xlu2 %5231, %v282_v57   ;;  %v10358_v59 = vrot.slane %v5928_v42, 4  ;;  %v1924_v57 = vadd.f32 %v5681_v40, %v1691_v61 }
  0xb6   : > { %2701 = vst.msk [vmem:[#allocation2 + $0x40] sm:$0xff] %vm2692_vm6, %v10341_v41  ;;  %v10366_v40 = vrot.slane %v5623_v62, 2  ;;  %v10367_v61 = vrot.slane %v5891_v39, 2 }
  0xb7   : > { %10346 = vst [vmem:[#allocation56_spill] sm:$0xff] %v5891_v39  ;;  %v693_v53 = vsel %vm668_vm5, %v10352_v23, %v10351_v27  ;;  %v5941_v23 = vmul.f32 %v5416_v9, %v5924_v4  ;;  %v5945_v27 = vmul.f32 %v5426_v12, %v5924_v4 }
  0xb8   : > { %10347 = vst [vmem:[#allocation57_spill] sm:$0xff] %v5895_v44  ;;  %v5985_v44 = vmul.f32 %v5400_v3, %v5902_v25  ;;  %v789_v35 = vadd.f32 %v693_v53, %v524_v52  ;;  %v6009_v53 = vmul.f32 %v5400_v3, %v5924_v4 }
  0xb9   : > { %2702 = vst.msk [vmem:[#allocation2 + $0x48] sm:$0xff] %vm2692_vm6, %v10341_v41  ;;  %v10359_v11 = vrot.slane %v5941_v23, 4 }
  0xba   : > { %10348 = vst [vmem:[#allocation58_spill] sm:$0xff] %v5902_v25 }
  0xbb   : > { %10349 = vst [vmem:[#allocation59_spill] sm:$0xff] %v5904_v19  ;;  %v1847_v28 = vsel %vm1573_vm2, %v10359_v11, %v10358_v59  ;;  %v10362_v59 = vrot.slane %v5932_v29, 5  ;;  %v917_v11 = vsel %vm892_vm0, %v10367_v61, %v10366_v40  ;;  %v2148_v40 = vadd.f32 %v5696_v63, %v1924_v57  ;;  %v283_v57 = vld [vmem:[%s9834_s5 + $0xf0] sm:$0xff] }
  0xbc   : > { %2703 = vst.msk [vmem:[#allocation2 + $0x50] sm:$0xff] %vm2692_vm6, %v10341_v41  ;;  %v1935_v52 = vadd.f32 %v1847_v28, %v5781_v18  ;;  %v10365_v18 = vrot.slane %v5949_v31, 6  ;;  %v6050_v61 = vmul.f32 %v5416_v9, %v5904_v19  ;;  %2628 = vperm.xlu0 %5229, %v283_v57   ;;  %v6115_v57 = vpop.permute.xlu1 %459 }
  0xbd   : > { %10353 = vst [vmem:[#allocation60_spill] sm:$0xff] %v5924_v4  ;;  %1043 = vperm.xlu2 %5231, %v326_v45  }
  0xbe   : > { %2704 = vst.msk [vmem:[#allocation2 + $0x58] sm:$0xff] %vm2692_vm6, %v10341_v41  ;;  %v2295_v28 = vsel %vm2254_vm4, %v10365_v18, %v10364_v32  ;;  %v1013_v18 = vadd.f32 %v917_v11, %v789_v35  ;;  %v284_v35 = vld [vmem:[%s9834_s5 + $0xf8] sm:$0xff]  ;;  %v2372_v11 = vadd.f32 %v5703_v49, %v2148_v40  ;;  %v6093_v49 = vmul.f32 %v5400_v3, %v6016_v58 }
  0xbf   : > { %2705 = vst.msk [vmem:[#allocation2 + $0x60] sm:$0xff] %vm2692_vm6, %v10341_v41  ;;  %2633 = vperm.xlu1 %5230, %v284_v35   ;;  %v6131_v35 = vmul.f32 %v5428_v13, %v5904_v19 }
  0xc0   : > { %2706 = vst.msk [vmem:[#allocation2 + $0x68] sm:$0xff] %vm2692_vm6, %v10341_v41 }
  0xc1   : > { %2707 = vst.msk [vmem:[#allocation2 + $0x70] sm:$0xff] %vm2692_vm6, %v10341_v41 }
  0xc2   : > { %10356 = vst [vmem:[#allocation61_spill] sm:$0xff] %v5985_v44  ;;  %v2381_v44 = vadd.f32 %v5578_v15, %v2157_v48  ;;  %v10363_v15 = vrot.slane %v5945_v27, 5 }
  0xc3   : > { %2708 = vst.msk [vmem:[#allocation2 + $0x78] sm:$0xff] %vm2692_vm6, %v10341_v41 }
  0xc4   : > { %10357 = vst [vmem:[#allocation62_spill] sm:$0xff] %v5997_v24  ;;  %v2071_v48 = vsel %vm2030_vm3, %v10363_v15, %v10362_v59  ;;  %v6036_v24 = vpop.permute.xlu0 %404  ;;  %v594_v59 = vmul.f32 %v5400_v3, %v335_v50  ;;  %v818_v15 = vmul.f32 %v5406_v6, %v335_v50  ;;  %v6043_v32 = vadd.f32 %v5991_v55, %v2381_v44 }
  0xc5   : > { %2709 = vst.msk [vmem:[#allocation2 + $0x80] sm:$0xff] %vm2692_vm6, %v10341_v41  ;;  %v2159_v62 = vadd.f32 %v2071_v48, %v1935_v52  ;;  %v6064_v63 = vmul.f32 %v5390_v60, %v6036_v24  ;;  %v6068_v44 = vmul.f32 %v5392_v0, %v6036_v24  ;;  %v513_v52 = vmul.f32 %v5404_v5, %v335_v50 }
  0xc6   : > { %10360 = vst [vmem:[#allocation63_spill] sm:$0xff] %v6009_v53  ;;  %v669_v39 = vrot.slane %v594_v59, 1  ;;  %v893_v53 = vrot.slane %v818_v15, 2  ;;  %v6079_v59 = vmul.f32 %v5394_v1, %v6036_v24  ;;  %v10372_v15 = vrot.slane %v5725_v34, 1 }
  0xc7   : > { %2710 = vst.msk [vmem:[#allocation2 + $0x88] sm:$0xff] %vm2692_vm6, %v10341_v41  ;;  %v2383_v48 = vadd.f32 %v2295_v28, %v2159_v62  ;;  %v10373_v50 = vrot.slane %v5728_v36, 2  ;;  %v9920_v62 = vrot.slane %v6064_v63, 2  ;;  %v6118_v28 = vadd.f32 %v5991_v55, %v2372_v11 }
  0xc8   : > { %10361 = vst [vmem:[#allocation64_spill] sm:$0xff] %v6016_v58  ;;  %v671_v54 = vsel %vm668_vm5, %v669_v39, %v10372_v15 }
  0xc9   : > { %2711 = vst.msk [vmem:[#allocation2 + $0x90] sm:$0xff] %vm2692_vm6, %v10341_v41  ;;  %v895_v33 = vsel %vm892_vm0, %v893_v53, %v10373_v50  ;;  %v778_v40 = vadd.f32 %v671_v54, %v513_v52  ;;  %v2423_v39 = vadd.f32 %v5991_v55, %v2383_v48  ;;  %v6100_v53 = vmul.f32 %v5400_v3, %v6036_v24  ;;  %v2574_v50 = vpop.permute.xlu2 %2573 }
  0xca   : > { %10368 = vst [vmem:[#allocation65_spill] sm:$0xff] %v6036_v24  ;;  %v10376_v54 = vrot.slane %v5748_v47, 2 }
  0xcb   : > { %2712 = vst.msk [vmem:[#allocation2 + $0x98] sm:$0xff] %vm2692_vm6, %v10341_v41  ;;  %v6111_v52 = vadd.f32 %v895_v33, %v778_v40  ;;  %v2459_v48 = vmax.f32 %v2423_v39, 0.0  ;;  %v10379_v33 = vrot.slane %v5788_v17, 3 }
  0xcc   : > { %2713 = vst.msk [vmem:[#allocation2 + $0xa0] sm:$0xff] %vm2692_vm6, %v10341_v41  ;;  %v1150_v45 = vsel %vm892_vm0, %v10376_v54, %v9920_v62  ;;  %v10378_v54 = vrot.slane %v6068_v44, 3 }
  0xcd   : > { %2716 = vst.msk [vmem:[#allocation2 + $0xb8] sm:$0xff] %vm2692_vm6, %v10341_v41  ;;  %v1246_v15 = vadd.f32 %v1150_v45, %v1013_v18  ;;  %v2675_v39 = vmul.f32 %v2574_v50, %v2459_v48  ;;  %v6166_v48 = vmul.f32 %v5400_v3, %v6115_v57  ;;  %v327_v50 = vld [vmem:[%s5295_s26 + $0x130] sm:$0xff] }
  0xce   : > { %10369 = vst [vmem:[#allocation66_spill] sm:$0xff] %v6064_v63  ;;  %v1374_v40 = vsel %vm1349_vm1, %v10379_v33, %v10378_v54  ;;  %v1020_v54 = vadd.f32 %v5958_v16, %v5937_v22  ;;  %v10386_v22 = vrot.slane %v5398_v2, 2  ;;  %1048 = vperm.xlu0 %5229, %v327_v50   ;;  %v10399_v50 = vrot.slane %v5941_v23, 4 }
  0xcf   : > { %10370 = vst [vmem:[#allocation67_spill] sm:$0xff] %v6068_v44  ;;  %v267_v44 = vld [vmem:[%s9834_s5 + $0x70] sm:$0xff]  ;;  %v1470_v63 = vadd.f32 %v1374_v40, %v1246_v15  ;;  %v10384_v15 = vrot.slane %v6079_v59, 4  ;;  %v10385_v40 = vrot.slane %v5825_v56, 4 }
  0xd0   : > { %2717 = vst.msk [vmem:[#allocation2 + $0xc0] sm:$0xff] %vm2692_vm6, %v10341_v41  ;;  %2548 = vperm.xlu1 %5230, %v267_v44   ;;  %v10392_v44 = vrot.slane %v5410_v7, 3 }
  0xd1   : > { %10371 = vst [vmem:[#allocation68_spill] sm:$0xff] %v6079_v59  ;;  %v1598_v16 = vsel %vm1573_vm2, %v10385_v40, %v10384_v15  ;;  %v6218_v40 = vpop.permute.xlu1 %354  ;;  %v10417_v15 = vld [vmem:[#allocation3_spill] sm:$0xff]  ;;  %v6306_v59 = vmul.f32 %v5392_v0, %v5924_v4 }
  0xd2   : > { %2718 = vst.msk [vmem:[#allocation2 + $0xc8] sm:$0xff] %vm2692_vm6, %v10341_v41 }
  0xd3   : > { %10374 = vst [vmem:[#allocation69_spill] sm:$0xff] %v6093_v49  ;;  %v345_v49 = vpop.permute.xlu0 %344 }
  0xd4   : > { %2719 = vst.msk [vmem:[#allocation2 + $0xd0] sm:$0xff] %vm2692_vm6, %v10341_v41  ;;  %v6134_v18 = vmul.f32 %v5400_v3, %v345_v49  ;;  %v6137_v11 = vmul.f32 %v5406_v6, %v345_v49  ;;  %v6140_v45 = vmul.f32 %v5390_v60, %v345_v49  ;;  %v6147_v33 = vmul.f32 %v5392_v0, %v345_v49 }
  0xd5   : > { %10375 = vst [vmem:[#allocation70_spill] sm:$0xff] %v6100_v53  ;;  %v6150_v62 = vmul.f32 %v5394_v1, %v345_v49  ;;  %v268_v53 = vld [vmem:[%s9834_s5 + $0x78] sm:$0xff] }
  0xd6   : > { %2720 = vst.msk [vmem:[#allocation2 + $0xd8] sm:$0xff] %vm2692_vm6, %v10341_v41  ;;  %v10388_v19 = vrot.slane %v6134_v18, 1  ;;  %2553 = vperm.xlu2 %5231, %v268_v53   ;;  %v10393_v53 = vrot.slane %v5718_v26, 3  ;;  %v257_v26 = vld [vmem:[%s9834_s5 + $0x20] sm:$0xff] }
  0xd7   : > { %10377 = vst [vmem:[#allocation71_spill] sm:$0xff] %v6111_v52  ;;  %v6171_v52 = vmul.f32 %v5404_v5, %v345_v49  ;;  %v10389_v49 = vrot.slane %v5725_v34, 1  ;;  %v6299_v34 = vmul.f32 %v5390_v60, %v5924_v4  ;;  %2498 = vperm.xlu0 %5229, %v257_v26  }
  0xd8   : > { %2721 = vst.msk [vmem:[#allocation2 + $0xe0] sm:$0xff] %vm2692_vm6, %v10341_v41 }
  0xd9   : > { %2722 = vst.msk [vmem:[#allocation2 + $0xe8] sm:$0xff] %vm2692_vm6, %v10341_v41  ;;  %v673_v17 = vsel %vm668_vm5, %v10389_v49, %v10388_v19  ;;  %v6204_v19 = vadd.f32 %v1598_v16, %v1470_v63  ;;  %v10396_v63 = vrot.slane %v5414_v8, 4  ;;  %v10397_v16 = vrot.slane %v5722_v10, 4  ;;  %v6326_v26 = vpop.permute.xlu1 %359 }
  0xda   : > { %10380 = vst [vmem:[#allocation72_spill] sm:$0xff] %v6140_v45  ;;  %v10401_v10 = vrot.slane %v5945_v27, 5 }
  0xdb   : > { %2723 = vst.msk [vmem:[#allocation2 + $0xf0] sm:$0xff] %vm2692_vm6, %v10341_v41  ;;  %v1612_v7 = vsel %vm1573_vm2, %v10397_v16, %v10396_v63 }
  0xdc   : > { %10381 = vst [vmem:[#allocation73_spill] sm:$0xff] %v6147_v33 }
  0xdd   : > { %10382 = vst [vmem:[#allocation74_spill] sm:$0xff] %v6150_v62 }
  0xde   : > { %2724 = vst.msk [vmem:[#allocation2 + $0xf8] sm:$0xff] %vm2692_vm6, %v10341_v41 }
  0xdf   : > { %2725 = vst.msk [vmem:[#allocation2 + $0x100] sm:$0xff] %vm2692_vm6, %v10341_v41 }
  0xe0   : > { %10383 = vst [vmem:[#allocation75_spill] sm:$0xff] %v6166_v48  ;;  %v10387_v48 = vrot.slane %v5648_v20, 2  ;;  %v10390_v20 = vrot.slane %v6137_v11, 2 }
  0xe1   : > { %2754 = vst.msk [vmem:[#allocation2 + $0xab] sm:$0xff] %vm2692_vm6, %v2675_v39  ;;  %v6285_v39 = vmul.f32 %v5400_v3, %v6218_v40 }
  0xe2   : > { %v1164_v47 = vsel %vm892_vm0, %v10387_v48, %v10386_v22  ;;  %2726 = vst.msk [vmem:[#allocation2 + $0x108] sm:$0xff] %vm2692_vm6, %v10341_v41  ;;  %v10391_v22 = vrot.slane %v5728_v36, 2  ;;  %v6216_v36 = vpop.permute.xlu2 %469 }
  0xe3   : > { %v1253_v2 = vadd.f32 %v1164_v47, %v1020_v54  ;;  %2727 = vst.msk [vmem:[#allocation2 + $0x110] sm:$0xff] %vm2692_vm6, %v10341_v41  ;;  %v1388_v47 = vsel %vm1349_vm1, %v10393_v53, %v10392_v44  ;;  %v6212_v54 = vadd.f32 %v673_v17, %v5763_v43  ;;  %v350_v17 = vpop.permute.xlu0 %349  ;;  %v6230_v43 = vmul.f32 %v5400_v3, %v6216_v36 }
  0xe4   : > { %v6199_v48 = vsel %vm892_vm0, %v10391_v22, %v10390_v20  ;;  %2728 = vst.msk [vmem:[#allocation2 + $0x118] sm:$0xff] %vm2692_vm6, %v10341_v41  ;;  %v10402_v20 = vld [vmem:[#allocation12_spill] sm:$0xff]  ;;  %v10404_v53 = vrot.slane %v5949_v31, 6  ;;  %v6250_v23 = vmul.f32 %v5400_v3, %v350_v17  ;;  %v6256_v27 = vmul.f32 %v5390_v60, %v350_v17 }
  0xe5   : > { %10394 = vst [vmem:[#allocation76_spill] sm:$0xff] %v6216_v36  ;;  %v1477_v49 = vadd.f32 %v1388_v47, %v1253_v2  ;;  %v10400_v2 = vrot.slane %v5452_v21, 4  ;;  %v10403_v22 = vrot.slane %v10402_v20, 5  ;;  %v10405_v47 = vld [vmem:[#allocation14_spill] sm:$0xff]  ;;  %v6253_v21 = vmul.f32 %v5406_v6, %v350_v17 }
  0xe6   : > { %10395 = vst [vmem:[#allocation77_spill] sm:$0xff] %v6218_v40  ;;  %v10406_v63 = vrot.slane %v10405_v47, 6  ;;  %v6266_v20 = vmul.f32 %v5392_v0, %v350_v17  ;;  %v258_v47 = vld [vmem:[%s9834_s5 + $0x28] sm:$0xff] }
  0xe7   : > { %2729 = vst.msk [vmem:[#allocation2 + $0x120] sm:$0xff] %vm2692_vm6, %v10341_v41  ;;  %v1845_v8 = vsel %vm1573_vm2, %v10400_v2, %v10399_v50  ;;  %v2069_v44 = vsel %vm2030_vm3, %v10403_v22, %v10401_v10  ;;  %v10410_v50 = vrot.slane %v5432_v14, 1  ;;  %v10411_v2 = vld [vmem:[#allocation31_spill] sm:$0xff]  ;;  %v6269_v22 = vmul.f32 %v5394_v1, %v350_v17  ;;  %2503 = vperm.xlu1 %5230, %v258_v47  }
  0xe8   : > { %10398 = vst [vmem:[#allocation78_spill] sm:$0xff] %v6230_v43  ;;  %v2293_v16 = vsel %vm2254_vm4, %v10406_v63, %v10404_v53  ;;  %v10412_v31 = vrot.slane %v10411_v2, 1  ;;  %v279_v53 = vld [vmem:[%s9834_s5 + $0xd0] sm:$0xff]  ;;  %v1701_v63 = vadd.f32 %v1612_v7, %v1477_v49  ;;  %v10415_v2 = vld [vmem:[#allocation26_spill] sm:$0xff]  ;;  %v6292_v49 = vmul.f32 %v5406_v6, %v10417_v15 }
  0xe9   : > { %2730 = vst.msk [vmem:[#allocation2 + $0x128] sm:$0xff] %vm2692_vm6, %v10341_v41  ;;  %v6295_v7 = vmul.f32 %v5404_v5, %v350_v17  ;;  %2608 = vperm.xlu2 %5231, %v279_v53   ;;  %v10420_v53 = vrot.slane %v6134_v18, 1  ;;  %v10433_v18 = vrot.slane %v6299_v34, 2 }
  0xea   : > { %10407 = vst [vmem:[#allocation12_spill] sm:$0xff] %v6250_v23  ;;  %v711_v10 = vsel %vm668_vm5, %v10412_v31, %v10410_v50  ;;  %v533_v50 = vmul.f32 %v5404_v5, %v10415_v2  ;;  %v10421_v2 = vrot.slane %v6253_v21, 2  ;;  %v10422_v31 = vrot.slane %v6137_v11, 2 }
  0xeb   : > { %10408 = vst [vmem:[#allocation14_spill] sm:$0xff] %v6253_v21 }
  0xec   : > { %10409 = vst [vmem:[#allocation79_spill] sm:$0xff] %v6256_v27  ;;  %v798_v43 = vadd.f32 %v711_v10, %v533_v50  ;;  %v10419_v50 = vrot.slane %v6250_v23, 1  ;;  %v6324_v17 = vsel %vm892_vm0, %v10422_v31, %v10421_v2  ;;  %v6340_v2 = vmul.f32 %v5416_v9, %v6115_v57  ;;  %v10434_v23 = vld [vmem:[#allocation7_spill] sm:$0xff] }
  0xed   : > { %2731 = vst.msk [vmem:[#allocation2 + $0x130] sm:$0xff] %vm2692_vm6, %v10341_v41  ;;  %v6344_v31 = vmul.f32 %v5426_v12, %v6115_v57  ;;  %v10435_v62 = vrot.slane %v10434_v23, 2 }
  0xee   : > { %10413 = vst [vmem:[#allocation31_spill] sm:$0xff] %v6266_v20  ;;  %v675_v47 = vsel %vm668_vm5, %v10420_v53, %v10419_v50  ;;  %v6334_v50 = vpop.permute.xlu0 %414  ;;  %v10428_v53 = vmax.f32 %v6118_v28, 0.0 }
  0xef   : > { %10414 = vst [vmem:[#allocation80_spill] sm:$0xff] %v6269_v22  ;;  %v6356_v28 = vmul.f32 %v5428_v13, %v6334_v50  ;;  %v1168_v33 = vsel %vm892_vm0, %v10435_v62, %v10433_v18  ;;  %v10437_v62 = vrot.slane %v6306_v59, 3  ;;  %v10438_v18 = vld [vmem:[#allocation8_spill] sm:$0xff] }
  0xf0   : > { %2732 = vst.msk [vmem:[#allocation2 + $0x138] sm:$0xff] %vm2692_vm6, %v10341_v41  ;;  %v1934_v41 = vadd.f32 %v1845_v8, %v1701_v63  ;;  %v6312_v63 = vmul.f32 %v5394_v1, %v5924_v4 }
  0xf1   : > { %10416 = vst [vmem:[#allocation81_spill] sm:$0xff] %v6285_v39  ;;  %v9933_v39 = vrot.slane %v6292_v49, 2 }
  0xf2   : > { %10418 = vst [vmem:[#allocation3_spill] sm:$0xff] %v6295_v7  ;;  %v2158_v8 = vadd.f32 %v2069_v44, %v1934_v41  ;;  %v2519_v41 = vpop.permute.xlu2 %2518  ;;  %v10425_v44 = vld [vmem:[#allocation33_spill] sm:$0xff] }
  0xf3   : > { %10423 = vst [vmem:[#allocation82_spill] sm:$0xff] %v6324_v17  ;;  %v10426_v10 = vrot.slane %v10425_v44, 2  ;;  %v2664_v11 = vmul.f32 %v2519_v41, %v10428_v53  ;;  %v6348_v44 = vmul.f32 %v5416_v9, %v6334_v50  ;;  %v328_v41 = vld [vmem:[%s5295_s26 + $0x138] sm:$0xff]  ;;  %v286_v53 = vld [vmem:[%s9834_s5 + $0x108] sm:$0xff] }
  0xf4   : > { %10424 = vst [vmem:[#allocation83_spill] sm:$0xff] %v6326_v26  ;;  %v2382_v21 = vadd.f32 %v2293_v16, %v2158_v8  ;;  %v6359_v8 = vadd.f32 %v675_v47, %v6171_v52  ;;  %v285_v52 = vld [vmem:[%s9834_s5 + $0x100] sm:$0xff]  ;;  %1724 = vperm.xlu2 %5231, %v328_v41   ;;  %2643 = vperm.xlu1 %5230, %v286_v53   ;;  %v2072_v41 = vrot.slane %v6344_v31, 5 }
  0xf5   : > { %v935_v7 = vsel %vm892_vm0, %v10426_v10, %v9933_v39  ;;  %10427 = vst [vmem:[#allocation33_spill] sm:$0xff] %v6334_v50  ;;  %v6352_v10 = vmul.f32 %v5426_v12, %v6334_v50  ;;  %2638 = vperm.xlu0 %5229, %v285_v52   ;;  %v6418_v31 = vmul.f32 %v5428_v13, %v6115_v57  ;;  %v10449_v52 = vrot.slane %v5476_v30, 1 }
  0xf6   : > { %10429 = vst [vmem:[#allocation84_spill] sm:$0xff] %v6348_v44  ;;  %v1022_v16 = vadd.f32 %v935_v7, %v798_v43  ;;  %v2422_v39 = vadd.f32 %v5991_v55, %v2382_v21  ;;  %v9938_v7 = vrot.slane %v6348_v44, 4  ;;  %v6381_v21 = vmul.f32 %v5400_v3, %v6326_v26  ;;  %v2569_v44 = vpop.permute.xlu1 %2568 }
  0xf7   : > { %10430 = vst [vmem:[#allocation85_spill] sm:$0xff] %v6352_v10  ;;  %v9940_v47 = vrot.slane %v6352_v10, 5  ;;  %v10439_v43 = vrot.slane %v10438_v18, 3  ;;  %v10442_v18 = vrot.slane %v6312_v63, 4 }
  0xf8   : > { %10431 = vst [vmem:[#allocation86_spill] sm:$0xff] %v6356_v28  ;;  %v1255_v45 = vadd.f32 %v1168_v33, %v1022_v16  ;;  %v2458_v23 = vmax.f32 %v2422_v39, 0.0  ;;  %v10441_v39 = vrot.slane %v6054_v37, 5 }
  0xf9   : > { %10432 = vst [vmem:[#allocation87_spill] sm:$0xff] %v6359_v8  ;;  %v1392_v17 = vsel %vm1349_vm1, %v10439_v43, %v10437_v62  ;;  %v10445_v8 = vrot.slane %v6356_v28, 6  ;;  %v2296_v28 = vrot.slane %v6418_v31, 6 }
  0xfa   : > { %2743 = vst.msk [vmem:[#allocation2 + $0x53] sm:$0xff] %vm2692_vm6, %v2664_v11  ;;  %v10440_v11 = vrot.slane %v6050_v61, 4  ;;  %v2055_v16 = vsel %vm2030_vm3, %v10441_v39, %v9940_v47  ;;  %v1479_v10 = vadd.f32 %v1392_v17, %v1255_v45  ;;  %v10447_v39 = vrot.slane %v6340_v2, 4  ;;  %v10451_v17 = vld [vmem:[#allocation4_spill] sm:$0xff] }
  0xfb   : > { %10436 = vst [vmem:[#allocation7_spill] sm:$0xff] %v6381_v21  ;;  %v10443_v21 = vld [vmem:[#allocation9_spill] sm:$0xff]  ;;  %v10448_v47 = vrot.slane %v5928_v42, 4  ;;  %v2564_v42 = vpop.permute.xlu0 %2563 }
  0xfc   : > { %v1831_v33 = vsel %vm1573_vm2, %v10440_v11, %v9938_v7  ;;  %v10444_v43 = vrot.slane %v10443_v21, 4  ;;  %v10446_v11 = vrot.slane %v6131_v35, 6 }
  0xfd   : > { %v1927_v53 = vadd.f32 %v1831_v33, %v6204_v19  ;;  %v1849_v21 = vsel %vm1573_vm2, %v10448_v47, %v10447_v39  ;;  %v534_v19 = vmul.f32 %v5404_v5, %v10417_v15  ;;  %v10450_v33 = vrot.slane %v5432_v14, 1 }
  0xfe   : > { %v1616_v62 = vsel %vm1573_vm2, %v10444_v43, %v10442_v18  ;;  %v2279_v7 = vsel %vm2254_vm4, %v10446_v11, %v10445_v8  ;;  %v6429_v8 = vmul.f32 %v5406_v6, %v10451_v17  ;;  %v2674_v18 = vmul.f32 %v2569_v44, %v2458_v23  ;;  %v287_v44 = vld [vmem:[%s9834_s5 + $0x110] sm:$0xff] }
  0xff   : > { %v713_v45 = vsel %vm668_vm5, %v10450_v33, %v10449_v52  ;;  %v2151_v47 = vadd.f32 %v2055_v16, %v1927_v53  ;;  %v1703_v43 = vadd.f32 %v1616_v62, %v1479_v10  ;;  %v6433_v11 = vmul.f32 %v5390_v60, %v5902_v25  ;;  %v259_v10 = vld [vmem:[%s9834_s5 + $0x30] sm:$0xff]  ;;  %2648 = vperm.xlu2 %5231, %v287_v44  }
 0x100   : > { %v10452_v15 = vmax.f32 %v6043_v32, 0.0  ;;  %v799_v14 = vadd.f32 %v713_v45, %v534_v19  ;;  %v9949_v52 = vrot.slane %v6429_v8, 2  ;;  %2753 = vst.msk [vmem:[#allocation2 + $0xa3] sm:$0xff] %vm2692_vm6, %v2674_v18  ;;  %v6449_v16 = vmul.f32 %v5392_v0, %v5902_v25  ;;  %2508 = vperm.xlu1 %5230, %v259_v10   ;;  %v2534_v10 = vpop.permute.xlu2 %2533 }
 0x101   : > { %v2375_v33 = vadd.f32 %v2279_v7, %v2151_v47  ;;  %v1936_v23 = vadd.f32 %v1849_v21, %v1703_v43  ;;  %v9946_v32 = vrot.slane %v6433_v11, 2  ;;  %v269_v7 = vld [vmem:[%s9834_s5 + $0x80] sm:$0xff]  ;;  %v10453_v62 = vrot.slane %v5932_v29, 5 }
 0x102   : > { %v2673_v39 = vmul.f32 %v2564_v42, %v10452_v15  ;;  %v10454_v21 = vrot.slane %v6292_v49, 2  ;;  %v6465_v19 = vmul.f32 %v5394_v1, %v5902_v25  ;;  %v6469_v45 = vmul.f32 %v5416_v9, %v5792_v38  ;;  %2558 = vperm.xlu0 %5229, %v269_v7  }
 0x103   : > { %v2073_v53 = vsel %vm2030_vm3, %v10453_v62, %v2072_v41  ;;  %v2415_v42 = vadd.f32 %v5991_v55, %v2375_v33  ;;  %v10455_v18 = vrot.slane %v6299_v34, 2  ;;  %v10456_v43 = vrot.slane %v5970_v46, 6 }
 0x104   : > { %2752 = vst.msk [vmem:[#allocation2 + $0x9b] sm:$0xff] %vm2692_vm6, %v2673_v39  ;;  %v937_v31 = vsel %vm892_vm0, %v10454_v21, %v9949_v52  ;;  %v2160_v47 = vadd.f32 %v2073_v53, %v1936_v23  ;;  %v9943_v39 = vrot.slane %v6449_v16, 3  ;;  %v9944_v62 = vrot.slane %v6465_v19, 4 }
 0x105   : > { %v1023_v29 = vadd.f32 %v937_v31, %v799_v14  ;;  %v1170_v49 = vsel %vm892_vm0, %v10455_v18, %v9946_v32  ;;  %v2297_v15 = vsel %vm2254_vm4, %v10456_v43, %v2296_v28  ;;  %v6484_v33 = vmul.f32 %v5426_v12, %v5792_v38  ;;  %v10459_v18 = vld [vmem:[#allocation44_spill] sm:$0xff]  ;;  %v2579_v43 = vpop.permute.xlu0 %2578 }
 0x106   : > { %v2451_v14 = vmax.f32 %v2415_v42, 0.0  ;;  %v2384_v23 = vadd.f32 %v2297_v15, %v2160_v47  ;;  %v6488_v44 = vmul.f32 %v5428_v13, %v5792_v38  ;;  %v6492_v46 = vmul.f32 %v5400_v3, %v6334_v50 }
 0x107   : > { %v1256_v34 = vadd.f32 %v1170_v49, %v1023_v29  ;;  %v10458_v53 = vrot.slane %v6306_v59, 3  ;;  %v9947_v31 = vrot.slane %v6469_v45, 4  ;;  %v9945_v7 = vrot.slane %v6484_v33, 5 }
 0x108   : > { %10457 = vst [vmem:[#allocation8_spill] sm:$0xff] %v6492_v46  ;;  %v2667_v42 = vmul.f32 %v2534_v10, %v2451_v14  ;;  %v2424_v47 = vadd.f32 %v5991_v55, %v2384_v23  ;;  %v10460_v15 = vrot.slane %v6312_v63, 4  ;;  %v6518_v23 = vmul.f32 %v5416_v9, %v6016_v58  ;;  %v10474_v46 = vld [vmem:[#allocation41_spill] sm:$0xff] }
 0x109   : > { %v1394_v21 = vsel %vm1349_vm1, %v10458_v53, %v9943_v39  ;;  %v10461_v53 = vrot.slane %v6340_v2, 4  ;;  %v2075_v14 = vsel %vm2030_vm3, %v2072_v41, %v9945_v7  ;;  %v9948_v10 = vrot.slane %v6488_v44, 6  ;;  %v288_v2 = vld [vmem:[%s9834_s5 + $0x118] sm:$0xff] }
 0x10a   : > { %v1480_v29 = vadd.f32 %v1394_v21, %v1256_v34  ;;  %v1618_v59 = vsel %vm1573_vm2, %v10460_v15, %v9944_v62  ;;  %2746 = vst.msk [vmem:[#allocation2 + $0x6b] sm:$0xff] %vm2692_vm6, %v2667_v42  ;;  %v2460_v34 = vmax.f32 %v2424_v47, 0.0  ;;  %v1003_v21 = vadd.f32 %v6199_v48, %v6212_v54  ;;  %v329_v15 = vld [vmem:[%s5295_s26 + $0x140] sm:$0x3f]  ;;  %2653 = vperm.xlu1 %5230, %v288_v2   ;;  %v6581_v2 = vpop.permute.xlu2 %489 }
 0x10b   : > { %v1851_v39 = vsel %vm1573_vm2, %v10461_v53, %v9947_v31  ;;  %v6530_v41 = vmul.f32 %v5426_v12, %v6016_v58  ;;  %v6534_v53 = vmul.f32 %v5428_v13, %v6016_v58  ;;  %v6538_v42 = vmul.f32 %v5390_v60, %v6218_v40  ;;  %v5042_v62 = vld [vmem:[%s9832_s3 + $0x2] sm:$0x3]  ;;  %1729 = vperm.xlu0 %5229, %v329_v15   ;;  %v10475_v58 = vld [vmem:[#allocation40_spill] sm:$0xff] }
 0x10c   : > { %v1704_v63 = vadd.f32 %v1618_v59, %v1480_v29  ;;  %v6542_v47 = vmul.f32 %v5392_v0, %v6218_v40  ;;  %v2676_v29 = vmul.f32 %v2579_v43, %v2460_v34  ;;  %v2299_v48 = vsel %vm2254_vm4, %v2296_v28, %v9948_v10  ;;  %10468 = vst [vmem:[#allocation91_spill] sm:$0xff] %v6581_v2 }
 0x10d   : > { %10462 = vst [vmem:[#allocation9_spill] sm:$0xff] %v6534_v53  ;;  %v9960_v54 = vrot.slane %v6518_v23, 4  ;;  %v9950_v7 = vrot.slane %v6538_v42, 2  ;;  %v6555_v31 = vmul.f32 %v5394_v1, %v6218_v40  ;;  %v6564_v43 = vmul.f32 %v5426_v12, %v6326_v26 }
 0x10e   : > { %v1937_v59 = vadd.f32 %v1851_v39, %v1704_v63  ;;  %v9951_v32 = vrot.slane %v6542_v47, 3  ;;  %v6559_v39 = vmul.f32 %v5416_v9, %v6326_v26  ;;  %2755 = vst.msk [vmem:[#allocation2 + $0xb3] sm:$0xff] %vm2692_vm6, %v2676_v29  ;;  %v6568_v34 = vmul.f32 %v5428_v13, %v6326_v26 }
 0x10f   : > { %10463 = vst [vmem:[#allocation4_spill] sm:$0xff] %v6555_v31  ;;  %v3038_v63 = vsel %vm2254_vm4, %v5042_v62, 0  ;;  %v10467_v10 = vrot.slane %v6256_v27, 2  ;;  %v10470_v15 = vrot.slane %v6269_v22, 4  ;;  %v10472_v62 = vrot.slane %v6530_v41, 5 }
 0x110   : > { %10464 = vst [vmem:[#allocation88_spill] sm:$0xff] %v6559_v39  ;;  %v2161_v28 = vadd.f32 %v2075_v14, %v1937_v59  ;;  %v9953_v14 = vrot.slane %v6555_v31, 4  ;;  %5215 = vmatpush.bf16.msra.mxu2 %v3038_v63  ;;  %5214 = vmatpush.bf16.msra.mxu1 %v3038_v63  ;;  %v10476_v50 = vrot.slane %v10475_v58, 1  ;;  %v10477_v25 = vrot.slane %v10459_v18, 1 }
 0x111   : > { %10465 = vst [vmem:[#allocation89_spill] sm:$0xff] %v6564_v43  ;;  %v1130_v29 = vsel %vm892_vm0, %v10467_v10, %v9950_v7  ;;  %3047 = vmatpush.bf16.msra.mxu0 %v3038_v63  ;;  %5216 = vmatpush.bf16.msra.mxu3 %v3038_v63  ;;  %v10469_v10 = vrot.slane %v6266_v20, 3  ;;  %v6633_v38 = vmul.f32 %v5416_v9, %v5790_v51 }
 0x112   : > { %10466 = vst [vmem:[#allocation90_spill] sm:$0xff] %v6568_v34  ;;  %v2385_v59 = vadd.f32 %v2299_v48, %v2161_v28  ;;  %v1236_v49 = vadd.f32 %v1130_v29, %v1003_v21  ;;  %v1578_v48 = vsel %vm1573_vm2, %v10470_v15, %v9953_v14  ;;  %v10471_v21 = vrot.slane %v6559_v39, 4  ;;  %v2584_v14 = vpop.permute.xlu1 %2583 }
 0x113   : > { %v1354_v7 = vsel %vm1349_vm1, %v10469_v10, %v9951_v32  ;;  %v10473_v10 = vrot.slane %v6564_v43, 5  ;;  %v520_v15 = vmul.f32 %v5404_v5, %v10474_v46  ;;  %10483 = vst [vmem:[#allocation95_spill] sm:$0xff] %v6633_v38 }
 0x114   : > { %v1811_v28 = vsel %vm1573_vm2, %v10471_v21, %v9960_v54  ;;  %v2425_v29 = vadd.f32 %v5991_v55, %v2385_v59  ;;  %v1460_v52 = vadd.f32 %v1354_v7, %v1236_v49  ;;  %v685_v21 = vsel %vm668_vm5, %v10477_v25, %v10476_v50  ;;  %v10479_v7 = vld [vmem:[#allocation5_spill] sm:$0xff]  ;;  %v10487_v50 = vld [vmem:[#allocation42_spill] sm:$0xff] }
 0x115   : > { %v2035_v32 = vsel %vm2030_vm3, %v10473_v10, %v10472_v62  ;;  %v6614_v59 = vmul.f32 %v5406_v6, %v10474_v46  ;;  %v6618_v49 = vmul.f32 %v5390_v60, %v10479_v7  ;;  %v6622_v62 = vmul.f32 %v5392_v0, %v10479_v7 }
 0x116   : > { %v2461_v10 = vmax.f32 %v2425_v29, 0.0  ;;  %v1684_v54 = vadd.f32 %v1578_v48, %v1460_v52  ;;  %v785_v63 = vadd.f32 %v685_v21, %v520_v15  ;;  %v6626_v58 = vmul.f32 %v5394_v1, %v10479_v7 }
 0x117   : > { %10478 = vst [vmem:[#allocation40_spill] sm:$0xff] %v6614_v59  ;;  %v9970_v25 = vrot.slane %v6614_v59, 2  ;;  %v6638_v52 = vmul.f32 %v5426_v12, %v5790_v51  ;;  %v10485_v48 = vrot.slane %v6534_v53, 6  ;;  %v10486_v15 = vrot.slane %v6568_v34, 6  ;;  %v6657_v53 = vpop.permute.xlu0 %474 }
 0x118   : > { %10480 = vst [vmem:[#allocation92_spill] sm:$0xff] %v6618_v49  ;;  %v2677_v43 = vmul.f32 %v2584_v14, %v2461_v10  ;;  %v1917_v39 = vadd.f32 %v1811_v28, %v1684_v54  ;;  %v10488_v18 = vrot.slane %v10487_v50, 2  ;;  %v10489_v14 = vld [vmem:[#allocation50_spill] sm:$0xff]  ;;  %v10491_v28 = vrot.slane %v6618_v49, 2 }
 0x119   : > { %10481 = vst [vmem:[#allocation93_spill] sm:$0xff] %v6622_v62  ;;  %v2259_v21 = vsel %vm2254_vm4, %v10486_v15, %v10485_v48  ;;  %v10490_v54 = vrot.slane %v10489_v14, 2  ;;  %v10493_v15 = vld [vmem:[#allocation51_spill] sm:$0xff]  ;;  %v10495_v59 = vrot.slane %v6622_v62, 3  ;;  %v10498_v49 = vrot.slane %v6626_v58, 4 }
 0x11a   : > { %10482 = vst [vmem:[#allocation94_spill] sm:$0xff] %v6626_v58  ;;  %v909_v22 = vsel %vm892_vm0, %v9970_v25, %v10488_v18  ;;  %v2141_v34 = vadd.f32 %v2035_v32, %v1917_v39  ;;  %v10494_v50 = vrot.slane %v10493_v15, 3  ;;  %v10496_v25 = vld [vmem:[#allocation53_spill] sm:$0xff]  ;;  %v6677_v32 = vmul.f32 %v5428_v13, %v5790_v51  ;;  %v10508_v58 = vld [vmem:[#allocation22_spill] sm:$0xff] }
 0x11b   : > { %10484 = vst [vmem:[#allocation96_spill] sm:$0xff] %v6638_v52  ;;  %v1142_v10 = vsel %vm892_vm0, %v10491_v28, %v10490_v54  ;;  %v1009_v48 = vadd.f32 %v909_v22, %v785_v63  ;;  %v10497_v14 = vrot.slane %v10496_v25, 4  ;;  %v10499_v28 = vld [vmem:[#allocation21_spill] sm:$0xff]  ;;  %v522_v15 = vmul.f32 %v5404_v5, %v10479_v7  ;;  %v10507_v22 = vld [vmem:[#allocation16_spill] sm:$0xff] }
 0x11c   : > { %2756 = vst.msk [vmem:[#allocation2 + $0xbb] sm:$0xff] %vm2692_vm6, %v2677_v43  ;;  %v1366_v18 = vsel %vm1349_vm1, %v10495_v59, %v10494_v50  ;;  %v10500_v29 = vrot.slane %v10499_v28, 4  ;;  %v10501_v43 = vrot.slane %v6633_v38, 4  ;;  %v10503_v39 = vld [vmem:[#allocation57_spill] sm:$0xff]  ;;  %v2365_v59 = vadd.f32 %v2259_v21, %v2141_v34 }
 0x11d   : > { %10492 = vst [vmem:[#allocation42_spill] sm:$0xff] %v6657_v53  ;;  %v1590_v54 = vsel %vm1573_vm2, %v10498_v49, %v10497_v14  ;;  %v9976_v63 = vrot.slane %v10503_v39, 1  ;;  %v1242_v25 = vadd.f32 %v1142_v10, %v1009_v48  ;;  %v10504_v49 = vld [vmem:[#allocation48_spill] sm:$0xff]  ;;  %v2484_v14 = vpop.permute.xlu2 %2483  ;;  %v10505_v28 = vld [vmem:[#allocation17_spill] sm:$0xff]  ;;  %v6694_v34 = vmul.f32 %v5390_v60, %v10507_v22 }
 0x11e   : > { %v1823_v20 = vsel %vm1573_vm2, %v10501_v43, %v10500_v29  ;;  %10502 = vst [vmem:[#allocation50_spill] sm:$0xff] %v6677_v32  ;;  %v6684_v50 = vmul.f32 %v5406_v6, %v10504_v49  ;;  %v10506_v43 = vrot.slane %v10505_v28, 1  ;;  %v6698_v21 = vmul.f32 %v5392_v0, %v10507_v22 }
 0x11f   : > { %v2405_v10 = vadd.f32 %v5991_v55, %v2365_v59  ;;  %v1466_v48 = vadd.f32 %v1366_v18, %v1242_v25  ;;  %v10509_v62 = vrot.slane %v10508_v58, 5  ;;  %v10510_v28 = vrot.slane %v6638_v52, 5  ;;  %v10514_v58 = vld [vmem:[#allocation19_spill] sm:$0xff] }
 0x120   : > { %v689_v51 = vsel %vm668_vm5, %v10506_v43, %v9976_v63  ;;  %v9984_v29 = vrot.slane %v6684_v50, 2  ;;  %v10511_v63 = vld [vmem:[#allocation23_spill] sm:$0xff]  ;;  %v10513_v40 = vrot.slane %v6677_v32, 6  ;;  %v9985_v31 = vrot.slane %v6694_v34, 2 }
 0x121   : > { %v787_v38 = vadd.f32 %v689_v51, %v522_v15  ;;  %v2047_v43 = vsel %vm2030_vm3, %v10510_v28, %v10509_v62  ;;  %v10512_v7 = vrot.slane %v10511_v63, 6  ;;  %v6715_v18 = vmul.f32 %v5394_v1, %v10507_v22  ;;  %v2514_v15 = vpop.permute.xlu1 %2513 }
 0x122   : > { %v2441_v59 = vmax.f32 %v2405_v10, 0.0  ;;  %v1690_v25 = vadd.f32 %v1590_v54, %v1466_v48  ;;  %v10515_v51 = vrot.slane %v10514_v58, 2  ;;  %v6724_v63 = vmul.f32 %v5416_v9, %v6036_v24 }
 0x123   : > { %v2271_v27 = vsel %vm2254_vm4, %v10513_v40, %v10512_v7  ;;  %v10516_v7 = vld [vmem:[#allocation49_spill] sm:$0xff]  ;;  %v9986_v54 = vrot.slane %v6698_v21, 3  ;;  %v9987_v10 = vrot.slane %v6715_v18, 4 }
 0x124   : > { %v913_v62 = vsel %vm892_vm0, %v10515_v51, %v9984_v29  ;;  %v10517_v28 = vrot.slane %v10516_v7, 2  ;;  %v2657_v48 = vmul.f32 %v2484_v14, %v2441_v59  ;;  %v1923_v52 = vadd.f32 %v1823_v20, %v1690_v25  ;;  %v6754_v25 = vpop.permute.xlu0 %2523 }
 0x125   : > { %v1011_v40 = vadd.f32 %v913_v62, %v787_v38  ;;  %v9988_v58 = vrot.slane %v6724_v63, 4  ;;  %v6736_v51 = vmul.f32 %v5426_v12, %v6036_v24  ;;  %v10518_v38 = vld [vmem:[#allocation52_spill] sm:$0xff]  ;;  %v6750_v20 = vmul.f32 %v5428_v13, %v6036_v24 }
 0x126   : > { %v1146_v32 = vsel %vm892_vm0, %v10517_v28, %v9985_v31  ;;  %v10519_v62 = vrot.slane %v10518_v38, 3  ;;  %v10520_v28 = vld [vmem:[#allocation54_spill] sm:$0xff]  ;;  %2736 = vst.msk [vmem:[#allocation2 + $0x1b] sm:$0xff] %vm2692_vm6, %v2657_v48  ;;  %v2147_v59 = vadd.f32 %v2047_v43, %v1923_v52  ;;  %v10522_v38 = vld [vmem:[#allocation63_spill] sm:$0xff]  ;;  %v6766_v48 = vmul.f32 %v5406_v6, %v5924_v4  ;;  %v10529_v24 = vld [vmem:[#allocation36_spill] sm:$0xff] }
 0x127   : > { %v1244_v29 = vadd.f32 %v1146_v32, %v1011_v40  ;;  %v10521_v31 = vrot.slane %v10520_v28, 4  ;;  %v535_v40 = vmul.f32 %v5404_v5, %v10451_v17  ;;  %v6770_v52 = vmul.f32 %v5416_v9, %v6216_v36 }
 0x128   : > { %v1370_v7 = vsel %vm1349_vm1, %v10519_v62, %v9986_v54  ;;  %v9991_v62 = vrot.slane %v10522_v38, 1  ;;  %10525 = vst [vmem:[#allocation51_spill] sm:$0xff] %v6766_v48  ;;  %v2371_v43 = vadd.f32 %v2271_v27, %v2147_v59  ;;  %v9995_v27 = vrot.slane %v6766_v48, 2  ;;  %v6787_v59 = vpop.permute.xlu2 %2588 }
 0x129   : > { %v1594_v14 = vsel %vm1573_vm2, %v10521_v31, %v9987_v10  ;;  %v1468_v54 = vadd.f32 %v1370_v7, %v1244_v29  ;;  %v10523_v31 = vld [vmem:[#allocation34_spill] sm:$0xff]  ;;  %v10526_v29 = vrot.slane %v5476_v30, 1  ;;  %v10528_v30 = vrot.slane %v6736_v51, 5 }
 0x12a   : > { %v10524_v28 = vrot.slane %v10523_v31, 4  ;;  %v6780_v31 = vmul.f32 %v5426_v12, %v6216_v36  ;;  %v2411_v17 = vadd.f32 %v5991_v55, %v2371_v43  ;;  %v6807_v43 = vmul.f32 %v5390_v60, %v6115_v57 }
 0x12b   : > { %v715_v7 = vsel %vm668_vm5, %v10526_v29, %v9991_v62  ;;  %v10530_v29 = vrot.slane %v10529_v24, 5  ;;  %v6811_v24 = vmul.f32 %v5392_v0, %v6115_v57 }
 0x12c   : > { %v1827_v10 = vsel %vm1573_vm2, %v10524_v28, %v9988_v58  ;;  %v6784_v28 = vmul.f32 %v5400_v3, %v6581_v2  ;;  %v1692_v58 = vadd.f32 %v1594_v14, %v1468_v54  ;;  %v800_v32 = vadd.f32 %v715_v7, %v535_v40 }
 0x12d   : > { %v2051_v62 = vsel %vm2030_vm3, %v10530_v29, %v10528_v30  ;;  %v6798_v2 = vmul.f32 %v5428_v13, %v6216_v36  ;;  %v10532_v14 = vrot.slane %v6429_v8, 2  ;;  %10533 = vst [vmem:[#allocation57_spill] sm:$0xff] %v6811_v24  ;;  %v2447_v7 = vmax.f32 %v2411_v17, 0.0  ;;  %v10535_v29 = vld [vmem:[#allocation37_spill] sm:$0xff] }
 0x12e   : > { %10527 = vst [vmem:[#allocation53_spill] sm:$0xff] %v6784_v28  ;;  %v1925_v54 = vadd.f32 %v1827_v10, %v1692_v58  ;;  %v10534_v30 = vrot.slane %v6750_v20, 6  ;;  %v10536_v22 = vrot.slane %v10535_v29, 6  ;;  %v10000_v8 = vrot.slane %v6780_v31, 5  ;;  %v6819_v28 = vpop.permute.xlu1 %2528 }
 0x12f   : > { %10531 = vst [vmem:[#allocation21_spill] sm:$0xff] %v6798_v2  ;;  %v939_v40 = vsel %vm892_vm0, %v10532_v14, %v9995_v27  ;;  %v9999_v48 = vrot.slane %v6807_v43, 2  ;;  %v2663_v4 = vmul.f32 %v2514_v15, %v2447_v7  ;;  %v6826_v17 = vmul.f32 %v5394_v1, %v6115_v57 }
 0x130   : > { %v2275_v10 = vsel %vm2254_vm4, %v10536_v22, %v10534_v30  ;;  %v1024_v58 = vadd.f32 %v939_v40, %v800_v32  ;;  %v2149_v14 = vadd.f32 %v2051_v62, %v1925_v54  ;;  %v523_v22 = vmul.f32 %v5404_v5, %v10504_v49  ;;  %v10537_v32 = vld [vmem:[#allocation47_spill] sm:$0xff] }
 0x131   : > { %v10538_v40 = vrot.slane %v10537_v32, 1  ;;  %v10539_v30 = vrot.slane %v10503_v39, 1  ;;  %v6837_v54 = vmul.f32 %v5400_v3, %v6657_v53  ;;  %v10541_v15 = vrot.slane %v6770_v52, 4  ;;  %2742 = vst.msk [vmem:[#allocation2 + $0x4b] sm:$0xff] %vm2692_vm6, %v2663_v4 }
 0x132   : > { %v2373_v29 = vadd.f32 %v2275_v10, %v2149_v14  ;;  %v10542_v7 = vrot.slane %v6469_v45, 4  ;;  %v10543_v27 = vrot.slane %v6433_v11, 2  ;;  %v10544_v39 = vrot.slane %v6484_v33, 5 }
 0x133   : > { %v691_v62 = vsel %vm668_vm5, %v10539_v30, %v10538_v40  ;;  %10540 = vst [vmem:[#allocation17_spill] sm:$0xff] %v6837_v54  ;;  %v2791_v30 = vld [vmem:[#allocation2 + $0xa0] sm:$0xff]  ;;  %v10547_v4 = vrot.slane %v6488_v44, 6  ;;  %v10548_v33 = vrot.slane %v6811_v24, 3  ;;  %v2793_v40 = vld [vmem:[#allocation2 + $0xb0] sm:$0xff]  ;;  %v10556_v24 = vld [vmem:[#allocation45_spill] sm:$0xff] }
 0x134   : > { %v1853_v38 = vsel %vm1573_vm2, %v10542_v7, %v10541_v15  ;;  %v1172_v32 = vsel %vm892_vm0, %v10543_v27, %v9999_v48  ;;  %v2077_v10 = vsel %vm2030_vm3, %v10544_v39, %v10000_v8  ;;  %v788_v45 = vadd.f32 %v691_v62, %v523_v22  ;;  %v2792_v15 = vld [vmem:[#allocation2 + $0xa8] sm:$0xff]  ;;  %v6856_v7 = vpop.permute.xlu0 %479 }
 0x135   : > { %v1257_v14 = vadd.f32 %v1172_v32, %v1024_v58  ;;  %10545 = vst [vmem:[#allocation22_spill] sm:$0xff] %v6856_v7  ;;  %v2413_v11 = vadd.f32 %v5991_v55, %v2373_v29  ;;  %v10546_v27 = vrot.slane %v6798_v2, 6  ;;  %v10549_v39 = vrot.slane %v6449_v16, 3  ;;  %v10550_v32 = vld [vmem:[#allocation56_spill] sm:$0xff]  ;;  %v2794_v29 = vld [vmem:[#allocation2 + $0xb8] sm:$0xff]  ;;  %v10553_v2 = vld [vmem:[#allocation43_spill] sm:$0xff] }
 0x136   : > { %v10551_v22 = vrot.slane %v10550_v32, 2  ;;  %v10552_v62 = vrot.slane %v6684_v50, 2  ;;  %v10554_v44 = vrot.slane %v10553_v2, 2  ;;  %v10557_v16 = vrot.slane %v10556_v24, 3  ;;  %v6896_v24 = vpop.permute.xlu2 %590 }
 0x137   : > { %v2301_v48 = vsel %vm2254_vm4, %v10547_v4, %v10546_v27  ;;  %v1396_v58 = vsel %vm1349_vm1, %v10549_v39, %v10548_v33  ;;  %v10555_v27 = vrot.slane %v6694_v34, 2  ;;  %v10558_v33 = vrot.slane %v6698_v21, 3  ;;  %10564 = vst [vmem:[#allocation19_spill] sm:$0xff] %v6896_v24 }
 0x138   : > { %v915_v8 = vsel %vm892_vm0, %v10552_v62, %v10551_v22  ;;  %v1481_v49 = vadd.f32 %v1396_v58, %v1257_v14  ;;  %v2449_v32 = vmax.f32 %v2413_v11, 0.0  ;;  %v10559_v50 = vrot.slane %v6826_v17, 4 }
 0x139   : > { %v1012_v54 = vadd.f32 %v915_v8, %v788_v45  ;;  %v1148_v4 = vsel %vm892_vm0, %v10555_v27, %v10554_v44  ;;  %v1372_v39 = vsel %vm1349_vm1, %v10558_v33, %v10557_v16  ;;  %v10560_v22 = vrot.slane %v6465_v19, 4 }
 0x13a   : > { %v10561_v8 = vrot.slane %v5825_v56, 4  ;;  %v10562_v2 = vrot.slane %v6715_v18, 4  ;;  %v6894_v45 = vpack.c.bf16 %v2792_v15, %v2791_v30  ;;  %v10565_v11 = vrot.slane %v6050_v61, 4 }
 0x13b   : > { %v1620_v14 = vsel %vm1573_vm2, %v10560_v22, %v10559_v50  ;;  %v1245_v58 = vadd.f32 %v1148_v4, %v1012_v54  ;;  %v10566_v62 = vrot.slane %v6724_v63, 4  ;;  %v6903_v44 = vpack.c.bf16 %v2794_v29, %v2793_v40 }
 0x13c   : > { %v1596_v34 = vsel %vm1573_vm2, %v10562_v2, %v10561_v8  ;;  %10563 = vst [vmem:[#allocation23_spill] sm:$0xff] %v6894_v45  ;;  %v1705_v21 = vadd.f32 %v1620_v14, %v1481_v49  ;;  %v2665_v56 = vmul.f32 %v6754_v25, %v2449_v32  ;;  %v10568_v18 = vrot.slane %v6054_v37, 5  ;;  %v6955_v2 = vpop.permute.xlu0 %494 }
 0x13d   : > { %v1829_v19 = vsel %vm1573_vm2, %v10566_v62, %v10565_v11  ;;  %10567 = vst [vmem:[#allocation49_spill] sm:$0xff] %v6903_v44  ;;  %v10569_v27 = vrot.slane %v6736_v51, 5  ;;  %v10570_v15 = vrot.slane %v6131_v35, 6  ;;  %v10571_v49 = vrot.slane %v6750_v20, 6  ;;  %v6926_v51 = vpop.permute.xlu1 %484 }
 0x13e   : > { %v6917_v63 = vshll.u32 %v6894_v45, 16  ;;  %v1938_v54 = vadd.f32 %v1853_v38, %v1705_v21  ;;  %v1469_v40 = vadd.f32 %v1372_v39, %v1245_v58  ;;  %v6920_v29 = vshll.u32 %v6903_v44, 16  ;;  %10575 = vst [vmem:[#allocation36_spill] sm:$0xff] %v6926_v51 }
 0x13f   : > { %v2053_v30 = vsel %vm2030_vm3, %v10569_v27, %v10568_v18  ;;  %v2277_v61 = vsel %vm2254_vm4, %v10571_v49, %v10570_v15  ;;  %v6924_v37 = vmul.f32 %v5400_v3, %v6896_v24  ;;  %2744 = vst.msk [vmem:[#allocation2 + $0x5b] sm:$0xff] %vm2692_vm6, %v2665_v56  ;;  %v6931_v20 = vshrl.u32 %v6894_v45, 16  ;;  %v10583_v15 = vld [vmem:[#allocation87_spill] sm:$0xff]  ;;  %v10584_v49 = vld [vmem:[#allocation82_spill] sm:$0xff] }
 0x140   : > { %10572 = vst [vmem:[#allocation52_spill] sm:$0xff] %v6917_v63  ;;  %v10005_v35 = vrot.slane %v6917_v63, 1  ;;  %v6935_v25 = vmul.f32 %v5406_v6, %v6896_v24  ;;  %v2162_v38 = vadd.f32 %v2077_v10, %v1938_v54  ;;  %v1693_v4 = vadd.f32 %v1596_v34, %v1469_v40 }
 0x141   : > { %10573 = vst [vmem:[#allocation54_spill] sm:$0xff] %v6920_v29  ;;  %v10006_v16 = vrot.slane %v6920_v29, 1  ;;  %v6940_v33 = vmul.f32 %v5390_v60, %v6896_v24  ;;  %v6947_v32 = vmul.f32 %v5400_v3, %v6856_v7  ;;  %v6952_v10 = vmul.f32 %v5400_v3, %v6926_v51 }
 0x142   : > { %10574 = vst [vmem:[#allocation34_spill] sm:$0xff] %v6924_v37  ;;  %v2921_v39 = vor.u32 %v6931_v20, %v10005_v35  ;;  %v2386_v22 = vadd.f32 %v2301_v48, %v2162_v38  ;;  %v1926_v14 = vadd.f32 %v1829_v19, %v1693_v4  ;;  %v6959_v34 = vmul.f32 %v5416_v9, %v10474_v46 }
 0x143   : > { %10576 = vst [vmem:[#allocation37_spill] sm:$0xff] %v6931_v20  ;;  %v6966_v58 = vmul.f32 %v5426_v12, %v10474_v46  ;;  %v6970_v48 = vmul.f32 %v5428_v13, %v10474_v46  ;;  %v6974_v11 = vmul.f32 %v5390_v60, %v6326_v26  ;;  %v6981_v18 = vmul.f32 %v5392_v0, %v6326_v26  ;;  %v10599_v20 = vld [vmem:[#allocation73_spill] sm:$0xff] }
 0x144   : > { %10577 = vst [vmem:[#allocation47_spill] sm:$0xff] %v6935_v25  ;;  %v2926_v21 = vsel %vm2834_vm7, %v2921_v39, %v10006_v16  ;;  %v2426_v62 = vadd.f32 %v5991_v55, %v2386_v22  ;;  %v2150_v19 = vadd.f32 %v2053_v30, %v1926_v14  ;;  %v6985_v27 = vmul.f32 %v5400_v3, %v6955_v2 }
 0x145   : > { %10578 = vst [vmem:[#allocation56_spill] sm:$0xff] %v6940_v33  ;;  %5053 = vmatmul.msk.bf16.vlgmr.msra.gmra.mxu2 %vm2692_vm6, %v2926_v21  ;;  %v1004_v54 = vadd.f32 %v10584_v49, %v10583_v15  ;;  %v10007_v40 = vrot.slane %v6974_v11, 2  ;;  %v6992_v30 = vmul.f32 %v5394_v1, %v6326_v26  ;;  %v10009_v39 = vrot.slane %v6959_v34, 4  ;;  %v10597_v21 = vld [vmem:[#allocation31_spill] sm:$0xff] }
 0x146   : > { %10579 = vst [vmem:[#allocation43_spill] sm:$0xff] %v6947_v32  ;;  %v2462_v38 = vmax.f32 %v2426_v62, 0.0  ;;  %v2374_v4 = vadd.f32 %v2277_v61, %v2150_v19  ;;  %v10010_v22 = vrot.slane %v6981_v18, 3  ;;  %v10008_v14 = vrot.slane %v6966_v58, 5  ;;  %v2782_v56 = vld [vmem:[#allocation2 + $0x58] sm:$0xff] }
 0x147   : > { %10580 = vst [vmem:[#allocation45_spill] sm:$0xff] %v6952_v10  ;;  %v10585_v15 = vrot.slane %v6538_v42, 2  ;;  %v10013_v35 = vrot.slane %v6992_v30, 4  ;;  %v10586_v62 = vrot.slane %v6518_v23, 4  ;;  %v10587_v42 = vrot.slane %v6530_v41, 5 }
 0x148   : > { %10581 = vst [vmem:[#allocation97_spill] sm:$0xff] %v6955_v2  ;;  %v2678_v8 = vmul.f32 %v6787_v59, %v2462_v38  ;;  %v2414_v61 = vadd.f32 %v5991_v55, %v2374_v4  ;;  %v10588_v59 = vrot.slane %v6542_v47, 3  ;;  %v10589_v38 = vld [vmem:[#allocation4_spill] sm:$0xff]  ;;  %v7178_v33 = vmul.f32 %v5428_v13, %v6926_v51 }
 0x149   : > { %10582 = vst [vmem:[#allocation98_spill] sm:$0xff] %v6985_v27  ;;  %v1132_v49 = vsel %vm892_vm0, %v10585_v15, %v10007_v40  ;;  %v1813_v19 = vsel %vm1573_vm2, %v10586_v62, %v10009_v39  ;;  %v2037_v15 = vsel %vm2030_vm3, %v10587_v42, %v10008_v14  ;;  %v10590_v23 = vrot.slane %v10589_v38, 4  ;;  %v10593_v62 = vld [vmem:[#allocation72_spill] sm:$0xff]  ;;  %v10595_v14 = vld [vmem:[#allocation71_spill] sm:$0xff]  ;;  %v10596_v39 = vld [vmem:[#allocation77_spill] sm:$0xff] }
 0x14a   : > { %v1237_v50 = vadd.f32 %v1132_v49, %v1004_v54  ;;  %v1356_v55 = vsel %vm1349_vm1, %v10588_v59, %v10010_v22  ;;  %v10591_v54 = vld [vmem:[#allocation79_spill] sm:$0xff]  ;;  %v10594_v16 = vrot.slane %v10593_v62, 2  ;;  %2757 = vst.msk [vmem:[#allocation2 + $0xc3] sm:$0xff] %vm2692_vm6, %v2678_v8  ;;  %v2450_v42 = vmax.f32 %v2414_v61, 0.0  ;;  %v2781_v22 = vld [vmem:[#allocation2 + $0x50] sm:$0xff] }
 0x14b   : > { %v1580_v4 = vsel %vm1573_vm2, %v10590_v23, %v10013_v35  ;;  %v10592_v49 = vrot.slane %v10591_v54, 2  ;;  %v1733_v59 = vmul.f32 %v5416_v9, %v10596_v39  ;;  %v10598_v38 = vrot.slane %v10597_v21, 3  ;;  %v10603_v21 = vld [vmem:[#allocation80_spill] sm:$0xff]  ;;  %10638 = vst [vmem:[#allocation100_spill] sm:$0xff] %v7178_v33 }
 0x14c   : > { %v1461_v40 = vadd.f32 %v1356_v55, %v1237_v50  ;;  %v10600_v23 = vrot.slane %v10599_v20, 3  ;;  %v1956_v62 = vmul.f32 %v5426_v12, %v10596_v39  ;;  %v7044_v8 = vpack.c.bf16 %v2782_v56, %v2781_v22  ;;  %v10605_v20 = vld [vmem:[#allocation74_spill] sm:$0xff]  ;;  %v10609_v56 = vld [vmem:[#allocation9_spill] sm:$0xff] }
 0x14d   : > { %v1128_v41 = vsel %vm892_vm0, %v10594_v16, %v10592_v49  ;;  %v2180_v16 = vmul.f32 %v5428_v13, %v10596_v39  ;;  %v2666_v50 = vmul.f32 %v6819_v28, %v2450_v42  ;;  %v1807_v55 = vrot.slane %v1733_v59, 4  ;;  %v7047_v49 = vpop.permute.xlu0 %499 }
 0x14e   : > { %v1235_v47 = vadd.f32 %v1128_v41, %v10595_v14  ;;  %v1352_v54 = vsel %vm1349_vm1, %v10600_v23, %v10598_v38  ;;  %10601 = vst [vmem:[#allocation87_spill] sm:$0xff] %v7044_v8  ;;  %v1685_v14 = vadd.f32 %v1580_v4, %v1461_v40  ;;  %v10604_v41 = vrot.slane %v10603_v21, 4  ;;  %v10615_v21 = vld [vmem:[#allocation90_spill] sm:$0xff] }
 0x14f   : > { %10602 = vst [vmem:[#allocation82_spill] sm:$0xff] %v7047_v49  ;;  %v10606_v35 = vrot.slane %v10605_v20, 4  ;;  %v2031_v23 = vrot.slane %v1956_v62, 5  ;;  %v2255_v45 = vrot.slane %v2180_v16, 6  ;;  %v7055_v63 = vshll.u32 %v7044_v8, 16 }
 0x150   : > { %v1459_v61 = vadd.f32 %v1352_v54, %v1235_v47  ;;  %2745 = vst.msk [vmem:[#allocation2 + $0x63] sm:$0xff] %vm2692_vm6, %v2666_v50  ;;  %v10608_v28 = vrot.slane %v6970_v48, 6  ;;  %v10610_v40 = vrot.slane %v10609_v56, 6  ;;  %v1918_v4 = vadd.f32 %v1813_v19, %v1685_v14  ;;  %v10611_v47 = vld [vmem:[#allocation88_spill] sm:$0xff] }
 0x151   : > { %v1576_v38 = vsel %vm1573_vm2, %v10606_v35, %v10604_v41  ;;  %10607 = vst [vmem:[#allocation4_spill] sm:$0xff] %v7055_v63  ;;  %v10612_v59 = vrot.slane %v10611_v47, 4  ;;  %v10613_v35 = vld [vmem:[#allocation89_spill] sm:$0xff]  ;;  %v10616_v41 = vrot.slane %v10615_v21, 6  ;;  %v7073_v20 = vshrl.u32 %v7044_v8, 16 }
 0x152   : > { %v2261_v22 = vsel %vm2254_vm4, %v10610_v40, %v10608_v28  ;;  %v1683_v42 = vadd.f32 %v1576_v38, %v1459_v61  ;;  %v10614_v62 = vrot.slane %v10613_v35, 5  ;;  %v7077_v28 = vmul.f32 %v5400_v3, %v7047_v49  ;;  %v2479_v61 = vpop.permute.xlu1 %2478  ;;  %v2489_v35 = vpop.permute.xlu2 %2488 }
 0x153   : > { %v1809_v54 = vsel %vm1573_vm2, %v1807_v55, %v10612_v59  ;;  %v2257_v50 = vsel %vm2254_vm4, %v2255_v45, %v10616_v41  ;;  %10617 = vst [vmem:[#allocation79_spill] sm:$0xff] %v7073_v20  ;;  %v2142_v19 = vadd.f32 %v2037_v15, %v1918_v4  ;;  %v7081_v55 = vmul.f32 %v5390_v60, %v6216_v36 }
 0x154   : > { %v2033_v16 = vsel %vm2030_vm3, %v2031_v23, %v10614_v62  ;;  %10618 = vst [vmem:[#allocation72_spill] sm:$0xff] %v7077_v28  ;;  %v1916_v14 = vadd.f32 %v1809_v54, %v1683_v42  ;;  %v7085_v38 = vmul.f32 %v5390_v60, %v6657_v53  ;;  %v10027_v45 = vrot.slane %v7055_v63, 1  ;;  %v10620_v23 = vld [vmem:[#allocation46_spill] sm:$0xff] }
 0x155   : > { %v7090_v56 = vmul.f32 %v5406_v6, %v10620_v23  ;;  %v7094_v40 = vmul.f32 %v5392_v0, %v6216_v36  ;;  %v7098_v15 = vmul.f32 %v5392_v0, %v6657_v53  ;;  %v2366_v4 = vadd.f32 %v2261_v22, %v2142_v19  ;;  %v7115_v22 = vld [vmem:[%s9831_s2] ss:$0 sm:$0xff]  ;;  %v10624_v19 = vld [vmem:[#allocation55_spill] sm:$0xff] }
 0x156   : > { %10619 = vst [vmem:[#allocation71_spill] sm:$0xff] %v7085_v38  ;;  %v2140_v42 = vadd.f32 %v2033_v16, %v1916_v14  ;;  %v7106_v62 = vmul.f32 %v5394_v1, %v6216_v36  ;;  %v7110_v21 = vmul.f32 %v5394_v1, %v6657_v53  ;;  %v7121_v54 = vmul.f32 %v5416_v9, %v6856_v7 }
 0x157   : > { %10621 = vst [vmem:[#allocation31_spill] sm:$0xff] %v7090_v56  ;;  %v2406_v16 = vadd.f32 %v7115_v22, %v2366_v4  ;;  %v2783_v47 = vld [vmem:[#allocation2 + $0x60] sm:$0xff]  ;;  %v2784_v59 = vld [vmem:[#allocation2 + $0x68] sm:$0xff]  ;;  %v2881_v8 = vor.u32 %v7073_v20, %v10027_v45  ;;  %v10626_v37 = vrot.slane %v7085_v38, 2  ;;  %v10627_v4 = vrot.slane %v7081_v55, 2 }
 0x158   : > { %10622 = vst [vmem:[#allocation73_spill] sm:$0xff] %v7098_v15  ;;  %v2364_v41 = vadd.f32 %v2257_v50, %v2140_v42  ;;  %v10628_v42 = vrot.slane %v7098_v15, 3  ;;  %v10629_v14 = vrot.slane %v7094_v40, 3  ;;  %v7138_v63 = vpack.c.bf16 %v2784_v59, %v2783_v47  ;;  %v10634_v47 = vld [vmem:[#allocation75_spill] sm:$0xff]  ;;  %v10646_v15 = vld [vmem:[#allocation60_spill] sm:$0xff] }
 0x159   : > { %10623 = vst [vmem:[#allocation80_spill] sm:$0xff] %v7110_v21  ;;  %v1178_v50 = vsel %vm892_vm0, %v10627_v4, %v10626_v37  ;;  %v2442_v26 = vmax.f32 %v2406_v16, 0.0  ;;  %v7145_v37 = vmul.f32 %v5426_v12, %v6856_v7  ;;  %v7149_v4 = vmul.f32 %v5428_v13, %v6856_v7 }
 0x15a   : > { %10625 = vst [vmem:[#allocation74_spill] sm:$0xff] %v7121_v54  ;;  %v1402_v28 = vsel %vm1349_vm1, %v10629_v14, %v10628_v42  ;;  %v2404_v46 = vadd.f32 %v7115_v22, %v2364_v41  ;;  %v7152_v41 = vshll.u32 %v7138_v63, 16  ;;  %v10037_v59 = vrot.slane %v10634_v47, 1  ;;  %v7180_v24 = vpop.permute.xlu1 %504 }
 0x15b   : > { %10630 = vst [vmem:[#allocation9_spill] sm:$0xff] %v7138_v63  ;;  %v2658_v14 = vmul.f32 %v2489_v35, %v2442_v26  ;;  %v538_v42 = vmul.f32 %v5404_v5, %v6115_v57  ;;  %v7159_v20 = vmul.f32 %v5406_v6, %v6115_v57  ;;  %v7163_v45 = vmul.f32 %v5416_v9, %v6926_v51 }
 0x15c   : > { %10631 = vst [vmem:[#allocation88_spill] sm:$0xff] %v7145_v37  ;;  %v2440_v16 = vmax.f32 %v2404_v46, 0.0  ;;  %v7167_v26 = vmul.f32 %v5426_v12, %v6926_v51  ;;  %v10637_v25 = vrot.slane %v10624_v19, 1  ;;  %v10640_v27 = vrot.slane %v7110_v21, 4  ;;  %v10647_v21 = vld [vmem:[#allocation58_spill] sm:$0xff] }
 0x15d   : > { %10632 = vst [vmem:[#allocation89_spill] sm:$0xff] %v7149_v4  ;;  %v10641_v63 = vrot.slane %v7106_v62, 4  ;;  %v10041_v35 = vrot.slane %v7159_v20, 2  ;;  %v7216_v38 = vmul.f32 %v5416_v9, %v6657_v53  ;;  %v7242_v36 = vmul.f32 %v5392_v0, %v10620_v23 }
 0x15e   : > { %10633 = vst [vmem:[#allocation90_spill] sm:$0xff] %v7152_v41  ;;  %v2656_v46 = vmul.f32 %v2479_v61, %v2440_v16  ;;  %v721_v57 = vsel %vm668_vm5, %v10037_v59, %v10637_v25  ;;  %v10642_v25 = vrot.slane %v7152_v41, 1  ;;  %v10653_v44 = vrot.slane %v7163_v45, 4 }
 0x15f   : > { %10635 = vst [vmem:[#allocation75_spill] sm:$0xff] %v7163_v45  ;;  %v1626_v61 = vsel %vm1573_vm2, %v10641_v63, %v10640_v27  ;;  %v803_v16 = vadd.f32 %v721_v57, %v538_v42  ;;  %v10643_v63 = vrot.slane %v7090_v56, 2  ;;  %v10659_v19 = vrot.slane %v7178_v33, 6 }
 0x160   : > { %10636 = vst [vmem:[#allocation99_spill] sm:$0xff] %v7167_v26  ;;  %v2886_v59 = vsel %vm2834_vm7, %v2881_v8, %v10642_v25  ;;  %v10645_v8 = vld [vmem:[#allocation61_spill] sm:$0xff] }
 0x161   : > { %2737 = vst.msk [vmem:[#allocation2 + $0x23] sm:$0xff] %vm2692_vm6, %v2658_v14  ;;  %5048 = vmatmul.msk.bf16.vlgmr.msra.gmra.mxu1 %vm2692_vm6, %v2886_v59  ;;  %v945_v27 = vsel %vm892_vm0, %v10041_v35, %v10643_v63  ;;  %v10046_v57 = vrot.slane %v10645_v8, 1  ;;  %v536_v14 = vmul.f32 %v5404_v5, %v10646_v15  ;;  %v7212_v59 = vmul.f32 %v5406_v6, %v10647_v21  ;;  %v10649_v63 = vld [vmem:[#allocation63_spill] sm:$0xff] }
 0x162   : > { %10639 = vst [vmem:[#allocation101_spill] sm:$0xff] %v7180_v24  ;;  %v1027_v25 = vadd.f32 %v945_v27, %v803_v16  ;;  %v10650_v35 = vrot.slane %v10649_v63, 1  ;;  %v7225_v16 = vmul.f32 %v5426_v12, %v6657_v53  ;;  %v7229_v15 = vmul.f32 %v5428_v13, %v6657_v53 }
 0x163   : > { %2735 = vst.msk [vmem:[#allocation2 + $0x13] sm:$0xff] %vm2692_vm6, %v2656_v46  ;;  %v7205_v46 = vmul.f32 %v5400_v3, %v7180_v24  ;;  %v7233_v27 = vmul.f32 %v5390_v60, %v10620_v23  ;;  %v10055_v56 = vrot.slane %v7212_v59, 2  ;;  %v10657_v63 = vrot.slane %v7167_v26, 5 }
 0x164   : > { %10648 = vst [vmem:[#allocation61_spill] sm:$0xff] %v7216_v38  ;;  %v717_v42 = vsel %vm668_vm5, %v10650_v35, %v10046_v57  ;;  %v7256_v57 = vmul.f32 %v5394_v1, %v10620_v23  ;;  %v10061_v26 = vrot.slane %v7242_v36, 3  ;;  %v10663_v53 = vrot.slane %v7216_v38, 4 }
 0x165   : > { %10644 = vst [vmem:[#allocation102_spill] sm:$0xff] %v7205_v46  ;;  %v1260_v46 = vadd.f32 %v1178_v50, %v1027_v25  ;;  %v801_v41 = vadd.f32 %v717_v42, %v536_v14  ;;  %v10654_v50 = vrot.slane %v7121_v54, 4  ;;  %v10655_v42 = vld [vmem:[#allocation51_spill] sm:$0xff]  ;;  %v10665_v33 = vrot.slane %v7225_v16, 5 }
 0x166   : > { %10651 = vst [vmem:[#allocation60_spill] sm:$0xff] %v7225_v16  ;;  %v10656_v25 = vrot.slane %v10655_v42, 2  ;;  %v10661_v42 = vrot.slane %v7233_v27, 2  ;;  %v10726_v16 = vld [vmem:[#allocation86_spill] sm:$0xff] }
 0x167   : > { %10652 = vst [vmem:[#allocation58_spill] sm:$0xff] %v7229_v15  ;;  %v1484_v29 = vadd.f32 %v1402_v28, %v1260_v46  ;;  %v1859_v14 = vsel %vm1573_vm2, %v10654_v50, %v10653_v44  ;;  %v10658_v28 = vrot.slane %v7145_v37, 5  ;;  %v10660_v44 = vrot.slane %v7149_v4, 6 }
 0x168   : > { %v941_v35 = vsel %vm892_vm0, %v10656_v25, %v10055_v56  ;;  %v10662_v25 = vrot.slane %v6807_v43, 2  ;;  %v10064_v43 = vrot.slane %v7256_v57, 4  ;;  %v10727_v37 = vrot.slane %v10726_v16, 6  ;;  %v10731_v16 = vld [vmem:[#allocation68_spill] sm:$0xff] }
 0x169   : > { %v2083_v46 = vsel %vm2030_vm3, %v10658_v28, %v10657_v63  ;;  %v2307_v50 = vsel %vm2254_vm4, %v10660_v44, %v10659_v19  ;;  %v1025_v45 = vadd.f32 %v941_v35, %v801_v41  ;;  %v1708_v23 = vadd.f32 %v1626_v61, %v1484_v29  ;;  %v2604_v35 = vpop.permute.xlu2 %2603  ;;  %v10668_v61 = vld [vmem:[#allocation21_spill] sm:$0xff] }
 0x16a   : > { %v1174_v56 = vsel %vm892_vm0, %v10662_v25, %v10661_v42  ;;  %v10664_v63 = vrot.slane %v6770_v52, 4  ;;  %v10666_v19 = vrot.slane %v6780_v31, 5  ;;  %v10667_v29 = vrot.slane %v7229_v15, 6 }
 0x16b   : > { %v1258_v44 = vadd.f32 %v1174_v56, %v1025_v45  ;;  %v10669_v42 = vrot.slane %v10668_v61, 6  ;;  %v542_v52 = vmul.f32 %v5404_v5, %v6856_v7  ;;  %v7303_v56 = vmul.f32 %v5390_v60, %v6955_v2 }
 0x16c   : > { %v1855_v28 = vsel %vm1573_vm2, %v10664_v63, %v10663_v53  ;;  %v2079_v41 = vsel %vm2030_vm3, %v10666_v19, %v10665_v33  ;;  %v1941_v53 = vadd.f32 %v1859_v14, %v1708_v23  ;;  %v10670_v63 = vld [vmem:[#allocation57_spill] sm:$0xff]  ;;  %v10672_v19 = vld [vmem:[#allocation91_spill] sm:$0xff]  ;;  %v7315_v14 = vmul.f32 %v5392_v0, %v6955_v2 }
 0x16d   : > { %v2303_v25 = vsel %vm2254_vm4, %v10669_v42, %v10667_v29  ;;  %v10671_v31 = vrot.slane %v10670_v63, 3  ;;  %v7299_v45 = vmul.f32 %v5390_v60, %v10672_v19  ;;  %10674 = vst [vmem:[#allocation51_spill] sm:$0xff] %v7303_v56  ;;  %v7307_v29 = vmul.f32 %v5406_v6, %v6856_v7 }
 0x16e   : > { %v7311_v23 = vmul.f32 %v5392_v0, %v10672_v19  ;;  %10677 = vst [vmem:[#allocation103_spill] sm:$0xff] %v7315_v14  ;;  %v2165_v42 = vadd.f32 %v2083_v46, %v1941_v53  ;;  %v10678_v63 = vrot.slane %v6826_v17, 4  ;;  %v7331_v46 = vmul.f32 %v5394_v1, %v6955_v2 }
 0x16f   : > { %v1398_v33 = vsel %vm1349_vm1, %v10671_v31, %v10061_v26  ;;  %10673 = vst [vmem:[#allocation63_spill] sm:$0xff] %v7299_v45  ;;  %v10067_v15 = vrot.slane %v7299_v45, 2  ;;  %v2774_v45 = vld [vmem:[#allocation2 + $0x18] sm:$0xff] }
 0x170   : > { %v1482_v61 = vadd.f32 %v1398_v33, %v1258_v44  ;;  %10675 = vst [vmem:[#allocation21_spill] sm:$0xff] %v7307_v29  ;;  %v1622_v31 = vsel %vm1573_vm2, %v10678_v63, %v10064_v43  ;;  %v7325_v33 = vmul.f32 %v5394_v1, %v10672_v19  ;;  %v2389_v53 = vadd.f32 %v2307_v50, %v2165_v42 }
 0x171   : > { %10676 = vst [vmem:[#allocation57_spill] sm:$0xff] %v7311_v23  ;;  %v10068_v63 = vrot.slane %v7311_v23, 3  ;;  %v7337_v43 = vmul.f32 %v5416_v9, %v7047_v49  ;;  %v10683_v42 = vrot.slane %v7315_v14, 3  ;;  %v7365_v19 = vmul.f32 %v5428_v13, %v7047_v49  ;;  %v7376_v14 = vpop.permute.xlu2 %2623 }
 0x172   : > { %10679 = vst [vmem:[#allocation104_spill] sm:$0xff] %v7325_v33  ;;  %v1706_v26 = vadd.f32 %v1622_v31, %v1482_v61  ;;  %v10682_v31 = vrot.slane %v7303_v56, 2  ;;  %v2429_v50 = vadd.f32 %v7115_v22, %v2389_v53  ;;  %v7361_v53 = vmul.f32 %v5406_v6, %v6926_v51  ;;  %v2772_v56 = vld [vmem:[#allocation2 + $0x8] sm:$0xff] }
 0x173   : > { %10680 = vst [vmem:[#allocation105_spill] sm:$0xff] %v7331_v46  ;;  %v1410_v17 = vsel %vm1349_vm1, %v10068_v63, %v10683_v42  ;;  %v10687_v42 = vrot.slane %v6947_v32, 1  ;;  %v2771_v63 = vld [vmem:[#allocation2] sm:$0xff] }
 0x174   : > { %10681 = vst [vmem:[#allocation106_spill] sm:$0xff] %v7337_v43  ;;  %v1939_v44 = vadd.f32 %v1855_v28, %v1706_v26  ;;  %v1186_v4 = vsel %vm892_vm0, %v10067_v15, %v10682_v31  ;;  %v10076_v28 = vrot.slane %v6952_v10, 1  ;;  %v7357_v31 = vmul.f32 %v5426_v12, %v7047_v49  ;;  %v2773_v10 = vld [vmem:[#allocation2 + $0x10] sm:$0xff] }
 0x175   : > { %10685 = vst [vmem:[#allocation108_spill] sm:$0xff] %v7361_v53  ;;  %v2465_v15 = vmax.f32 %v2429_v50, 0.0  ;;  %v10085_v23 = vrot.slane %v7361_v53, 2  ;;  %v7381_v49 = vmul.f32 %v5426_v12, %v7180_v24  ;;  %v10697_v53 = vrot.slane %v7337_v43, 4 }
 0x176   : > { %v2163_v61 = vadd.f32 %v2079_v41, %v1939_v44  ;;  %10684 = vst [vmem:[#allocation107_spill] sm:$0xff] %v7357_v31  ;;  %v729_v41 = vsel %vm668_vm5, %v10687_v42, %v10076_v28  ;;  %v7374_v44 = vmul.f32 %v5416_v9, %v7180_v24  ;;  %v10690_v42 = vrot.slane %v7331_v46, 4 }
 0x177   : > { %10686 = vst [vmem:[#allocation109_spill] sm:$0xff] %v7365_v19  ;;  %v807_v50 = vadd.f32 %v729_v41, %v542_v52  ;;  %v2681_v32 = vmul.f32 %v2604_v35, %v2465_v15  ;;  %v10691_v28 = vrot.slane %v7325_v33, 4  ;;  %v7391_v52 = vmul.f32 %v5428_v13, %v7180_v24 }
 0x178   : > { %10688 = vst [vmem:[#allocation110_spill] sm:$0xff] %v7374_v44  ;;  %v2387_v26 = vadd.f32 %v2303_v25, %v2163_v61  ;;  %v10693_v15 = vrot.slane %v7307_v29, 2  ;;  %v7400_v46 = vpack.c.bf16 %v2772_v56, %v2771_v63  ;;  %v7405_v33 = vpack.c.bf16 %v2774_v45, %v2773_v10 }
 0x179   : > { %10689 = vst [vmem:[#allocation111_spill] sm:$0xff] %v7381_v49  ;;  %v1634_v51 = vsel %vm1573_vm2, %v10691_v28, %v10690_v42  ;;  %v2594_v28 = vpop.permute.xlu0 %2593  ;;  %v10696_v41 = vrot.slane %v7374_v44, 4  ;;  %v10700_v42 = vld [vmem:[#allocation38_spill] sm:$0xff]  ;;  %v10701_v44 = vld [vmem:[#allocation27_spill] sm:$0xff] }
 0x17a   : > { %10692 = vst [vmem:[#allocation112_spill] sm:$0xff] %v7391_v52  ;;  %v2427_v61 = vadd.f32 %v7115_v22, %v2387_v26  ;;  %v953_v35 = vsel %vm892_vm0, %v10693_v15, %v10085_v23  ;;  %v2836_v56 = vshrl.u32 %v7400_v46, 16  ;;  %v2838_v63 = vshll.u32 %v7400_v46, 16 }
 0x17b   : > { %10694 = vst [vmem:[#allocation113_spill] sm:$0xff] %v7400_v46  ;;  %v1031_v25 = vadd.f32 %v953_v35, %v807_v50  ;;  %v1867_v29 = vsel %vm1573_vm2, %v10697_v53, %v10696_v41  ;;  %v10087_v50 = vshll.u32 %v7405_v33, 16  ;;  %v10698_v35 = vld [vmem:[#allocation16_spill] sm:$0xff]  ;;  %v694_v24 = vrot.slane %v10700_v42, 1 }
 0x17c   : > { %2760 = vst.msk [vmem:[#allocation2 + $0xdb] sm:$0xff] %vm2692_vm6, %v2681_v32  ;;  %v2463_v26 = vmax.f32 %v2427_v61, 0.0  ;;  %v525_v10 = vmul.f32 %v5404_v5, %v10698_v35  ;;  %v7418_v61 = vpop.permute.xlu1 %509  ;;  %v2840_v23 = vrot.slane %v2838_v63, 1  ;;  %v7423_v53 = vmul.f32 %v5406_v6, %v10701_v44 }
 0x17d   : > { %10695 = vst [vmem:[#allocation114_spill] sm:$0xff] %v7405_v33  ;;  %v1264_v32 = vadd.f32 %v1186_v4, %v1031_v25  ;;  %v7427_v4 = vrot.slane %v10087_v50, 1  ;;  %v10703_v25 = vld [vmem:[#allocation18_spill] sm:$0xff]  ;;  %v10706_v46 = vrot.slane %v7381_v49, 5  ;;  %v10707_v33 = vrot.slane %v7357_v31, 5 }
 0x17e   : > { %v2679_v45 = vmul.f32 %v2594_v28, %v2463_v26  ;;  %10699 = vst [vmem:[#allocation16_spill] sm:$0xff] %v7418_v61  ;;  %v7431_v15 = vmul.f32 %v5416_v9, %v10703_v25  ;;  %v7435_v28 = vmul.f32 %v5426_v12, %v10703_v25  ;;  %v2841_v42 = vor.u32 %v2840_v23, %v2836_v56  ;;  %v10704_v26 = vld [vmem:[#allocation25_spill] sm:$0xff] }
 0x17f   : > { %v1488_v41 = vadd.f32 %v1410_v17, %v1264_v32  ;;  %10702 = vst [vmem:[#allocation38_spill] sm:$0xff] %v7427_v4  ;;  %v10705_v63 = vrot.slane %v10704_v26, 1  ;;  %v918_v17 = vrot.slane %v7423_v53, 2  ;;  %v7444_v32 = vmul.f32 %v5428_v13, %v10703_v25 }
 0x180   : > { %2758 = vst.msk [vmem:[#allocation2 + $0xcb] sm:$0xff] %vm2692_vm6, %v2679_v45  ;;  %v2091_v43 = vsel %vm2030_vm3, %v10707_v33, %v10706_v46  ;;  %v7453_v23 = vmul.f32 %v5400_v3, %v7418_v61  ;;  %v10709_v45 = vrot.slane %v7391_v52, 6  ;;  %v10710_v53 = vrot.slane %v7365_v19, 6  ;;  %v7465_v33 = vpop.permute.xlu2 %1043  ;;  %v10713_v3 = vld [vmem:[#allocation35_spill] sm:$0xff] }
 0x181   : > { %v695_v35 = vsel %vm668_vm5, %v10705_v63, %v694_v24  ;;  %v1712_v50 = vadd.f32 %v1634_v51, %v1488_v41  ;;  %v2846_v51 = vsel %vm2834_vm7, %v2841_v42, %v7427_v4  ;;  %v10711_v63 = vld [vmem:[#allocation59_spill] sm:$0xff]  ;;  %10712 = vst [vmem:[#allocation18_spill] sm:$0xff] %v7465_v33  ;;  %v10725_v7 = vrot.slane %v7444_v32, 6 }
 0x182   : > { %10708 = vst [vmem:[#allocation27_spill] sm:$0xff] %v7453_v23  ;;  %v790_v56 = vadd.f32 %v695_v35, %v525_v10  ;;  %v2315_v26 = vsel %vm2254_vm4, %v10710_v53, %v10709_v45  ;;  %v1065_v49 = vmul.f32 %v5390_v60, %v10711_v63  ;;  %5043 = vmatmul.msk.bf16.vlgmr.msra.gmra.mxu0 %vm2692_vm6, %v2846_v51  ;;  %v10714_v10 = vrot.slane %v10713_v3, 2  ;;  %v10723_v45 = vld [vmem:[#allocation66_spill] sm:$0xff] }
 0x183   : > { %v1945_v46 = vadd.f32 %v1867_v29, %v1712_v50  ;;  %v10109_v23 = vrot.slane %v7435_v28, 5  ;;  %v1288_v41 = vmul.f32 %v5392_v0, %v10711_v63  ;;  %v1512_v4 = vmul.f32 %v5394_v1, %v10711_v63 }
 0x184   : > { %v919_v35 = vsel %vm892_vm0, %v10714_v10, %v918_v17  ;;  %v1151_v42 = vrot.slane %v1065_v49, 2  ;;  %v7479_v29 = vmul.f32 %v5390_v60, %v7465_v33  ;;  %v7483_v50 = vmul.f32 %v5392_v0, %v7465_v33 }
 0x185   : > { %v1014_v53 = vadd.f32 %v919_v35, %v790_v56  ;;  %v2169_v52 = vadd.f32 %v2091_v43, %v1945_v46  ;;  %v7487_v51 = vmul.f32 %v5394_v1, %v7465_v33  ;;  %v10718_v49 = vrot.slane %v7431_v15, 4  ;;  %v10719_v56 = vld [vmem:[#allocation84_spill] sm:$0xff]  ;;  %v10721_v43 = vld [vmem:[#allocation85_spill] sm:$0xff] }
 0x186   : > { %10715 = vst [vmem:[#allocation25_spill] sm:$0xff] %v7479_v29  ;;  %v10720_v3 = vrot.slane %v10719_v56, 4  ;;  %v10722_v46 = vrot.slane %v10721_v43, 5  ;;  %v10724_v61 = vrot.slane %v10723_v45, 2  ;;  %v1375_v31 = vrot.slane %v1288_v41, 3 }
 0x187   : > { %10716 = vst [vmem:[#allocation59_spill] sm:$0xff] %v7483_v50  ;;  %v2393_v2 = vadd.f32 %v2315_v26, %v2169_v52  ;;  %v2281_v56 = vsel %vm2254_vm4, %v10727_v37, %v10725_v7  ;;  %v10732_v41 = vrot.slane %v10731_v16, 4  ;;  %v526_v16 = vmul.f32 %v5404_v5, %v10701_v44 }
 0x188   : > { %10717 = vst [vmem:[#allocation35_spill] sm:$0xff] %v7487_v51  ;;  %v1833_v10 = vsel %vm1573_vm2, %v10720_v3, %v10718_v49  ;;  %v2057_v35 = vsel %vm2030_vm3, %v10722_v46, %v10109_v23  ;;  %v1152_v19 = vsel %vm892_vm0, %v10724_v61, %v1151_v42  ;;  %v1599_v49 = vrot.slane %v1512_v4, 4  ;;  %v10728_v3 = vld [vmem:[#allocation67_spill] sm:$0xff]  ;;  %v10738_v51 = vld [vmem:[#allocation32_spill] sm:$0xff] }
 0x189   : > { %v1247_v38 = vadd.f32 %v1152_v19, %v1014_v53  ;;  %v10729_v54 = vrot.slane %v10728_v3, 3  ;;  %v7514_v61 = vmul.f32 %v5416_v9, %v7465_v33  ;;  %v2433_v52 = vadd.f32 %v7115_v22, %v2393_v2  ;;  %v10733_v19 = vld [vmem:[#allocation70_spill] sm:$0xff]  ;;  %v10735_v3 = vld [vmem:[#allocation33_spill] sm:$0xff] }
 0x18a   : > { %v1600_v7 = vsel %vm1573_vm2, %v10732_v41, %v1599_v49  ;;  %v10111_v4 = vrot.slane %v10733_v19, 1  ;;  %v7528_v45 = vmul.f32 %v5390_v60, %v10735_v3  ;;  %v7532_v2 = vmul.f32 %v5392_v0, %v10735_v3 }
 0x18b   : > { %v1376_v43 = vsel %vm1349_vm1, %v10729_v54, %v1375_v31  ;;  %10730 = vst [vmem:[#allocation84_spill] sm:$0xff] %v7514_v61  ;;  %v10734_v54 = vld [vmem:[#allocation65_spill] sm:$0xff]  ;;  %v7538_v41 = vmul.f32 %v5394_v1, %v10735_v3  ;;  %v7549_v44 = vmul.f32 %v5426_v12, %v7465_v33 }
 0x18c   : > { %v1471_v26 = vadd.f32 %v1376_v43, %v1247_v38  ;;  %v7524_v53 = vmul.f32 %v5406_v6, %v10734_v54  ;;  %v2469_v38 = vmax.f32 %v2433_v52, 0.0  ;;  %v697_v37 = vsel %vm668_vm5, %v694_v24, %v10111_v4 }
 0x18d   : > { %10736 = vst [vmem:[#allocation85_spill] sm:$0xff] %v7538_v41  ;;  %v10114_v23 = vrot.slane %v7528_v45, 2  ;;  %v10118_v4 = vrot.slane %v7538_v41, 4  ;;  %v7560_v54 = vmul.f32 %v5416_v9, %v10738_v51  ;;  %v10841_v41 = vld [vmem:[#allocation43_spill] sm:$0xff] }
 0x18e   : > { %v1695_v43 = vadd.f32 %v1600_v7, %v1471_v26  ;;  %v10115_v46 = vrot.slane %v7524_v53, 2  ;;  %v2685_v52 = vmul.f32 %v7376_v14, %v2469_v38  ;;  %10737 = vst [vmem:[#allocation66_spill] sm:$0xff] %v7549_v44  ;;  %v791_v7 = vadd.f32 %v697_v37, %v526_v16  ;;  %v10743_v16 = vld [vmem:[#allocation39_spill] sm:$0xff] }
 0x18f   : > { %v1154_v24 = vsel %vm892_vm0, %v1151_v42, %v10114_v23  ;;  %10739 = vst [vmem:[#allocation86_spill] sm:$0xff] %v7560_v54  ;;  %v10740_v37 = vrot.slane %v7532_v2, 3  ;;  %v7577_v23 = vmul.f32 %v5416_v9, %v10743_v16  ;;  %v10750_v42 = vrot.slane %v7444_v32, 6 }
 0x190   : > { %v1928_v26 = vadd.f32 %v1833_v10, %v1695_v43  ;;  %v921_v19 = vsel %vm892_vm0, %v918_v17, %v10115_v46  ;;  %2764 = vst.msk [vmem:[#allocation2 + $0xfb] sm:$0xff] %vm2692_vm6, %v2685_v52  ;;  %v7568_v17 = vmul.f32 %v5426_v12, %v10738_v51  ;;  %v7573_v43 = vmul.f32 %v5428_v13, %v10738_v51 }
 0x191   : > { %v1015_v10 = vadd.f32 %v921_v19, %v791_v7  ;;  %v1378_v38 = vsel %vm1349_vm1, %v1375_v31, %v10740_v37  ;;  %10744 = vst [vmem:[#allocation32_spill] sm:$0xff] %v7577_v23  ;;  %v1602_v7 = vsel %vm1573_vm2, %v1599_v49, %v10118_v4  ;;  %v10121_v46 = vrot.slane %v7577_v23, 4  ;;  %v2539_v4 = vpop.permute.xlu0 %2538 }
 0x192   : > { %v2152_v14 = vadd.f32 %v2057_v35, %v1928_v26  ;;  %10741 = vst [vmem:[#allocation67_spill] sm:$0xff] %v7568_v17  ;;  %v7581_v35 = vmul.f32 %v5426_v12, %v10743_v16  ;;  %v10120_v52 = vrot.slane %v7568_v17, 5  ;;  %v7586_v26 = vmul.f32 %v5428_v13, %v10743_v16 }
 0x193   : > { %10742 = vst [vmem:[#allocation68_spill] sm:$0xff] %v7573_v43  ;;  %v1248_v31 = vadd.f32 %v1154_v24, %v1015_v10  ;;  %v10122_v37 = vrot.slane %v7573_v43, 6  ;;  %v10747_v24 = vrot.slane %v7560_v54, 4  ;;  %v10749_v16 = vrot.slane %v7435_v28, 5  ;;  %v10829_v43 = vld [vmem:[#allocation55_spill] sm:$0xff] }
 0x194   : > { %10745 = vst [vmem:[#allocation115_spill] sm:$0xff] %v7581_v35  ;;  %v2376_v19 = vadd.f32 %v2281_v56, %v2152_v14  ;;  %v10748_v14 = vrot.slane %v7431_v15, 4 }
 0x195   : > { %10746 = vst [vmem:[#allocation116_spill] sm:$0xff] %v7586_v26  ;;  %v1472_v56 = vadd.f32 %v1378_v38, %v1248_v31  ;;  %v2059_v49 = vsel %vm2030_vm3, %v10749_v16, %v10120_v52  ;;  %v10751_v38 = vrot.slane %v6959_v34, 4  ;;  %v10753_v16 = vrot.slane %v7581_v35, 5  ;;  %v10756_v34 = vld [vmem:[#allocation12_spill] sm:$0xff] }
 0x196   : > { %v2416_v33 = vadd.f32 %v7115_v22, %v2376_v19  ;;  %v1835_v10 = vsel %vm1573_vm2, %v10748_v14, %v10747_v24  ;;  %v2283_v19 = vsel %vm2254_vm4, %v10750_v42, %v10122_v37  ;;  %v10752_v24 = vld [vmem:[#allocation81_spill] sm:$0xff]  ;;  %v10754_v52 = vrot.slane %v6966_v58, 5  ;;  %v10758_v37 = vld [vmem:[#allocation64_spill] sm:$0xff] }
 0x197   : > { %v1815_v15 = vsel %vm1573_vm2, %v10751_v38, %v10121_v46  ;;  %v10123_v14 = vrot.slane %v10752_v24, 1  ;;  %v1696_v17 = vadd.f32 %v1602_v7, %v1472_v56  ;;  %v7624_v42 = vmul.f32 %v5406_v6, %v10596_v39 }
 0x198   : > { %v2452_v28 = vmax.f32 %v2416_v33, 0.0  ;;  %v2039_v32 = vsel %vm2030_vm3, %v10754_v52, %v10753_v16  ;;  %v10757_v38 = vrot.slane %v10756_v34, 1  ;;  %v7633_v33 = vmul.f32 %v5390_v60, %v10758_v37  ;;  %v10762_v16 = vld [vmem:[#allocation3_spill] sm:$0xff] }
 0x199   : > { %10755 = vst [vmem:[#allocation117_spill] sm:$0xff] %v7624_v42  ;;  %v7637_v7 = vmul.f32 %v5392_v0, %v10758_v37  ;;  %v7641_v58 = vmul.f32 %v5394_v1, %v10758_v37  ;;  %v1929_v56 = vadd.f32 %v1835_v10, %v1696_v17  ;;  %v10130_v34 = vrot.slane %v7624_v42, 2 }
 0x19a   : > { %v677_v46 = vsel %vm668_vm5, %v10757_v38, %v10123_v14  ;;  %10759 = vst [vmem:[#allocation12_spill] sm:$0xff] %v7633_v33  ;;  %v2668_v52 = vmul.f32 %v2539_v4, %v2452_v28  ;;  %v10763_v38 = vrot.slane %v7586_v26, 6  ;;  %v10764_v14 = vrot.slane %v6970_v48, 6  ;;  %v10767_v28 = vld [vmem:[#allocation62_spill] sm:$0xff]  ;;  %v10768_v48 = vld [vmem:[#allocation8_spill] sm:$0xff] }
 0x19b   : > { %10760 = vst [vmem:[#allocation118_spill] sm:$0xff] %v7637_v7  ;;  %v781_v31 = vadd.f32 %v677_v46, %v10762_v16  ;;  %v10132_v35 = vrot.slane %v7633_v33, 2  ;;  %v10131_v23 = vrot.slane %v7637_v7, 3  ;;  %v2153_v4 = vadd.f32 %v2059_v49, %v1929_v56  ;;  %v10765_v46 = vld [vmem:[#allocation14_spill] sm:$0xff] }
 0x19c   : > { %10761 = vst [vmem:[#allocation119_spill] sm:$0xff] %v7641_v58  ;;  %v2263_v24 = vsel %vm2254_vm4, %v10764_v14, %v10763_v38  ;;  %v10766_v17 = vrot.slane %v10765_v46, 2  ;;  %v10133_v16 = vrot.slane %v10767_v28, 1  ;;  %v10129_v37 = vrot.slane %v10768_v48, 1 }
 0x19d   : > { %2747 = vst.msk [vmem:[#allocation2 + $0x73] sm:$0xff] %vm2692_vm6, %v2668_v52  ;;  %v10769_v38 = vrot.slane %v6974_v11, 2  ;;  %v10770_v49 = vrot.slane %v6981_v18, 3  ;;  %v528_v56 = vmul.f32 %v5404_v5, %v10711_v63  ;;  %v2377_v46 = vadd.f32 %v2283_v19, %v2153_v4 }
 0x19e   : > { %v901_v10 = vsel %vm892_vm0, %v10766_v17, %v10130_v34  ;;  %v7680_v11 = vmul.f32 %v5406_v6, %v10711_v63  ;;  %v7684_v17 = vmul.f32 %v5406_v6, %v10735_v3  ;;  %v7692_v19 = vmul.f32 %v5390_v60, %v10738_v51 }
 0x19f   : > { %v1005_v14 = vadd.f32 %v901_v10, %v781_v31  ;;  %v1134_v39 = vsel %vm892_vm0, %v10769_v38, %v10132_v35  ;;  %v1358_v52 = vsel %vm1349_vm1, %v10770_v49, %v10131_v23  ;;  %v701_v31 = vsel %vm668_vm5, %v10133_v16, %v10129_v37 }
 0x1a0   : > { %10771 = vst [vmem:[#allocation3_spill] sm:$0xff] %v7684_v17  ;;  %v793_v10 = vadd.f32 %v701_v31, %v528_v56  ;;  %v7688_v38 = vmul.f32 %v5390_v60, %v10703_v25  ;;  %v2417_v4 = vadd.f32 %v7115_v22, %v2377_v46  ;;  %v10137_v49 = vrot.slane %v7680_v11, 2 }
 0x1a1   : > { %v1238_v18 = vadd.f32 %v1134_v39, %v1005_v14  ;;  %10772 = vst [vmem:[#allocation14_spill] sm:$0xff] %v7692_v19  ;;  %v10136_v63 = vrot.slane %v7684_v17, 2  ;;  %v7699_v37 = vmul.f32 %v5392_v0, %v10703_v25  ;;  %v2544_v39 = vpop.permute.xlu1 %2543  ;;  %v10773_v56 = vrot.slane %v7641_v58, 4 }
 0x1a2   : > { %v10774_v31 = vrot.slane %v6992_v30, 4  ;;  %v7709_v46 = vmul.f32 %v5392_v0, %v10738_v51  ;;  %v2453_v35 = vmax.f32 %v2417_v4, 0.0  ;;  %v7719_v30 = vmul.f32 %v5394_v1, %v10703_v25 }
 0x1a3   : > { %v1462_v14 = vadd.f32 %v1358_v52, %v1238_v18  ;;  %v925_v16 = vsel %vm892_vm0, %v10137_v49, %v10136_v63  ;;  %v10140_v52 = vrot.slane %v7688_v38, 2  ;;  %v10776_v4 = vrot.slane %v7692_v19, 2  ;;  %v10778_v49 = vld [vmem:[#allocation15_spill] sm:$0xff] }
 0x1a4   : > { %v1582_v34 = vsel %vm1573_vm2, %v10774_v31, %v10773_v56  ;;  %10775 = vst [vmem:[#allocation62_spill] sm:$0xff] %v7709_v46  ;;  %v1017_v56 = vadd.f32 %v925_v16, %v793_v10  ;;  %v10139_v31 = vrot.slane %v7699_v37, 3  ;;  %v10138_v23 = vrot.slane %v7709_v46, 3 }
 0x1a5   : > { %v1686_v18 = vadd.f32 %v1582_v34, %v1462_v14  ;;  %v2669_v48 = vmul.f32 %v2544_v39, %v2453_v35  ;;  %v1158_v17 = vsel %vm892_vm0, %v10140_v52, %v10776_v4  ;;  %v7730_v63 = vmul.f32 %v5394_v1, %v10738_v51  ;;  %v10780_v14 = vld [vmem:[#allocation26_spill] sm:$0xff] }
 0x1a6   : > { %v7734_v25 = vmul.f32 %v5416_v9, %v10778_v49  ;;  %v1250_v16 = vadd.f32 %v1158_v17, %v1017_v56  ;;  %v10142_v10 = vrot.slane %v7719_v30, 4  ;;  %v7739_v35 = vmul.f32 %v5416_v9, %v10780_v14 }
 0x1a7   : > { %10777 = vst [vmem:[#allocation120_spill] sm:$0xff] %v7730_v63  ;;  %v1919_v34 = vadd.f32 %v1815_v15, %v1686_v18  ;;  %v1382_v51 = vsel %vm1349_vm1, %v10139_v31, %v10138_v23  ;;  %v10141_v39 = vrot.slane %v7730_v63, 4  ;;  %v7750_v15 = vmul.f32 %v5426_v12, %v10778_v49 }
 0x1a8   : > { %10779 = vst [vmem:[#allocation15_spill] sm:$0xff] %v7734_v25  ;;  %v7754_v17 = vmul.f32 %v5426_v12, %v10780_v14  ;;  %v1474_v56 = vadd.f32 %v1382_v51, %v1250_v16  ;;  %v7759_v4 = vmul.f32 %v5428_v13, %v10778_v49  ;;  %v10145_v31 = vrot.slane %v7734_v25, 4  ;;  %v2796_v49 = vld [vmem:[#allocation2 + $0xc8] sm:$0xff] }
 0x1a9   : > { %10781 = vst [vmem:[#allocation26_spill] sm:$0xff] %v7739_v35  ;;  %v2143_v18 = vadd.f32 %v2039_v32, %v1919_v34  ;;  %v1606_v23 = vsel %vm1573_vm2, %v10142_v10, %v10141_v39  ;;  %v7770_v32 = vmul.f32 %v5428_v13, %v10780_v14  ;;  %v537_v52 = vmul.f32 %v5404_v5, %v10647_v21 }
 0x1aa   : > { %2748 = vst.msk [vmem:[#allocation2 + $0x7b] sm:$0xff] %vm2692_vm6, %v2669_v48  ;;  %v10144_v48 = vrot.slane %v7739_v35, 4  ;;  %v1698_v51 = vadd.f32 %v1606_v23, %v1474_v56  ;;  %v10786_v14 = vrot.slane %v10634_v47, 1  ;;  %v10787_v63 = vrot.slane %v10645_v8, 1 }
 0x1ab   : > { %10782 = vst [vmem:[#allocation121_spill] sm:$0xff] %v7750_v15  ;;  %v2367_v16 = vadd.f32 %v2263_v24, %v2143_v18  ;;  %v10789_v10 = vrot.slane %v7750_v15, 5  ;;  %v10790_v8 = vrot.slane %v7159_v20, 2  ;;  %v10795_v35 = vrot.slane %v7759_v4, 6 }
 0x1ac   : > { %10783 = vst [vmem:[#allocation122_spill] sm:$0xff] %v7754_v17  ;;  %v1839_v39 = vsel %vm1573_vm2, %v10145_v31, %v10144_v48  ;;  %v719_v24 = vsel %vm668_vm5, %v10787_v63, %v10786_v14  ;;  %v2494_v48 = vpop.permute.xlu0 %2493  ;;  %v10788_v31 = vrot.slane %v7754_v17, 5  ;;  %v10791_v63 = vrot.slane %v7212_v59, 2 }
 0x1ad   : > { %10784 = vst [vmem:[#allocation123_spill] sm:$0xff] %v7759_v4  ;;  %v2407_v18 = vadd.f32 %v7115_v22, %v2367_v16  ;;  %v1931_v56 = vadd.f32 %v1839_v39, %v1698_v51  ;;  %v802_v47 = vadd.f32 %v719_v24, %v537_v52  ;;  %v10792_v16 = vrot.slane %v7081_v55, 2 }
 0x1ae   : > { %10785 = vst [vmem:[#allocation124_spill] sm:$0xff] %v7770_v32  ;;  %v2063_v21 = vsel %vm2030_vm3, %v10789_v10, %v10788_v31  ;;  %v943_v14 = vsel %vm892_vm0, %v10791_v63, %v10790_v8  ;;  %v10793_v39 = vrot.slane %v7233_v27, 2  ;;  %v10794_v17 = vrot.slane %v7770_v32, 6  ;;  %v2795_v10 = vld [vmem:[#allocation2 + $0xc0] sm:$0xff]  ;;  %v10802_v8 = vld [vmem:[#allocation61_spill] sm:$0xff] }
 0x1af   : > { %v2443_v23 = vmax.f32 %v2407_v18, 0.0  ;;  %v2155_v34 = vadd.f32 %v2063_v21, %v1931_v56  ;;  %v10796_v20 = vrot.slane %v7094_v40, 3  ;;  %v10797_v59 = vrot.slane %v7242_v36, 3  ;;  %v10800_v56 = vld [vmem:[#allocation74_spill] sm:$0xff] }
 0x1b0   : > { %v1176_v51 = vsel %vm892_vm0, %v10793_v39, %v10792_v16  ;;  %v2287_v52 = vsel %vm2254_vm4, %v10795_v35, %v10794_v17  ;;  %v1026_v55 = vadd.f32 %v943_v14, %v802_v47  ;;  %v10798_v27 = vrot.slane %v7106_v62, 4  ;;  %v10805_v16 = vld [vmem:[#allocation88_spill] sm:$0xff]  ;;  %v10809_v14 = vld [vmem:[#allocation42_spill] sm:$0xff] }
 0x1b1   : > { %v1400_v31 = vsel %vm1349_vm1, %v10797_v59, %v10796_v20  ;;  %v10799_v24 = vrot.slane %v7256_v57, 4  ;;  %v10801_v21 = vrot.slane %v10800_v56, 4  ;;  %v10803_v63 = vrot.slane %v10802_v8, 4  ;;  %v10807_v20 = vld [vmem:[#allocation60_spill] sm:$0xff] }
 0x1b2   : > { %v7825_v17 = vpack.c.bf16 %v2796_v49, %v2795_v10  ;;  %v2659_v40 = vmul.f32 %v2494_v48, %v2443_v23  ;;  %v2379_v36 = vadd.f32 %v2287_v52, %v2155_v34  ;;  %v10806_v39 = vrot.slane %v10805_v16, 5  ;;  %v10813_v49 = vld [vmem:[#allocation22_spill] sm:$0xff]  ;;  %v10814_v23 = vld [vmem:[#allocation89_spill] sm:$0xff] }
 0x1b3   : > { %v1624_v18 = vsel %vm1573_vm2, %v10799_v24, %v10798_v27  ;;  %v1857_v35 = vsel %vm1573_vm2, %v10803_v63, %v10801_v21  ;;  %v10808_v47 = vrot.slane %v10807_v20, 5  ;;  %v7834_v57 = vmul.f32 %v5406_v6, %v10809_v14  ;;  %v10810_v27 = vld [vmem:[#allocation49_spill] sm:$0xff]  ;;  %v10816_v10 = vld [vmem:[#allocation58_spill] sm:$0xff]  ;;  %v2554_v63 = vpop.permute.xlu2 %2553 }
 0x1b4   : > { %10804 = vst [vmem:[#allocation74_spill] sm:$0xff] %v7825_v17  ;;  %v1259_v59 = vadd.f32 %v1176_v51, %v1026_v55  ;;  %v7837_v24 = vshrl.u32 %v10810_v27, 16  ;;  %v7840_v56 = vshll.u32 %v7825_v17, 16  ;;  %v7844_v48 = vmul.f32 %v5390_v60, %v10813_v49  ;;  %v10821_v27 = vld [vmem:[#allocation97_spill] sm:$0xff] }
 0x1b5   : > { %v2081_v62 = vsel %vm2030_vm3, %v10808_v47, %v10806_v39  ;;  %2738 = vst.msk [vmem:[#allocation2 + $0x2b] sm:$0xff] %vm2692_vm6, %v2659_v40  ;;  %v2419_v34 = vadd.f32 %v7115_v22, %v2379_v36  ;;  %v10815_v52 = vrot.slane %v10814_v23, 6  ;;  %v10817_v21 = vrot.slane %v10816_v10, 6  ;;  %v10818_v39 = vld [vmem:[#allocation54_spill] sm:$0xff]  ;;  %v10820_v47 = vld [vmem:[#allocation17_spill] sm:$0xff]  ;;  %v10823_v23 = vld [vmem:[#allocation76_spill] sm:$0xff] }
 0x1b6   : > { %10811 = vst [vmem:[#allocation61_spill] sm:$0xff] %v7837_v24  ;;  %v7855_v55 = vmul.f32 %v5392_v0, %v10813_v49  ;;  %v7859_v8 = vmul.f32 %v5394_v1, %v10813_v49  ;;  %v1483_v16 = vadd.f32 %v1400_v31, %v1259_v59  ;;  %v10819_v40 = vrot.slane %v10818_v39, 1 }
 0x1b7   : > { %10812 = vst [vmem:[#allocation88_spill] sm:$0xff] %v7840_v56  ;;  %v2305_v51 = vsel %vm2254_vm4, %v10817_v21, %v10815_v52  ;;  %v10149_v20 = vrot.slane %v7840_v56, 1  ;;  %v2455_v10 = vmax.f32 %v2419_v34, 0.0  ;;  %v1179_v21 = vrot.slane %v7844_v48, 2 }
 0x1b8   : > { %v2929_v36 = vor.u32 %v7837_v24, %v10819_v40  ;;  %v7870_v32 = vmul.f32 %v5416_v9, %v10821_v27  ;;  %v1707_v49 = vadd.f32 %v1624_v18, %v1483_v16  ;;  %v1403_v59 = vrot.slane %v7855_v55, 3  ;;  %v10822_v18 = vld [vmem:[#allocation78_spill] sm:$0xff] }
 0x1b9   : > { %v1627_v40 = vrot.slane %v7859_v8, 4  ;;  %v2671_v39 = vmul.f32 %v2554_v63, %v2455_v10  ;;  %v7880_v34 = vmul.f32 %v5426_v12, %v10821_v27  ;;  %v7884_v48 = vmul.f32 %v5428_v13, %v10821_v27  ;;  %v10824_v8 = vld [vmem:[#allocation36_spill] sm:$0xff] }
 0x1ba   : > { %v2934_v31 = vsel %vm2834_vm7, %v2929_v36, %v10149_v20  ;;  %v722_v16 = vrot.slane %v10822_v18, 1  ;;  %v1940_v52 = vadd.f32 %v1857_v35, %v1707_v49  ;;  %v540_v36 = vmul.f32 %v5404_v5, %v10823_v23  ;;  %v10826_v49 = vld [vmem:[#allocation91_spill] sm:$0xff] }
 0x1bb   : > { %5054 = vmatmul.msk.bf16.gmra.mxu2 %vm2692_vm6, %v2934_v31  ;;  %v845_v55 = vmul.f32 %v5406_v6, %v10823_v23  ;;  %v1080_v63 = vmul.f32 %v5390_v60, %v10824_v8  ;;  %2750 = vst.msk [vmem:[#allocation2 + $0x8b] sm:$0xff] %vm2692_vm6, %v2671_v39  ;;  %v10825_v10 = vrot.slane %v10820_v47, 1  ;;  %v1303_v20 = vmul.f32 %v5392_v0, %v10824_v8 }
 0x1bc   : > { %v1527_v35 = vmul.f32 %v5394_v1, %v10824_v8  ;;  %v1760_v18 = vmul.f32 %v5416_v9, %v10826_v49  ;;  %v2164_v24 = vadd.f32 %v2081_v62, %v1940_v52  ;;  %v1862_v3 = vrot.slane %v7870_v32, 4 }
 0x1bd   : > { %v725_v31 = vsel %vm668_vm5, %v722_v16, %v10825_v10  ;;  %v946_v46 = vrot.slane %v845_v55, 2  ;;  %v1181_v19 = vrot.slane %v1080_v63, 2  ;;  %v1405_v39 = vrot.slane %v1303_v20, 3 }
 0x1be   : > { %v805_v23 = vadd.f32 %v725_v31, %v540_v36  ;;  %v1629_v44 = vrot.slane %v1527_v35, 4  ;;  %v1983_v10 = vmul.f32 %v5426_v12, %v10826_v49  ;;  %v2388_v61 = vadd.f32 %v2305_v51, %v2164_v24  ;;  %v10828_v51 = vld [vmem:[#allocation46_spill] sm:$0xff]  ;;  %v2599_v31 = vpop.permute.xlu1 %2598 }
 0x1bf   : > { %v10827_v58 = vrot.slane %v7834_v57, 2  ;;  %v1182_v7 = vsel %vm892_vm0, %v1179_v21, %v1181_v19  ;;  %v2207_v62 = vmul.f32 %v5428_v13, %v10826_v49  ;;  %v2086_v52 = vrot.slane %v7880_v34, 5 }
 0x1c0   : > { %v2310_v36 = vrot.slane %v7884_v48, 6  ;;  %v1860_v20 = vrot.slane %v1760_v18, 4  ;;  %v2428_v55 = vadd.f32 %v7115_v22, %v2388_v61  ;;  %v1406_v63 = vsel %vm1349_vm1, %v1403_v59, %v1405_v39  ;;  %v10831_v61 = vld [vmem:[#allocation31_spill] sm:$0xff] }
 0x1c1   : > { %v949_v42 = vsel %vm892_vm0, %v946_v46, %v10827_v58  ;;  %v1630_v24 = vsel %vm1573_vm2, %v1627_v40, %v1629_v44  ;;  %v539_v58 = vmul.f32 %v5404_v5, %v10828_v51  ;;  %v2084_v33 = vrot.slane %v1983_v10, 5 }
 0x1c2   : > { %v1029_v32 = vadd.f32 %v949_v42, %v805_v23  ;;  %v2308_v26 = vrot.slane %v2207_v62, 6  ;;  %v10830_v4 = vrot.slane %v10829_v43, 1  ;;  %v2464_v48 = vmax.f32 %v2428_v55, 0.0 }
 0x1c3   : > { %v1863_v42 = vsel %vm1573_vm2, %v1860_v20, %v1862_v3  ;;  %v10832_v23 = vrot.slane %v10831_v61, 2  ;;  %v2087_v25 = vsel %vm2030_vm3, %v2084_v33, %v2086_v52 }
 0x1c4   : > { %v1262_v35 = vadd.f32 %v1182_v7, %v1029_v32  ;;  %v723_v34 = vsel %vm668_vm5, %v10830_v4, %v722_v16  ;;  %v2311_v51 = vsel %vm2254_vm4, %v2308_v26, %v2310_v36  ;;  %v10833_v7 = vld [vmem:[#allocation71_spill] sm:$0xff]  ;;  %v2680_v43 = vmul.f32 %v2599_v31, %v2464_v48  ;;  %v10835_v4 = vld [vmem:[#allocation73_spill] sm:$0xff]  ;;  %v2785_v48 = vld [vmem:[#allocation2 + $0x70] sm:$0xff] }
 0x1c5   : > { %v804_v18 = vadd.f32 %v723_v34, %v539_v58  ;;  %v947_v15 = vsel %vm892_vm0, %v10832_v23, %v946_v46  ;;  %v10834_v10 = vrot.slane %v10833_v7, 2  ;;  %v10836_v16 = vrot.slane %v10835_v4, 3  ;;  %v10837_v58 = vld [vmem:[#allocation80_spill] sm:$0xff] }
 0x1c6   : > { %v1486_v54 = vadd.f32 %v1406_v63, %v1262_v35  ;;  %v10838_v34 = vrot.slane %v10837_v58, 4  ;;  %v10839_v63 = vld [vmem:[#allocation75_spill] sm:$0xff]  ;;  %v541_v7 = vmul.f32 %v5404_v5, %v10809_v14  ;;  %2759 = vst.msk [vmem:[#allocation2 + $0xd3] sm:$0xff] %vm2692_vm6, %v2680_v43 }
 0x1c7   : > { %v1180_v62 = vsel %vm892_vm0, %v10834_v10, %v1179_v21  ;;  %v1028_v32 = vadd.f32 %v947_v15, %v804_v18  ;;  %v1404_v55 = vsel %vm1349_vm1, %v10836_v16, %v1403_v59  ;;  %v10840_v35 = vrot.slane %v10839_v63, 4  ;;  %v2786_v59 = vld [vmem:[#allocation2 + $0x78] sm:$0xff]  ;;  %v10846_v10 = vld [vmem:[#allocation100_spill] sm:$0xff] }
 0x1c8   : > { %v1628_v61 = vsel %vm1573_vm2, %v10838_v34, %v1627_v40  ;;  %v1710_v46 = vadd.f32 %v1630_v24, %v1486_v54  ;;  %v10842_v21 = vrot.slane %v10841_v41, 1  ;;  %v10843_v15 = vrot.slane %v10820_v47, 1  ;;  %v7948_v40 = vpop.permute.xlu2 %2608  ;;  %v10844_v54 = vld [vmem:[#allocation99_spill] sm:$0xff]  ;;  %v10848_v41 = vld [vmem:[#allocation21_spill] sm:$0xff] }
 0x1c9   : > { %v1861_v23 = vsel %vm1573_vm2, %v10840_v35, %v1860_v20  ;;  %v1261_v18 = vadd.f32 %v1180_v62, %v1028_v32  ;;  %v10845_v24 = vrot.slane %v10844_v54, 5  ;;  %v10847_v4 = vrot.slane %v10846_v10, 6  ;;  %v5079_v62 = vld [vmem:[%s9832_s3 + $0x4] sm:$0x3]  ;;  %v10851_v34 = vld [vmem:[#allocation63_spill] sm:$0xff]  ;;  %v10853_v35 = vld [vmem:[#allocation57_spill] sm:$0xff] }
 0x1ca   : > { %v727_v31 = vsel %vm668_vm5, %v10843_v15, %v10842_v21  ;;  %v10849_v16 = vrot.slane %v10848_v41, 2  ;;  %v10850_v47 = vrot.slane %v7834_v57, 2  ;;  %v1943_v43 = vadd.f32 %v1863_v42, %v1710_v46  ;;  %v10855_v54 = vld [vmem:[#allocation104_spill] sm:$0xff]  ;;  %v10857_v10 = vld [vmem:[#allocation106_spill] sm:$0xff] }
 0x1cb   : > { %v2085_v20 = vsel %vm2030_vm3, %v10845_v24, %v2084_v33  ;;  %v2309_v14 = vsel %vm2254_vm4, %v10847_v4, %v2308_v26  ;;  %v806_v32 = vadd.f32 %v727_v31, %v541_v7  ;;  %v10852_v63 = vrot.slane %v10851_v34, 2 }
 0x1cc   : > { %v951_v58 = vsel %vm892_vm0, %v10850_v47, %v10849_v16  ;;  %v10854_v21 = vrot.slane %v10853_v35, 3  ;;  %v1485_v15 = vadd.f32 %v1404_v55, %v1261_v18  ;;  %v10856_v24 = vrot.slane %v10855_v54, 4  ;;  %v10861_v55 = vld [vmem:[#allocation9_spill] sm:$0xff] }
 0x1cd   : > { %v1184_v33 = vsel %vm892_vm0, %v1181_v19, %v10852_v63  ;;  %v10858_v4 = vrot.slane %v10857_v10, 4  ;;  %v7976_v16 = vpack.c.bf16 %v2786_v59, %v2785_v48  ;;  %v2167_v42 = vadd.f32 %v2087_v25, %v1943_v43  ;;  %v10860_v19 = vld [vmem:[#allocation82_spill] sm:$0xff]  ;;  %v10864_v59 = vld [vmem:[#allocation107_spill] sm:$0xff]  ;;  %v10866_v43 = vld [vmem:[#allocation109_spill] sm:$0xff] }
 0x1ce   : > { %v1408_v26 = vsel %vm1349_vm1, %v1405_v39, %v10854_v21  ;;  %v1632_v57 = vsel %vm1573_vm2, %v1629_v44, %v10856_v24  ;;  %v1030_v46 = vadd.f32 %v951_v58, %v806_v32  ;;  %v3391_v7 = vsel %vm2254_vm4, %v5079_v62, 0  ;;  %v10868_v63 = vld [vmem:[#allocation90_spill] sm:$0xff]  ;;  %v2614_v24 = vpop.permute.xlu0 %2613 }
 0x1cf   : > { %v1865_v41 = vsel %vm1573_vm2, %v1862_v3, %v10858_v4  ;;  %10859 = vst [vmem:[#allocation60_spill] sm:$0xff] %v7976_v16  ;;  %v7981_v31 = vmul.f32 %v5390_v60, %v10860_v19  ;;  %v1709_v39 = vadd.f32 %v1628_v61, %v1485_v15  ;;  %v7984_v18 = vshrl.u32 %v10861_v55, 16  ;;  %3400 = vmatpush.bf16.msrb.mxu2 %v3391_v7  ;;  %v10870_v4 = vld [vmem:[#allocation53_spill] sm:$0xff] }
 0x1d0   : > { %v7987_v44 = vshll.u32 %v7976_v16, 16  ;;  %v7991_v3 = vmul.f32 %v5392_v0, %v10860_v19  ;;  %v2391_v25 = vadd.f32 %v2311_v51, %v2167_v42  ;;  %v1263_v48 = vadd.f32 %v1184_v33, %v1030_v46 }
 0x1d1   : > { %10862 = vst [vmem:[#allocation42_spill] sm:$0xff] %v7984_v18  ;;  %v10865_v47 = vrot.slane %v10864_v59, 5  ;;  %v7998_v61 = vmul.f32 %v5394_v1, %v10860_v19  ;;  %v1942_v62 = vadd.f32 %v1861_v23, %v1709_v39  ;;  %v10867_v32 = vrot.slane %v10866_v43, 6 }
 0x1d2   : > { %10863 = vst [vmem:[#allocation22_spill] sm:$0xff] %v7987_v44  ;;  %v10869_v35 = vrot.slane %v10868_v63, 1  ;;  %v10170_v51 = vrot.slane %v7987_v44, 1  ;;  %v2431_v33 = vadd.f32 %v7115_v22, %v2391_v25  ;;  %v1487_v15 = vadd.f32 %v1408_v26, %v1263_v48 }
 0x1d3   : > { %v2089_v58 = vsel %vm2030_vm3, %v2086_v52, %v10865_v47  ;;  %v2313_v34 = vsel %vm2254_vm4, %v2310_v36, %v10867_v32  ;;  %v10176_v52 = vrot.slane %v7981_v31, 2  ;;  %v10171_v54 = vrot.slane %v7991_v3, 3  ;;  %v10873_v47 = vld [vmem:[#allocation16_spill] sm:$0xff] }
 0x1d4   : > { %v2889_v21 = vor.u32 %v7984_v18, %v10869_v35  ;;  %v2166_v10 = vadd.f32 %v2085_v20, %v1942_v62  ;;  %v543_v36 = vmul.f32 %v5404_v5, %v10824_v8  ;;  %v730_v42 = vrot.slane %v10870_v4, 1  ;;  %v10871_v20 = vld [vmem:[#allocation45_spill] sm:$0xff]  ;;  %v10874_v4 = vld [vmem:[#allocation51_spill] sm:$0xff] }
 0x1d5   : > { %v2467_v46 = vmax.f32 %v2431_v33, 0.0  ;;  %v1711_v7 = vadd.f32 %v1632_v57, %v1487_v15  ;;  %v10174_v26 = vrot.slane %v7998_v61, 4  ;;  %v849_v39 = vmul.f32 %v5406_v6, %v10826_v49  ;;  %v1725_v57 = vpop.permute.xlu2 %1724 }
 0x1d6   : > { %v2894_v23 = vsel %vm2834_vm7, %v2889_v21, %v10170_v51  ;;  %v2390_v25 = vadd.f32 %v2309_v14, %v2166_v10  ;;  %v10872_v48 = vrot.slane %v10871_v20, 1  ;;  %v8025_v62 = vmul.f32 %v5416_v9, %v10873_v47  ;;  %v10879_v20 = vld [vmem:[#allocation103_spill] sm:$0xff] }
 0x1d7   : > { %5049 = vmatmul.msk.bf16.gmra.mxu1 %vm2692_vm6, %v2894_v23  ;;  %v8029_v8 = vmul.f32 %v5426_v12, %v10873_v47  ;;  %v2683_v43 = vmul.f32 %v2614_v24, %v2467_v46  ;;  %v1944_v32 = vadd.f32 %v1865_v41, %v1711_v7  ;;  %v954_v21 = vrot.slane %v849_v39, 2  ;;  %v10885_v51 = vld [vmem:[#allocation111_spill] sm:$0xff] }
 0x1d8   : > { %v731_v59 = vsel %vm668_vm5, %v10872_v48, %v730_v42  ;;  %v2430_v33 = vadd.f32 %v7115_v22, %v2390_v25  ;;  %v10173_v14 = vrot.slane %v8025_v62, 4  ;;  %v8036_v10 = vmul.f32 %v5428_v13, %v10873_v47 }
 0x1d9   : > { %v808_v35 = vadd.f32 %v731_v59, %v543_v36  ;;  %v10172_v15 = vrot.slane %v8029_v8, 5  ;;  %2762 = vst.msk [vmem:[#allocation2 + $0xeb] sm:$0xff] %vm2692_vm6, %v2683_v43  ;;  %v2168_v23 = vadd.f32 %v2089_v58, %v1944_v32  ;;  %v10875_v24 = vrot.slane %v10874_v4, 2  ;;  %v10876_v36 = vld [vmem:[#allocation108_spill] sm:$0xff]  ;;  %v10881_v59 = vld [vmem:[#allocation105_spill] sm:$0xff] }
 0x1da   : > { %v10877_v46 = vrot.slane %v10876_v36, 2  ;;  %v8048_v39 = vmul.f32 %v5416_v9, %v1725_v57  ;;  %v2466_v25 = vmax.f32 %v2430_v33, 0.0  ;;  %v10880_v48 = vrot.slane %v10879_v20, 3  ;;  %v10883_v36 = vld [vmem:[#allocation110_spill] sm:$0xff] }
 0x1db   : > { %v1188_v41 = vsel %vm892_vm0, %v10875_v24, %v10176_v52  ;;  %v10882_v43 = vrot.slane %v10881_v59, 4  ;;  %v2392_v24 = vadd.f32 %v2313_v34, %v2168_v23  ;;  %v10886_v20 = vrot.slane %v10885_v51, 5  ;;  %v2776_v52 = vld [vmem:[#allocation2 + $0x28] sm:$0xff] }
 0x1dc   : > { %v955_v7 = vsel %vm892_vm0, %v10877_v46, %v954_v21  ;;  %10878 = vst [vmem:[#allocation89_spill] sm:$0xff] %v8048_v39  ;;  %v1412_v58 = vsel %vm1349_vm1, %v10880_v48, %v10171_v54  ;;  %v10884_v46 = vrot.slane %v10883_v36, 4  ;;  %v8071_v54 = vmul.f32 %v5426_v12, %v1725_v57  ;;  %v10889_v36 = vld [vmem:[#allocation98_spill] sm:$0xff] }
 0x1dd   : > { %v1636_v32 = vsel %vm1573_vm2, %v10882_v43, %v10174_v26  ;;  %v1032_v4 = vadd.f32 %v955_v7, %v808_v35  ;;  %v2093_v48 = vsel %vm2030_vm3, %v10886_v20, %v10172_v15  ;;  %v2682_v59 = vmul.f32 %v7948_v40, %v2466_v25  ;;  %v2619_v20 = vpop.permute.xlu1 %2618  ;;  %v8086_v40 = vpop.permute.xlu0 %2628 }
 0x1de   : > { %v1869_v33 = vsel %vm1573_vm2, %v10884_v46, %v10173_v14  ;;  %10887 = vst [vmem:[#allocation58_spill] sm:$0xff] %v8071_v54  ;;  %v2432_v23 = vadd.f32 %v7115_v22, %v2392_v24  ;;  %v8078_v7 = vmul.f32 %v5428_v13, %v1725_v57  ;;  %v10175_v46 = vrot.slane %v10889_v36, 1 }
 0x1df   : > { %v1265_v43 = vadd.f32 %v1188_v41, %v1032_v4  ;;  %v8083_v51 = vmul.f32 %v5406_v6, %v10821_v27  ;;  %2761 = vst.msk [vmem:[#allocation2 + $0xe3] sm:$0xff] %vm2692_vm6, %v2682_v59  ;;  %v544_v25 = vmul.f32 %v5404_v5, %v10826_v49  ;;  %v10890_v4 = vld [vmem:[#allocation101_spill] sm:$0xff] }
 0x1e0   : > { %10888 = vst [vmem:[#allocation17_spill] sm:$0xff] %v8078_v7  ;;  %v8092_v22 = vmul.f32 %v5390_v60, %v10890_v4  ;;  %v8096_v57 = vmul.f32 %v5392_v0, %v10890_v4  ;;  %v2468_v24 = vmax.f32 %v2432_v23, 0.0  ;;  %v733_v59 = vsel %vm668_vm5, %v730_v42, %v10175_v46  ;;  %v10891_v42 = vld [vmem:[#allocation19_spill] sm:$0xff] }
 0x1e1   : > { %v1489_v41 = vadd.f32 %v1412_v58, %v1265_v43  ;;  %v10177_v35 = vrot.slane %v8083_v51, 2  ;;  %v8104_v58 = vmul.f32 %v5394_v1, %v10890_v4  ;;  %v809_v43 = vadd.f32 %v733_v59, %v544_v25  ;;  %v2798_v59 = vld [vmem:[#allocation2 + $0xd8] sm:$0xff] }
 0x1e2   : > { %v10178_v15 = vrot.slane %v8092_v22, 2  ;;  %v2684_v26 = vmul.f32 %v2619_v20, %v2468_v24  ;;  %v8114_v46 = vmul.f32 %v5416_v9, %v10891_v42  ;;  %v10892_v25 = vrot.slane %v7981_v31, 2  ;;  %v2797_v24 = vld [vmem:[#allocation2 + $0xd0] sm:$0xff] }
 0x1e3   : > { %v1713_v49 = vadd.f32 %v1636_v32, %v1489_v41  ;;  %v957_v23 = vsel %vm892_vm0, %v954_v21, %v10177_v35  ;;  %v10893_v21 = vrot.slane %v8036_v10, 6  ;;  %v10894_v35 = vld [vmem:[#allocation112_spill] sm:$0xff]  ;;  %v8151_v18 = vpack.c.bf16 %v2798_v59, %v2797_v24  ;;  %v5117_v24 = vld [vmem:[%s9832_s3 + $0x8] sm:$0x3] }
 0x1e4   : > { %v1033_v41 = vadd.f32 %v957_v23, %v809_v43  ;;  %v1190_v20 = vsel %vm892_vm0, %v10892_v25, %v10178_v15  ;;  %2763 = vst.msk [vmem:[#allocation2 + $0xf3] sm:$0xff] %vm2692_vm6, %v2684_v26  ;;  %v10895_v34 = vrot.slane %v10894_v35, 6  ;;  %v10897_v43 = vrot.slane %v7991_v3, 3  ;;  %v2775_v25 = vld [vmem:[#allocation2 + $0x20] sm:$0xff] }
 0x1e5   : > { %v1946_v63 = vadd.f32 %v1869_v33, %v1713_v49  ;;  %v10896_v49 = vrot.slane %v8096_v57, 3  ;;  %v8136_v23 = vmul.f32 %v5426_v12, %v10891_v42  ;;  %v10181_v32 = vrot.slane %v8114_v46, 4 }
 0x1e6   : > { %v2317_v14 = vsel %vm2254_vm4, %v10895_v34, %v10893_v21  ;;  %v1266_v15 = vadd.f32 %v1190_v20, %v1033_v41  ;;  %v8139_v35 = vpack.c.bf16 %v2776_v52, %v2775_v25  ;;  %v10899_v34 = vrot.slane %v8104_v58, 4  ;;  %v10905_v25 = vld [vmem:[#allocation38_spill] sm:$0xff] }
 0x1e7   : > { %v1414_v31 = vsel %vm1349_vm1, %v10897_v43, %v10896_v49  ;;  %v2170_v26 = vadd.f32 %v2093_v48, %v1946_v63  ;;  %v10900_v21 = vrot.slane %v7998_v61, 4  ;;  %v8148_v3 = vmul.f32 %v5428_v13, %v10891_v42  ;;  %v10902_v49 = vld [vmem:[#allocation114_spill] sm:$0xff] }
 0x1e8   : > { %10898 = vst [vmem:[#allocation97_spill] sm:$0xff] %v8139_v35  ;;  %v10182_v43 = vshrl.u32 %v10902_v49, 16  ;;  %v2830_v63 = vld [vmem:[%s9832_s3] sm:$0x3]  ;;  %v1490_v48 = vadd.f32 %v1414_v31, %v1266_v15  ;;  %v10903_v61 = vrot.slane %v8025_v62, 4  ;;  %v8162_v20 = vshll.u32 %v8139_v35, 16 }
 0x1e9   : > { %v1638_v33 = vsel %vm1573_vm2, %v10900_v21, %v10899_v34  ;;  %10901 = vst [vmem:[#allocation78_spill] sm:$0xff] %v8148_v3  ;;  %v2394_v52 = vadd.f32 %v2317_v14, %v2170_v26  ;;  %v8172_v15 = vshrl.u32 %v7825_v17, 16  ;;  %v8175_v62 = vshll.u32 %v8151_v18, 16  ;;  %v8180_v31 = vld [vmem:[%s9831_s2] ss:$0 sm:$0xff] }
 0x1ea   : > { %v1871_v41 = vsel %vm1573_vm2, %v10903_v61, %v10181_v32  ;;  %10904 = vst [vmem:[#allocation76_spill] sm:$0xff] %v8162_v20  ;;  %v2849_v14 = vor.u32 %v10182_v43, %v10905_v25  ;;  %v1714_v34 = vadd.f32 %v1638_v33, %v1490_v48  ;;  %v10188_v21 = vrot.slane %v8162_v20, 1  ;;  %v1049_v32 = vpop.permute.xlu0 %1048 }
 0x1eb   : > { %10906 = vst [vmem:[#allocation36_spill] sm:$0xff] %v8172_v15  ;;  %v2434_v26 = vadd.f32 %v8180_v31, %v2394_v52  ;;  %v3176_v61 = vsel %vm2254_vm4, %v2830_v63, 0  ;;  %v10189_v25 = vrot.slane %v8148_v3, 6  ;;  %v10907_v43 = vrot.slane %v7840_v56, 1  ;;  %v2634_v56 = vpop.permute.xlu1 %2633 }
 0x1ec   : > { %v10190_v17 = vrot.slane %v8175_v62, 1  ;;  %3185 = vmatpush.bf16.msrb.mxu1 %v3176_v61  ;;  %v3825_v55 = vsel %vm2254_vm4, %v5117_v24, 0  ;;  %v1947_v35 = vadd.f32 %v1871_v41, %v1714_v34  ;;  %v10908_v33 = vrot.slane %v8136_v23, 5 }
 0x1ed   : > { %v2937_v59 = vor.u32 %v8172_v15, %v10907_v43  ;;  %v2470_v49 = vmax.f32 %v2434_v26, 0.0  ;;  %v10909_v52 = vrot.slane %v8029_v8, 5  ;;  %v2854_v48 = vsel %vm2834_vm7, %v2849_v14, %v10188_v21  ;;  %3834 = vmatpush.bf16.msrb.mxu0 %v3825_v55  ;;  %v10924_v15 = vld [vmem:[#allocation27_spill] sm:$0xff] }
 0x1ee   : > { %v10910_v43 = vrot.slane %v8036_v10, 6  ;;  %5044 = vmatmul.msk.bf16.gmra.mxu0 %vm2692_vm6, %v2854_v48  ;;  %v8209_v8 = vmul.f32 %v5390_v60, %v1049_v32  ;;  %v8212_v24 = vmul.f32 %v5416_v9, %v1049_v32  ;;  %v8217_v10 = vmul.f32 %v5392_v0, %v1049_v32 }
 0x1ef   : > { %v2095_v63 = vsel %vm2030_vm3, %v10909_v52, %v10908_v33  ;;  %v2942_v41 = vsel %vm2834_vm7, %v2937_v59, %v10190_v17  ;;  %v2686_v55 = vmul.f32 %v8086_v40, %v2470_v49  ;;  %v8220_v26 = vmul.f32 %v5426_v12, %v1049_v32  ;;  %v10914_v52 = vld [vmem:[#allocation56_spill] sm:$0xff] }
 0x1f0   : > { %v2319_v61 = vsel %vm2254_vm4, %v10910_v43, %v10189_v25  ;;  %10911 = vst [vmem:[#allocation91_spill] sm:$0xff] %v8212_v24  ;;  %v2171_v14 = vadd.f32 %v2095_v63, %v1947_v35  ;;  %5055 = vmatmul.msk.bf16.gmra.mxu2 %vm2692_vm6, %v2942_v41  ;;  %v8223_v34 = vmul.f32 %v5394_v1, %v1049_v32  ;;  %v10193_v59 = vrot.slane %v8212_v24, 4 }
 0x1f1   : > { %10912 = vst [vmem:[#allocation46_spill] sm:$0xff] %v8220_v26  ;;  %v10913_v33 = vrot.slane %v7479_v29, 2  ;;  %v10915_v48 = vrot.slane %v10914_v52, 2  ;;  %v8233_v35 = vmul.f32 %v5392_v0, %v10891_v42  ;;  %v10197_v63 = vrot.slane %v8220_v26, 5 }
 0x1f2   : > { %2765 = vst.msk [vmem:[#allocation2 + $0x103] sm:$0xff] %vm2692_vm6, %v2686_v55  ;;  %v2395_v49 = vadd.f32 %v2319_v61, %v2171_v14  ;;  %v8239_v43 = vmul.f32 %v5394_v1, %v10891_v42  ;;  %v8242_v41 = vmul.f32 %v5428_v13, %v1049_v32  ;;  %v547_v61 = vmul.f32 %v5404_v5, %v10890_v4  ;;  %v10920_v55 = vld [vmem:[#allocation102_spill] sm:$0xff] }
 0x1f3   : > { %v1196_v40 = vsel %vm892_vm0, %v10915_v48, %v10913_v33  ;;  %10916 = vst [vmem:[#allocation55_spill] sm:$0xff] %v8233_v35  ;;  %v10919_v33 = vrot.slane %v8048_v39, 4  ;;  %v10921_v32 = vrot.slane %v8071_v54, 5  ;;  %v8271_v42 = vmul.f32 %v5406_v6, %v10890_v4  ;;  %v10931_v4 = vld [vmem:[#allocation65_spill] sm:$0xff] }
 0x1f4   : > { %10917 = vst [vmem:[#allocation31_spill] sm:$0xff] %v8239_v43  ;;  %v2435_v25 = vadd.f32 %v8180_v31, %v2395_v49  ;;  %v8275_v54 = vmul.f32 %v5406_v6, %v10873_v47  ;;  %v10928_v39 = vrot.slane %v8239_v43, 4  ;;  %v10929_v29 = vrot.slane %v8078_v7, 6  ;;  %v10935_v7 = vld [vmem:[#allocation70_spill] sm:$0xff] }
 0x1f5   : > { %10918 = vst [vmem:[#allocation71_spill] sm:$0xff] %v8242_v41  ;;  %v1877_v48 = vsel %vm1573_vm2, %v10193_v59, %v10919_v33  ;;  %v8260_v17 = vsel %vm2030_vm3, %v10197_v63, %v10921_v32  ;;  %v10922_v33 = vrot.slane %v7483_v50, 3  ;;  %v10923_v59 = vrot.slane %v8233_v35, 3  ;;  %v10926_v63 = vld [vmem:[#allocation35_spill] sm:$0xff] }
 0x1f6   : > { %10925 = vst [vmem:[#allocation73_spill] sm:$0xff] %v8275_v54  ;;  %v2471_v32 = vmax.f32 %v2435_v25, 0.0  ;;  %v10927_v21 = vrot.slane %v10926_v63, 4  ;;  %v527_v49 = vmul.f32 %v5404_v5, %v10931_v4  ;;  %v10932_v20 = vrot.slane %v10924_v15, 1 }
 0x1f7   : > { %v1420_v14 = vsel %vm1349_vm1, %v10923_v59, %v10922_v33  ;;  %v10930_v59 = vrot.slane %v8242_v41, 6  ;;  %v10933_v25 = vrot.slane %v10920_v55, 1  ;;  %v10213_v44 = vrot.slane %v8271_v42, 2 }
 0x1f8   : > { %v1644_v50 = vsel %vm1573_vm2, %v10928_v39, %v10927_v21  ;;  %v10212_v39 = vrot.slane %v8275_v54, 2  ;;  %v10934_v21 = vrot.slane %v10767_v28, 1  ;;  %v10936_v41 = vrot.slane %v10935_v7, 1 }
 0x1f9   : > { %v8287_v33 = vsel %vm2254_vm4, %v10930_v59, %v10929_v29  ;;  %v739_v63 = vsel %vm668_vm5, %v10933_v25, %v10932_v20  ;;  %v2687_v59 = vmul.f32 %v2634_v56, %v2471_v32  ;;  %v10937_v4 = vrot.slane %v7680_v11, 2  ;;  %v10946_v25 = vld [vmem:[#allocation15_spill] sm:$0xff] }
 0x1fa   : > { %v699_v29 = vsel %vm668_vm5, %v10936_v41, %v10934_v21  ;;  %v812_v26 = vadd.f32 %v739_v63, %v547_v61  ;;  %v10938_v15 = vrot.slane %v7524_v53, 2  ;;  %v963_v20 = vsel %vm892_vm0, %v10213_v44, %v10212_v39  ;;  %v10944_v41 = vld [vmem:[#allocation85_spill] sm:$0xff]  ;;  %v10948_v21 = vld [vmem:[#allocation86_spill] sm:$0xff] }
 0x1fb   : > { %v792_v16 = vadd.f32 %v699_v29, %v527_v49  ;;  %v10939_v28 = vrot.slane %v7688_v38, 2  ;;  %v10940_v7 = vrot.slane %v7528_v45, 2  ;;  %v10941_v63 = vrot.slane %v7699_v37, 3  ;;  %2766 = vst.msk [vmem:[#allocation2 + $0x10b] sm:$0xff] %vm2692_vm6, %v2687_v59 }
 0x1fc   : > { %v923_v24 = vsel %vm892_vm0, %v10938_v15, %v10937_v4  ;;  %v10942_v11 = vrot.slane %v7532_v2, 3  ;;  %v10943_v15 = vrot.slane %v7719_v30, 4  ;;  %v10945_v61 = vrot.slane %v10944_v41, 4  ;;  %v10950_v4 = vld [vmem:[#allocation121_spill] sm:$0xff]  ;;  %v10956_v41 = vld [vmem:[#allocation68_spill] sm:$0xff] }
 0x1fd   : > { %v1156_v56 = vsel %vm892_vm0, %v10940_v7, %v10939_v28  ;;  %v1036_v32 = vadd.f32 %v963_v20, %v812_v26  ;;  %v1016_v38 = vadd.f32 %v923_v24, %v792_v16  ;;  %v10947_v45 = vrot.slane %v10946_v25, 4  ;;  %v10952_v28 = vld [vmem:[#allocation67_spill] sm:$0xff]  ;;  %v10958_v26 = vld [vmem:[#allocation41_spill] sm:$0xff] }
 0x1fe   : > { %v1380_v53 = vsel %vm1349_vm1, %v10942_v11, %v10941_v63  ;;  %v1604_v49 = vsel %vm1573_vm2, %v10945_v61, %v10943_v15  ;;  %v10949_v29 = vrot.slane %v10948_v21, 4  ;;  %v10951_v2 = vrot.slane %v10950_v4, 5  ;;  %v10954_v63 = vld [vmem:[#allocation123_spill] sm:$0xff] }
 0x1ff   : > { %v10953_v7 = vrot.slane %v10952_v28, 5  ;;  %v10955_v11 = vrot.slane %v10954_v63, 6  ;;  %v10957_v15 = vrot.slane %v10956_v41, 6  ;;  %v1057_v16 = vmul.f32 %v5390_v60, %v10958_v26 }
 0x200   : > { %v1837_v37 = vsel %vm1573_vm2, %v10949_v29, %v10947_v45  ;;  %v1280_v24 = vmul.f32 %v5392_v0, %v10958_v26  ;;  %v1504_v20 = vmul.f32 %v5394_v1, %v10958_v26  ;;  %v1269_v61 = vadd.f32 %v1196_v40, %v1036_v32  ;;  %v10959_v45 = vld [vmem:[#allocation5_spill] sm:$0xff] }
 0x201   : > { %v2061_v30 = vsel %vm2030_vm3, %v10953_v7, %v10951_v2  ;;  %v2285_v59 = vsel %vm2254_vm4, %v10957_v15, %v10955_v11  ;;  %v1249_v25 = vadd.f32 %v1156_v56, %v1016_v38  ;;  %v8352_v21 = vmul.f32 %v5416_v9, %v10959_v45  ;;  %v10960_v38 = vld [vmem:[#allocation77_spill] sm:$0xff]  ;;  %v10961_v15 = vld [vmem:[#allocation7_spill] sm:$0xff] }
 0x202   : > { %v8356_v29 = vmul.f32 %v5426_v12, %v10959_v45  ;;  %v1135_v4 = vrot.slane %v1057_v16, 2  ;;  %v1359_v2 = vrot.slane %v1280_v24, 3  ;;  %v1583_v28 = vrot.slane %v1504_v20, 4  ;;  %v10962_v16 = vld [vmem:[#allocation83_spill] sm:$0xff] }
 0x203   : > { %v8360_v7 = vmul.f32 %v5428_v13, %v10959_v45  ;;  %v1493_v63 = vadd.f32 %v1420_v14, %v1269_v61  ;;  %v1473_v11 = vadd.f32 %v1380_v53, %v1249_v25  ;;  %v10214_v40 = vrot.slane %v8352_v21, 4  ;;  %v10963_v14 = vld [vmem:[#allocation32_spill] sm:$0xff]  ;;  %v10965_v25 = vld [vmem:[#allocation115_spill] sm:$0xff] }
 0x204   : > { %v10217_v56 = vrot.slane %v8356_v29, 5  ;;  %v517_v41 = vmul.f32 %v5404_v5, %v10960_v38  ;;  %v678_v26 = vrot.slane %v10961_v15, 1  ;;  %v823_v24 = vmul.f32 %v5406_v6, %v10962_v16  ;;  %v10967_v38 = vld [vmem:[#allocation116_spill] sm:$0xff] }
 0x205   : > { %v10220_v32 = vrot.slane %v8360_v7, 6  ;;  %v1717_v20 = vadd.f32 %v1644_v50, %v1493_v63  ;;  %v1697_v39 = vadd.f32 %v1604_v49, %v1473_v11  ;;  %v10964_v53 = vrot.slane %v10963_v14, 4  ;;  %v10969_v49 = vld [vmem:[#allocation81_spill] sm:$0xff] }
 0x206   : > { %v10966_v45 = vrot.slane %v10965_v25, 5  ;;  %v10968_v15 = vrot.slane %v10967_v38, 6  ;;  %v10970_v63 = vrot.slane %v10969_v49, 1  ;;  %v902_v14 = vrot.slane %v823_v24, 2  ;;  %v10975_v38 = vld [vmem:[#allocation117_spill] sm:$0xff] }
 0x207   : > { %v1817_v61 = vsel %vm1573_vm2, %v10964_v53, %v10214_v40  ;;  %v10971_v53 = vld [vmem:[#allocation12_spill] sm:$0xff]  ;;  %v1950_v25 = vadd.f32 %v1877_v48, %v1717_v20  ;;  %v1930_v43 = vadd.f32 %v1837_v37, %v1697_v39  ;;  %v10976_v52 = vrot.slane %v10975_v38, 2 }
 0x208   : > { %v8380_v44 = vsel %vm2030_vm3, %v10966_v45, %v10217_v56  ;;  %v8387_v50 = vsel %vm2254_vm4, %v10968_v15, %v10220_v32  ;;  %v679_v11 = vsel %vm668_vm5, %v10970_v63, %v678_v26  ;;  %v10972_v40 = vrot.slane %v10971_v53, 2  ;;  %v10973_v56 = vld [vmem:[#allocation118_spill] sm:$0xff]  ;;  %v10977_v32 = vld [vmem:[#allocation119_spill] sm:$0xff]  ;;  %v10979_v53 = vld [vmem:[#allocation69_spill] sm:$0xff] }
 0x209   : > { %v782_v45 = vadd.f32 %v679_v11, %v517_v41  ;;  %v10974_v3 = vrot.slane %v10973_v56, 3  ;;  %v903_v15 = vsel %vm892_vm0, %v10976_v52, %v902_v14  ;;  %v10978_v49 = vrot.slane %v10977_v32, 4  ;;  %v10980_v56 = vld [vmem:[#allocation64_spill] sm:$0xff]  ;;  %v10981_v32 = vld [vmem:[#allocation39_spill] sm:$0xff] }
 0x20a   : > { %v1136_v54 = vsel %vm892_vm0, %v10972_v40, %v1135_v4  ;;  %v518_v24 = vmul.f32 %v5404_v5, %v10962_v16  ;;  %v10221_v40 = vrot.slane %v10979_v53, 1  ;;  %v2174_v48 = vadd.f32 %v8260_v17, %v1950_v25 }
 0x20b   : > { %v1360_v35 = vsel %vm1349_vm1, %v10974_v3, %v1359_v2  ;;  %v1584_v63 = vsel %vm1573_vm2, %v10978_v49, %v1583_v28  ;;  %v2154_v39 = vadd.f32 %v2061_v30, %v1930_v43  ;;  %v1006_v37 = vadd.f32 %v903_v15, %v782_v45 }
 0x20c   : > { %v8410_v3 = vmul.f32 %v5406_v6, %v10980_v56  ;;  %v681_v52 = vsel %vm668_vm5, %v678_v26, %v10221_v40  ;;  %v8417_v41 = vmul.f32 %v5390_v60, %v10981_v32  ;;  %v8421_v16 = vmul.f32 %v5392_v0, %v10981_v32 }
 0x20d   : > { %v8425_v17 = vmul.f32 %v5394_v1, %v10981_v32  ;;  %v2398_v43 = vadd.f32 %v8287_v33, %v2174_v48  ;;  %v2378_v30 = vadd.f32 %v2285_v59, %v2154_v39  ;;  %v1239_v20 = vadd.f32 %v1136_v54, %v1006_v37  ;;  %v10982_v32 = vld [vmem:[#allocation48_spill] sm:$0xff]  ;;  %v2799_v33 = vld [vmem:[#allocation2 + $0xe0] sm:$0xff]  ;;  %v2800_v54 = vld [vmem:[#allocation2 + $0xe8] sm:$0xff]  ;;  %v2549_v59 = vpop.permute.xlu1 %2548 }
 0x20e   : > { %v783_v11 = vadd.f32 %v681_v52, %v518_v24  ;;  %v10227_v25 = vrot.slane %v8410_v3, 2  ;;  %v10225_v26 = vrot.slane %v8417_v41, 2  ;;  %v10224_v45 = vrot.slane %v8421_v16, 3 }
 0x20f   : > { %v10226_v38 = vrot.slane %v8425_v17, 4  ;;  %v2438_v15 = vadd.f32 %v8180_v31, %v2398_v43  ;;  %v2418_v49 = vadd.f32 %v8180_v31, %v2378_v30  ;;  %v1463_v40 = vadd.f32 %v1360_v35, %v1239_v20  ;;  %v2649_v20 = vpop.permute.xlu2 %2648 }
 0x210   : > { %v8436_v53 = vmul.f32 %v5416_v9, %v10982_v32  ;;  %v905_v24 = vsel %vm892_vm0, %v902_v14, %v10227_v25  ;;  %v1138_v48 = vsel %vm892_vm0, %v1135_v4, %v10225_v26  ;;  %v1362_v39 = vsel %vm1349_vm1, %v1359_v2, %v10224_v45  ;;  %v2801_v45 = vld [vmem:[#allocation2 + $0xf0] sm:$0xff]  ;;  %v2802_v26 = vld [vmem:[#allocation2 + $0xf8] sm:$0xff] }
 0x211   : > { %v1586_v35 = vsel %vm1573_vm2, %v1583_v28, %v10226_v38  ;;  %v2474_v37 = vmax.f32 %v2438_v15, 0.0  ;;  %v2454_v52 = vmax.f32 %v2418_v49, 0.0  ;;  %v1687_v43 = vadd.f32 %v1584_v63, %v1463_v40  ;;  %v2803_v40 = vld [vmem:[#allocation2 + $0x100] sm:$0xff] }
 0x212   : > { %v1007_v30 = vadd.f32 %v905_v24, %v783_v11  ;;  %v10231_v9 = vrot.slane %v8436_v53, 4  ;;  %v8453_v14 = vmul.f32 %v5426_v12, %v10982_v32  ;;  %v8457_v4 = vmul.f32 %v5428_v13, %v10982_v32  ;;  %v2804_v11 = vld [vmem:[#allocation2 + $0x108] sm:$0xff] }
 0x213   : > { %v8459_v2 = vpack.c.bf16 %v2800_v54, %v2799_v33  ;;  %v2690_v28 = vmul.f32 %v2649_v20, %v2474_v37  ;;  %v2670_v15 = vmul.f32 %v2549_v59, %v2454_v52  ;;  %v1920_v49 = vadd.f32 %v1817_v61, %v1687_v43  ;;  %v2499_v54 = vpop.permute.xlu0 %2498 }
 0x214   : > { %v1240_v63 = vadd.f32 %v1138_v48, %v1007_v30  ;;  %v10983_v24 = vrot.slane %v8352_v21, 4  ;;  %v10230_v25 = vrot.slane %v8453_v14, 5  ;;  %v10228_v32 = vrot.slane %v8457_v4, 6 }
 0x215   : > { %v8469_v33 = vshrl.u32 %v8151_v18, 16  ;;  %2769 = vst.msk [vmem:[#allocation2 + $0x123] sm:$0xff] %vm2692_vm6, %v2690_v28  ;;  %v2144_v61 = vadd.f32 %v8380_v44, %v1920_v49  ;;  %v8474_v48 = vshll.u32 %v8459_v2, 16  ;;  %v8476_v37 = vpack.c.bf16 %v2802_v26, %v2801_v45 }
 0x216   : > { %v1819_v38 = vsel %vm1573_vm2, %v10983_v24, %v10231_v9  ;;  %v1464_v59 = vadd.f32 %v1362_v39, %v1240_v63  ;;  %2749 = vst.msk [vmem:[#allocation2 + $0x83] sm:$0xff] %vm2692_vm6, %v2670_v15  ;;  %v10984_v21 = vrot.slane %v8356_v29, 5  ;;  %v10985_v43 = vrot.slane %v8360_v7, 6  ;;  %v10987_v63 = vld [vmem:[#allocation72_spill] sm:$0xff] }
 0x217   : > { %v10986_v39 = vrot.slane %v8175_v62, 1  ;;  %v8492_v26 = vpack.c.bf16 %v2804_v11, %v2803_v40  ;;  %v2368_v45 = vadd.f32 %v8387_v50, %v2144_v61  ;;  %v2949_v28 = vrot.slane %v8474_v48, 1 }
 0x218   : > { %v2043_v52 = vsel %vm2030_vm3, %v10984_v21, %v10230_v25  ;;  %v2267_v44 = vsel %vm2254_vm4, %v10985_v43, %v10228_v32  ;;  %v1688_v20 = vadd.f32 %v1586_v35, %v1464_v59  ;;  %v8497_v29 = vshll.u32 %v8476_v37, 16 }
 0x219   : > { %v2945_v30 = vor.u32 %v8469_v33, %v10986_v39  ;;  %v8500_v15 = vshrl.u32 %v8476_v37, 16  ;;  %v8503_v7 = vshll.u32 %v8492_v26, 16  ;;  %v545_v49 = vmul.f32 %v5404_v5, %v10821_v27 }
 0x21a   : > { %v734_v40 = vrot.slane %v10987_v63, 1  ;;  %v2408_v11 = vadd.f32 %v8180_v31, %v2368_v45  ;;  %v1921_v50 = vadd.f32 %v1819_v38, %v1688_v20  ;;  %v2957_v24 = vrot.slane %v8497_v29, 1 }
 0x21b   : > { %v2950_v35 = vsel %vm2834_vm7, %v2945_v30, %v2949_v28  ;;  %v10229_v61 = vrot.slane %v8503_v7, 1  ;;  %v10988_v59 = vrot.slane %v10889_v36, 1  ;;  %v851_v27 = vmul.f32 %v5406_v6, %v10860_v19 }
 0x21c   : > { %5056 = vmatmul.msk.bf16.gmra.mxu2 %vm2692_vm6, %v2950_v35  ;;  %v1085_v38 = vmul.f32 %v5390_v60, %v10873_v47  ;;  %v2444_v43 = vmax.f32 %v2408_v11, 0.0  ;;  %v2145_v39 = vadd.f32 %v2043_v52, %v1921_v50  ;;  %v2961_v30 = vor.u32 %v8500_v15, %v2957_v24 }
 0x21d   : > { %v735_v21 = vsel %vm668_vm5, %v10988_v59, %v734_v40  ;;  %v958_v20 = vrot.slane %v851_v27, 2  ;;  %v1308_v36 = vmul.f32 %v5392_v0, %v10873_v47  ;;  %v1532_v35 = vmul.f32 %v5394_v1, %v10873_v47  ;;  %v8543_v27 = vpop.permute.xlu0 %2638 }
 0x21e   : > { %v810_v45 = vadd.f32 %v735_v21, %v545_v49  ;;  %v1191_v63 = vrot.slane %v1085_v38, 2  ;;  %v1197_v6 = vrot.slane %v8209_v8, 2  ;;  %v2660_v59 = vmul.f32 %v2499_v54, %v2444_v43  ;;  %v10991_v38 = vld [vmem:[#allocation18_spill] sm:$0xff] }
 0x21f   : > { %v2369_v32 = vadd.f32 %v2267_v44, %v2145_v39  ;;  %v2966_v60 = vsel %vm2834_vm7, %v2961_v30, %v10229_v61  ;;  %v10989_v52 = vrot.slane %v8083_v51, 2  ;;  %v10990_v11 = vrot.slane %v8092_v22, 2  ;;  %v2504_v39 = vpop.permute.xlu1 %2503  ;;  %v10992_v22 = vld [vmem:[#allocation84_spill] sm:$0xff]  ;;  %v2787_v21 = vld [vmem:[#allocation2 + $0x80] sm:$0xff] }
 0x220   : > { %5058 = vmatmul.msk.bf16.vlgmr.msra.gmra.mxu3 %vm2692_vm6, %v2966_v60  ;;  %v1415_v50 = vrot.slane %v1308_v36, 3  ;;  %v1639_v1 = vrot.slane %v1532_v35, 4  ;;  %2739 = vst.msk [vmem:[#allocation2 + $0x33] sm:$0xff] %vm2692_vm6, %v2660_v59  ;;  %v2213_v51 = vmul.f32 %v5428_v13, %v10991_v38  ;;  %v10993_v30 = vrot.slane %v10992_v22, 4 }
 0x221   : > { %v959_v49 = vsel %vm892_vm0, %v10989_v52, %v958_v20  ;;  %v1192_v0 = vsel %vm892_vm0, %v10990_v11, %v1191_v63  ;;  %v2409_v54 = vadd.f32 %v8180_v31, %v2369_v32  ;;  %v10994_v36 = vrot.slane %v8114_v46, 4  ;;  %v2788_v46 = vld [vmem:[#allocation2 + $0x88] sm:$0xff] }
 0x222   : > { %v1034_v44 = vadd.f32 %v959_v49, %v810_v45  ;;  %v546_v59 = vmul.f32 %v5404_v5, %v10860_v19  ;;  %v10995_v32 = vrot.slane %v10920_v55, 1  ;;  %v10996_v49 = vld [vmem:[#allocation66_spill] sm:$0xff]  ;;  %v10998_v38 = vrot.slane %v8136_v23, 5 }
 0x223   : > { %v1873_v35 = vsel %vm1573_vm2, %v10994_v36, %v10993_v30  ;;  %v2445_v60 = vmax.f32 %v2409_v54, 0.0  ;;  %v10997_v11 = vrot.slane %v10996_v49, 5  ;;  %v2320_v43 = vrot.slane %v2213_v51, 6  ;;  %v5098_v23 = vld [vmem:[%s9832_s3 + $0x6] sm:$0x3] }
 0x224   : > { %v737_v45 = vsel %vm668_vm5, %v734_v40, %v10995_v32  ;;  %v1267_v52 = vadd.f32 %v1192_v0, %v1034_v44  ;;  %v10999_v30 = vrot.slane %v8096_v57, 3  ;;  %v11000_v19 = vrot.slane %v8104_v58, 4  ;;  %v11002_v32 = vld [vmem:[#allocation56_spill] sm:$0xff] }
 0x225   : > { %v2097_v61 = vsel %vm2030_vm3, %v10998_v38, %v10997_v11  ;;  %v811_v40 = vadd.f32 %v737_v45, %v546_v59  ;;  %v11001_v0 = vrot.slane %v8271_v42, 2  ;;  %v2661_v44 = vmul.f32 %v2504_v39, %v2445_v60  ;;  %v11004_v38 = vld [vmem:[#allocation55_spill] sm:$0xff] }
 0x226   : > { %v1416_v36 = vsel %vm1349_vm1, %v10999_v30, %v1415_v50  ;;  %v1640_v55 = vsel %vm1573_vm2, %v11000_v19, %v1639_v1  ;;  %v11003_v11 = vrot.slane %v11002_v32, 2  ;;  %v11005_v30 = vrot.slane %v11004_v38, 3  ;;  %v11006_v19 = vld [vmem:[#allocation78_spill] sm:$0xff]  ;;  %v11010_v60 = vld [vmem:[#allocation91_spill] sm:$0xff]  ;;  %v11013_v32 = vld [vmem:[#allocation33_spill] sm:$0xff] }
 0x227   : > { %v961_v54 = vsel %vm892_vm0, %v958_v20, %v11001_v0  ;;  %v1491_v51 = vadd.f32 %v1416_v36, %v1267_v52  ;;  %v11007_v59 = vrot.slane %v11006_v19, 6  ;;  %v11008_v20 = vld [vmem:[#allocation31_spill] sm:$0xff]  ;;  %v8587_v9 = vpack.c.bf16 %v2788_v46, %v2787_v21  ;;  %2740 = vst.msk [vmem:[#allocation2 + $0x3b] sm:$0xff] %vm2692_vm6, %v2661_v44  ;;  %v11017_v21 = vld [vmem:[#allocation20_spill] sm:$0xff] }
 0x228   : > { %v1194_v57 = vsel %vm892_vm0, %v1191_v63, %v11003_v11  ;;  %v1418_v58 = vsel %vm1349_vm1, %v1415_v50, %v11005_v30  ;;  %v1035_v45 = vadd.f32 %v961_v54, %v811_v40  ;;  %v11009_v0 = vrot.slane %v11008_v20, 4  ;;  %v11014_v11 = vld [vmem:[#allocation60_spill] sm:$0xff]  ;;  %v11021_v30 = vld [vmem:[#allocation46_spill] sm:$0xff] }
 0x229   : > { %v2321_v42 = vsel %vm2254_vm4, %v11007_v59, %v2320_v43  ;;  %v1715_v39 = vadd.f32 %v1640_v55, %v1491_v51  ;;  %v11011_v63 = vrot.slane %v11010_v60, 4  ;;  %v11012_v52 = vrot.slane %v10992_v22, 4  ;;  %v11019_v55 = vld [vmem:[#allocation8_spill] sm:$0xff]  ;;  %v11024_v59 = vld [vmem:[#allocation71_spill] sm:$0xff] }
 0x22a   : > { %v1642_v25 = vsel %vm1573_vm2, %v1639_v1, %v11009_v0  ;;  %v3545_v36 = vsel %vm2254_vm4, %v5098_v23, 0  ;;  %v529_v40 = vmul.f32 %v5404_v5, %v11013_v32  ;;  %v1268_v54 = vadd.f32 %v1194_v57, %v1035_v45 }
 0x22b   : > { %v1875_v50 = vsel %vm1573_vm2, %v11012_v52, %v11011_v63  ;;  %v8599_v38 = vshrl.u32 %v11014_v11, 16  ;;  %v8602_v1 = vshll.u32 %v8587_v9, 16  ;;  %3554 = vmatpush.bf16.msrb.mxu3 %v3545_v36  ;;  %v11018_v46 = vrot.slane %v11017_v21, 1  ;;  %v11026_v63 = vld [vmem:[#allocation22_spill] sm:$0xff]  ;;  %v11028_v21 = vld [vmem:[#allocation24_spill] sm:$0xff] }
 0x22c   : > { %v11020_v44 = vrot.slane %v11019_v55, 1  ;;  %v1948_v51 = vadd.f32 %v1873_v35, %v1715_v39  ;;  %v11022_v23 = vrot.slane %v11021_v30, 5  ;;  %v11023_v19 = vrot.slane %v10996_v49, 5  ;;  %v11030_v39 = vld [vmem:[#allocation3_spill] sm:$0xff]  ;;  %v11032_v30 = vld [vmem:[#allocation28_spill] sm:$0xff] }
 0x22d   : > { %11015 = vst [vmem:[#allocation80_spill] sm:$0xff] %v8599_v38  ;;  %v11025_v45 = vrot.slane %v11024_v59, 6  ;;  %v1492_v60 = vadd.f32 %v1418_v58, %v1268_v54  ;;  %v11027_v52 = vrot.slane %v11026_v63, 1  ;;  %v10232_v32 = vrot.slane %v8602_v1, 1 }
 0x22e   : > { %11016 = vst [vmem:[#allocation75_spill] sm:$0xff] %v8602_v1  ;;  %v703_v22 = vsel %vm668_vm5, %v11020_v44, %v11018_v46  ;;  %v2099_v57 = vsel %vm2030_vm3, %v11023_v19, %v11022_v23  ;;  %v11029_v35 = vrot.slane %v11028_v21, 2  ;;  %v11031_v46 = vrot.slane %v11030_v39, 2  ;;  %v11034_v19 = vld [vmem:[#allocation14_spill] sm:$0xff] }
 0x22f   : > { %v2323_v20 = vsel %vm2254_vm4, %v2320_v43, %v11025_v45  ;;  %v794_v0 = vadd.f32 %v703_v22, %v529_v40  ;;  %v2897_v36 = vor.u32 %v8599_v38, %v11027_v52  ;;  %v2172_v55 = vadd.f32 %v2097_v61, %v1948_v51  ;;  %v11036_v40 = vld [vmem:[#allocation29_spill] sm:$0xff]  ;;  %v11038_v22 = vld [vmem:[#allocation62_spill] sm:$0xff]  ;;  %v8636_v52 = vpop.permute.xlu0 %2558 }
 0x230   : > { %v927_v49 = vsel %vm892_vm0, %v11031_v46, %v11029_v35  ;;  %v11033_v23 = vrot.slane %v11032_v30, 2  ;;  %v11035_v43 = vrot.slane %v11034_v19, 2  ;;  %v11037_v54 = vrot.slane %v11036_v40, 3  ;;  %v11040_v51 = vld [vmem:[#allocation30_spill] sm:$0xff]  ;;  %v11042_v35 = vld [vmem:[#allocation120_spill] sm:$0xff] }
 0x231   : > { %v1018_v44 = vadd.f32 %v927_v49, %v794_v0  ;;  %v11039_v59 = vrot.slane %v11038_v22, 3  ;;  %v1716_v21 = vadd.f32 %v1642_v25, %v1492_v60  ;;  %v2902_v61 = vsel %vm2834_vm7, %v2897_v36, %v10232_v32  ;;  %v11044_v19 = vld [vmem:[#allocation10_spill] sm:$0xff]  ;;  %v11048_v36 = vld [vmem:[#allocation44_spill] sm:$0xff]  ;;  %v11050_v22 = vld [vmem:[#allocation69_spill] sm:$0xff] }
 0x232   : > { %v1160_v58 = vsel %vm892_vm0, %v11035_v43, %v11033_v23  ;;  %v11041_v0 = vrot.slane %v11040_v51, 4  ;;  %v11043_v39 = vrot.slane %v11042_v35, 4  ;;  %v519_v49 = vmul.f32 %v5404_v5, %v10980_v56  ;;  %5050 = vmatmul.msk.bf16.gmra.mxu1 %vm2692_vm6, %v2902_v61  ;;  %v11046_v25 = vld [vmem:[#allocation26_spill] sm:$0xff]  ;;  %v11052_v35 = vld [vmem:[#allocation11_spill] sm:$0xff]  ;;  %v11058_v61 = vld [vmem:[#allocation124_spill] sm:$0xff] }
 0x233   : > { %v1384_v45 = vsel %vm1349_vm1, %v11039_v59, %v11037_v54  ;;  %v2396_v30 = vadd.f32 %v2321_v42, %v2172_v55  ;;  %v1251_v23 = vadd.f32 %v1160_v58, %v1018_v44  ;;  %v11045_v43 = vrot.slane %v11044_v19, 4  ;;  %v11054_v56 = vld [vmem:[#allocation122_spill] sm:$0xff]  ;;  %v11056_v44 = vld [vmem:[#allocation13_spill] sm:$0xff] }
 0x234   : > { %v1608_v46 = vsel %vm1573_vm2, %v11043_v39, %v11041_v0  ;;  %v11047_v60 = vrot.slane %v11046_v25, 4  ;;  %v11049_v54 = vrot.slane %v11048_v36, 1  ;;  %v11051_v59 = vrot.slane %v11050_v22, 1  ;;  %v2778_v36 = vld [vmem:[#allocation2 + $0x38] sm:$0xff] }
 0x235   : > { %v1949_v0 = vadd.f32 %v1875_v50, %v1716_v21  ;;  %v11053_v39 = vrot.slane %v11052_v35, 5  ;;  %v11055_v42 = vrot.slane %v11054_v56, 5  ;;  %v11057_v58 = vrot.slane %v11056_v44, 6  ;;  %v11063_v35 = vld [vmem:[#allocation92_spill] sm:$0xff] }
 0x236   : > { %v1841_v40 = vsel %vm1573_vm2, %v11047_v60, %v11045_v43  ;;  %v683_v51 = vsel %vm668_vm5, %v11051_v59, %v11049_v54  ;;  %v11059_v19 = vrot.slane %v11058_v61, 6  ;;  %v2777_v60 = vld [vmem:[#allocation2 + $0x30] sm:$0xff]  ;;  %v2436_v22 = vadd.f32 %v8180_v31, %v2396_v30  ;;  %v11069_v30 = vld [vmem:[#allocation94_spill] sm:$0xff] }
 0x237   : > { %v2065_v55 = vsel %vm2030_vm3, %v11055_v42, %v11053_v39  ;;  %v784_v43 = vadd.f32 %v683_v51, %v519_v49  ;;  %v1475_v32 = vadd.f32 %v1384_v45, %v1251_v23  ;;  %v11060_v54 = vld [vmem:[#allocation40_spill] sm:$0xff]  ;;  %v11062_v21 = vrot.slane %v8410_v3, 2  ;;  %v11066_v49 = vld [vmem:[#allocation93_spill] sm:$0xff] }
 0x238   : > { %v2289_v25 = vsel %vm2254_vm4, %v11059_v19, %v11057_v58  ;;  %v11061_v50 = vrot.slane %v11060_v54, 2  ;;  %v11064_v39 = vrot.slane %v11063_v35, 2  ;;  %v11065_v56 = vrot.slane %v8417_v41, 2  ;;  %v11072_v41 = vld [vmem:[#allocation97_spill] sm:$0xff] }
 0x239   : > { %v2173_v44 = vadd.f32 %v2099_v57, %v1949_v0  ;;  %v11067_v51 = vrot.slane %v11066_v49, 3  ;;  %v11068_v61 = vrot.slane %v8421_v16, 3  ;;  %v11070_v23 = vrot.slane %v11069_v30, 4  ;;  %v1730_v49 = vpop.permute.xlu0 %1729 }
 0x23a   : > { %v907_v59 = vsel %vm892_vm0, %v11062_v21, %v11061_v50  ;;  %v1140_v42 = vsel %vm892_vm0, %v11065_v56, %v11064_v39  ;;  %v11071_v3 = vrot.slane %v8425_v17, 4  ;;  %v2472_v54 = vmax.f32 %v2436_v22, 0.0  ;;  %v11074_v39 = vld [vmem:[#allocation76_spill] sm:$0xff] }
 0x23b   : > { %v1008_v58 = vadd.f32 %v907_v59, %v784_v43  ;;  %v1364_v45 = vsel %vm1349_vm1, %v11068_v61, %v11067_v51  ;;  %v1699_v50 = vadd.f32 %v1608_v46, %v1475_v32  ;;  %v8690_v21 = vpack.c.bf16 %v2778_v36, %v2777_v60  ;;  %v11081_v61 = vld [vmem:[#allocation47_spill] sm:$0xff] }
 0x23c   : > { %v1588_v19 = vsel %vm1573_vm2, %v11071_v3, %v11070_v23  ;;  %v8693_v35 = vshrl.u32 %v11072_v41, 16  ;;  %v2397_v57 = vadd.f32 %v2323_v20, %v2173_v44  ;;  %v8696_v43 = vshrl.u32 %v8459_v2, 16  ;;  %v2644_v20 = vpop.permute.xlu1 %2643 }
 0x23d   : > { %v1241_v0 = vadd.f32 %v1140_v42, %v1008_v58  ;;  %v548_v16 = vmul.f32 %v5404_v5, %v10873_v47  ;;  %v2688_v59 = vmul.f32 %v8543_v27, %v2472_v54  ;;  %v1932_v17 = vadd.f32 %v1841_v40, %v1699_v50  ;;  %v11077_v42 = vld [vmem:[#allocation34_spill] sm:$0xff]  ;;  %v11079_v47 = vld [vmem:[#allocation27_spill] sm:$0xff] }
 0x23e   : > { %11073 = vst [vmem:[#allocation43_spill] sm:$0xff] %v8693_v35  ;;  %v11075_v56 = vrot.slane %v11074_v39, 1  ;;  %v8705_v46 = vshll.u32 %v8690_v21, 16  ;;  %v2437_v60 = vadd.f32 %v8180_v31, %v2397_v57  ;;  %v2953_v22 = vor.u32 %v8696_v43, %v2949_v28  ;;  %v11085_v57 = vld [vmem:[#allocation25_spill] sm:$0xff] }
 0x23f   : > { %v1465_v36 = vadd.f32 %v1364_v45, %v1241_v0  ;;  %v11078_v5 = vrot.slane %v11077_v42, 1  ;;  %v11080_v27 = vrot.slane %v11079_v47, 1  ;;  %2767 = vst.msk [vmem:[#allocation2 + $0x113] sm:$0xff] %vm2692_vm6, %v2688_v59  ;;  %v2156_v44 = vadd.f32 %v2065_v55, %v1932_v17  ;;  %v11083_v45 = vld [vmem:[#allocation73_spill] sm:$0xff] }
 0x240   : > { %v2857_v32 = vor.u32 %v8693_v35, %v11075_v56  ;;  %11076 = vst [vmem:[#allocation99_spill] sm:$0xff] %v8705_v46  ;;  %v2861_v58 = vrot.slane %v8705_v46, 1  ;;  %v11082_v30 = vrot.slane %v11081_v61, 2  ;;  %v11084_v23 = vrot.slane %v11083_v45, 2 }
 0x241   : > { %v741_v40 = vsel %vm668_vm5, %v11080_v27, %v11078_v5  ;;  %v2473_v28 = vmax.f32 %v2437_v60, 0.0  ;;  %v1689_v54 = vadd.f32 %v1588_v19, %v1465_v36  ;;  %v2958_v50 = vsel %vm2834_vm7, %v2953_v22, %v2957_v24  ;;  %v11090_v36 = vld [vmem:[#allocation96_spill] sm:$0xff] }
 0x242   : > { %v813_v51 = vadd.f32 %v741_v40, %v548_v16  ;;  %v965_v3 = vsel %vm892_vm0, %v11084_v23, %v11082_v30  ;;  %v11086_v55 = vrot.slane %v11085_v57, 2  ;;  %v2380_v59 = vadd.f32 %v2289_v25, %v2156_v44  ;;  %v11087_v16 = vld [vmem:[#allocation95_spill] sm:$0xff]  ;;  %5057 = vmatmul.msk.bf16.gmra.mxu2 %vm2692_vm6, %v2958_v50  ;;  %v11097_v23 = vld [vmem:[#allocation50_spill] sm:$0xff] }
 0x243   : > { %v11088_v17 = vrot.slane %v11087_v16, 4  ;;  %v11089_v56 = vrot.slane %v8436_v53, 4  ;;  %v2862_v19 = vsel %vm2834_vm7, %v2857_v32, %v2861_v58  ;;  %v2689_v60 = vmul.f32 %v2644_v20, %v2473_v28  ;;  %v11093_v53 = vld [vmem:[#allocation6_spill] sm:$0xff] }
 0x244   : > { %v1198_v0 = vsel %vm892_vm0, %v11086_v55, %v1197_v6  ;;  %v1037_v24 = vadd.f32 %v965_v3, %v813_v51  ;;  %v11091_v22 = vrot.slane %v11090_v36, 5  ;;  %v11092_v6 = vrot.slane %v8453_v14, 5  ;;  %5045 = vmatmul.msk.bf16.gmra.mxu0 %vm2692_vm6, %v2862_v19  ;;  %v11095_v51 = vld [vmem:[#allocation59_spill] sm:$0xff]  ;;  %v11103_v55 = vld [vmem:[#allocation89_spill] sm:$0xff]  ;;  %v2509_v19 = vpop.permute.xlu1 %2508 }
 0x245   : > { %v1821_v42 = vsel %vm1573_vm2, %v11089_v56, %v11088_v17  ;;  %v1769_v5 = vmul.f32 %v11093_v53, %v1730_v49  ;;  %v2420_v47 = vadd.f32 %v8180_v31, %v2380_v59  ;;  %v1992_v32 = vmul.f32 %v5426_v12, %v1730_v49  ;;  %2768 = vst.msk [vmem:[#allocation2 + $0x11b] sm:$0xff] %vm2692_vm6, %v2689_v60 }
 0x246   : > { %v1922_v8 = vadd.f32 %v1821_v42, %v1689_v54  ;;  %v2045_v25 = vsel %vm2030_vm3, %v11092_v6, %v11091_v22  ;;  %v1270_v27 = vadd.f32 %v1198_v0, %v1037_v24  ;;  %v2216_v40 = vmul.f32 %v5428_v13, %v1730_v49  ;;  %v11101_v49 = vld [vmem:[#allocation35_spill] sm:$0xff] }
 0x247   : > { %v11094_v44 = vrot.slane %v8217_v10, 3  ;;  %v11096_v14 = vrot.slane %v11095_v51, 3  ;;  %v1878_v30 = vrot.slane %v1769_v5, 4  ;;  %v2456_v45 = vmax.f32 %v2420_v47, 0.0 }
 0x248   : > { %v2146_v20 = vadd.f32 %v2045_v25, %v1922_v8  ;;  %v11098_v3 = vrot.slane %v11097_v23, 6  ;;  %v11099_v28 = vrot.slane %v8457_v4, 6  ;;  %v11100_v13 = vrot.slane %v8223_v34, 4  ;;  %v2805_v34 = vld [vmem:[#allocation2 + $0x110] sm:$0xff]  ;;  %v11105_v8 = vld [vmem:[#allocation58_spill] sm:$0xff]  ;;  %v11107_v25 = vld [vmem:[#allocation17_spill] sm:$0xff] }
 0x249   : > { %v1422_v61 = vsel %vm1349_vm1, %v11096_v14, %v11094_v44  ;;  %v11102_v57 = vrot.slane %v11101_v49, 4  ;;  %v11104_v0 = vrot.slane %v11103_v55, 4  ;;  %v2102_v16 = vrot.slane %v1992_v32, 5  ;;  %v11109_v32 = vld [vmem:[#allocation113_spill] sm:$0xff] }
 0x24a   : > { %v2269_v54 = vsel %vm2254_vm4, %v11099_v28, %v11098_v3  ;;  %v1494_v12 = vadd.f32 %v1422_v61, %v1270_v27  ;;  %v2672_v17 = vmul.f32 %v8636_v52, %v2456_v45  ;;  %v2326_v42 = vrot.slane %v2216_v40, 6 }
 0x24b   : > { %v2370_v50 = vadd.f32 %v2269_v54, %v2146_v20  ;;  %v1646_v10 = vsel %vm1573_vm2, %v11102_v57, %v11100_v13  ;;  %v1879_v59 = vsel %vm1573_vm2, %v11104_v0, %v1878_v30  ;;  %v11106_v36 = vrot.slane %v11105_v8, 5  ;;  %v11110_v20 = vld [vmem:[#allocation114_spill] sm:$0xff]  ;;  %v5155_v0 = vld [vmem:[%s9832_s3 + $0xc] sm:$0x3] }
 0x24c   : > { %v1718_v56 = vadd.f32 %v1646_v10, %v1494_v12  ;;  %2751 = vst.msk [vmem:[#allocation2 + $0x93] sm:$0xff] %vm2692_vm6, %v2672_v17  ;;  %v11108_v53 = vrot.slane %v11107_v25, 6  ;;  %v2806_v52 = vld [vmem:[#allocation2 + $0x118] sm:$0xff]  ;;  %v3299_v40 = vrot.slane %v11109_v32, 1  ;;  %v3300_v44 = vrot.slane %v11110_v20, 1  ;;  %v2654_v49 = vpop.permute.xlu1 %2653 }
 0x24d   : > { %v2410_v4 = vadd.f32 %v8180_v31, %v2370_v50  ;;  %v2103_v22 = vsel %vm2030_vm3, %v11106_v36, %v2102_v16  ;;  %v8778_v27 = vpack.c.bf16 %v2806_v52, %v2805_v34  ;;  %v8784_v14 = vshrl.u32 %v8492_v26, 16  ;;  %v8819_v34 = vld [vmem:[#allocation2 + $0x120] sm:$0xff] }
 0x24e   : > { %v1951_v24 = vadd.f32 %v1879_v59, %v1718_v56  ;;  %v2327_v5 = vsel %vm2254_vm4, %v11108_v53, %v2326_v42  ;;  %v11111_v45 = vrot.slane %v8503_v7, 1  ;;  %v3301_v12 = vsel %vm668_vm5, %v3299_v40, %v3300_v44  ;;  %v5174_v59 = vld [vmem:[%s9832_s3 + $0xe] sm:$0x3] }
 0x24f   : > { %v2446_v60 = vmax.f32 %v2410_v4, 0.0  ;;  %v8787_v61 = vshll.u32 %v8778_v27, 16  ;;  %v4211_v16 = vsel %vm2254_vm4, %v5155_v0, 0  ;;  %v4491_v17 = vsel %vm2254_vm4, %v5174_v59, 0  ;;  %v11122_v59 = vld [vmem:[#allocation4_spill] sm:$0xff] }
 0x250   : > { %v2175_v6 = vadd.f32 %v2103_v22, %v1951_v24  ;;  %v2969_v23 = vor.u32 %v8784_v14, %v11111_v45  ;;  %v11114_v4 = vrot.slane %v8602_v1, 1  ;;  %4220 = vmatpush.bf16.msra.mxu2 %v4211_v16  ;;  %4500 = vmatpush.bf16.msra.mxu3 %v4491_v17  ;;  %v8825_v36 = vshrl.u32 %v8690_v21, 16 }
 0x251   : > { %v2662_v47 = vmul.f32 %v2509_v19, %v2446_v60  ;;  %v2973_v3 = vrot.slane %v8787_v61, 1  ;;  %v8841_v52 = vshrl.u32 %v8778_v27, 16  ;;  %v3302_v40 = vrot.slane %v11072_v41, 1 }
 0x252   : > { %v2399_v51 = vadd.f32 %v2327_v5, %v2175_v6  ;;  %5080 = vmatmul.msk.bf16.vlgmr.msrb.gmra.mxu2 %vm2692_vm6, %v3301_v12  ;;  %11116 = vst [vmem:[#allocation57_spill] sm:$0xff] %v8825_v36  ;;  %v8833_v6 = vpack.c.bf16 %v8819_v34, %v8819_v34  ;;  %v2865_v25 = vor.u32 %v8825_v36, %v2861_v58  ;;  %v5193_v58 = vld [vmem:[%s9832_s3 + $0x10] sm:$0x3]  ;;  %v11123_v16 = vrot.slane %v11122_v59, 1 }
 0x253   : > { %2741 = vst.msk [vmem:[#allocation2 + $0x43] sm:$0xff] %vm2692_vm6, %v2662_v47  ;;  %v2789_v28 = vld [vmem:[#allocation2 + $0x90] sm:$0xff]  ;;  %v2790_v54 = vld [vmem:[#allocation2 + $0x98] sm:$0xff]  ;;  %v2974_v57 = vsel %vm2834_vm7, %v2969_v23, %v2973_v3  ;;  %v4723_v23 = vsel %vm2254_vm4, %v5193_v58, 0 }
 0x254   : > { %v2439_v30 = vadd.f32 %v8180_v31, %v2399_v51  ;;  %v8795_v13 = vpack.c.bf16 %v2790_v54, %v2789_v28  ;;  %5059 = vmatmul.msk.bf16.gmra.mxu3 %vm2692_vm6, %v2974_v57  ;;  %v8801_v31 = vshrl.u32 %v8587_v9, 16  ;;  %v2979_v47 = vshll.u32 %v8833_v6, 16  ;;  %v5136_v51 = vld [vmem:[%s9832_s3 + $0xa] sm:$0x3]  ;;  %4732 = vmatpush.bf16.msra.mxu0 %v4723_v23  ;;  %v11120_v57 = vld [vmem:[#allocation52_spill] sm:$0xff] }
 0x255   : > { %v4057_v45 = vsel %vm2254_vm4, %v5136_v51, 0  ;;  %v3303_v54 = vsel %vm668_vm5, %v3300_v44, %v3302_v40  ;;  %v3692_v23 = vrot.slane %v8825_v36, 1 }
 0x256   : > { %v2475_v50 = vmax.f32 %v2439_v30, 0.0  ;;  %11112 = vst [vmem:[#allocation100_spill] sm:$0xff] %v8801_v31  ;;  %v8804_v55 = vshll.u32 %v8795_v13, 16  ;;  %v2905_v19 = vor.u32 %v8801_v31, %v11114_v4  ;;  %v2977_v30 = vor.u32 %v8841_v52, %v2973_v3  ;;  %4066 = vmatpush.bf16.msra.mxu1 %v4057_v45 }
 0x257   : > { %v2981_v28 = vrot.slane %v2979_v47, 1  ;;  %v8857_v12 = vshrl.u32 %v8795_v13, 16  ;;  %v3688_v4 = vrot.slane %v8693_v35, 1 }
 0x258   : > { %v2691_v10 = vmul.f32 %v2654_v49, %v2475_v50  ;;  %11113 = vst [vmem:[#allocation21_spill] sm:$0xff] %v8804_v55  ;;  %v2909_v24 = vrot.slane %v8804_v55, 1 }
 0x259   : > { %11118 = vst [vmem:[#allocation106_spill] sm:$0xff] %v8857_v12  ;;  %v2982_v50 = vsel %vm2834_vm7, %v2977_v30, %v2981_v28 }
 0x25a   : > { %2770 = vst.msk [vmem:[#allocation2 + $0x12b] sm:$0xff] %vm2692_vm6, %v2691_v10  ;;  %v2779_v56 = vld [vmem:[#allocation2 + $0x40] sm:$0xff]  ;;  %v2780_v42 = vld [vmem:[#allocation2 + $0x48] sm:$0xff]  ;;  %v2910_v8 = vsel %vm2834_vm7, %v2905_v19, %v2909_v24  ;;  %v2913_v3 = vor.u32 %v8857_v12, %v2909_v24  ;;  %v11121_v10 = vrot.slane %v11120_v57, 1  ;;  %v3689_v19 = vrot.slane %v11074_v39, 2  ;;  %v8881_v24 = vpop.f32.mrf.mxu2  ;;  %v11154_v39 = vld [vmem:[#allocation49_spill] sm:$0xff] }
 0x25b   : > { %v8821_v60 = vpack.c.bf16 %v2780_v42, %v2779_v56  ;;  %5051 = vmatmul.msk.bf16.gmra.mxu1 %vm2692_vm6, %v2910_v8  ;;  %v3304_v56 = vrot.slane %v8690_v21, 1  ;;  %11124 = vst [vmem:[#allocation107_spill] sm:$0xff] %v8881_v24  ;;  %v11125_v8 = vshrl.u32 %v11110_v20, 16  ;;  %v3320_v35 = vrot.slane %v11154_v39, 1 }
 0x25c   : > { %v2918_v0 = vsel %vm2834_vm7, %v2913_v3, %v11121_v10  ;;  %v3690_v47 = vor.u32 %v3689_v19, %v3688_v4  ;;  %v11129_v3 = vld [vmem:[#allocation87_spill] sm:$0xff]  ;;  %v11131_v4 = vld [vmem:[#allocation9_spill] sm:$0xff] }
 0x25d   : > { %11115 = vst [vmem:[#allocation63_spill] sm:$0xff] %v8821_v60  ;;  %v8828_v22 = vshll.u32 %v8821_v60, 16  ;;  %v8864_v49 = vshrl.u32 %v8821_v60, 16  ;;  %v3305_v42 = vsel %vm668_vm5, %v3302_v40, %v3304_v56  ;;  %v3306_v58 = vrot.slane %v8821_v60, 1 }
 0x25e   : > { %v3308_v10 = vrot.slane %v11129_v3, 1  ;;  %v3310_v19 = vrot.slane %v11131_v4, 1 }
 0x25f   : > { %11117 = vst [vmem:[#allocation104_spill] sm:$0xff] %v8828_v22  ;;  %v2869_v53 = vrot.slane %v8828_v22, 1  ;;  %v3307_v45 = vsel %vm668_vm5, %v3304_v56, %v3306_v58 }
 0x260   : > { %11119 = vst [vmem:[#allocation82_spill] sm:$0xff] %v8864_v49 }
 0x261   : > { %v2870_v5 = vsel %vm2834_vm7, %v2865_v25, %v2869_v53  ;;  %v2873_v44 = vor.u32 %v8864_v49, %v2869_v53  ;;  %v3685_v25 = vrot.slane %v11125_v8, 1  ;;  %v11126_v53 = vshll.u32 %v11110_v20, 16 }
 0x262   : > { %5046 = vmatmul.msk.bf16.gmra.mxu0 %vm2692_vm6, %v2870_v5  ;;  %5081 = vmatmul.msk.bf16.gmra.mxu2 %vm2692_vm6, %v3303_v54  ;;  %v8892_v30 = vpop.f32.mrf.mxu2 }
 0x263   : > { %v2878_v17 = vsel %vm2834_vm7, %v2873_v44, %v11123_v16  ;;  %v3686_v5 = vrot.slane %v11126_v53, 2  ;;  %11127 = vst [vmem:[#allocation109_spill] sm:$0xff] %v8892_v30  ;;  %v3696_v16 = vrot.slane %v8864_v49, 1  ;;  %v3311_v53 = vsel %vm668_vm5, %v3308_v10, %v3310_v19 }
 0x264   : > { %5060 = vmatmul.msk.bf16.gmra.mxu3 %vm2692_vm6, %v2982_v50 }
 0x265   : > { %v3687_v40 = vor.u32 %v3686_v5, %v3685_v25  ;;  %v8920_v25 = vpop.f32.mrf.mxu1  ;;  %v8924_v5 = vpop.f32.mrf.mxu0 }
 0x267   : > { %v3691_v51 = vsel %vm3684_vm8, %v3687_v40, %v3690_v47 }
 0x26b   : > { %5052 = vmatmul.msk.bf16.gmra.mxu1 %vm2692_vm6, %v2918_v0  ;;  %v3309_v0 = vsel %vm668_vm5, %v3306_v58, %v3308_v10 }
 0x272   : > { %5047 = vmatmul.msk.bf16.gmra.mxu0 %vm2692_vm6, %v2878_v17  ;;  %5082 = vmatmul.msk.bf16.gmra.mxu2 %vm2692_vm6, %v3305_v42  ;;  %v3697_v17 = vrot.slane %v8828_v22, 2  ;;  %v2808_v22 = vld [vmem:[#allocation2 + $0x128] sm:$0xff] }
 0x273   : > { %v9029_v24 = vpack.c.bf16 %v2808_v22, %v8819_v34 }
 0x274   : > { %5099 = vmatmul.msk.bf16.vlgmr.msrb.gmra.mxu3 %vm2692_vm6, %v3303_v54  ;;  %v8901_v54 = vpop.f32.mrf.mxu2  ;;  %v3698_v56 = vor.u32 %v3697_v17, %v3696_v16 }
 0x275   : > { %11128 = vst [vmem:[#allocation53_spill] sm:$0xff] %v8901_v54 }
 0x276   : > { %11152 = vst [vmem:[#allocation85_spill] sm:$0xff] %v9029_v24 }
 0x27b   : > { %5061 = vmatmul.msk.bf16.vlgmr.msrb.gmra.mxu1 %vm2692_vm6, %v11109_v32  ;;  %v3693_v32 = vrot.slane %v8705_v46, 2 }
 0x27c   : > { %v8908_v44 = vpop.f32.mrf.mxu2 }
 0x27d   : > { %v3694_v28 = vor.u32 %v3693_v32, %v3692_v23  ;;  %11130 = vst [vmem:[#allocation45_spill] sm:$0xff] %v8908_v44  ;;  %v8935_v32 = vpop.f32.mrf.mxu0 }
 0x27f   : > { %v3695_v50 = vsel %vm3684_vm8, %v3690_v47, %v3694_v28  ;;  %v11133_v47 = vld [vmem:[#allocation79_spill] sm:$0xff] }
 0x280   : > { %v3700_v40 = vrot.slane %v11133_v47, 1 }
 0x282   : > { %5118 = vmatmul.msk.bf16.vlgmr.msrb.gmra.mxu0 %vm2692_vm6, %v3691_v51  ;;  %5083 = vmatmul.msk.bf16.gmra.mxu2 %vm2692_vm6, %v3307_v45  ;;  %v3701_v51 = vrot.slane %v11122_v59, 2 }
 0x284   : > { %5100 = vmatmul.msk.bf16.gmra.mxu3 %vm2692_vm6, %v3305_v42  ;;  %v3699_v42 = vsel %vm3684_vm8, %v3694_v28, %v3698_v56  ;;  %v8917_v8 = vpop.f32.mrf.mxu2  ;;  %v3702_v23 = vor.u32 %v3701_v51, %v3700_v40  ;;  %v11137_v51 = vld [vmem:[#allocation90_spill] sm:$0xff] }
 0x285   : > { %11132 = vst [vmem:[#allocation16_spill] sm:$0xff] %v8917_v8  ;;  %v8947_v17 = vpop.f32.mrf.mxu0  ;;  %v3314_v8 = vrot.slane %v8587_v9, 1 }
 0x286   : > { %v3703_v28 = vsel %vm3684_vm8, %v3698_v56, %v3702_v23  ;;  %v3705_v56 = vrot.slane %v11137_v51, 2 }
 0x28b   : > { %5062 = vmatmul.msk.bf16.gmra.mxu1 %vm2692_vm6, %v11110_v20 }
 0x28c   : > { %v8929_v58 = vpop.f32.mrf.mxu2 }
 0x28d   : > { %11134 = vst [vmem:[#allocation51_spill] sm:$0xff] %v8929_v58 }
 0x292   : > { %5119 = vmatmul.msk.bf16.gmra.mxu0 %vm2692_vm6, %v3695_v50  ;;  %5084 = vmatmul.msk.bf16.gmra.mxu2 %vm2692_vm6, %v3309_v0  ;;  %v3312_v50 = vrot.slane %v11014_v11, 1 }
 0x294   : > { %5101 = vmatmul.msk.bf16.gmra.mxu3 %vm2692_vm6, %v3307_v45  ;;  %v8933_v45 = vpop.f32.mrf.mxu1  ;;  %v3313_v10 = vsel %vm668_vm5, %v3310_v19, %v3312_v50 }
 0x29b   : > { %5063 = vmatmul.msk.bf16.gmra.mxu1 %vm2692_vm6, %v11072_v41 }
 0x29c   : > { %v8943_v16 = vpop.f32.mrf.mxu1 }
 0x2a2   : > { %5120 = vmatmul.msk.bf16.gmra.mxu0 %vm2692_vm6, %v3699_v42  ;;  %5085 = vmatmul.msk.bf16.gmra.mxu2 %vm2692_vm6, %v3311_v53  ;;  %v11136_v42 = vld [vmem:[#allocation42_spill] sm:$0xff] }
 0x2a3   : > { %v3704_v40 = vrot.slane %v11136_v42, 1  ;;  %v3315_v42 = vsel %vm668_vm5, %v3312_v50, %v3314_v8 }
 0x2a4   : > { %5102 = vmatmul.msk.bf16.gmra.mxu3 %vm2692_vm6, %v3309_v0  ;;  %v8941_v0 = vpop.f32.mrf.mxu2  ;;  %v8955_v19 = vpop.f32.mrf.mxu1 }
 0x2a5   : > { %11135 = vst [vmem:[#allocation108_spill] sm:$0xff] %v8941_v0 }
 0x2ab   : > { %5064 = vmatmul.msk.bf16.gmra.mxu1 %vm2692_vm6, %v8690_v21 }
 0x2ac   : > { %v8953_v58 = vpop.f32.mrf.mxu2 }
 0x2ad   : > { %11138 = vst [vmem:[#allocation103_spill] sm:$0xff] %v8953_v58 }
 0x2af   : > { %v8964_v51 = vpop.f32.mrf.mxu1 }
 0x2b2   : > { %5121 = vmatmul.msk.bf16.gmra.mxu0 %vm2692_vm6, %v3703_v28  ;;  %5086 = vmatmul.msk.bf16.gmra.mxu2 %vm2692_vm6, %v3313_v10  ;;  %v3706_v28 = vor.u32 %v3705_v56, %v3704_v40  ;;  %v8967_v40 = vpop.f32.mrf.mxu3  ;;  %v3708_v56 = vrot.slane %v8599_v38, 1 }
 0x2b3   : > { %11139 = vst [vmem:[#allocation105_spill] sm:$0xff] %v8967_v40 }
 0x2b4   : > { %5103 = vmatmul.msk.bf16.gmra.mxu3 %vm2692_vm6, %v3311_v53  ;;  %v3707_v0 = vsel %vm3684_vm8, %v3702_v23, %v3706_v28  ;;  %v8960_v53 = vpop.f32.mrf.mxu0  ;;  %v3709_v23 = vrot.slane %v11026_v63, 2 }
 0x2b6   : > { %v3710_v50 = vor.u32 %v3709_v23, %v3708_v56  ;;  %v3713_v56 = vrot.slane %v8602_v1, 2 }
 0x2b7   : > { %v8981_v47 = vpop.f32.mrf.mxu1 }
 0x2b8   : > { %11142 = vst [vmem:[#allocation98_spill] sm:$0xff] %v8981_v47 }
 0x2ba   : > { %v8984_v40 = vpop.f32.mrf.mxu3 }
 0x2bb   : > { %5065 = vmatmul.msk.bf16.gmra.mxu1 %vm2692_vm6, %v8821_v60  ;;  %11143 = vst [vmem:[#allocation101_spill] sm:$0xff] %v8984_v40 }
 0x2c1   : > { %v8973_v44 = vpop.f32.mrf.mxu0 }
 0x2c2   : > { %5122 = vmatmul.msk.bf16.gmra.mxu0 %vm2692_vm6, %v3707_v0  ;;  %5087 = vmatmul.msk.bf16.gmra.mxu2 %vm2692_vm6, %v3315_v42  ;;  %v3711_v0 = vsel %vm3684_vm8, %v3706_v28, %v3710_v50  ;;  %v3712_v28 = vrot.slane %v8801_v31, 1  ;;  %v11148_v31 = vld [vmem:[#allocation23_spill] sm:$0xff] }
 0x2c3   : > { %v3318_v30 = vrot.slane %v11148_v31, 1 }
 0x2c4   : > { %5104 = vmatmul.msk.bf16.gmra.mxu3 %vm2692_vm6, %v3313_v10  ;;  %v3316_v10 = vrot.slane %v8795_v13, 1 }
 0x2c5   : > { %v8971_v58 = vpop.f32.mrf.mxu2 }
 0x2c6   : > { %11140 = vst [vmem:[#allocation110_spill] sm:$0xff] %v8971_v58  ;;  %v3317_v58 = vsel %vm668_vm5, %v3314_v8, %v3316_v10 }
 0x2c9   : > { %v8986_v63 = vpop.f32.mrf.mxu0 }
 0x2cb   : > { %5066 = vmatmul.msk.bf16.gmra.mxu1 %vm2692_vm6, %v11129_v3 }
 0x2cd   : > { %v8978_v59 = vpop.f32.mrf.mxu2 }
 0x2ce   : > { %11141 = vst [vmem:[#allocation111_spill] sm:$0xff] %v8978_v59 }
 0x2d2   : > { %5123 = vmatmul.msk.bf16.gmra.mxu0 %vm2692_vm6, %v3711_v0  ;;  %5088 = vmatmul.msk.bf16.gmra.mxu2 %vm2692_vm6, %v3317_v58  ;;  %v3714_v0 = vor.u32 %v3713_v56, %v3712_v28  ;;  %v3716_v28 = vrot.slane %v8857_v12, 1  ;;  %v3717_v56 = vrot.slane %v8804_v55, 2  ;;  %v2810_v12 = vld [vmem:[#allocation2 + $0x138] sm:$0xff] }
 0x2d4   : > { %5105 = vmatmul.msk.bf16.gmra.mxu3 %vm2692_vm6, %v3315_v42  ;;  %v3715_v8 = vsel %vm3684_vm8, %v3710_v50, %v3714_v0  ;;  %v11149_v50 = vmov 0.0  }
 0x2d5   : > { %v8993_v23 = vpop.f32.mrf.mxu2  ;;  %2734 = vst.msk [vmem:[#allocation2 + $0x140] sm:$0x3f] %vm2733_vm9, %v11149_v50  ;;  %v2809_v50 = vld [vmem:[#allocation2 + $0x130] sm:$0xff] }
 0x2d6   : > { %v9033_v20 = vpack.c.bf16 %v2810_v12, %v2809_v50  ;;  %v9064_v46 = vpack.c.bf16 %v2809_v50, %v2809_v50 }
 0x2d7   : > { %v8997_v38 = vpop.f32.mrf.mxu3 }
 0x2d8   : > { %v8995_v59 = vpop.f32.mrf.mxu1  ;;  %11145 = vst [vmem:[#allocation112_spill] sm:$0xff] %v8997_v38  ;;  %v3319_v38 = vsel %vm668_vm5, %v3316_v10, %v3318_v30  ;;  %v3718_v10 = vor.u32 %v3717_v56, %v3716_v28  ;;  %v10251_v28 = vshrl.u32 %v9029_v24, 16  ;;  %v9047_v56 = vrot.slane %v9029_v24, 2 }
 0x2d9   : > { %11144 = vst [vmem:[#allocation19_spill] sm:$0xff] %v8995_v59  ;;  %v10250_v12 = vrot.slane %v9033_v20, 2  ;;  %v4419_v36 = vshrl.u32 %v9033_v20, 16  ;;  %v11161_v59 = vld [vmem:[#allocation37_spill] sm:$0xff] }
 0x2da   : > { %11153 = vst [vmem:[#allocation15_spill] sm:$0xff] %v9033_v20  ;;  %v3719_v55 = vsel %vm3684_vm8, %v3714_v0, %v3718_v10  ;;  %v3321_v0 = vsel %vm668_vm5, %v3318_v30, %v3320_v35  ;;  %v4414_v34 = vrot.slane %v10251_v28, 2  ;;  %v10256_v30 = vrot.slane %v9029_v24, 3 }
 0x2db   : > { %5067 = vmatmul.msk.bf16.gmra.mxu1 %vm2692_vm6, %v11131_v4  ;;  %11157 = vst [vmem:[#allocation67_spill] sm:$0xff] %v9047_v56  ;;  %v3720_v50 = vrot.slane %v11161_v59, 1 }
 0x2dd   : > { %v9004_v54 = vpop.f32.mrf.mxu2 }
 0x2df   : > { %v9001_v40 = vpop.f32.mrf.mxu0  ;;  %v9009_v1 = vpop.f32.mrf.mxu3 }
 0x2e0   : > { %v9007_v42 = vpop.f32.mrf.mxu1  ;;  %11147 = vst [vmem:[#allocation102_spill] sm:$0xff] %v9009_v1 }
 0x2e1   : > { %11146 = vst [vmem:[#allocation38_spill] sm:$0xff] %v9007_v42  ;;  %v4421_v42 = vrot.slane %v4419_v36, 2  ;;  %v4000_v36 = vrot.slane %v9064_v46, 2 }
 0x2e2   : > { %5124 = vmatmul.msk.bf16.gmra.mxu0 %vm2692_vm6, %v3715_v8  ;;  %5089 = vmatmul.msk.bf16.gmra.mxu2 %vm2692_vm6, %v3319_v38 }
 0x2e4   : > { %5106 = vmatmul.msk.bf16.gmra.mxu3 %vm2692_vm6, %v3317_v58 }
 0x2e5   : > { %v9020_v8 = vpop.f32.mrf.mxu2 }
 0x2e7   : > { %v9014_v4 = vpop.f32.mrf.mxu0  ;;  %v9024_v49 = vpop.f32.mrf.mxu3 }
 0x2e8   : > { %v9022_v1 = vpop.f32.mrf.mxu1  ;;  %11151 = vst [vmem:[#allocation70_spill] sm:$0xff] %v9024_v49 }
 0x2e9   : > { %11150 = vst [vmem:[#allocation65_spill] sm:$0xff] %v9022_v1  ;;  %v4422_v1 = vshll.u32 %v9033_v20, 16 }
 0x2eb   : > { %5068 = vmatmul.msk.bf16.gmra.mxu1 %vm2692_vm6, %v11014_v11 }
 0x2ed   : > { %v9036_v3 = vpop.f32.mrf.mxu2 }
 0x2ef   : > { %v9031_v58 = vpop.f32.mrf.mxu0  ;;  %v9044_v22 = vpop.f32.mrf.mxu3 }
 0x2f0   : > { %v9040_v49 = vpop.f32.mrf.mxu1  ;;  %11156 = vst [vmem:[#allocation121_spill] sm:$0xff] %v9044_v22  ;;  %v11159_v22 = vshll.u32 %v9029_v24, 16 }
 0x2f1   : > { %11155 = vst [vmem:[#allocation86_spill] sm:$0xff] %v9040_v49 }
 0x2f2   : > { %5125 = vmatmul.msk.bf16.gmra.mxu0 %vm2692_vm6, %v3719_v55  ;;  %v9055_v55 = vsel %vm892_vm0, %v9047_v56, %v10250_v12  ;;  %5090 = vmatmul.msk.bf16.gmra.mxu2 %vm2692_vm6, %v3321_v0  ;;  %v4415_v11 = vrot.slane %v11159_v22, 3  ;;  %v4424_v22 = vrot.slane %v4422_v1, 3 }
 0x2f3   : > { %11158 = vst [vmem:[#allocation123_spill] sm:$0xff] %v9055_v55  ;;  %v10255_v55 = vrot.slane %v9033_v20, 3 }
 0x2f4   : > { %5107 = vmatmul.msk.bf16.gmra.mxu3 %vm2692_vm6, %v3319_v38  ;;  %v9070_v12 = vor.u32 %v4415_v11, %v4414_v34  ;;  %v3721_v38 = vrot.slane %v11120_v57, 2  ;;  %v9085_v34 = vor.u32 %v4424_v22, %v4421_v42 }
 0x2f5   : > { %v9073_v28 = vpop.f32.mrf.mxu2  ;;  %v9081_v41 = vsel %vm1349_vm1, %v10256_v30, %v10255_v55 }
 0x2f6   : > { %11160 = vst [vmem:[#allocation68_spill] sm:$0xff] %v9070_v12  ;;  %v9094_v55 = vsel %vm4350_vm10, %v9070_v12, %v9085_v34  ;;  %v3722_v22 = vor.u32 %v3721_v38, %v3720_v50  ;;  %v11167_v38 = vld [vmem:[#allocation61_spill] sm:$0xff] }
 0x2f7   : > { %v9062_v49 = vpop.f32.mrf.mxu0  ;;  %11162 = vst [vmem:[#allocation41_spill] sm:$0xff] %v9081_v41  ;;  %v3556_v47 = vpop.f32.mrf.mxu3 }
 0x2f8   : > { %v3187_v60 = vpop.f32.mrf.mxu1  ;;  %11163 = vst [vmem:[#allocation5_spill] sm:$0xff] %v9085_v34  ;;  %v3723_v41 = vsel %vm3684_vm8, %v3718_v10, %v3722_v22 }
 0x2f9   : > { %v3188_v11 = vadd.f32 %v3187_v60, %v8924_v5  ;;  %11164 = vst [vmem:[#allocation77_spill] sm:$0xff] %v9094_v55  ;;  %v9098_v60 = vsel %vm892_vm0, %v9047_v56, %v4000_v36 }
 0x2fa   : > { %11165 = vst [vmem:[#allocation7_spill] sm:$0xff] %v9098_v60 }
 0x2fb   : > { %v3492_v1 = vadd.f32 %v8993_v23, %v3188_v11  ;;  %5069 = vmatmul.msk.bf16.gmra.mxu1 %vm2692_vm6, %v8587_v9  ;;  %v11166_v11 = vld [vmem:[#allocation74_spill] sm:$0xff] }
 0x2fc   : > { %v3322_v20 = vrot.slane %v11166_v11, 1 }
 0x2fd   : > { %v3646_v5 = vadd.f32 %v3556_v47, %v3492_v1  ;;  %v3414_v23 = vpop.f32.mrf.mxu2  ;;  %v3724_v1 = vrot.slane %v11167_v38, 1 }
 0x2fe   : > { %v3323_v36 = vsel %vm668_vm5, %v3320_v35, %v3322_v20 }
 0x2ff   : > { %v3836_v42 = vpop.f32.mrf.mxu0  ;;  %v3558_v59 = vpop.f32.mrf.mxu3 }
 0x300   : > { %v9100_v30 = vadd.f32 %v3836_v42, %v3646_v5  ;;  %v3189_v57 = vpop.f32.mrf.mxu1  ;;  %v11168_v5 = vld [vmem:[#allocation54_spill] sm:$0xff] }
 0x301   : > { %v3190_v34 = vadd.f32 %v3189_v57, %v8935_v32 }
 0x302   : > { %5126 = vmatmul.msk.bf16.gmra.mxu0 %vm2692_vm6, %v3723_v41  ;;  %5091 = vmatmul.msk.bf16.gmra.mxu2 %vm2692_vm6, %v3323_v36  ;;  %v3725_v41 = vrot.slane %v11168_v5, 2 }
 0x303   : > { %v3493_v55 = vadd.f32 %v9004_v54, %v3190_v34 }
 0x304   : > { %5108 = vmatmul.msk.bf16.gmra.mxu3 %vm2692_vm6, %v3321_v0  ;;  %v3726_v35 = vor.u32 %v3725_v41, %v3724_v1  ;;  %v11171_v41 = vld [vmem:[#allocation36_spill] sm:$0xff] }
 0x305   : > { %v3647_v47 = vadd.f32 %v3558_v59, %v3493_v55  ;;  %v3417_v42 = vpop.f32.mrf.mxu2 }
 0x306   : > { %v3727_v55 = vsel %vm3684_vm8, %v3722_v22, %v3726_v35 }
 0x307   : > { %v3838_v50 = vpop.f32.mrf.mxu0  ;;  %v3561_v12 = vpop.f32.mrf.mxu3 }
 0x308   : > { %v9110_v10 = vadd.f32 %v3838_v50, %v3647_v47  ;;  %v3192_v60 = vpop.f32.mrf.mxu1  ;;  %v3324_v47 = vrot.slane %v8151_v18, 1 }
 0x309   : > { %v3193_v57 = vadd.f32 %v3192_v60, %v8947_v17 }
 0x30a   : > { %v3325_v60 = vsel %vm668_vm5, %v3322_v20, %v3324_v47 }
 0x30b   : > { %v3494_v54 = vadd.f32 %v9020_v8, %v3193_v57  ;;  %5070 = vmatmul.msk.bf16.gmra.mxu1 %vm2692_vm6, %v8795_v13  ;;  %v3728_v57 = vrot.slane %v11171_v41, 1 }
 0x30d   : > { %v3648_v59 = vadd.f32 %v3561_v12, %v3494_v54  ;;  %v3419_v34 = vpop.f32.mrf.mxu2  ;;  %v11172_v54 = vld [vmem:[#allocation88_spill] sm:$0xff] }
 0x30f   : > { %v3841_v32 = vpop.f32.mrf.mxu0  ;;  %v3563_v56 = vpop.f32.mrf.mxu3 }
 0x310   : > { %v9118_v0 = vadd.f32 %v3841_v32, %v3648_v59  ;;  %v3194_v50 = vpop.f32.mrf.mxu1  ;;  %v3729_v59 = vrot.slane %v11172_v54, 2 }
 0x311   : > { %v3195_v17 = vadd.f32 %v3194_v50, %v8960_v53 }
 0x312   : > { %11169 = vst [vmem:[#allocation83_spill] sm:$0xff] %v9118_v0  ;;  %5127 = vmatmul.msk.bf16.gmra.mxu0 %vm2692_vm6, %v3727_v55  ;;  %5092 = vmatmul.msk.bf16.gmra.mxu2 %vm2692_vm6, %v3325_v60  ;;  %v3730_v20 = vor.u32 %v3729_v59, %v3728_v57 }
 0x313   : > { %v3495_v8 = vadd.f32 %v9036_v3, %v3195_v17 }
 0x314   : > { %5109 = vmatmul.msk.bf16.gmra.mxu3 %vm2692_vm6, %v3323_v36  ;;  %v3731_v17 = vsel %vm3684_vm8, %v3726_v35, %v3730_v20  ;;  %v3732_v35 = vrot.slane %v8469_v33, 1 }
 0x315   : > { %v3649_v12 = vadd.f32 %v3563_v56, %v3495_v8  ;;  %v3422_v32 = vpop.f32.mrf.mxu2 }
 0x317   : > { %v3843_v1 = vpop.f32.mrf.mxu0  ;;  %v3566_v0 = vpop.f32.mrf.mxu3 }
 0x318   : > { %v9128_v22 = vadd.f32 %v3843_v1, %v3649_v12  ;;  %v3197_v55 = vpop.f32.mrf.mxu1  ;;  %v3326_v12 = vrot.slane %v8459_v2, 1 }
 0x319   : > { %v3198_v53 = vadd.f32 %v3197_v55, %v8973_v44 }
 0x31a   : > { %11170 = vst [vmem:[#allocation32_spill] sm:$0xff] %v9128_v22  ;;  %v3327_v55 = vsel %vm668_vm5, %v3324_v47, %v3326_v12 }
 0x31b   : > { %v3496_v3 = vadd.f32 %v9073_v28, %v3198_v53  ;;  %5071 = vmatmul.msk.bf16.gmra.mxu1 %vm2692_vm6, %v11148_v31  ;;  %v3733_v53 = vrot.slane %v8175_v62, 2 }
 0x31d   : > { %v3650_v56 = vadd.f32 %v3566_v0, %v3496_v3  ;;  %v3424_v8 = vpop.f32.mrf.mxu2  ;;  %v3734_v47 = vor.u32 %v3733_v53, %v3732_v35 }
 0x31f   : > { %v3846_v50 = vpop.f32.mrf.mxu0  ;;  %v3568_v22 = vpop.f32.mrf.mxu3 }
 0x320   : > { %v9136_v36 = vadd.f32 %v3846_v50, %v3650_v56  ;;  %v3199_v1 = vpop.f32.mrf.mxu1 }
 0x321   : > { %v3200_v44 = vadd.f32 %v3199_v1, %v8986_v63 }
 0x322   : > { %5128 = vmatmul.msk.bf16.gmra.mxu0 %vm2692_vm6, %v3731_v17  ;;  %5093 = vmatmul.msk.bf16.gmra.mxu2 %vm2692_vm6, %v3327_v55 }
 0x323   : > { %v3497_v28 = vadd.f32 %v3414_v23, %v3200_v44 }
 0x324   : > { %5110 = vmatmul.msk.bf16.gmra.mxu3 %vm2692_vm6, %v3325_v60  ;;  %v3735_v60 = vsel %vm3684_vm8, %v3730_v20, %v3734_v47  ;;  %v3736_v20 = vrot.slane %v8696_v43, 1 }
 0x325   : > { %v3651_v0 = vadd.f32 %v3568_v22, %v3497_v28  ;;  %v3427_v3 = vpop.f32.mrf.mxu2  ;;  %v3328_v28 = vrot.slane %v8476_v37, 1 }
 0x327   : > { %v3848_v57 = vpop.f32.mrf.mxu0  ;;  %v3571_v50 = vpop.f32.mrf.mxu3 }
 0x328   : > { %v9145_v59 = vadd.f32 %v3848_v57, %v3651_v0  ;;  %v3202_v56 = vpop.f32.mrf.mxu1 }
 0x329   : > { %v3203_v63 = vadd.f32 %v3202_v56, %v9001_v40  ;;  %v3329_v56 = vsel %vm668_vm5, %v3326_v12, %v3328_v28 }
 0x32b   : > { %v3498_v23 = vadd.f32 %v3417_v42, %v3203_v63  ;;  %5072 = vmatmul.msk.bf16.gmra.mxu1 %vm2692_vm6, %v11154_v39  ;;  %v3737_v63 = vrot.slane %v8474_v48, 2 }
 0x32d   : > { %v3652_v22 = vadd.f32 %v3571_v50, %v3498_v23  ;;  %v3429_v44 = vpop.f32.mrf.mxu2  ;;  %v3738_v12 = vor.u32 %v3737_v63, %v3736_v20 }
 0x32f   : > { %v3851_v17 = vpop.f32.mrf.mxu0  ;;  %v3573_v57 = vpop.f32.mrf.mxu3 }
 0x330   : > { %v9152_v1 = vadd.f32 %v3851_v17, %v3652_v22  ;;  %v3204_v0 = vpop.f32.mrf.mxu1 }
 0x331   : > { %v3205_v40 = vadd.f32 %v3204_v0, %v9014_v4 }
 0x332   : > { %5129 = vmatmul.msk.bf16.gmra.mxu0 %vm2692_vm6, %v3735_v60  ;;  %5094 = vmatmul.msk.bf16.gmra.mxu2 %vm2692_vm6, %v3329_v56 }
 0x333   : > { %v3499_v42 = vadd.f32 %v3419_v34, %v3205_v40 }
 0x334   : > { %5111 = vmatmul.msk.bf16.gmra.mxu3 %vm2692_vm6, %v3327_v55  ;;  %v3739_v55 = vsel %vm3684_vm8, %v3734_v47, %v3738_v12  ;;  %v3740_v47 = vrot.slane %v8500_v15, 1 }
 0x335   : > { %v3653_v35 = vadd.f32 %v3573_v57, %v3499_v42  ;;  %v3432_v23 = vpop.f32.mrf.mxu2  ;;  %v3330_v42 = vrot.slane %v8492_v26, 1 }
 0x337   : > { %v3853_v53 = vpop.f32.mrf.mxu0  ;;  %v3576_v17 = vpop.f32.mrf.mxu3 }
 0x338   : > { %v9161_v50 = vadd.f32 %v3853_v53, %v3653_v35  ;;  %v3207_v22 = vpop.f32.mrf.mxu1 }
 0x339   : > { %v3208_v4 = vadd.f32 %v3207_v22, %v9031_v58  ;;  %v3331_v22 = vsel %vm668_vm5, %v3328_v28, %v3330_v42 }
 0x33b   : > { %v3500_v34 = vadd.f32 %v3422_v32, %v3208_v4  ;;  %5073 = vmatmul.msk.bf16.gmra.mxu1 %vm2692_vm6, %v11166_v11  ;;  %v3741_v4 = vrot.slane %v8497_v29, 2 }
 0x33d   : > { %v3654_v60 = vadd.f32 %v3576_v17, %v3500_v34  ;;  %v3434_v40 = vpop.f32.mrf.mxu2  ;;  %v3742_v28 = vor.u32 %v3741_v4, %v3740_v47 }
 0x33f   : > { %v3856_v0 = vpop.f32.mrf.mxu0  ;;  %v3578_v53 = vpop.f32.mrf.mxu3 }
 0x340   : > { %v9168_v57 = vadd.f32 %v3856_v0, %v3654_v60  ;;  %v3209_v35 = vpop.f32.mrf.mxu1 }
 0x341   : > { %v3210_v58 = vadd.f32 %v3209_v35, %v9062_v49 }
 0x342   : > { %5130 = vmatmul.msk.bf16.gmra.mxu0 %vm2692_vm6, %v3739_v55  ;;  %5095 = vmatmul.msk.bf16.gmra.mxu2 %vm2692_vm6, %v3331_v22 }
 0x343   : > { %v3501_v32 = vadd.f32 %v3424_v8, %v3210_v58 }
 0x344   : > { %5112 = vmatmul.msk.bf16.gmra.mxu3 %vm2692_vm6, %v3329_v56  ;;  %v3743_v56 = vsel %vm3684_vm8, %v3738_v12, %v3742_v28 }
 0x345   : > { %v3655_v20 = vadd.f32 %v3578_v53, %v3501_v32  ;;  %v3437_v34 = vpop.f32.mrf.mxu2  ;;  %v9188_v32 = vrot.slane %v8778_v27, 1 }
 0x347   : > { %v3858_v63 = vpop.f32.mrf.mxu0  ;;  %v3581_v0 = vpop.f32.mrf.mxu3  ;;  %v3333_v47 = vsel %vm668_vm5, %v3330_v42, %v9188_v32 }
 0x348   : > { %v9177_v17 = vadd.f32 %v3858_v63, %v3655_v20  ;;  %v3212_v60 = vpop.f32.mrf.mxu1 }
 0x349   : > { %v3213_v49 = vadd.f32 %v3212_v60, %v8920_v25 }
 0x34b   : > { %v3502_v8 = vadd.f32 %v3427_v3, %v3213_v49  ;;  %5074 = vmatmul.msk.bf16.gmra.mxu1 %vm2692_vm6, %v8151_v18  ;;  %v3745_v49 = vrot.slane %v8503_v7, 2 }
 0x34d   : > { %v3656_v55 = vadd.f32 %v3581_v0, %v3502_v8  ;;  %v3439_v58 = vpop.f32.mrf.mxu2  ;;  %v3744_v0 = vrot.slane %v8784_v14, 1 }
 0x34f   : > { %v3861_v35 = vpop.f32.mrf.mxu0  ;;  %v3583_v63 = vpop.f32.mrf.mxu3  ;;  %v3746_v42 = vor.u32 %v3745_v49, %v3744_v0 }
 0x350   : > { %v9184_v53 = vadd.f32 %v3861_v35, %v3656_v55  ;;  %v3214_v20 = vpop.f32.mrf.mxu1 }
 0x351   : > { %v3215_v25 = vadd.f32 %v3214_v20, %v8933_v45 }
 0x352   : > { %5131 = vmatmul.msk.bf16.gmra.mxu0 %vm2692_vm6, %v3743_v56  ;;  %5096 = vmatmul.msk.bf16.gmra.mxu2 %vm2692_vm6, %v3333_v47 }
 0x353   : > { %v3503_v3 = vadd.f32 %v3429_v44, %v3215_v25 }
 0x354   : > { %5113 = vmatmul.msk.bf16.gmra.mxu3 %vm2692_vm6, %v3331_v22  ;;  %v3747_v22 = vsel %vm3684_vm8, %v3742_v28, %v3746_v42 }
 0x355   : > { %v3657_v4 = vadd.f32 %v3583_v63, %v3503_v3  ;;  %v3442_v8 = vpop.f32.mrf.mxu2  ;;  %v3334_v3 = vrot.slane %v8833_v6, 1  ;;  %v3748_v6 = vrot.slane %v8841_v52, 1 }
 0x357   : > { %v3863_v60 = vpop.f32.mrf.mxu0  ;;  %v3586_v35 = vpop.f32.mrf.mxu3 }
 0x358   : > { %v9196_v12 = vadd.f32 %v3863_v60, %v3657_v4  ;;  %v3217_v55 = vpop.f32.mrf.mxu1 }
 0x359   : > { %v3218_v45 = vadd.f32 %v3217_v55, %v8943_v16  ;;  %v3335_v55 = vsel %vm668_vm5, %v9188_v32, %v3334_v3 }
 0x35a   : > { %11173 = vst [vmem:[#allocation115_spill] sm:$0xff] %v9196_v12  ;;  %v11192_v12 = vld [vmem:[#allocation76_spill] sm:$0xff] }
 0x35b   : > { %v3504_v44 = vadd.f32 %v3432_v23, %v3218_v45  ;;  %5075 = vmatmul.msk.bf16.gmra.mxu1 %vm2692_vm6, %v8459_v2 }
 0x35d   : > { %v3658_v56 = vadd.f32 %v3586_v35, %v3504_v44  ;;  %v3444_v25 = vpop.f32.mrf.mxu2  ;;  %v3749_v35 = vrot.slane %v8787_v61, 2 }
 0x35f   : > { %v3866_v20 = vpop.f32.mrf.mxu0  ;;  %v3588_v60 = vpop.f32.mrf.mxu3 }
 0x360   : > { %v9203_v63 = vadd.f32 %v3866_v20, %v3658_v56  ;;  %v3219_v4 = vpop.f32.mrf.mxu1  ;;  %v3750_v20 = vor.u32 %v3749_v35, %v3748_v6 }
 0x361   : > { %v3220_v16 = vadd.f32 %v3219_v4, %v8955_v19 }
 0x362   : > { %11174 = vst [vmem:[#allocation116_spill] sm:$0xff] %v9203_v63  ;;  %5132 = vmatmul.msk.bf16.gmra.mxu0 %vm2692_vm6, %v3747_v22  ;;  %5097 = vmatmul.msk.bf16.gmra.mxu2 %vm2692_vm6, %v3335_v55  ;;  %v3751_v4 = vsel %vm3684_vm8, %v3746_v42, %v3750_v20 }
 0x363   : > { %v3505_v23 = vadd.f32 %v3434_v40, %v3220_v16  ;;  %v3968_v16 = vrot.slane %v8690_v21, 2 }
 0x364   : > { %5114 = vmatmul.msk.bf16.gmra.mxu3 %vm2692_vm6, %v3333_v47 }
 0x365   : > { %v3659_v0 = vadd.f32 %v3588_v60, %v3505_v23  ;;  %v9217_v45 = vpop.f32.mrf.mxu2 }
 0x367   : > { %v3868_v49 = vpop.f32.mrf.mxu0  ;;  %v3591_v19 = vpop.f32.mrf.mxu3 }
 0x368   : > { %v9213_v28 = vadd.f32 %v3868_v49, %v3659_v0  ;;  %v3222_v44 = vpop.f32.mrf.mxu1  ;;  %v3534_v0 = vrot.slane %v9029_v24, 1  ;;  %v11178_v49 = vld [vmem:[#allocation97_spill] sm:$0xff] }
 0x369   : > { %v3223_v40 = vadd.f32 %v3222_v44, %v8964_v51  ;;  %v11177_v51 = vld [vmem:[#allocation98_spill] sm:$0xff]  ;;  %v10263_v6 = vrot.slane %v11178_v49, 2 }
 0x36a   : > { %11175 = vst [vmem:[#allocation81_spill] sm:$0xff] %v9213_v28 }
 0x36b   : > { %v3506_v56 = vadd.f32 %v3437_v34, %v3223_v40  ;;  %5076 = vmatmul.msk.bf16.gmra.mxu1 %vm2692_vm6, %v8476_v37  ;;  %v9235_v44 = vsel %vm892_vm0, %v10263_v6, %v3968_v16  ;;  %v3535_v40 = vsel %vm668_vm5, %v9188_v32, %v3534_v0  ;;  %v11182_v6 = vld [vmem:[#allocation19_spill] sm:$0xff] }
 0x36d   : > { %v3660_v22 = vadd.f32 %v3591_v19, %v3506_v56  ;;  %v9225_v60 = vpop.f32.mrf.mxu2 }
 0x36f   : > { %v3871_v3 = vpop.f32.mrf.mxu0  ;;  %v3593_v55 = vpop.f32.mrf.mxu3 }
 0x370   : > { %v9222_v47 = vadd.f32 %v3871_v3, %v3660_v22  ;;  %v3224_v23 = vpop.f32.mrf.mxu1  ;;  %v11180_v22 = vshrl.u32 %v9029_v24, 16  ;;  %v11181_v3 = vshll.u32 %v9029_v24, 16 }
 0x371   : > { %v3225_v34 = vadd.f32 %v3224_v23, %v11177_v51 }
 0x372   : > { %11176 = vst [vmem:[#allocation12_spill] sm:$0xff] %v9222_v47  ;;  %5133 = vmatmul.msk.bf16.gmra.mxu0 %vm2692_vm6, %v3751_v4  ;;  %5156 = vmatmul.msk.bf16.vlgmr.msra.gmra.mxu2 %vm2692_vm6, %v9235_v44  ;;  %v3758_v4 = vrot.slane %v11181_v3, 2  ;;  %v11184_v3 = vld [vmem:[#allocation63_spill] sm:$0xff] }
 0x373   : > { %v3507_v35 = vadd.f32 %v3439_v58, %v3225_v34  ;;  %v3755_v58 = vrot.slane %v11180_v22, 1  ;;  %v3970_v24 = vrot.slane %v11184_v3, 2 }
 0x374   : > { %5115 = vmatmul.msk.bf16.gmra.mxu3 %vm2692_vm6, %v3535_v40 }
 0x375   : > { %v3661_v42 = vadd.f32 %v3593_v55, %v3507_v35  ;;  %v9248_v23 = vpop.f32.mrf.mxu2  ;;  %v3759_v32 = vor.u32 %v3758_v4, %v3755_v58  ;;  %v3762_v58 = vshrl.u32 %v9064_v46, 16  ;;  %v3765_v4 = vshll.u32 %v9064_v46, 16 }
 0x377   : > { %v3873_v19 = vpop.f32.mrf.mxu0  ;;  %v3596_v34 = vpop.f32.mrf.mxu3  ;;  %v3760_v22 = vsel %vm3684_vm8, %v3750_v20, %v3759_v32 }
 0x378   : > { %v9242_v56 = vadd.f32 %v3873_v19, %v3661_v42  ;;  %v3227_v51 = vpop.f32.mrf.mxu1 }
 0x379   : > { %v3228_v55 = vadd.f32 %v3227_v51, %v11182_v6  ;;  %v11185_v6 = vld [vmem:[#allocation38_spill] sm:$0xff]  ;;  %v3536_v51 = vrot.slane %v9064_v46, 1 }
 0x37a   : > { %11179 = vst [vmem:[#allocation118_spill] sm:$0xff] %v9242_v56 }
 0x37b   : > { %v3508_v35 = vadd.f32 %v3442_v8, %v3228_v55  ;;  %5077 = vmatmul.msk.bf16.gmra.mxu1 %vm2692_vm6, %v8492_v26 }
 0x37d   : > { %v3662_v40 = vadd.f32 %v3596_v34, %v3508_v35  ;;  %v9256_v56 = vpop.f32.mrf.mxu2  ;;  %v9265_v34 = vsel %vm892_vm0, %v3968_v16, %v3970_v24 }
 0x37f   : > { %v3876_v42 = vpop.f32.mrf.mxu0  ;;  %v3598_v28 = vpop.f32.mrf.mxu3 }
 0x380   : > { %v9253_v19 = vadd.f32 %v3876_v42, %v3662_v40  ;;  %v3229_v47 = vpop.f32.mrf.mxu1  ;;  %v3537_v40 = vsel %vm668_vm5, %v3534_v0, %v3536_v51  ;;  %v3764_v42 = vrot.slane %v3762_v58, 1  ;;  %v11188_v51 = vld [vmem:[#allocation57_spill] sm:$0xff] }
 0x381   : > { %v3230_v8 = vadd.f32 %v3229_v47, %v11185_v6 }
 0x382   : > { %11183 = vst [vmem:[#allocation117_spill] sm:$0xff] %v9253_v19  ;;  %5134 = vmatmul.msk.bf16.gmra.mxu0 %vm2692_vm6, %v3760_v22  ;;  %5157 = vmatmul.msk.bf16.gmra.mxu2 %vm2692_vm6, %v9265_v34 }
 0x383   : > { %v3509_v55 = vadd.f32 %v3444_v25, %v3230_v8  ;;  %v3767_v25 = vrot.slane %v3765_v4, 2  ;;  %v11187_v8 = vld [vmem:[#allocation65_spill] sm:$0xff] }
 0x384   : > { %5116 = vmatmul.msk.bf16.gmra.mxu3 %vm2692_vm6, %v3537_v40  ;;  %v4354_v40 = vrot.slane %v11188_v51, 2 }
 0x385   : > { %v3663_v20 = vadd.f32 %v3598_v28, %v3509_v55  ;;  %v9273_v22 = vpop.f32.mrf.mxu2  ;;  %v3768_v28 = vor.u32 %v3767_v25, %v3764_v42 }
 0x387   : > { %v3878_v35 = vpop.f32.mrf.mxu0  ;;  %v3601_v46 = vpop.f32.mrf.mxu3  ;;  %v3769_v4 = vsel %vm3684_vm8, %v3759_v32, %v3768_v28 }
 0x388   : > { %v9271_v47 = vadd.f32 %v3878_v35, %v3663_v20  ;;  %v3232_v6 = vpop.f32.mrf.mxu1  ;;  %v11189_v20 = vld [vmem:[#allocation99_spill] sm:$0xff] }
 0x389   : > { %v3233_v16 = vadd.f32 %v3232_v6, %v11187_v8  ;;  %v4355_v35 = vrot.slane %v11189_v20, 3  ;;  %v4352_v6 = vrot.slane %v11192_v12, 3 }
 0x38a   : > { %11186 = vst [vmem:[#allocation119_spill] sm:$0xff] %v9271_v47  ;;  %v11191_v47 = vld [vmem:[#allocation43_spill] sm:$0xff] }
 0x38b   : > { %v3510_v19 = vadd.f32 %v9217_v45, %v3233_v16  ;;  %5078 = vmatmul.msk.bf16.gmra.mxu1 %vm2692_vm6, %v8778_v27  ;;  %v4351_v63 = vrot.slane %v11191_v47, 2  ;;  %v11194_v16 = vld [vmem:[#allocation87_spill] sm:$0xff] }
 0x38c   : > { %v3972_v51 = vrot.slane %v11194_v16, 2 }
 0x38d   : > { %v3664_v55 = vadd.f32 %v3601_v46, %v3510_v19  ;;  %v9286_v8 = vpop.f32.mrf.mxu2  ;;  %v11193_v19 = vld [vmem:[#allocation86_spill] sm:$0xff]  ;;  %v4356_v46 = vor.u32 %v4355_v35, %v4354_v40 }
 0x38e   : > { %v9293_v32 = vsel %vm892_vm0, %v3970_v24, %v3972_v51 }
 0x38f   : > { %v3881_v0 = vpop.f32.mrf.mxu0  ;;  %v3603_v42 = vpop.f32.mrf.mxu3 }
 0x390   : > { %v9281_v58 = vadd.f32 %v3881_v0, %v3664_v55  ;;  %v3234_v45 = vpop.f32.mrf.mxu1  ;;  %v4353_v0 = vor.u32 %v4352_v6, %v4351_v63  ;;  %v11197_v6 = vld [vmem:[#allocation107_spill] sm:$0xff] }
 0x391   : > { %v3235_v25 = vadd.f32 %v3234_v45, %v11193_v19  ;;  %v11198_v45 = vrot.slane %v11178_v49, 2 }
 0x392   : > { %11190 = vst [vmem:[#allocation64_spill] sm:$0xff] %v9281_v58  ;;  %5135 = vmatmul.msk.bf16.gmra.mxu0 %vm2692_vm6, %v3769_v4  ;;  %5158 = vmatmul.msk.bf16.gmra.mxu2 %vm2692_vm6, %v9293_v32  ;;  %v4357_v28 = vsel %vm4350_vm10, %v4353_v0, %v4356_v46  ;;  %v11196_v4 = vld [vmem:[#allocation114_spill] sm:$0xff] }
 0x393   : > { %v3511_v55 = vadd.f32 %v9225_v60, %v3235_v25  ;;  %v3965_v60 = vrot.slane %v11196_v4, 2  ;;  %v4632_v25 = vrot.slane %v8690_v21, 3  ;;  %v11200_v4 = vld [vmem:[#allocation104_spill] sm:$0xff] }
 0x394   : > { %5175 = vmatmul.msk.bf16.vlgmr.msra.gmra.mxu3 %vm2692_vm6, %v4357_v28 }
 0x395   : > { %v3665_v12 = vadd.f32 %v3603_v42, %v3511_v55  ;;  %v9301_v40 = vpop.f32.mrf.mxu2  ;;  %v3967_v19 = vsel %vm892_vm0, %v3965_v60, %v11198_v45  ;;  %v11201_v60 = vld [vmem:[#allocation9_spill] sm:$0xff] }
 0x397   : > { %v3883_v47 = vpop.f32.mrf.mxu0  ;;  %v3606_v63 = vpop.f32.mrf.mxu3 }
 0x398   : > { %v9299_v20 = vadd.f32 %v3883_v47, %v3665_v12  ;;  %v3237_v35 = vpop.f32.mrf.mxu1  ;;  %v4631_v12 = vrot.slane %v11178_v49, 3  ;;  %v11199_v47 = vld [vmem:[#allocation82_spill] sm:$0xff] }
 0x399   : > { %v3238_v24 = vadd.f32 %v3237_v35, %v11197_v6  ;;  %v4358_v28 = vrot.slane %v11199_v47, 2 }
 0x39a   : > { %11195 = vst [vmem:[#allocation39_spill] sm:$0xff] %v9299_v20  ;;  %v4359_v20 = vrot.slane %v11200_v4, 3  ;;  %v4633_v35 = vsel %vm1349_vm1, %v4631_v12, %v4632_v25 }
 0x39b   : > { %v3512_v42 = vadd.f32 %v9248_v23, %v3238_v24  ;;  %5137 = vmatmul.msk.bf16.vlgmr.msra.gmra.mxu1 %vm2692_vm6, %v3967_v19  ;;  %v3974_v23 = vrot.slane %v11201_v60, 2 }
 0x39c   : > { %v4360_v19 = vor.u32 %v4359_v20, %v4358_v28  ;;  %v11204_v20 = vld [vmem:[#allocation53_spill] sm:$0xff] }
 0x39d   : > { %v3666_v55 = vadd.f32 %v3606_v63, %v3512_v42  ;;  %v9317_v6 = vpop.f32.mrf.mxu2  ;;  %v11202_v63 = vld [vmem:[#allocation109_spill] sm:$0xff]  ;;  %v9324_v42 = vsel %vm892_vm0, %v3972_v51, %v3974_v23  ;;  %v4634_v51 = vrot.slane %v11184_v3, 3 }
 0x39e   : > { %v4361_v12 = vsel %vm4350_vm10, %v4356_v46, %v4360_v19 }
 0x39f   : > { %v3886_v0 = vpop.f32.mrf.mxu0  ;;  %v3608_v21 = vpop.f32.mrf.mxu3 }
 0x3a0   : > { %v9314_v58 = vadd.f32 %v3886_v0, %v3666_v55  ;;  %v3239_v24 = vpop.f32.mrf.mxu1 }
 0x3a1   : > { %v3240_v45 = vadd.f32 %v3239_v24, %v11202_v63 }
 0x3a2   : > { %5194 = vmatmul.msk.bf16.vlgmr.msra.gmra.mxu0 %vm2692_vm6, %v4633_v35  ;;  %5159 = vmatmul.msk.bf16.gmra.mxu2 %vm2692_vm6, %v9324_v42 }
 0x3a3   : > { %v3513_v49 = vadd.f32 %v9256_v56, %v3240_v45  ;;  %v11205_v45 = vld [vmem:[#allocation79_spill] sm:$0xff] }
 0x3a4   : > { %5176 = vmatmul.msk.bf16.gmra.mxu3 %vm2692_vm6, %v4361_v12  ;;  %v4362_v46 = vrot.slane %v11205_v45, 2 }
 0x3a5   : > { %v3667_v55 = vadd.f32 %v3608_v21, %v3513_v49  ;;  %v3467_v4 = vpop.f32.mrf.mxu2 }
 0x3a7   : > { %v3888_v0 = vpop.f32.mrf.mxu0  ;;  %v3611_v24 = vpop.f32.mrf.mxu3 }
 0x3a8   : > { %v9330_v47 = vadd.f32 %v3888_v0, %v3667_v55  ;;  %v3242_v35 = vpop.f32.mrf.mxu1  ;;  %v4635_v55 = vsel %vm1349_vm1, %v4632_v25, %v4634_v51  ;;  %v11207_v0 = vld [vmem:[#allocation4_spill] sm:$0xff] }
 0x3a9   : > { %v3243_v28 = vadd.f32 %v3242_v35, %v11204_v20  ;;  %v4363_v12 = vrot.slane %v11207_v0, 3  ;;  %v11208_v35 = vld [vmem:[#allocation60_spill] sm:$0xff] }
 0x3aa   : > { %11203 = vst [vmem:[#allocation48_spill] sm:$0xff] %v9330_v47  ;;  %v3976_v20 = vrot.slane %v11208_v35, 2 }
 0x3ab   : > { %v3514_v56 = vadd.f32 %v9273_v22, %v3243_v28  ;;  %5138 = vmatmul.msk.bf16.gmra.mxu1 %vm2692_vm6, %v9235_v44  ;;  %v11209_v28 = vld [vmem:[#allocation45_spill] sm:$0xff] }
 0x3ad   : > { %v3668_v21 = vadd.f32 %v3611_v24, %v3514_v56  ;;  %v9342_v47 = vpop.f32.mrf.mxu2  ;;  %v4364_v56 = vor.u32 %v4363_v12, %v4362_v46 }
 0x3af   : > { %v3891_v63 = vpop.f32.mrf.mxu0  ;;  %v3613_v44 = vpop.f32.mrf.mxu3  ;;  %v4365_v45 = vsel %vm4350_vm10, %v4360_v19, %v4364_v56 }
 0x3b0   : > { %v9338_v49 = vadd.f32 %v3891_v63, %v3668_v21  ;;  %v3244_v22 = vpop.f32.mrf.mxu1  ;;  %v9349_v21 = vsel %vm892_vm0, %v3974_v23, %v3976_v20 }
 0x3b1   : > { %v3245_v3 = vadd.f32 %v3244_v22, %v11209_v28  ;;  %v11211_v28 = vld [vmem:[#allocation16_spill] sm:$0xff] }
 0x3b2   : > { %11206 = vst [vmem:[#allocation72_spill] sm:$0xff] %v9338_v49  ;;  %5195 = vmatmul.msk.bf16.gmra.mxu0 %vm2692_vm6, %v4635_v55  ;;  %5160 = vmatmul.msk.bf16.gmra.mxu2 %vm2692_vm6, %v9349_v21 }
 0x3b3   : > { %v3515_v24 = vadd.f32 %v9286_v8, %v3245_v3  ;;  %v11212_v3 = vld [vmem:[#allocation42_spill] sm:$0xff] }
 0x3b4   : > { %5177 = vmatmul.msk.bf16.gmra.mxu3 %vm2692_vm6, %v4365_v45  ;;  %v4366_v19 = vrot.slane %v11212_v3, 2 }
 0x3b5   : > { %v3669_v25 = vadd.f32 %v3613_v44, %v3515_v24  ;;  %v3472_v0 = vpop.f32.mrf.mxu2  ;;  %v4636_v44 = vrot.slane %v11194_v16, 3  ;;  %v11213_v24 = vld [vmem:[#allocation90_spill] sm:$0xff] }
 0x3b6   : > { %v4367_v45 = vrot.slane %v11213_v24, 3 }
 0x3b7   : > { %v3893_v63 = vpop.f32.mrf.mxu0  ;;  %v3616_v22 = vpop.f32.mrf.mxu3 }
 0x3b8   : > { %v9355_v55 = vadd.f32 %v3893_v63, %v3669_v25  ;;  %v3247_v49 = vpop.f32.mrf.mxu1  ;;  %v4637_v63 = vsel %vm1349_vm1, %v4634_v51, %v4636_v44 }
 0x3b9   : > { %v3248_v8 = vadd.f32 %v3247_v49, %v11211_v28  ;;  %v3978_v49 = vrot.slane %v8587_v9, 2 }
 0x3ba   : > { %11210 = vst [vmem:[#allocation18_spill] sm:$0xff] %v9355_v55 }
 0x3bb   : > { %v3516_v46 = vadd.f32 %v9301_v40, %v3248_v8  ;;  %5139 = vmatmul.msk.bf16.gmra.mxu1 %vm2692_vm6, %v9265_v34  ;;  %v4368_v8 = vor.u32 %v4367_v45, %v4366_v19  ;;  %v11216_v19 = vld [vmem:[#allocation108_spill] sm:$0xff] }
 0x3bd   : > { %v3670_v23 = vadd.f32 %v3616_v22, %v3516_v46  ;;  %v9367_v55 = vpop.f32.mrf.mxu2  ;;  %v11215_v22 = vld [vmem:[#allocation51_spill] sm:$0xff]  ;;  %v9374_v46 = vsel %vm892_vm0, %v3976_v20, %v3978_v49  ;;  %v4638_v20 = vrot.slane %v11201_v60, 3 }
 0x3bf   : > { %v3896_v12 = vpop.f32.mrf.mxu0  ;;  %v3618_v34 = vpop.f32.mrf.mxu3 }
 0x3c0   : > { %v9364_v25 = vadd.f32 %v3896_v12, %v3670_v23  ;;  %v3249_v40 = vpop.f32.mrf.mxu1  ;;  %v4369_v12 = vsel %vm4350_vm10, %v4364_v56, %v4368_v8  ;;  %v11218_v56 = vld [vmem:[#allocation22_spill] sm:$0xff] }
 0x3c1   : > { %v3250_v28 = vadd.f32 %v3249_v40, %v11215_v22 }
 0x3c2   : > { %11214 = vst [vmem:[#allocation84_spill] sm:$0xff] %v9364_v25  ;;  %5196 = vmatmul.msk.bf16.gmra.mxu0 %vm2692_vm6, %v4637_v63  ;;  %5161 = vmatmul.msk.bf16.gmra.mxu2 %vm2692_vm6, %v9374_v46  ;;  %v4371_v25 = vrot.slane %v11218_v56, 3 }
 0x3c3   : > { %v3517_v16 = vadd.f32 %v9317_v6, %v3250_v28  ;;  %v11217_v28 = vld [vmem:[#allocation80_spill] sm:$0xff] }
 0x3c4   : > { %5178 = vmatmul.msk.bf16.gmra.mxu3 %vm2692_vm6, %v4369_v12 }
 0x3c5   : > { %v3671_v51 = vadd.f32 %v3618_v34, %v3517_v16  ;;  %v3477_v24 = vpop.f32.mrf.mxu2  ;;  %v4370_v16 = vrot.slane %v11217_v28, 2 }
 0x3c7   : > { %v3898_v23 = vpop.f32.mrf.mxu0  ;;  %v3621_v40 = vpop.f32.mrf.mxu3 }
 0x3c8   : > { %v9380_v3 = vadd.f32 %v3898_v23, %v3671_v51  ;;  %v3252_v63 = vpop.f32.mrf.mxu1  ;;  %v4639_v51 = vsel %vm1349_vm1, %v4636_v44, %v4638_v20 }
 0x3c9   : > { %v3253_v45 = vadd.f32 %v3252_v63, %v11216_v19  ;;  %v3980_v63 = vrot.slane %v8795_v13, 2  ;;  %v11220_v19 = vld [vmem:[#allocation103_spill] sm:$0xff] }
 0x3cb   : > { %v3518_v6 = vadd.f32 %v3467_v4, %v3253_v45  ;;  %5140 = vmatmul.msk.bf16.gmra.mxu1 %vm2692_vm6, %v9293_v32 }
 0x3cd   : > { %v3672_v22 = vadd.f32 %v3621_v40, %v3518_v6  ;;  %v9391_v23 = vpop.f32.mrf.mxu2  ;;  %v4372_v40 = vor.u32 %v4371_v25, %v4370_v16  ;;  %v9398_v6 = vsel %vm892_vm0, %v3978_v49, %v3980_v63  ;;  %v11221_v25 = vld [vmem:[#allocation110_spill] sm:$0xff]  ;;  %v4640_v49 = vrot.slane %v11208_v35, 3 }
 0x3ce   : > { %v3982_v35 = vrot.slane %v11148_v31, 2 }
 0x3cf   : > { %v3901_v34 = vpop.f32.mrf.mxu0  ;;  %v3623_v32 = vpop.f32.mrf.mxu3 }
 0x3d0   : > { %v9388_v12 = vadd.f32 %v3901_v34, %v3672_v22  ;;  %v3254_v4 = vpop.f32.mrf.mxu1  ;;  %v4373_v34 = vsel %vm4350_vm10, %v4368_v8, %v4372_v40  ;;  %v11223_v8 = vld [vmem:[#allocation75_spill] sm:$0xff] }
 0x3d1   : > { %v3255_v60 = vadd.f32 %v3254_v4, %v11220_v19 }
 0x3d2   : > { %11219 = vst [vmem:[#allocation66_spill] sm:$0xff] %v9388_v12  ;;  %5197 = vmatmul.msk.bf16.gmra.mxu0 %vm2692_vm6, %v4639_v51  ;;  %5162 = vmatmul.msk.bf16.gmra.mxu2 %vm2692_vm6, %v9398_v6  ;;  %v4375_v12 = vrot.slane %v11223_v8, 3 }
 0x3d3   : > { %v3519_v45 = vadd.f32 %v9342_v47, %v3255_v60  ;;  %v11222_v60 = vld [vmem:[#allocation100_spill] sm:$0xff] }
 0x3d4   : > { %5179 = vmatmul.msk.bf16.gmra.mxu3 %vm2692_vm6, %v4373_v34 }
 0x3d5   : > { %v3673_v44 = vadd.f32 %v3623_v32, %v3519_v45  ;;  %v3482_v56 = vpop.f32.mrf.mxu2  ;;  %v4374_v45 = vrot.slane %v11222_v60, 2 }
 0x3d7   : > { %v3903_v22 = vpop.f32.mrf.mxu0  ;;  %v3626_v4 = vpop.f32.mrf.mxu3 }
 0x3d8   : > { %v9404_v28 = vadd.f32 %v3903_v22, %v3673_v44  ;;  %v3257_v51 = vpop.f32.mrf.mxu1  ;;  %v4641_v44 = vsel %vm1349_vm1, %v4638_v20, %v4640_v49 }
 0x3d9   : > { %v3258_v16 = vadd.f32 %v3257_v51, %v11221_v25  ;;  %v11225_v25 = vld [vmem:[#allocation111_spill] sm:$0xff] }
 0x3db   : > { %v3520_v47 = vadd.f32 %v3472_v0, %v3258_v16  ;;  %5141 = vmatmul.msk.bf16.gmra.mxu1 %vm2692_vm6, %v9324_v42  ;;  %v4376_v42 = vor.u32 %v4375_v12, %v4374_v45 }
 0x3dd   : > { %v3674_v19 = vadd.f32 %v3626_v4, %v3520_v47  ;;  %v3484_v22 = vpop.f32.mrf.mxu2  ;;  %v9420_v47 = vsel %vm892_vm0, %v3980_v63, %v3982_v35  ;;  %v4642_v63 = vrot.slane %v8587_v9, 3 }
 0x3df   : > { %v3906_v32 = vpop.f32.mrf.mxu0  ;;  %v3628_v0 = vpop.f32.mrf.mxu3 }
 0x3e0   : > { %v9412_v34 = vadd.f32 %v3906_v32, %v3674_v19  ;;  %v3259_v51 = vpop.f32.mrf.mxu1  ;;  %v4377_v32 = vsel %vm4350_vm10, %v4372_v40, %v4376_v42  ;;  %v11228_v40 = vld [vmem:[#allocation21_spill] sm:$0xff] }
 0x3e1   : > { %v3260_v16 = vadd.f32 %v3259_v51, %v11225_v25 }
 0x3e2   : > { %11224 = vst [vmem:[#allocation56_spill] sm:$0xff] %v9412_v34  ;;  %5198 = vmatmul.msk.bf16.gmra.mxu0 %vm2692_vm6, %v4641_v44  ;;  %5163 = vmatmul.msk.bf16.gmra.mxu2 %vm2692_vm6, %v9420_v47  ;;  %v11226_v44 = vld [vmem:[#allocation105_spill] sm:$0xff]  ;;  %v4379_v34 = vrot.slane %v11228_v40, 3 }
 0x3e3   : > { %v3521_v4 = vadd.f32 %v9367_v55, %v3260_v16  ;;  %v11227_v16 = vld [vmem:[#allocation106_spill] sm:$0xff] }
 0x3e4   : > { %5180 = vmatmul.msk.bf16.gmra.mxu3 %vm2692_vm6, %v4377_v32 }
 0x3e5   : > { %v3675_v19 = vadd.f32 %v3628_v0, %v3521_v4  ;;  %v3487_v8 = vpop.f32.mrf.mxu2  ;;  %v4378_v4 = vrot.slane %v11227_v16, 2 }
 0x3e7   : > { %v3908_v20 = vpop.f32.mrf.mxu0  ;;  %v3631_v45 = vpop.f32.mrf.mxu3 }
 0x3e8   : > { %v9426_v60 = vadd.f32 %v3908_v20, %v3675_v19  ;;  %v3262_v12 = vpop.f32.mrf.mxu1  ;;  %v4643_v19 = vsel %vm1349_vm1, %v4640_v49, %v4642_v63 }
 0x3e9   : > { %v3263_v51 = vadd.f32 %v3262_v12, %v11226_v44  ;;  %v3984_v12 = vrot.slane %v11154_v39, 2  ;;  %v11229_v44 = vld [vmem:[#allocation101_spill] sm:$0xff] }
 0x3eb   : > { %v3522_v55 = vadd.f32 %v3477_v24, %v3263_v51  ;;  %5142 = vmatmul.msk.bf16.gmra.mxu1 %vm2692_vm6, %v9349_v21 }
 0x3ed   : > { %v3676_v25 = vadd.f32 %v3631_v45, %v3522_v55  ;;  %v9437_v20 = vpop.f32.mrf.mxu2  ;;  %v4380_v45 = vor.u32 %v4379_v34, %v4378_v4  ;;  %v9444_v55 = vsel %vm892_vm0, %v3982_v35, %v3984_v12  ;;  %v11231_v34 = vld [vmem:[#allocation112_spill] sm:$0xff]  ;;  %v4644_v35 = vrot.slane %v8795_v13, 3 }
 0x3ef   : > { %v3911_v0 = vpop.f32.mrf.mxu0  ;;  %v3633_v21 = vpop.f32.mrf.mxu3 }
 0x3f0   : > { %v9434_v32 = vadd.f32 %v3911_v0, %v3676_v25  ;;  %v3264_v24 = vpop.f32.mrf.mxu1  ;;  %v4381_v0 = vsel %vm4350_vm10, %v4376_v42, %v4380_v45 }
 0x3f1   : > { %v3265_v9 = vadd.f32 %v3264_v24, %v11229_v44 }
 0x3f2   : > { %5199 = vmatmul.msk.bf16.gmra.mxu0 %vm2692_vm6, %v4643_v19  ;;  %5164 = vmatmul.msk.bf16.gmra.mxu2 %vm2692_vm6, %v9444_v55 }
 0x3f3   : > { %v3523_v51 = vadd.f32 %v9391_v23, %v3265_v9  ;;  %v11232_v9 = vld [vmem:[#allocation37_spill] sm:$0xff] }
 0x3f4   : > { %5181 = vmatmul.msk.bf16.gmra.mxu3 %vm2692_vm6, %v4381_v0 }
 0x3f5   : > { %v3677_v49 = vadd.f32 %v3633_v21, %v3523_v51  ;;  %v4222_v40 = vpop.f32.mrf.mxu2  ;;  %v4382_v51 = vrot.slane %v11232_v9, 2 }
 0x3f7   : > { %v3913_v25 = vpop.f32.mrf.mxu0  ;;  %v3636_v24 = vpop.f32.mrf.mxu3 }
 0x3f8   : > { %v9450_v16 = vadd.f32 %v3913_v25, %v3677_v49  ;;  %v3267_v19 = vpop.f32.mrf.mxu1  ;;  %v4645_v49 = vsel %vm1349_vm1, %v4642_v63, %v4644_v35  ;;  %v11233_v25 = vld [vmem:[#allocation52_spill] sm:$0xff] }
 0x3f9   : > { %v3268_v4 = vadd.f32 %v3267_v19, %v11231_v34  ;;  %v4383_v0 = vrot.slane %v11233_v25, 3  ;;  %v3986_v19 = vrot.slane %v11166_v11, 2  ;;  %v11234_v34 = vld [vmem:[#allocation102_spill] sm:$0xff] }
 0x3fa   : > { %11230 = vst [vmem:[#allocation55_spill] sm:$0xff] %v9450_v16 }
 0x3fb   : > { %v3524_v23 = vadd.f32 %v3482_v56, %v3268_v4  ;;  %5143 = vmatmul.msk.bf16.gmra.mxu1 %vm2692_vm6, %v9374_v46  ;;  %v4384_v4 = vor.u32 %v4383_v0, %v4382_v51 }
 0x3fd   : > { %v3678_v44 = vadd.f32 %v3636_v24, %v3524_v23  ;;  %v9461_v16 = vpop.f32.mrf.mxu2  ;;  %v9467_v23 = vsel %vm892_vm0, %v3984_v12, %v3986_v19 }
 0x3ff   : > { %v3916_v21 = vpop.f32.mrf.mxu0  ;;  %v3638_v46 = vpop.f32.mrf.mxu3 }
 0x400   : > { %v9457_v42 = vadd.f32 %v3916_v21, %v3678_v44  ;;  %v3269_v56 = vpop.f32.mrf.mxu1  ;;  %v4385_v21 = vsel %vm4350_vm10, %v4380_v45, %v4384_v4  ;;  %v4386_v45 = vrot.slane %v11167_v38, 2 }
 0x401   : > { %v3270_v13 = vadd.f32 %v3269_v56, %v11234_v34 }
 0x402   : > { %5200 = vmatmul.msk.bf16.gmra.mxu0 %vm2692_vm6, %v4645_v49  ;;  %5165 = vmatmul.msk.bf16.gmra.mxu2 %vm2692_vm6, %v9467_v23 }
 0x403   : > { %v3525_v24 = vadd.f32 %v3484_v22, %v3270_v13  ;;  %v11235_v22 = vld [vmem:[#allocation70_spill] sm:$0xff]  ;;  %v4387_v13 = vrot.slane %v11168_v5, 3 }
 0x404   : > { %5182 = vmatmul.msk.bf16.gmra.mxu3 %vm2692_vm6, %v4385_v21  ;;  %v3988_v21 = vrot.slane %v8151_v18, 2 }
 0x405   : > { %v3679_v63 = vadd.f32 %v3638_v46, %v3525_v24  ;;  %v9475_v49 = vpop.f32.mrf.mxu2  ;;  %v4646_v46 = vrot.slane %v11148_v31, 3 }
 0x406   : > { %v9493_v38 = vsel %vm892_vm0, %v3986_v19, %v3988_v21 }
 0x407   : > { %v3918_v44 = vpop.f32.mrf.mxu0  ;;  %v3641_v56 = vpop.f32.mrf.mxu3 }
 0x408   : > { %v9473_v9 = vadd.f32 %v3918_v44, %v3679_v63  ;;  %v3272_v25 = vpop.f32.mrf.mxu1  ;;  %v4647_v63 = vsel %vm1349_vm1, %v4644_v35, %v4646_v46 }
 0x409   : > { %v3273_v51 = vadd.f32 %v3272_v25, %v11235_v22  ;;  %v11236_v25 = vld [vmem:[#allocation121_spill] sm:$0xff]  ;;  %v4388_v22 = vor.u32 %v4387_v13, %v4386_v45  ;;  %v4648_v13 = vrot.slane %v11154_v39, 3 }
 0x40b   : > { %v3526_v0 = vadd.f32 %v3487_v8, %v3273_v51  ;;  %5144 = vmatmul.msk.bf16.gmra.mxu1 %vm2692_vm6, %v9398_v6  ;;  %v4389_v51 = vsel %vm4350_vm10, %v4384_v4, %v4388_v22  ;;  %v9510_v4 = vld [vmem:[%s9833_s4] ss:$0 sm:$0xff] }
 0x40d   : > { %v3680_v12 = vadd.f32 %v3641_v56, %v3526_v0  ;;  %v9486_v44 = vpop.f32.mrf.mxu2 }
 0x40f   : > { %v3921_v34 = vpop.f32.mrf.mxu0  ;;  %v3643_v6 = vpop.f32.mrf.mxu3 }
 0x410   : > { %v9483_v24 = vadd.f32 %v3921_v34, %v3680_v12  ;;  %v3274_v8 = vpop.f32.mrf.mxu1 }
 0x411   : > { %v3275_v56 = vadd.f32 %v3274_v8, %v11236_v25  ;;  %v4391_v25 = vrot.slane %v11172_v54, 3 }
 0x412   : > { %5201 = vmatmul.msk.bf16.gmra.mxu0 %vm2692_vm6, %v4647_v63  ;;  %5166 = vmatmul.msk.bf16.gmra.mxu2 %vm2692_vm6, %v9493_v38 }
 0x413   : > { %v3527_v31 = vadd.f32 %v9437_v20, %v3275_v56 }
 0x414   : > { %5183 = vmatmul.msk.bf16.gmra.mxu3 %vm2692_vm6, %v4389_v51 }
 0x415   : > { %v3681_v5 = vadd.f32 %v3643_v6, %v3527_v31  ;;  %v9501_v12 = vpop.f32.mrf.mxu2  ;;  %v4390_v6 = vrot.slane %v11171_v41, 2 }
 0x417   : > { %v3923_v35 = vpop.f32.mrf.mxu0  ;;  %v4502_v45 = vpop.f32.mrf.mxu3  ;;  %v4392_v51 = vor.u32 %v4391_v25, %v4390_v6 }
 0x418   : > { %v9499_v0 = vadd.f32 %v3923_v35, %v3681_v5  ;;  %v4068_v34 = vpop.f32.mrf.mxu1 }
 0x419   : > { %v4158_v20 = vadd.f32 %v4068_v34, %v9100_v30  ;;  %v4649_v30 = vsel %vm1349_vm1, %v4646_v46, %v4648_v13 }
 0x41b   : > { %v4312_v19 = vadd.f32 %v4222_v40, %v4158_v20  ;;  %5145 = vmatmul.msk.bf16.gmra.mxu1 %vm2692_vm6, %v9420_v47  ;;  %v3990_v47 = vrot.slane %v8459_v2, 2 }
 0x41d   : > { %v4592_v63 = vadd.f32 %v4502_v45, %v4312_v19  ;;  %v9516_v40 = vpop.f32.mrf.mxu2  ;;  %v9529_v46 = vsel %vm892_vm0, %v3988_v21, %v3990_v47  ;;  %v4393_v45 = vsel %vm4350_vm10, %v4388_v22, %v4392_v51 }
 0x41f   : > { %v4734_v8 = vpop.f32.mrf.mxu0  ;;  %v4504_v5 = vpop.f32.mrf.mxu3 }
 0x420   : > { %v4824_v56 = vadd.f32 %v4734_v8, %v4592_v63  ;;  %v4070_v39 = vpop.f32.mrf.mxu1  ;;  %v11237_v8 = vld [vmem:[#allocation83_spill] sm:$0xff] }
 0x421   : > { %v4159_v35 = vadd.f32 %v4070_v39, %v9110_v10 }
 0x422   : > { %5202 = vmatmul.msk.bf16.gmra.mxu0 %vm2692_vm6, %v4649_v30  ;;  %v4864_v31 = vadd.f32 %v9510_v4, %v4824_v56  ;;  %5167 = vmatmul.msk.bf16.gmra.mxu2 %vm2692_vm6, %v9529_v46  ;;  %v4650_v30 = vrot.slane %v11166_v11, 3 }
 0x423   : > { %v4313_v54 = vadd.f32 %v9461_v16, %v4159_v35 }
 0x424   : > { %v4900_v41 = vmax.f32 %v4864_v31, 0.0  ;;  %5184 = vmatmul.msk.bf16.gmra.mxu3 %vm2692_vm6, %v4393_v45  ;;  %v4394_v31 = vrot.slane %v8469_v33, 2 }
 0x425   : > { %v4593_v10 = vadd.f32 %v4504_v5, %v4313_v54  ;;  %v9537_v19 = vpop.f32.mrf.mxu2  ;;  %v4395_v5 = vrot.slane %v8175_v62, 3 }
 0x426   : > { %4936 = vst.msk [vmem:[%s9525_s22] sm:$0xff] %vm2692_vm6, %v4900_v41  ;;  %v4651_v41 = vsel %vm1349_vm1, %v4648_v13, %v4650_v30 }
 0x427   : > { %v4736_v34 = vpop.f32.mrf.mxu0  ;;  %v4507_v21 = vpop.f32.mrf.mxu3 }
 0x428   : > { %v4825_v20 = vadd.f32 %v4736_v34, %v4593_v10  ;;  %v4073_v63 = vpop.f32.mrf.mxu1  ;;  %v11238_v34 = vld [vmem:[#allocation32_spill] sm:$0xff] }
 0x429   : > { %v4160_v6 = vadd.f32 %v4073_v63, %v11237_v8 }
 0x42a   : > { %v4865_v16 = vadd.f32 %v9510_v4, %v4825_v20  ;;  %v4396_v20 = vor.u32 %v4395_v5, %v4394_v31  ;;  %v4652_v31 = vrot.slane %v8151_v18, 3 }
 0x42b   : > { %v4314_v56 = vadd.f32 %v9475_v49, %v4160_v6  ;;  %5146 = vmatmul.msk.bf16.gmra.mxu1 %vm2692_vm6, %v9444_v55  ;;  %v3992_v49 = vrot.slane %v8476_v37, 2 }
 0x42c   : > { %v4901_v25 = vmax.f32 %v4865_v16, 0.0 }
 0x42d   : > { %v4594_v22 = vadd.f32 %v4507_v21, %v4314_v56  ;;  %v9550_v54 = vpop.f32.mrf.mxu2  ;;  %v9558_v62 = vsel %vm892_vm0, %v3990_v47, %v3992_v49  ;;  %v4397_v21 = vsel %vm4350_vm10, %v4392_v51, %v4396_v20 }
 0x42e   : > { %4937 = vst.msk [vmem:[%s9525_s22 + $0x8] sm:$0xff] %vm2692_vm6, %v4901_v25 }
 0x42f   : > { %v4739_v39 = vpop.f32.mrf.mxu0  ;;  %v4509_v10 = vpop.f32.mrf.mxu3 }
 0x430   : > { %v4826_v35 = vadd.f32 %v4739_v39, %v4594_v22  ;;  %v4075_v55 = vpop.f32.mrf.mxu1 }
 0x431   : > { %v4161_v45 = vadd.f32 %v4075_v55, %v11238_v34 }
 0x432   : > { %5203 = vmatmul.msk.bf16.gmra.mxu0 %vm2692_vm6, %v4651_v41  ;;  %v4866_v11 = vadd.f32 %v9510_v4, %v4826_v35  ;;  %5168 = vmatmul.msk.bf16.gmra.mxu2 %vm2692_vm6, %v9558_v62  ;;  %v4398_v35 = vrot.slane %v8696_v43, 2  ;;  %v4399_v41 = vrot.slane %v8474_v48, 3 }
 0x433   : > { %v4315_v63 = vadd.f32 %v9486_v44, %v4161_v45 }
 0x434   : > { %v4902_v33 = vmax.f32 %v4866_v11, 0.0  ;;  %5185 = vmatmul.msk.bf16.gmra.mxu3 %vm2692_vm6, %v4397_v21  ;;  %v4400_v45 = vor.u32 %v4399_v41, %v4398_v35 }
 0x435   : > { %v4595_v13 = vadd.f32 %v4509_v10, %v4315_v63  ;;  %v9566_v6 = vpop.f32.mrf.mxu2 }
 0x436   : > { %4938 = vst.msk [vmem:[%s9525_s22 + $0x10] sm:$0xff] %vm2692_vm6, %v4902_v33 }
 0x437   : > { %v4741_v16 = vpop.f32.mrf.mxu0  ;;  %v4512_v47 = vpop.f32.mrf.mxu3 }
 0x438   : > { %v4827_v8 = vadd.f32 %v4741_v16, %v4595_v13  ;;  %v4078_v25 = vpop.f32.mrf.mxu1  ;;  %v4401_v13 = vsel %vm4350_vm10, %v4396_v20, %v4400_v45 }
 0x439   : > { %v4162_v56 = vadd.f32 %v4078_v25, %v9136_v36  ;;  %v4653_v36 = vsel %vm1349_vm1, %v4650_v30, %v4652_v31 }
 0x43a   : > { %v4867_v44 = vadd.f32 %v9510_v4, %v4827_v8 }
 0x43b   : > { %v4316_v39 = vadd.f32 %v9501_v12, %v4162_v56  ;;  %5147 = vmatmul.msk.bf16.gmra.mxu1 %vm2692_vm6, %v9467_v23  ;;  %v3994_v12 = vrot.slane %v8492_v26, 2 }
 0x43c   : > { %v4903_v22 = vmax.f32 %v4867_v44, 0.0 }
 0x43d   : > { %v4596_v51 = vadd.f32 %v4512_v47, %v4316_v39  ;;  %v9579_v11 = vpop.f32.mrf.mxu2  ;;  %v9587_v48 = vsel %vm892_vm0, %v3992_v49, %v3994_v12  ;;  %v4654_v47 = vrot.slane %v8459_v2, 3  ;;  %v4403_v39 = vrot.slane %v8497_v29, 3 }
 0x43e   : > { %4939 = vst.msk [vmem:[%s9525_s22 + $0x18] sm:$0xff] %vm2692_vm6, %v4903_v22  ;;  %v4402_v22 = vrot.slane %v8500_v15, 2 }
 0x43f   : > { %v4744_v5 = vpop.f32.mrf.mxu0  ;;  %v4514_v10 = vpop.f32.mrf.mxu3 }
 0x440   : > { %v4828_v55 = vadd.f32 %v4744_v5, %v4596_v51  ;;  %v4080_v23 = vpop.f32.mrf.mxu1 }
 0x441   : > { %v4163_v34 = vadd.f32 %v4080_v23, %v9145_v59 }
 0x442   : > { %5204 = vmatmul.msk.bf16.gmra.mxu0 %vm2692_vm6, %v4653_v36  ;;  %v4868_v18 = vadd.f32 %v9510_v4, %v4828_v55  ;;  %5169 = vmatmul.msk.bf16.gmra.mxu2 %vm2692_vm6, %v9587_v48  ;;  %v4404_v55 = vor.u32 %v4403_v39, %v4402_v22 }
 0x443   : > { %v4317_v33 = vadd.f32 %v9516_v40, %v4163_v34 }
 0x444   : > { %v4904_v43 = vmax.f32 %v4868_v18, 0.0  ;;  %5186 = vmatmul.msk.bf16.gmra.mxu3 %vm2692_vm6, %v4401_v13  ;;  %v4405_v18 = vsel %vm4350_vm10, %v4400_v45, %v4404_v55 }
 0x445   : > { %v4597_v30 = vadd.f32 %v4514_v10, %v4317_v33  ;;  %v9595_v16 = vpop.f32.mrf.mxu2 }
 0x446   : > { %4940 = vst.msk [vmem:[%s9525_s22 + $0x20] sm:$0xff] %vm2692_vm6, %v4904_v43 }
 0x447   : > { %v4746_v63 = vpop.f32.mrf.mxu0  ;;  %v4517_v49 = vpop.f32.mrf.mxu3 }
 0x448   : > { %v4829_v59 = vadd.f32 %v4746_v63, %v4597_v30  ;;  %v4083_v21 = vpop.f32.mrf.mxu1  ;;  %v4656_v63 = vrot.slane %v8476_v37, 3 }
 0x449   : > { %v4164_v8 = vadd.f32 %v4083_v21, %v9152_v1  ;;  %v4655_v1 = vsel %vm1349_vm1, %v4652_v31, %v4654_v47  ;;  %v4407_v21 = vrot.slane %v8503_v7, 3 }
 0x44a   : > { %v4869_v40 = vadd.f32 %v9510_v4, %v4829_v59  ;;  %v4406_v59 = vrot.slane %v8784_v14, 2  ;;  %v11239_v14 = vld [vmem:[#allocation67_spill] sm:$0xff] }
 0x44b   : > { %v4318_v44 = vadd.f32 %v9537_v19, %v4164_v8  ;;  %5148 = vmatmul.msk.bf16.gmra.mxu1 %vm2692_vm6, %v9493_v38  ;;  %v3996_v19 = vrot.slane %v8778_v27, 2 }
 0x44c   : > { %v4905_v25 = vmax.f32 %v4869_v40, 0.0 }
 0x44d   : > { %v4598_v20 = vadd.f32 %v4517_v49, %v4318_v44  ;;  %v9608_v5 = vpop.f32.mrf.mxu2  ;;  %v9616_v29 = vsel %vm892_vm0, %v3994_v12, %v3996_v19  ;;  %v9645_v7 = vsel %vm892_vm0, %v3996_v19, %v11239_v14 }
 0x44e   : > { %4941 = vst.msk [vmem:[%s9525_s22 + $0x28] sm:$0xff] %vm2692_vm6, %v4905_v25  ;;  %v4408_v25 = vor.u32 %v4407_v21, %v4406_v59  ;;  %v11242_v21 = vld [vmem:[#allocation116_spill] sm:$0xff] }
 0x44f   : > { %v4749_v56 = vpop.f32.mrf.mxu0  ;;  %v4519_v35 = vpop.f32.mrf.mxu3 }
 0x450   : > { %v4830_v51 = vadd.f32 %v4749_v56, %v4598_v20  ;;  %v4085_v38 = vpop.f32.mrf.mxu1  ;;  %v4409_v22 = vsel %vm4350_vm10, %v4404_v55, %v4408_v25 }
 0x451   : > { %v4165_v41 = vadd.f32 %v4085_v38, %v9161_v50 }
 0x452   : > { %5205 = vmatmul.msk.bf16.gmra.mxu0 %vm2692_vm6, %v4655_v1  ;;  %v4870_v2 = vadd.f32 %v9510_v4, %v4830_v51  ;;  %5170 = vmatmul.msk.bf16.gmra.mxu2 %vm2692_vm6, %v9616_v29 }
 0x453   : > { %v4319_v36 = vadd.f32 %v9550_v54, %v4165_v41 }
 0x454   : > { %v4906_v15 = vmax.f32 %v4870_v2, 0.0  ;;  %5187 = vmatmul.msk.bf16.gmra.mxu3 %vm2692_vm6, %v4405_v18  ;;  %v11240_v18 = vld [vmem:[#allocation115_spill] sm:$0xff] }
 0x455   : > { %v4599_v31 = vadd.f32 %v4519_v35, %v4319_v36  ;;  %v9624_v10 = vpop.f32.mrf.mxu2  ;;  %v4658_v35 = vrot.slane %v8492_v26, 3  ;;  %v4411_v36 = vrot.slane %v8787_v61, 3 }
 0x456   : > { %4942 = vst.msk [vmem:[%s9525_s22 + $0x30] sm:$0xff] %vm2692_vm6, %v4906_v15  ;;  %v4410_v15 = vrot.slane %v8841_v52, 2  ;;  %v11241_v52 = vld [vmem:[#allocation123_spill] sm:$0xff] }
 0x457   : > { %v4751_v23 = vpop.f32.mrf.mxu0  ;;  %v4522_v12 = vpop.f32.mrf.mxu3 }
 0x458   : > { %v4831_v50 = vadd.f32 %v4751_v23, %v4599_v31  ;;  %v4088_v34 = vpop.f32.mrf.mxu1 }
 0x459   : > { %v4166_v43 = vadd.f32 %v4088_v34, %v9168_v57  ;;  %v4657_v57 = vsel %vm1349_vm1, %v4654_v47, %v4656_v63  ;;  %v4412_v34 = vor.u32 %v4411_v36, %v4410_v15 }
 0x45a   : > { %v4871_v54 = vadd.f32 %v9510_v4, %v4831_v50 }
 0x45b   : > { %v4320_v30 = vadd.f32 %v9566_v6, %v4166_v43  ;;  %5149 = vmatmul.msk.bf16.gmra.mxu1 %vm2692_vm6, %v9529_v46 }
 0x45c   : > { %v4907_v33 = vmax.f32 %v4871_v54, 0.0 }
 0x45d   : > { %v4600_v45 = vadd.f32 %v4522_v12, %v4320_v30  ;;  %v9637_v49 = vpop.f32.mrf.mxu2 }
 0x45e   : > { %4943 = vst.msk [vmem:[%s9525_s22 + $0x38] sm:$0xff] %vm2692_vm6, %v4907_v33  ;;  %v4413_v33 = vsel %vm4350_vm10, %v4408_v25, %v4412_v34 }
 0x45f   : > { %v4754_v13 = vpop.f32.mrf.mxu0  ;;  %v4524_v37 = vpop.f32.mrf.mxu3 }
 0x460   : > { %v4832_v40 = vadd.f32 %v4754_v13, %v4600_v45  ;;  %v4090_v6 = vpop.f32.mrf.mxu1  ;;  %v2811_v13 = vld [vmem:[#allocation2 + $0x140] sm:$0x3f] }
 0x461   : > { %v4167_v8 = vadd.f32 %v4090_v6, %v9177_v17 }
 0x462   : > { %5206 = vmatmul.msk.bf16.gmra.mxu0 %vm2692_vm6, %v4657_v57  ;;  %v4872_v46 = vadd.f32 %v9510_v4, %v4832_v40  ;;  %5171 = vmatmul.msk.bf16.gmra.mxu2 %vm2692_vm6, %v9645_v7 }
 0x463   : > { %v4321_v20 = vadd.f32 %v9579_v11, %v4167_v8 }
 0x464   : > { %v4908_v44 = vmax.f32 %v4872_v46, 0.0  ;;  %5188 = vmatmul.msk.bf16.gmra.mxu3 %vm2692_vm6, %v4409_v22  ;;  %v4660_v46 = vrot.slane %v8778_v27, 3 }
 0x465   : > { %v4601_v47 = vadd.f32 %v4524_v37, %v4321_v20  ;;  %v9653_v39 = vpop.f32.mrf.mxu2  ;;  %v9686_v37 = vpack.c.bf16 %v2811_v13, %v2811_v13 }
 0x466   : > { %4944 = vst.msk [vmem:[%s9525_s22 + $0x40] sm:$0xff] %vm2692_vm6, %v4908_v44  ;;  %v4661_v20 = vsel %vm1349_vm1, %v4658_v35, %v4660_v46 }
 0x467   : > { %v4756_v56 = vpop.f32.mrf.mxu0  ;;  %v4527_v1 = vpop.f32.mrf.mxu3 }
 0x468   : > { %v4833_v17 = vadd.f32 %v4756_v56, %v4601_v47  ;;  %v4093_v11 = vpop.f32.mrf.mxu1  ;;  %v4202_v47 = vrot.slane %v9686_v37, 2  ;;  %v11243_v56 = vld [vmem:[#allocation81_spill] sm:$0xff] }
 0x469   : > { %v4168_v19 = vadd.f32 %v4093_v11, %v9184_v53  ;;  %v4659_v53 = vsel %vm1349_vm1, %v4656_v63, %v4658_v35  ;;  %v11246_v35 = vld [vmem:[#allocation68_spill] sm:$0xff] }
 0x46a   : > { %v4873_v51 = vadd.f32 %v9510_v4, %v4833_v17 }
 0x46b   : > { %v4322_v2 = vadd.f32 %v9595_v16, %v4168_v19  ;;  %5150 = vmatmul.msk.bf16.gmra.mxu1 %vm2692_vm6, %v9558_v62 }
 0x46c   : > { %v4909_v38 = vmax.f32 %v4873_v51, 0.0  ;;  %v11244_v51 = vld [vmem:[#allocation15_spill] sm:$0xff] }
 0x46d   : > { %v4602_v41 = vadd.f32 %v4527_v1, %v4322_v2  ;;  %v9666_v23 = vpop.f32.mrf.mxu2  ;;  %v11245_v1 = vrot.slane %v11244_v51, 2 }
 0x46e   : > { %4945 = vst.msk [vmem:[%s9525_s22 + $0x48] sm:$0xff] %vm2692_vm6, %v4909_v38 }
 0x46f   : > { %v4759_v55 = vpop.f32.mrf.mxu0  ;;  %v4529_v26 = vpop.f32.mrf.mxu3  ;;  %v4203_v19 = vsel %vm892_vm0, %v11245_v1, %v4202_v47 }
 0x470   : > { %v4834_v31 = vadd.f32 %v4759_v55, %v4602_v41  ;;  %v4095_v16 = vpop.f32.mrf.mxu1  ;;  %v4417_v41 = vsel %vm4350_vm10, %v4412_v34, %v11246_v35 }
 0x471   : > { %v4169_v50 = vadd.f32 %v4095_v16, %v11240_v18 }
 0x472   : > { %5207 = vmatmul.msk.bf16.gmra.mxu0 %vm2692_vm6, %v4659_v53  ;;  %v4874_v62 = vadd.f32 %v9510_v4, %v4834_v31  ;;  %5172 = vmatmul.msk.bf16.gmra.mxu2 %vm2692_vm6, %v11241_v52  ;;  %v11247_v53 = vld [vmem:[#allocation12_spill] sm:$0xff] }
 0x473   : > { %v4323_v12 = vadd.f32 %v9608_v5, %v4169_v50 }
 0x474   : > { %v4910_v54 = vmax.f32 %v4874_v62, 0.0  ;;  %5189 = vmatmul.msk.bf16.gmra.mxu3 %vm2692_vm6, %v4413_v33 }
 0x475   : > { %v4603_v61 = vadd.f32 %v4529_v26, %v4323_v12  ;;  %v9678_v63 = vpop.f32.mrf.mxu2 }
 0x476   : > { %4946 = vst.msk [vmem:[%s9525_s22 + $0x50] sm:$0xff] %vm2692_vm6, %v4910_v54  ;;  %v11248_v54 = vld [vmem:[#allocation85_spill] sm:$0xff] }
 0x477   : > { %v4761_v43 = vpop.f32.mrf.mxu0  ;;  %v4532_v5 = vpop.f32.mrf.mxu3  ;;  %v11249_v12 = vrot.slane %v11248_v54, 3 }
 0x478   : > { %v4835_v30 = vadd.f32 %v4761_v43, %v4603_v61  ;;  %v4098_v45 = vpop.f32.mrf.mxu1 }
 0x479   : > { %v4170_v40 = vadd.f32 %v4098_v45, %v11242_v21  ;;  %v4663_v52 = vsel %vm1349_vm1, %v4660_v46, %v11249_v12  ;;  %v11251_v21 = vld [vmem:[#allocation77_spill] sm:$0xff]  ;;  %v11257_v12 = vld [vmem:[#allocation7_spill] sm:$0xff] }
 0x47a   : > { %v4875_v59 = vadd.f32 %v9510_v4, %v4835_v30  ;;  %v11250_v30 = vld [vmem:[#allocation118_spill] sm:$0xff] }
 0x47b   : > { %v4324_v6 = vadd.f32 %v9624_v10, %v4170_v40  ;;  %5151 = vmatmul.msk.bf16.gmra.mxu1 %vm2692_vm6, %v9587_v48 }
 0x47c   : > { %v4911_v57 = vmax.f32 %v4875_v59, 0.0 }
 0x47d   : > { %v4604_v8 = vadd.f32 %v4532_v5, %v4324_v6  ;;  %v9691_v14 = vpop.f32.mrf.mxu2 }
 0x47e   : > { %4947 = vst.msk [vmem:[%s9525_s22 + $0x58] sm:$0xff] %vm2692_vm6, %v4911_v57 }
 0x47f   : > { %v4764_v25 = vpop.f32.mrf.mxu0  ;;  %v4534_v27 = vpop.f32.mrf.mxu3 }
 0x480   : > { %v4836_v44 = vadd.f32 %v4764_v25, %v4604_v8  ;;  %v4100_v10 = vpop.f32.mrf.mxu1  ;;  %v11252_v8 = vld [vmem:[#allocation117_spill] sm:$0xff] }
 0x481   : > { %v4171_v22 = vadd.f32 %v4100_v10, %v11243_v56 }
 0x482   : > { %5208 = vmatmul.msk.bf16.gmra.mxu0 %vm2692_vm6, %v4661_v20  ;;  %v4876_v48 = vadd.f32 %v9510_v4, %v4836_v44  ;;  %5173 = vmatmul.msk.bf16.gmra.mxu2 %vm2692_vm6, %v4203_v19  ;;  %v4428_v44 = vshrl.u32 %v9686_v37, 16  ;;  %v4431_v20 = vshll.u32 %v9686_v37, 16 }
 0x483   : > { %v4325_v11 = vadd.f32 %v9637_v49, %v4171_v22 }
 0x484   : > { %v4912_v17 = vmax.f32 %v4876_v48, 0.0  ;;  %5190 = vmatmul.msk.bf16.gmra.mxu3 %vm2692_vm6, %v4417_v41  ;;  %v4430_v56 = vrot.slane %v4428_v44, 2  ;;  %v4433_v22 = vrot.slane %v4431_v20, 3 }
 0x485   : > { %v4605_v38 = vadd.f32 %v4534_v27, %v4325_v11  ;;  %v4267_v36 = vpop.f32.mrf.mxu2  ;;  %v11253_v11 = vld [vmem:[#allocation41_spill] sm:$0xff] }
 0x486   : > { %4948 = vst.msk [vmem:[%s9525_s22 + $0x60] sm:$0xff] %vm2692_vm6, %v4912_v17  ;;  %v4434_v35 = vor.u32 %v4433_v22, %v4430_v56 }
 0x487   : > { %v4766_v2 = vpop.f32.mrf.mxu0  ;;  %v4537_v31 = vpop.f32.mrf.mxu3 }
 0x488   : > { %v4837_v55 = vadd.f32 %v4766_v2, %v4605_v38  ;;  %v4103_v15 = vpop.f32.mrf.mxu1 }
 0x489   : > { %v4172_v16 = vadd.f32 %v4103_v15, %v11247_v53 }
 0x48a   : > { %v4877_v49 = vadd.f32 %v9510_v4, %v4837_v55 }
 0x48b   : > { %v4326_v26 = vadd.f32 %v9653_v39, %v4172_v16  ;;  %5152 = vmatmul.msk.bf16.gmra.mxu1 %vm2692_vm6, %v9616_v29 }
 0x48c   : > { %v4913_v62 = vmax.f32 %v4877_v49, 0.0  ;;  %v11255_v49 = vld [vmem:[#allocation5_spill] sm:$0xff] }
 0x48d   : > { %v4606_v18 = vadd.f32 %v4537_v31, %v4326_v26  ;;  %v4269_v45 = vpop.f32.mrf.mxu2  ;;  %v4435_v31 = vsel %vm4350_vm10, %v11255_v49, %v4434_v35 }
 0x48e   : > { %4949 = vst.msk [vmem:[%s9525_s22 + $0x68] sm:$0xff] %vm2692_vm6, %v4913_v62 }
 0x48f   : > { %v4769_v50 = vpop.f32.mrf.mxu0  ;;  %v4539_v33 = vpop.f32.mrf.mxu3 }
 0x490   : > { %v4838_v34 = vadd.f32 %v4769_v50, %v4606_v18  ;;  %v4105_v61 = vpop.f32.mrf.mxu1  ;;  %v11256_v50 = vld [vmem:[#allocation64_spill] sm:$0xff] }
 0x491   : > { %v4173_v39 = vadd.f32 %v4105_v61, %v11250_v30  ;;  %v11258_v30 = vrot.slane %v11244_v51, 3 }
 0x492   : > { %5209 = vmatmul.msk.bf16.gmra.mxu0 %vm2692_vm6, %v4663_v52  ;;  %v4878_v43 = vadd.f32 %v9510_v4, %v4838_v34  ;;  %v4666_v52 = vrot.slane %v9686_v37, 3 }
 0x493   : > { %v4327_v29 = vadd.f32 %v9666_v23, %v4173_v39 }
 0x494   : > { %v4914_v13 = vmax.f32 %v4878_v43, 0.0  ;;  %5191 = vmatmul.msk.bf16.gmra.mxu3 %vm2692_vm6, %v11251_v21  ;;  %v4667_v39 = vsel %vm1349_vm1, %v11258_v30, %v4666_v52 }
 0x495   : > { %v4607_v59 = vadd.f32 %v4539_v33, %v4327_v29  ;;  %v4272_v10 = vpop.f32.mrf.mxu2 }
 0x496   : > { %4950 = vst.msk [vmem:[%s9525_s22 + $0x70] sm:$0xff] %vm2692_vm6, %v4914_v13 }
 0x497   : > { %v4771_v5 = vpop.f32.mrf.mxu0  ;;  %v4542_v46 = vpop.f32.mrf.mxu3 }
 0x498   : > { %v4839_v40 = vadd.f32 %v4771_v5, %v4607_v59  ;;  %v4108_v57 = vpop.f32.mrf.mxu1  ;;  %v11259_v5 = vld [vmem:[#allocation39_spill] sm:$0xff] }
 0x499   : > { %v4174_v25 = vadd.f32 %v4108_v57, %v11252_v8 }
 0x49a   : > { %v4879_v6 = vadd.f32 %v9510_v4, %v4839_v40 }
 0x49b   : > { %v4328_v47 = vadd.f32 %v9678_v63, %v4174_v25  ;;  %5153 = vmatmul.msk.bf16.gmra.mxu1 %vm2692_vm6, %v9645_v7  ;;  %v11254_v63 = vld [vmem:[#allocation119_spill] sm:$0xff] }
 0x49c   : > { %v4915_v23 = vmax.f32 %v4879_v6, 0.0 }
 0x49d   : > { %v4608_v48 = vadd.f32 %v4542_v46, %v4328_v47  ;;  %v4274_v53 = vpop.f32.mrf.mxu2 }
 0x49e   : > { %4951 = vst.msk [vmem:[%s9525_s22 + $0x78] sm:$0xff] %vm2692_vm6, %v4915_v23 }
 0x49f   : > { %v4774_v27 = vpop.f32.mrf.mxu0  ;;  %v4544_v38 = vpop.f32.mrf.mxu3 }
 0x4a0   : > { %v4840_v17 = vadd.f32 %v4774_v27, %v4608_v48  ;;  %v4110_v1 = vpop.f32.mrf.mxu1 }
 0x4a1   : > { %v4175_v2 = vadd.f32 %v4110_v1, %v11254_v63 }
 0x4a2   : > { %5210 = vmatmul.msk.bf16.gmra.mxu0 %vm2692_vm6, %v11253_v11  ;;  %v4880_v19 = vadd.f32 %v9510_v4, %v4840_v17  ;;  %v11260_v11 = vld [vmem:[#allocation48_spill] sm:$0xff] }
 0x4a3   : > { %v4329_v41 = vadd.f32 %v9691_v14, %v4175_v2 }
 0x4a4   : > { %v4916_v7 = vmax.f32 %v4880_v19, 0.0  ;;  %5192 = vmatmul.msk.bf16.gmra.mxu3 %vm2692_vm6, %v4435_v31 }
 0x4a5   : > { %v4609_v55 = vadd.f32 %v4544_v38, %v4329_v41  ;;  %v4277_v13 = vpop.f32.mrf.mxu2 }
 0x4a6   : > { %4952 = vst.msk [vmem:[%s9525_s22 + $0x80] sm:$0xff] %vm2692_vm6, %v4916_v7 }
 0x4a7   : > { %v4776_v15 = vpop.f32.mrf.mxu0  ;;  %v4547_v18 = vpop.f32.mrf.mxu3 }
 0x4a8   : > { %v4841_v16 = vadd.f32 %v4776_v15, %v4609_v55  ;;  %v4113_v62 = vpop.f32.mrf.mxu1  ;;  %v11261_v55 = vld [vmem:[#allocation72_spill] sm:$0xff] }
 0x4a9   : > { %v4176_v34 = vadd.f32 %v4113_v62, %v11256_v50 }
 0x4aa   : > { %v4881_v26 = vadd.f32 %v9510_v4, %v4841_v16 }
 0x4ab   : > { %v4330_v14 = vadd.f32 %v4267_v36, %v4176_v34  ;;  %5154 = vmatmul.msk.bf16.gmra.mxu1 %vm2692_vm6, %v11257_v12 }
 0x4ac   : > { %v4917_v54 = vmax.f32 %v4881_v26, 0.0 }
 0x4ad   : > { %v4610_v61 = vadd.f32 %v4547_v18, %v4330_v14  ;;  %v4279_v20 = vpop.f32.mrf.mxu2 }
 0x4ae   : > { %4953 = vst.msk [vmem:[%s9525_s22 + $0x88] sm:$0xff] %vm2692_vm6, %v4917_v54  ;;  %v11262_v54 = vld [vmem:[#allocation18_spill] sm:$0xff] }
 0x4af   : > { %v4779_v43 = vpop.f32.mrf.mxu0  ;;  %v4549_v59 = vpop.f32.mrf.mxu3 }
 0x4b0   : > { %v4842_v33 = vadd.f32 %v4779_v43, %v4610_v61  ;;  %v4115_v29 = vpop.f32.mrf.mxu1 }
 0x4b1   : > { %v4177_v21 = vadd.f32 %v4115_v29, %v11259_v5 }
 0x4b2   : > { %5211 = vmatmul.msk.bf16.gmra.mxu0 %vm2692_vm6, %v4667_v39  ;;  %v4882_v36 = vadd.f32 %v9510_v4, %v4842_v33 }
 0x4b3   : > { %v4331_v40 = vadd.f32 %v4269_v45, %v4177_v21 }
 0x4b4   : > { %v4918_v37 = vmax.f32 %v4882_v36, 0.0  ;;  %v11263_v36 = vld [vmem:[#allocation84_spill] sm:$0xff] }
 0x4b5   : > { %v4611_v57 = vadd.f32 %v4549_v59, %v4331_v40  ;;  %v4282_v63 = vpop.f32.mrf.mxu2 }
 0x4b6   : > { %4954 = vst.msk [vmem:[%s9525_s22 + $0x90] sm:$0xff] %vm2692_vm6, %v4918_v37 }
 0x4b7   : > { %v4781_v6 = vpop.f32.mrf.mxu0  ;;  %v4552_v25 = vpop.f32.mrf.mxu3 }
 0x4b8   : > { %v4843_v46 = vadd.f32 %v4781_v6, %v4611_v57  ;;  %v4118_v51 = vpop.f32.mrf.mxu1 }
 0x4b9   : > { %v4178_v44 = vadd.f32 %v4118_v51, %v9314_v58 }
 0x4ba   : > { %v4883_v8 = vadd.f32 %v9510_v4, %v4843_v46 }
 0x4bb   : > { %v4332_v47 = vadd.f32 %v4272_v10, %v4178_v44 }
 0x4bc   : > { %v4919_v23 = vmax.f32 %v4883_v8, 0.0 }
 0x4bd   : > { %v4612_v48 = vadd.f32 %v4552_v25, %v4332_v47 }
 0x4be   : > { %4955 = vst.msk [vmem:[%s9525_s22 + $0x98] sm:$0xff] %vm2692_vm6, %v4919_v23 }
 0x4bf   : > { %v4784_v27 = vpop.f32.mrf.mxu0  ;;  %v4554_v17 = vpop.f32.mrf.mxu3 }
 0x4c0   : > { %v4844_v45 = vadd.f32 %v4784_v27, %v4612_v48  ;;  %v4120_v56 = vpop.f32.mrf.mxu1 }
 0x4c1   : > { %v4179_v1 = vadd.f32 %v4120_v56, %v11260_v11 }
 0x4c2   : > { %v4884_v22 = vadd.f32 %v9510_v4, %v4844_v45 }
 0x4c3   : > { %v4333_v38 = vadd.f32 %v4274_v53, %v4179_v1  ;;  %v4284_v53 = vpop.f32.mrf.mxu2 }
 0x4c4   : > { %v4920_v19 = vmax.f32 %v4884_v22, 0.0  ;;  %v11264_v22 = vld [vmem:[#allocation66_spill] sm:$0xff] }
 0x4c5   : > { %v4613_v58 = vadd.f32 %v4554_v17, %v4333_v38 }
 0x4c6   : > { %4956 = vst.msk [vmem:[%s9525_s22 + $0xa0] sm:$0xff] %vm2692_vm6, %v4920_v19 }
 0x4c7   : > { %v4786_v2 = vpop.f32.mrf.mxu0  ;;  %v4557_v41 = vpop.f32.mrf.mxu3 }
 0x4c8   : > { %v4845_v10 = vadd.f32 %v4786_v2, %v4613_v58  ;;  %v4123_v35 = vpop.f32.mrf.mxu1 }
 0x4c9   : > { %v4180_v15 = vadd.f32 %v4123_v35, %v11261_v55 }
 0x4ca   : > { %v4885_v7 = vadd.f32 %v9510_v4, %v4845_v10 }
 0x4cb   : > { %v4334_v31 = vadd.f32 %v4277_v13, %v4180_v15  ;;  %v4287_v30 = vpop.f32.mrf.mxu2 }
 0x4cc   : > { %v4921_v49 = vmax.f32 %v4885_v7, 0.0 }
 0x4cd   : > { %v4614_v16 = vadd.f32 %v4557_v41, %v4334_v31 }
 0x4ce   : > { %4957 = vst.msk [vmem:[%s9525_s22 + $0xa8] sm:$0xff] %vm2692_vm6, %v4921_v49 }
 0x4cf   : > { %v4789_v62 = vpop.f32.mrf.mxu0  ;;  %v4559_v34 = vpop.f32.mrf.mxu3 }
 0x4d0   : > { %v4846_v26 = vadd.f32 %v4789_v62, %v4614_v16  ;;  %v4125_v18 = vpop.f32.mrf.mxu1 }
 0x4d1   : > { %v4181_v14 = vadd.f32 %v4125_v18, %v11262_v54 }
 0x4d2   : > { %v4886_v50 = vadd.f32 %v9510_v4, %v4846_v26  ;;  %v11265_v26 = vld [vmem:[#allocation56_spill] sm:$0xff] }
 0x4d3   : > { %v4335_v52 = vadd.f32 %v4279_v20, %v4181_v14  ;;  %v4289_v25 = vpop.f32.mrf.mxu2 }
 0x4d4   : > { %v4922_v12 = vmax.f32 %v4886_v50, 0.0 }
 0x4d5   : > { %v4615_v61 = vadd.f32 %v4559_v34, %v4335_v52 }
 0x4d6   : > { %4958 = vst.msk [vmem:[%s9525_s22 + $0xb0] sm:$0xff] %vm2692_vm6, %v4922_v12 }
 0x4d7   : > { %v4791_v43 = vpop.f32.mrf.mxu0  ;;  %v4562_v29 = vpop.f32.mrf.mxu3 }
 0x4d8   : > { %v4847_v33 = vadd.f32 %v4791_v43, %v4615_v61  ;;  %v4128_v39 = vpop.f32.mrf.mxu1 }
 0x4d9   : > { %v4182_v59 = vadd.f32 %v4128_v39, %v11263_v36 }
 0x4da   : > { %v4887_v13 = vadd.f32 %v9510_v4, %v4847_v33 }
 0x4db   : > { %v4336_v21 = vadd.f32 %v4282_v63, %v4182_v59  ;;  %v4292_v19 = vpop.f32.mrf.mxu2 }
 0x4dc   : > { %v4923_v5 = vmax.f32 %v4887_v13, 0.0 }
 0x4dd   : > { %v4616_v37 = vadd.f32 %v4562_v29, %v4336_v21 }
 0x4de   : > { %4959 = vst.msk [vmem:[%s9525_s22 + $0xb8] sm:$0xff] %vm2692_vm6, %v4923_v5 }
 0x4df   : > { %v4794_v40 = vpop.f32.mrf.mxu0  ;;  %v4564_v51 = vpop.f32.mrf.mxu3 }
 0x4e0   : > { %v4848_v57 = vadd.f32 %v4794_v40, %v4616_v37  ;;  %v4130_v6 = vpop.f32.mrf.mxu1 }
 0x4e1   : > { %v4183_v8 = vadd.f32 %v4130_v6, %v9380_v3 }
 0x4e2   : > { %v4888_v46 = vadd.f32 %v9510_v4, %v4848_v57 }
 0x4e3   : > { %v4337_v20 = vadd.f32 %v4284_v53, %v4183_v8  ;;  %v4294_v49 = vpop.f32.mrf.mxu2 }
 0x4e4   : > { %v4924_v44 = vmax.f32 %v4888_v46, 0.0 }
 0x4e5   : > { %v4617_v23 = vadd.f32 %v4564_v51, %v4337_v20  ;;  %v11266_v20 = vld [vmem:[#allocation55_spill] sm:$0xff] }
 0x4e6   : > { %4960 = vst.msk [vmem:[%s9525_s22 + $0xc0] sm:$0xff] %vm2692_vm6, %v4924_v44 }
 0x4e7   : > { %v4796_v47 = vpop.f32.mrf.mxu0  ;;  %v4567_v56 = vpop.f32.mrf.mxu3 }
 0x4e8   : > { %v4849_v48 = vadd.f32 %v4796_v47, %v4617_v23  ;;  %v4133_v27 = vpop.f32.mrf.mxu1 }
 0x4e9   : > { %v4184_v17 = vadd.f32 %v4133_v27, %v11264_v22 }
 0x4ea   : > { %v4889_v45 = vadd.f32 %v9510_v4, %v4849_v48 }
 0x4eb   : > { %v4338_v1 = vadd.f32 %v4287_v30, %v4184_v17  ;;  %v4297_v12 = vpop.f32.mrf.mxu2 }
 0x4ec   : > { %v4925_v11 = vmax.f32 %v4889_v45, 0.0 }
 0x4ed   : > { %v4618_v3 = vadd.f32 %v4567_v56, %v4338_v1 }
 0x4ee   : > { %4961 = vst.msk [vmem:[%s9525_s22 + $0xc8] sm:$0xff] %vm2692_vm6, %v4925_v11 }
 0x4ef   : > { %v4799_v38 = vpop.f32.mrf.mxu0  ;;  %v4569_v10 = vpop.f32.mrf.mxu3 }
 0x4f0   : > { %v4850_v63 = vadd.f32 %v4799_v38, %v4618_v3  ;;  %v4135_v58 = vpop.f32.mrf.mxu1 }
 0x4f1   : > { %v4185_v35 = vadd.f32 %v4135_v58, %v9404_v28 }
 0x4f2   : > { %v4890_v2 = vadd.f32 %v9510_v4, %v4850_v63 }
 0x4f3   : > { %v4339_v41 = vadd.f32 %v4289_v25, %v4185_v35  ;;  %v4299_v40 = vpop.f32.mrf.mxu2 }
 0x4f4   : > { %v4926_v7 = vmax.f32 %v4890_v2, 0.0 }
 0x4f5   : > { %v4619_v55 = vadd.f32 %v4569_v10, %v4339_v41 }
 0x4f6   : > { %4962 = vst.msk [vmem:[%s9525_s22 + $0xd0] sm:$0xff] %vm2692_vm6, %v4926_v7 }
 0x4f7   : > { %v4801_v15 = vpop.f32.mrf.mxu0  ;;  %v4572_v53 = vpop.f32.mrf.mxu3 }
 0x4f8   : > { %v4851_v31 = vadd.f32 %v4801_v15, %v4619_v55  ;;  %v4138_v16 = vpop.f32.mrf.mxu1 }
 0x4f9   : > { %v4186_v18 = vadd.f32 %v4138_v16, %v11265_v26 }
 0x4fa   : > { %v4891_v62 = vadd.f32 %v9510_v4, %v4851_v31 }
 0x4fb   : > { %v4340_v34 = vadd.f32 %v4292_v19, %v4186_v18  ;;  %v4302_v27 = vpop.f32.mrf.mxu2 }
 0x4fc   : > { %v4927_v50 = vmax.f32 %v4891_v62, 0.0 }
 0x4fd   : > { %v4620_v28 = vadd.f32 %v4572_v53, %v4340_v34 }
 0x4fe   : > { %4963 = vst.msk [vmem:[%s9525_s22 + $0xd8] sm:$0xff] %vm2692_vm6, %v4927_v50 }
 0x4ff   : > { %v4804_v54 = vpop.f32.mrf.mxu0  ;;  %v4574_v43 = vpop.f32.mrf.mxu3 }
 0x500   : > { %v4852_v14 = vadd.f32 %v4804_v54, %v4620_v28  ;;  %v4140_v52 = vpop.f32.mrf.mxu1 }
 0x501   : > { %v4187_v33 = vadd.f32 %v4140_v52, %v9426_v60 }
 0x502   : > { %v4892_v61 = vadd.f32 %v9510_v4, %v4852_v14 }
 0x503   : > { %v4341_v39 = vadd.f32 %v4294_v49, %v4187_v33  ;;  %v4304_v58 = vpop.f32.mrf.mxu2 }
 0x504   : > { %v4928_v30 = vmax.f32 %v4892_v61, 0.0 }
 0x505   : > { %v4621_v13 = vadd.f32 %v4574_v43, %v4341_v39 }
 0x506   : > { %4964 = vst.msk [vmem:[%s9525_s22 + $0xe0] sm:$0xff] %vm2692_vm6, %v4928_v30 }
 0x507   : > { %v4806_v29 = vpop.f32.mrf.mxu0  ;;  %v4577_v21 = vpop.f32.mrf.mxu3 }
 0x508   : > { %v4853_v36 = vadd.f32 %v4806_v29, %v4621_v13  ;;  %v4143_v59 = vpop.f32.mrf.mxu1 }
 0x509   : > { %v4188_v37 = vadd.f32 %v4143_v59, %v9434_v32 }
 0x50a   : > { %v4893_v5 = vadd.f32 %v9510_v4, %v4853_v36 }
 0x50b   : > { %v4342_v6 = vadd.f32 %v4297_v12, %v4188_v37  ;;  %v4307_v16 = vpop.f32.mrf.mxu2 }
 0x50c   : > { %v4929_v57 = vmax.f32 %v4893_v5, 0.0 }
 0x50d   : > { %v4622_v60 = vadd.f32 %v4577_v21, %v4342_v6 }
 0x50e   : > { %4965 = vst.msk [vmem:[%s9525_s22 + $0xe8] sm:$0xff] %vm2692_vm6, %v4929_v57 }
 0x50f   : > { %v4809_v46 = vpop.f32.mrf.mxu0  ;;  %v4579_v44 = vpop.f32.mrf.mxu3 }
 0x510   : > { %v4854_v51 = vadd.f32 %v4809_v46, %v4622_v60  ;;  %v4145_v8 = vpop.f32.mrf.mxu1 }
 0x511   : > { %v4189_v23 = vadd.f32 %v4145_v8, %v11266_v20 }
 0x512   : > { %v4894_v25 = vadd.f32 %v9510_v4, %v4854_v51 }
 0x513   : > { %v4343_v48 = vadd.f32 %v4299_v40, %v4189_v23  ;;  %v4309_v61 = vpop.f32.mrf.mxu2 }
 0x514   : > { %v4930_v47 = vmax.f32 %v4894_v25, 0.0 }
 0x515   : > { %v4623_v32 = vadd.f32 %v4579_v44, %v4343_v48 }
 0x516   : > { %4966 = vst.msk [vmem:[%s9525_s22 + $0xf0] sm:$0xff] %vm2692_vm6, %v4930_v47 }
 0x517   : > { %v4811_v45 = vpop.f32.mrf.mxu0  ;;  %v4582_v11 = vpop.f32.mrf.mxu3 }
 0x518   : > { %v4855_v56 = vadd.f32 %v4811_v45, %v4623_v32  ;;  %v4148_v22 = vpop.f32.mrf.mxu1 }
 0x519   : > { %v4190_v1 = vadd.f32 %v4148_v22, %v9457_v42 }
 0x51a   : > { %v4895_v17 = vadd.f32 %v9510_v4, %v4855_v56 }
 0x51b   : > { %v4344_v3 = vadd.f32 %v4302_v27, %v4190_v1 }
 0x51c   : > { %v4931_v19 = vmax.f32 %v4895_v17, 0.0 }
 0x51d   : > { %v4624_v38 = vadd.f32 %v4582_v11, %v4344_v3 }
 0x51e   : > { %4967 = vst.msk [vmem:[%s9525_s22 + $0xf8] sm:$0xff] %vm2692_vm6, %v4931_v19 }
 0x51f   : > { %v4814_v63 = vpop.f32.mrf.mxu0  ;;  %v4584_v7 = vpop.f32.mrf.mxu3 }
 0x520   : > { %v4856_v2 = vadd.f32 %v4814_v63, %v4624_v38  ;;  %v4150_v10 = vpop.f32.mrf.mxu1 }
 0x521   : > { %v4191_v41 = vadd.f32 %v4150_v10, %v9473_v9 }
 0x522   : > { %v4896_v35 = vadd.f32 %v9510_v4, %v4856_v2 }
 0x523   : > { %v4345_v15 = vadd.f32 %v4304_v58, %v4191_v41 }
 0x524   : > { %v4932_v55 = vmax.f32 %v4896_v35, 0.0 }
 0x525   : > { %v4625_v42 = vadd.f32 %v4584_v7, %v4345_v15 }
 0x526   : > { %4968 = vst.msk [vmem:[%s9525_s22 + $0x100] sm:$0xff] %vm2692_vm6, %v4932_v55 }
 0x527   : > { %v4816_v49 = vpop.f32.mrf.mxu0  ;;  %v4587_v18 = vpop.f32.mrf.mxu3 }
 0x528   : > { %v4857_v31 = vadd.f32 %v4816_v49, %v4625_v42  ;;  %v4153_v62 = vpop.f32.mrf.mxu1 }
 0x529   : > { %v4192_v26 = vadd.f32 %v4153_v62, %v9483_v24 }
 0x52a   : > { %v4897_v53 = vadd.f32 %v9510_v4, %v4857_v31 }
 0x52b   : > { %v4346_v34 = vadd.f32 %v4307_v16, %v4192_v26 }
 0x52c   : > { %v4933_v50 = vmax.f32 %v4897_v53, 0.0 }
 0x52d   : > { %v4626_v9 = vadd.f32 %v4587_v18, %v4346_v34 }
 0x52e   : > { %4969 = vst.msk [vmem:[%s9525_s22 + $0x108] sm:$0xff] %vm2692_vm6, %v4933_v50 }
 0x52f   : > { %v4819_v28 = vpop.f32.mrf.mxu0  ;;  %v4589_v30 = vpop.f32.mrf.mxu3 }
 0x530   : > { %v4858_v54 = vadd.f32 %v4819_v28, %v4626_v9  ;;  %v4155_v14 = vpop.f32.mrf.mxu1 }
 0x531   : > { %v4193_v52 = vadd.f32 %v4155_v14, %v9499_v0 }
 0x532   : > { %v4898_v12 = vadd.f32 %v9510_v4, %v4858_v54 }
 0x533   : > { %v4347_v33 = vadd.f32 %v4309_v61, %v4193_v52 }
 0x534   : > { %v4934_v43 = vmax.f32 %v4898_v12, 0.0 }
 0x535   : > { %v4627_v24 = vadd.f32 %v4589_v30, %v4347_v33 }
 0x536   : > { %4970 = vst.msk [vmem:[%s9525_s22 + $0x110] sm:$0xff] %vm2692_vm6, %v4934_v43 }
 0x537   : > { %v4821_v39 = vpop.f32.mrf.mxu0 }
 0x538   : > { %v4859_v13 = vadd.f32 %v4821_v39, %v4627_v24 }
 0x53a   : > { %v4899_v29 = vadd.f32 %v9510_v4, %v4859_v13 }
 0x53c   : > { %v4935_v36 = vmax.f32 %v4899_v29, 0.0 }
 0x53e   : > { %4971 = vst.msk [vmem:[%s9525_s22 + $0x118] sm:$0xff] %vm2692_vm6, %v4935_v36 }
 0x53f PF: > { %s16_s21 = sadd.s32 1, %s5242_s21  }
 0x540   : > { %p13_p4 = scmp.ge.s32.totalorder %s16_s21, 4  }
 0x542   :  { %15 = sbr.rel (!%p13_p4) target bundleno = 1 (0x1), region = 90 }

</bundles_post_ra>
